<compile_context>
chip_gen: v7x
topology: tpu7x:2x2x1
jax: 0.10.0
libtpu: 0.0.40
codegen_flags: <defaults>
</compile_context>

<pallas_src>
import functools

import jax
import jax.numpy as jnp
from jax import lax
from jax.experimental import pallas as pl
from jax.experimental.pallas import tpu as pltpu

FC_K_TILE = 1792  # fc1 contraction tile (multiple of 128); 5184 -> 5376 = 3 steps


def _round_up(x, m):
    return (x + m - 1) // m * m


# ---------------------------------------------------------------------------
# Kernel 1: single-K-step GEMM,  out = act(x @ w + b).
# M is tiled on a "parallel" grid axis; weights/bias arrive pre-padded, so the
# body is one MXU pass + bias + ReLU per M tile (no scratch, no K loop).
# ---------------------------------------------------------------------------
def _mm_bias_act_kernel(x_ref, w_ref, b_ref, o_ref, *, relu):
    y = jnp.dot(x_ref[...], w_ref[...], preferred_element_type=jnp.float32)
    y = y + b_ref[...]
    if relu:
        y = jnp.maximum(y, 0.0)
    o_ref[...] = y.astype(o_ref.dtype)


def matmul_bias_act(x, w, b, *, relu, tm_max=512):
    """y = act(x @ w + b).

    x: (M, K) f32 (unpadded).  w: (Kp, Np) pre-padded (Kp, Np multiples of
    128 / K zero-padded).  b: (1, Np).  Returns (M, Np); caller slices N.
    """
    M, K = x.shape
    Kp, Np = w.shape

    # M tiling: single tile if small, else ~even tiles <= tm_max (parallel axis).
    Mp = _round_up(M, 8)
    if Mp <= tm_max:
        tm = Mp
    else:
        nt = -(-Mp // tm_max)               # cdiv
        tm = _round_up(-(-Mp // nt), 8)
        Mp = nt * tm

    if (Mp, Kp) != (M, K):                  # pad activations only (cheap)
        x = jnp.zeros((Mp, Kp), x.dtype).at[:M, :K].set(x)

    out = pl.pallas_call(
        functools.partial(_mm_bias_act_kernel, relu=relu),
        out_shape=jax.ShapeDtypeStruct((Mp, Np), jnp.float32),
        grid_spec=pltpu.PrefetchScalarGridSpec(
            num_scalar_prefetch=0,
            grid=(Mp // tm,),
            in_specs=[
                pl.BlockSpec((tm, Kp), lambda i: (i, 0)),
                pl.BlockSpec((Kp, Np), lambda i: (0, 0)),
                pl.BlockSpec((1, Np), lambda i: (0, 0)),
            ],
            out_specs=pl.BlockSpec((tm, Np), lambda i: (i, 0)),
        ),
        compiler_params=pltpu.CompilerParams(
            dimension_semantics=("parallel",),
        ),
    )(x, w, b)
    return out[:M]


# ---------------------------------------------------------------------------
# Kernel 2: fused fc1 (K-tiled, accumulated in VMEM) + ReLU + fc2 + bias.
# Only the tiny (B, action_dim_padded) result ever leaves VMEM.
# ---------------------------------------------------------------------------
def _fc_fused_kernel(x_ref, w1_ref, b1_ref, w2_ref, b2_ref, o_ref, acc_ref):
    k = pl.program_id(0)

    @pl.when(k == 0)
    def _():
        acc_ref[...] = jnp.zeros_like(acc_ref)

    acc_ref[...] += jnp.dot(x_ref[...], w1_ref[...],
                            preferred_element_type=jnp.float32)

    @pl.when(k == pl.num_programs(0) - 1)
    def _():
        h = jnp.maximum(acc_ref[...] + b1_ref[...], 0.0)          # fc1 + ReLU
        o_ref[...] = (jnp.dot(h, w2_ref[...],
                              preferred_element_type=jnp.float32)
                      + b2_ref[...]).astype(o_ref.dtype)          # fc2


def fc_head(x, w1p, b1p, w2p, b2p, *, tk=FC_K_TILE):
    """x: (B, K1) NHWC-flattened conv3 output.  w1p: (K1p, H), b1p: (1, H),
    w2p: (H, Np2), b2p: (1, Np2) — all pre-padded.  Returns (B, Np2)."""
    B, K1 = x.shape
    K1p, Hd = w1p.shape
    _, Np2 = w2p.shape
    assert K1p % tk == 0, (K1p, tk)
    Mp = _round_up(B, 8)
    xp = jnp.zeros((Mp, K1p), x.dtype).at[:B, :K1].set(x)

    out = pl.pallas_call(
        _fc_fused_kernel,
        out_shape=jax.ShapeDtypeStruct((Mp, Np2), jnp.float32),
        grid_spec=pltpu.PrefetchScalarGridSpec(
            num_scalar_prefetch=0,
            grid=(K1p // tk,),
            in_specs=[
                pl.BlockSpec((Mp, tk), lambda k: (0, k)),
                pl.BlockSpec((tk, Hd), lambda k: (k, 0)),
                pl.BlockSpec((1, Hd), lambda k: (0, 0)),
                pl.BlockSpec((Hd, Np2), lambda k: (0, 0)),
                pl.BlockSpec((1, Np2), lambda k: (0, 0)),
            ],
            out_specs=pl.BlockSpec((Mp, Np2), lambda k: (0, 0)),
            scratch_shapes=[pltpu.VMEM((Mp, Hd), jnp.float32)],
        ),
        compiler_params=pltpu.CompilerParams(
            dimension_semantics=("arbitrary",),
        ),
    )(xp, w1p, b1p, w2p, b2p)
    return out[:B]


# ---------------------------------------------------------------------------
# Conv layer = patches (XLA) + Pallas GEMM.  Activations stay NHWC throughout.
# ---------------------------------------------------------------------------
def conv2d_relu_nhwc(x, wp, bp, kh, kw, stride, oc):
    """x: (B, H, W, C) NHWC.  wp: (Kp, Np) pre-packed GEMM weight with
    feature order (C, KH, KW).  Returns (B, OH, OW, oc) NHWC."""
    B, H, W, C = x.shape
    OH = (H - kh) // stride + 1
    OW = (W - kw) // stride + 1
    # Patch feature order is (C, KH, KW) == torch weight.reshape(OC, -1) order.
    patches = lax.conv_general_dilated_patches(
        x, (kh, kw), (stride, stride), "VALID",
        dimension_numbers=("NHWC", "HWIO", "NHWC"))
    patches = patches.reshape(B * OH * OW, C * kh * kw)
    y = matmul_bias_act(patches, wp, bp, relu=True)
    return y[:, :oc].reshape(B, OH, OW, oc)


# ---------------------------------------------------------------------------
# One-time parameter repacking (padding / transposes done offline, not per call)
# ---------------------------------------------------------------------------
def prepare_params(params, *, fc_k_tile=FC_K_TILE):
    def pack_conv(w, b):
        oc, ic, kh, kw = w.shape
        k = ic * kh * kw
        kp = _round_up(k, 128)
        npad = _round_up(oc, 128)
        wp = jnp.zeros((kp, npad), jnp.float32).at[:k, :oc].set(
            w.reshape(oc, k).T)
        bp = jnp.zeros((1, npad), jnp.float32).at[0, :oc].set(b)
        return wp, bp

    p = {}
    p["w1"], p["b1"] = pack_conv(params["w1"], params["b1"])
    p["w2"], p["b2"] = pack_conv(params["w2"], params["b2"])
    p["w3"], p["b3"] = pack_conv(params["w3"], params["b3"])

    # fc1: torch flattens NCHW as (C, H, W); our activations flatten NHWC as
    # (H, W, C) -> permute fc1's columns once, offline.
    fw1 = params["fw1"]                          # (hidden, C*H*W)
    hidden, k1 = fw1.shape
    c3 = params["w3"].shape[0]
    hw = int(round((k1 // c3) ** 0.5))           # 9
    fw1 = fw1.reshape(hidden, c3, hw, hw).transpose(0, 2, 3, 1).reshape(hidden, k1)
    k1p = _round_up(k1, fc_k_tile)
    p["fw1"] = jnp.zeros((k1p, hidden), jnp.float32).at[:k1, :].set(fw1.T)
    p["fb1"] = params["fb1"].reshape(1, hidden)

    fw2 = params["fw2"]                          # (action_dim, hidden)
    act_dim = fw2.shape[0]
    np2 = _round_up(act_dim, 128)
    p["fw2"] = jnp.zeros((hidden, np2), jnp.float32).at[:, :act_dim].set(fw2.T)
    p["fb2"] = jnp.zeros((1, np2), jnp.float32).at[0, :act_dim].set(params["fb2"])
    return p


# ---------------------------------------------------------------------------
# DQNNetwork forward
# ---------------------------------------------------------------------------
def make_forward(num_filters, filter_sizes, strides, action_dim):
    f1, f2, f3 = num_filters
    s1, s2, s3 = filter_sizes
    t1, t2, t3 = strides

    @jax.jit
    def fwd(pp, state):
        x = jnp.transpose(state, (0, 2, 3, 1))                 # NCHW -> NHWC once
        x = conv2d_relu_nhwc(x, pp["w1"], pp["b1"], s1, s1, t1, f1)
        x = conv2d_relu_nhwc(x, pp["w2"], pp["b2"], s2, s2, t2, f2)
        x = conv2d_relu_nhwc(x, pp["w3"], pp["b3"], s3, s3, t3, f3)
        x = x.reshape(state.shape[0], -1)                      # NHWC flatten
        y = fc_head(x, pp["fw1"], pp["fb1"], pp["fw2"], pp["fb2"])
        return y[:, :action_dim]

    return fwd
# TODO(synk): self.criterion (SmoothL1Loss) is not part of forward(); not implemented.
# TODO(synk): further fusion (conv3 + fc head in one pallas_call) is possible but
#             omitted for clarity.


# Pure-JAX reference (mirrors the PyTorch module exactly).
def reference_forward(params, state):
    def conv(x, w, b, s):
        y = lax.conv_general_dilated(
            x, w, (s, s), "VALID", dimension_numbers=("NCHW", "OIHW", "NCHW"))
        return jax.nn.relu(y + b[None, :, None, None])

    x = conv(state, params["w1"], params["b1"], 4)
    x = conv(x, params["w2"], params["b2"], 2)
    x = conv(x, params["w3"], params["b3"], 1)
    x = x.reshape(state.shape[0], -1)
    x = jax.nn.relu(x @ params["fw1"].T + params["fb1"])
    return x @ params["fw2"].T + params["fb2"]


def init_params(key, in_ch, action_dim, num_filters, filter_sizes, fc_hidden):
    def uinit(k, shape, fan_in):
        bound = 1.0 / jnp.sqrt(fan_in)
        return jax.random.uniform(k, shape, jnp.float32, -bound, bound)

    ks = jax.random.split(key, 10)
    f1, f2, f3 = num_filters
    s1, s2, s3 = filter_sizes
    return {
        "w1": uinit(ks[0], (f1, in_ch, s1, s1), in_ch * s1 * s1),
        "b1": uinit(ks[1], (f1,), in_ch * s1 * s1),
        "w2": uinit(ks[2], (f2, f1, s2, s2), f1 * s2 * s2),
        "b2": uinit(ks[3], (f2,), f1 * s2 * s2),
        "w3": uinit(ks[4], (f3, f2, s3, s3), f2 * s3 * s3),
        "b3": uinit(ks[5], (f3,), f2 * s3 * s3),
        "fw1": uinit(ks[6], (fc_hidden, f3 * 9 * 9), f3 * 9 * 9),
        "fb1": uinit(ks[7], (fc_hidden,), f3 * 9 * 9),
        "fw2": uinit(ks[8], (action_dim, fc_hidden), fc_hidden),
        "fb2": uinit(ks[9], (action_dim,), fc_hidden),
    }


if __name__ == "__main__":
    key = jax.random.PRNGKey(0)
    k_param, k_state = jax.random.split(key)

    batch = 2
    input_dim = (4, 100, 100)        # 100x100 -> 24 -> 11 -> 9 spatial (matches fc1)
    action_dim = 6
    num_filters = [32, 64, 64]
    filter_sizes = [8, 4, 3]
    strides = [4, 2, 1]
    fc_hidden = 512

    params = init_params(
        k_param, input_dim[0], action_dim, num_filters, filter_sizes, fc_hidden)
    state = jax.random.normal(k_state, (batch,) + input_dim, jnp.float32)

    prepped = prepare_params(params)                 # one-time weight repack
    forward = make_forward(num_filters, filter_sizes, strides, action_dim)

    q_values = jax.block_until_ready(forward(prepped, state))
    q_ref = jax.block_until_ready(reference_forward(params, state))

    assert q_values.shape == (batch, action_dim), q_values.shape
    assert jnp.allclose(q_values, q_ref, rtol=2e-4, atol=2e-4), (
        float(jnp.max(jnp.abs(q_values - q_ref))))
    print("KERNEL_OK")
</pallas_src>

<mosaic_0001>
module attributes {stable_mosaic.version = 11 : i64} {
  func.func @_mm_bias_act_kernel(%arg0: i32, %arg1: memref<384x256xf32, #tpu.memory_space<vmem>>, %arg2: memref<256x128xf32, #tpu.memory_space<vmem>>, %arg3: memref<1x128xf32, #tpu.memory_space<vmem>>, %arg4: memref<384x128xf32, #tpu.memory_space<vmem>>) attributes {dimension_semantics = [#tpu.dimension_semantics<parallel>], iteration_bounds = array<i64: 3>, scalar_prefetch = 0 : i64, scratch_operands = 0 : i64, tpu.core_type = #tpu.core_type<tc>, window_params = [{transform_indices = @transform_0, window_bounds = array<i64: 384, 256>}, {pipeline_mode = #tpu.pipeline_mode<synchronous>, transform_indices = @transform_1, window_bounds = array<i64: 256, 128>}, {pipeline_mode = #tpu.pipeline_mode<synchronous>, transform_indices = @transform_2, window_bounds = array<i64: 1, 128>}, {transform_indices = @transform_3, window_bounds = array<i64: 384, 128>}]} {
    %c0 = arith.constant 0 : index
    %c0_0 = arith.constant 0 : index
    %0 = vector.load %arg1[%c0, %c0_0] : memref<384x256xf32, #tpu.memory_space<vmem>>, vector<384x256xf32>
    %c0_1 = arith.constant 0 : index
    %c0_2 = arith.constant 0 : index
    %1 = vector.load %arg2[%c0_1, %c0_2] : memref<256x128xf32, #tpu.memory_space<vmem>>, vector<256x128xf32>
    %cst = arith.constant dense<0.000000e+00> : vector<384x128xf32>
    %2 = tpu.matmul %0, %1, %cst {dimension_numbers = #tpu.dot_dimension_numbers<[1], [0], [0], [1], [0, 0, 1, 1], [], []>} : vector<384x256xf32>, vector<256x128xf32>, vector<384x128xf32> -> vector<384x128xf32>
    %c0_3 = arith.constant 0 : index
    %c0_4 = arith.constant 0 : index
    %3 = vector.load %arg3[%c0_3, %c0_4] : memref<1x128xf32, #tpu.memory_space<vmem>>, vector<1x128xf32>
    %4 = vector.broadcast %3 : vector<1x128xf32> to vector<384x128xf32>
    %5 = arith.addf %2, %4 : vector<384x128xf32>
    %cst_5 = arith.constant 0.000000e+00 : f32
    %6 = vector.broadcast %cst_5 : f32 to vector<384x128xf32>
    %7 = arith.maximumf %5, %6 : vector<384x128xf32>
    %c0_6 = arith.constant 0 : index
    %c0_7 = arith.constant 0 : index
    %8 = vector.load %arg4[%c0_6, %c0_7] : memref<384x128xf32, #tpu.memory_space<vmem>>, vector<384x128xf32>
    tpu.vector_store %arg4[%c0_6, %c0_7], %7 {strides = array<i32>} : memref<384x128xf32, #tpu.memory_space<vmem>>, vector<384x128xf32>,
    return
  }
  func.func @transform_0(%arg0: i32) -> (i32, i32) {
    %c0_i32 = arith.constant 0 : i32
    %c0_i32_0 = arith.constant 0 : i32
    return %arg0, %c0_i32 : i32, i32
  }
  func.func @transform_1(%arg0: i32) -> (i32, i32) {
    %c0_i32 = arith.constant 0 : i32
    %c0_i32_0 = arith.constant 0 : i32
    %c0_i32_1 = arith.constant 0 : i32
    return %c0_i32, %c0_i32_0 : i32, i32
  }
  func.func @transform_2(%arg0: i32) -> (i32, i32) {
    %c0_i32 = arith.constant 0 : i32
    %c0_i32_0 = arith.constant 0 : i32
    %c0_i32_1 = arith.constant 0 : i32
    return %c0_i32, %c0_i32_0 : i32, i32
  }
  func.func @transform_3(%arg0: i32) -> (i32, i32) {
    %c0_i32 = arith.constant 0 : i32
    %c0_i32_0 = arith.constant 0 : i32
    return %arg0, %c0_i32 : i32, i32
  }
}

module attributes {stable_mosaic.version = 11 : i64} {
  func.func @_mm_bias_act_kernel(%arg0: i32, %arg1: memref<248x512xf32, #tpu.memory_space<vmem>>, %arg2: memref<512x128xf32, #tpu.memory_space<vmem>>, %arg3: memref<1x128xf32, #tpu.memory_space<vmem>>, %arg4: memref<248x128xf32, #tpu.memory_space<vmem>>) attributes {dimension_semantics = [#tpu.dimension_semantics<parallel>], iteration_bounds = array<i64: 1>, scalar_prefetch = 0 : i64, scratch_operands = 0 : i64, tpu.core_type = #tpu.core_type<tc>, window_params = [{transform_indices = @transform_0, window_bounds = array<i64: 248, 512>}, {pipeline_mode = #tpu.pipeline_mode<synchronous>, transform_indices = @transform_1, window_bounds = array<i64: 512, 128>}, {pipeline_mode = #tpu.pipeline_mode<synchronous>, transform_indices = @transform_2, window_bounds = array<i64: 1, 128>}, {transform_indices = @transform_3, window_bounds = array<i64: 248, 128>}]} {
    %c0 = arith.constant 0 : index
    %c0_0 = arith.constant 0 : index
    %0 = vector.load %arg1[%c0, %c0_0] : memref<248x512xf32, #tpu.memory_space<vmem>>, vector<248x512xf32>
    %c0_1 = arith.constant 0 : index
    %c0_2 = arith.constant 0 : index
    %1 = vector.load %arg2[%c0_1, %c0_2] : memref<512x128xf32, #tpu.memory_space<vmem>>, vector<512x128xf32>
    %cst = arith.constant dense<0.000000e+00> : vector<248x128xf32>
    %2 = tpu.matmul %0, %1, %cst {dimension_numbers = #tpu.dot_dimension_numbers<[1], [0], [0], [1], [0, 0, 1, 1], [], []>} : vector<248x512xf32>, vector<512x128xf32>, vector<248x128xf32> -> vector<248x128xf32>
    %c0_3 = arith.constant 0 : index
    %c0_4 = arith.constant 0 : index
    %3 = vector.load %arg3[%c0_3, %c0_4] : memref<1x128xf32, #tpu.memory_space<vmem>>, vector<1x128xf32>
    %4 = vector.broadcast %3 : vector<1x128xf32> to vector<248x128xf32>
    %5 = arith.addf %2, %4 : vector<248x128xf32>
    %cst_5 = arith.constant 0.000000e+00 : f32
    %6 = vector.broadcast %cst_5 : f32 to vector<248x128xf32>
    %7 = arith.maximumf %5, %6 : vector<248x128xf32>
    %c0_6 = arith.constant 0 : index
    %c0_7 = arith.constant 0 : index
    %8 = vector.load %arg4[%c0_6, %c0_7] : memref<248x128xf32, #tpu.memory_space<vmem>>, vector<248x128xf32>
    tpu.vector_store %arg4[%c0_6, %c0_7], %7 {strides = array<i32>} : memref<248x128xf32, #tpu.memory_space<vmem>>, vector<248x128xf32>,
    return
  }
  func.func @transform_0(%arg0: i32) -> (i32, i32) {
    %c0_i32 = arith.constant 0 : i32
    %c0_i32_0 = arith.constant 0 : i32
    return %arg0, %c0_i32 : i32, i32
  }
  func.func @transform_1(%arg0: i32) -> (i32, i32) {
    %c0_i32 = arith.constant 0 : i32
    %c0_i32_0 = arith.constant 0 : i32
    %c0_i32_1 = arith.constant 0 : i32
    return %c0_i32, %c0_i32_0 : i32, i32
  }
  func.func @transform_2(%arg0: i32) -> (i32, i32) {
    %c0_i32 = arith.constant 0 : i32
    %c0_i32_0 = arith.constant 0 : i32
    %c0_i32_1 = arith.constant 0 : i32
    return %c0_i32, %c0_i32_0 : i32, i32
  }
  func.func @transform_3(%arg0: i32) -> (i32, i32) {
    %c0_i32 = arith.constant 0 : i32
    %c0_i32_0 = arith.constant 0 : i32
    return %arg0, %c0_i32 : i32, i32
  }
}

module attributes {stable_mosaic.version = 11 : i64} {
  func.func @_mm_bias_act_kernel(%arg0: i32, %arg1: memref<168x640xf32, #tpu.memory_space<vmem>>, %arg2: memref<640x128xf32, #tpu.memory_space<vmem>>, %arg3: memref<1x128xf32, #tpu.memory_space<vmem>>, %arg4: memref<168x128xf32, #tpu.memory_space<vmem>>) attributes {dimension_semantics = [#tpu.dimension_semantics<parallel>], iteration_bounds = array<i64: 1>, scalar_prefetch = 0 : i64, scratch_operands = 0 : i64, tpu.core_type = #tpu.core_type<tc>, window_params = [{transform_indices = @transform_0, window_bounds = array<i64: 168, 640>}, {pipeline_mode = #tpu.pipeline_mode<synchronous>, transform_indices = @transform_1, window_bounds = array<i64: 640, 128>}, {pipeline_mode = #tpu.pipeline_mode<synchronous>, transform_indices = @transform_2, window_bounds = array<i64: 1, 128>}, {transform_indices = @transform_3, window_bounds = array<i64: 168, 128>}]} {
    %c0 = arith.constant 0 : index
    %c0_0 = arith.constant 0 : index
    %0 = vector.load %arg1[%c0, %c0_0] : memref<168x640xf32, #tpu.memory_space<vmem>>, vector<168x640xf32>
    %c0_1 = arith.constant 0 : index
    %c0_2 = arith.constant 0 : index
    %1 = vector.load %arg2[%c0_1, %c0_2] : memref<640x128xf32, #tpu.memory_space<vmem>>, vector<640x128xf32>
    %cst = arith.constant dense<0.000000e+00> : vector<168x128xf32>
    %2 = tpu.matmul %0, %1, %cst {dimension_numbers = #tpu.dot_dimension_numbers<[1], [0], [0], [1], [0, 0, 1, 1], [], []>} : vector<168x640xf32>, vector<640x128xf32>, vector<168x128xf32> -> vector<168x128xf32>
    %c0_3 = arith.constant 0 : index
    %c0_4 = arith.constant 0 : index
    %3 = vector.load %arg3[%c0_3, %c0_4] : memref<1x128xf32, #tpu.memory_space<vmem>>, vector<1x128xf32>
    %4 = vector.broadcast %3 : vector<1x128xf32> to vector<168x128xf32>
    %5 = arith.addf %2, %4 : vector<168x128xf32>
    %cst_5 = arith.constant 0.000000e+00 : f32
    %6 = vector.broadcast %cst_5 : f32 to vector<168x128xf32>
    %7 = arith.maximumf %5, %6 : vector<168x128xf32>
    %c0_6 = arith.constant 0 : index
    %c0_7 = arith.constant 0 : index
    %8 = vector.load %arg4[%c0_6, %c0_7] : memref<168x128xf32, #tpu.memory_space<vmem>>, vector<168x128xf32>
    tpu.vector_store %arg4[%c0_6, %c0_7], %7 {strides = array<i32>} : memref<168x128xf32, #tpu.memory_space<vmem>>, vector<168x128xf32>,
    return
  }
  func.func @transform_0(%arg0: i32) -> (i32, i32) {
    %c0_i32 = arith.constant 0 : i32
    %c0_i32_0 = arith.constant 0 : i32
    return %arg0, %c0_i32 : i32, i32
  }
  func.func @transform_1(%arg0: i32) -> (i32, i32) {
    %c0_i32 = arith.constant 0 : i32
    %c0_i32_0 = arith.constant 0 : i32
    %c0_i32_1 = arith.constant 0 : i32
    return %c0_i32, %c0_i32_0 : i32, i32
  }
  func.func @transform_2(%arg0: i32) -> (i32, i32) {
    %c0_i32 = arith.constant 0 : i32
    %c0_i32_0 = arith.constant 0 : i32
    %c0_i32_1 = arith.constant 0 : i32
    return %c0_i32, %c0_i32_0 : i32, i32
  }
  func.func @transform_3(%arg0: i32) -> (i32, i32) {
    %c0_i32 = arith.constant 0 : i32
    %c0_i32_0 = arith.constant 0 : i32
    return %arg0, %c0_i32 : i32, i32
  }
}

module attributes {stable_mosaic.version = 11 : i64} {
  func.func @_fc_fused_kernel(%arg0: i32, %arg1: memref<8x1792xf32, #tpu.memory_space<vmem>>, %arg2: memref<1792x512xf32, #tpu.memory_space<vmem>>, %arg3: memref<1x512xf32, #tpu.memory_space<vmem>>, %arg4: memref<512x128xf32, #tpu.memory_space<vmem>>, %arg5: memref<1x128xf32, #tpu.memory_space<vmem>>, %arg6: memref<8x128xf32, #tpu.memory_space<vmem>>, %arg7: memref<8x512xf32, #tpu.memory_space<vmem>>) attributes {dimension_semantics = [#tpu.dimension_semantics<arbitrary>], iteration_bounds = array<i64: 3>, scalar_prefetch = 0 : i64, scratch_operands = 1 : i64, tpu.core_type = #tpu.core_type<tc>, window_params = [{transform_indices = @transform_0, window_bounds = array<i64: 8, 1792>}, {transform_indices = @transform_1, window_bounds = array<i64: 1792, 512>}, {pipeline_mode = #tpu.pipeline_mode<synchronous>, transform_indices = @transform_2, window_bounds = array<i64: 1, 512>}, {pipeline_mode = #tpu.pipeline_mode<synchronous>, transform_indices = @transform_3, window_bounds = array<i64: 512, 128>}, {pipeline_mode = #tpu.pipeline_mode<synchronous>, transform_indices = @transform_4, window_bounds = array<i64: 1, 128>}, {pipeline_mode = #tpu.pipeline_mode<synchronous>, transform_indices = @transform_5, window_bounds = array<i64: 8, 128>}]} {
    %c0_i32 = arith.constant 0 : i32
    %0 = arith.cmpi eq, %arg0, %c0_i32 : i32
    %1 = arith.extui %0 : i1 to i32
    %c0_i32_0 = arith.constant 0 : i32
    %2 = arith.cmpi ne, %1, %c0_i32_0 : i32
    scf.if %2 {
      %cst_9 = arith.constant 0.000000e+00 : f32
      %12 = vector.broadcast %cst_9 : f32 to vector<8x512xf32>
      %c0_10 = arith.constant 0 : index
      %c0_11 = arith.constant 0 : index
      %13 = vector.load %arg7[%c0_10, %c0_11] : memref<8x512xf32, #tpu.memory_space<vmem>>, vector<8x512xf32>
      tpu.vector_store %arg7[%c0_10, %c0_11], %12 {strides = array<i32>} : memref<8x512xf32, #tpu.memory_space<vmem>>, vector<8x512xf32>,
    } else {
    }
    %c0 = arith.constant 0 : index
    %c0_1 = arith.constant 0 : index
    %3 = vector.load %arg7[%c0, %c0_1] : memref<8x512xf32, #tpu.memory_space<vmem>>, vector<8x512xf32>
    %c0_2 = arith.constant 0 : index
    %c0_3 = arith.constant 0 : index
    %4 = vector.load %arg1[%c0_2, %c0_3] : memref<8x1792xf32, #tpu.memory_space<vmem>>, vector<8x1792xf32>
    %c0_4 = arith.constant 0 : index
    %c0_5 = arith.constant 0 : index
    %5 = vector.load %arg2[%c0_4, %c0_5] : memref<1792x512xf32, #tpu.memory_space<vmem>>, vector<1792x512xf32>
    %cst = arith.constant dense<0.000000e+00> : vector<8x512xf32>
    %6 = tpu.matmul %4, %5, %cst {dimension_numbers = #tpu.dot_dimension_numbers<[1], [0], [0], [1], [0, 0, 1, 1], [], []>} : vector<8x1792xf32>, vector<1792x512xf32>, vector<8x512xf32> -> vector<8x512xf32>
    %7 = arith.addf %3, %6 : vector<8x512xf32>
    %c0_6 = arith.constant 0 : index
    %c0_7 = arith.constant 0 : index
    %8 = vector.load %arg7[%c0_6, %c0_7] : memref<8x512xf32, #tpu.memory_space<vmem>>, vector<8x512xf32>
    tpu.vector_store %arg7[%c0_6, %c0_7], %7 {strides = array<i32>} : memref<8x512xf32, #tpu.memory_space<vmem>>, vector<8x512xf32>,
    %c2_i32 = arith.constant 2 : i32
    %9 = arith.cmpi eq, %arg0, %c2_i32 : i32
    %10 = arith.extui %9 : i1 to i32
    %c0_i32_8 = arith.constant 0 : i32
    %11 = arith.cmpi ne, %10, %c0_i32_8 : i32
    scf.if %11 {
      %c0_9 = arith.constant 0 : index
      %c0_10 = arith.constant 0 : index
      %12 = vector.load %arg7[%c0_9, %c0_10] : memref<8x512xf32, #tpu.memory_space<vmem>>, vector<8x512xf32>
      %c0_11 = arith.constant 0 : index
      %c0_12 = arith.constant 0 : index
      %13 = vector.load %arg3[%c0_11, %c0_12] : memref<1x512xf32, #tpu.memory_space<vmem>>, vector<1x512xf32>
      %14 = vector.broadcast %13 : vector<1x512xf32> to vector<8x512xf32>
      %15 = arith.addf %12, %14 : vector<8x512xf32>
      %cst_13 = arith.constant 0.000000e+00 : f32
      %16 = vector.broadcast %cst_13 : f32 to vector<8x512xf32>
      %17 = arith.maximumf %15, %16 : vector<8x512xf32>
      %c0_14 = arith.constant 0 : index
      %c0_15 = arith.constant 0 : index
      %18 = vector.load %arg4[%c0_14, %c0_15] : memref<512x128xf32, #tpu.memory_space<vmem>>, vector<512x128xf32>
      %cst_16 = arith.constant dense<0.000000e+00> : vector<8x128xf32>
      %19 = tpu.matmul %17, %18, %cst_16 {dimension_numbers = #tpu.dot_dimension_numbers<[1], [0], [0], [1], [0, 0, 1, 1], [], []>} : vector<8x512xf32>, vector<512x128xf32>, vector<8x128xf32> -> vector<8x128xf32>
      %c0_17 = arith.constant 0 : index
      %c0_18 = arith.constant 0 : index
      %20 = vector.load %arg5[%c0_17, %c0_18] : memref<1x128xf32, #tpu.memory_space<vmem>>, vector<1x128xf32>
      %21 = vector.broadcast %20 : vector<1x128xf32> to vector<8x128xf32>
      %22 = arith.addf %19, %21 : vector<8x128xf32>
      %c0_19 = arith.constant 0 : index
      %c0_20 = arith.constant 0 : index
      %23 = vector.load %arg6[%c0_19, %c0_20] : memref<8x128xf32, #tpu.memory_space<vmem>>, vector<8x128xf32>
      tpu.vector_store %arg6[%c0_19, %c0_20], %22 {strides = array<i32>} : memref<8x128xf32, #tpu.memory_space<vmem>>, vector<8x128xf32>,
    } else {
    }
    return
  }
  func.func @transform_0(%arg0: i32) -> (i32, i32) {
    %c0_i32 = arith.constant 0 : i32
    %c0_i32_0 = arith.constant 0 : i32
    return %c0_i32, %arg0 : i32, i32
  }
  func.func @transform_1(%arg0: i32) -> (i32, i32) {
    %c0_i32 = arith.constant 0 : i32
    %c0_i32_0 = arith.constant 0 : i32
    return %arg0, %c0_i32 : i32, i32
  }
  func.func @transform_2(%arg0: i32) -> (i32, i32) {
    %c0_i32 = arith.constant 0 : i32
    %c0_i32_0 = arith.constant 0 : i32
    %c0_i32_1 = arith.constant 0 : i32
    return %c0_i32, %c0_i32_0 : i32, i32
  }
  func.func @transform_3(%arg0: i32) -> (i32, i32) {
    %c0_i32 = arith.constant 0 : i32
    %c0_i32_0 = arith.constant 0 : i32
    %c0_i32_1 = arith.constant 0 : i32
    return %c0_i32, %c0_i32_0 : i32, i32
  }
  func.func @transform_4(%arg0: i32) -> (i32, i32) {
    %c0_i32 = arith.constant 0 : i32
    %c0_i32_0 = arith.constant 0 : i32
    %c0_i32_1 = arith.constant 0 : i32
    return %c0_i32, %c0_i32_0 : i32, i32
  }
  func.func @transform_5(%arg0: i32) -> (i32, i32) {
    %c0_i32 = arith.constant 0 : i32
    %c0_i32_0 = arith.constant 0 : i32
    %c0_i32_1 = arith.constant 0 : i32
    return %c0_i32, %c0_i32_0 : i32, i32
  }
}

</mosaic_0001>

<bundles_post_ra>
// kernel: fwd.4
= control target key start
LH: loop header
LB: loop body
LE: loop exit
PB: predicated region body
PF: predicated region fallthrough
CT: control target
= control target key end

     0   :  { %s899_s12 = smov 0   ;;  %s1249_s0 = inlined_call_operand.vmem [shape: f32[1152,256], index: 0, kind: input, shape index: {}]   ;;  %s1250_s1 = inlined_call_operand.vmem [shape: f32[256,128], index: 1, kind: input, shape index: {}]   ;;  %s1251_s2 = inlined_call_operand.vmem [shape: f32[1,128], index: 2, kind: input, shape index: {}]   ;;  %s1252_s3 = inlined_call_operand.vmem [shape: f32[1152,128], index: 3, kind: output, shape index: {}]  }
   0x1 LB: > { %s769_s13 = sadd.s32 4294967295, %s876_s12   ;;  %p773_p0 = scmp.ge.s32.totalorder %s876_s12, 1  ;;  %s876_s12 = sphi %s899_s12, %s13_s12  }
   0x2   : > { %p139_p1 = scmp.lt.s32.totalorder %s876_s12, 4 }
   0x4   : > { %p140_p2 = pnand %p773_p0, %p139_p1 }
   0x5   : > { %v273_v0 = vld [vmem:[%s1250_s1] sm:$0xff] (!%p140_p2)  ;;  %v274_v1 = vld [vmem:[%s1250_s1 + $0x8] sm:$0xff] (!%p140_p2)  ;;  %v275_v2 = vld [vmem:[%s1250_s1 + $0x10] sm:$0xff] (!%p140_p2)  ;;  %s164_s20 = smul.u32 (!%p140_p2), 48, %s769_s13  ;;  %v878_v3 = vmov (!%p140_p2), 0.0|0.0  }
   0x6   : > { %143 = sbr.rel (%p140_p2) target bundleno = 380 (0x17c), region = 32  ;;  %781 = vmatprep.subr.bf16.mxu0 (!%p140_p2), %v878_v3  ;;  %829 = vmatprep.subr.bf16.mxu1 (!%p140_p2), %v878_v3  ;;  %v782_v4 = vpack.c.bf16 (!%p140_p2), %v274_v1, %v273_v0  ;;  %v276_v5 = vld [vmem:[%s1250_s1 + $0x18] sm:$0xff] (!%p140_p2)  ;;  %v277_v7 = vld [vmem:[%s1250_s1 + $0x20] sm:$0xff] (!%p140_p2)  ;;  %v278_v8 = vld [vmem:[%s1250_s1 + $0x28] sm:$0xff] (!%p140_p2) }
   0x7   : > { %p165_p3 = scmp.lt.s32.totalorder (!%p140_p2), %s164_s20, 143  ;;  %v785_v6 = vpack.c.bf16 (!%p140_p2), %v276_v5, %v275_v2  ;;  %v788_v9 = vpack.c.bf16 (!%p140_p2), %v278_v8, %v277_v7  ;;  %v279_v10 = vld [vmem:[%s1250_s1 + $0x30] sm:$0xff] (!%p140_p2)  ;;  %v280_v11 = vld [vmem:[%s1250_s1 + $0x38] sm:$0xff] (!%p140_p2)  ;;  %v281_v15 = vld [vmem:[%s1250_s1 + $0x40] sm:$0xff] (!%p140_p2) }
   0x8   : > { %783 = vmatpush1.bf16.msra.mxu0 (!%p140_p2), %v782_v4  ;;  %845 = vmatpush1.bf16.msra.mxu1 (!%p140_p2), %v782_v4  ;;  %v791_v13 = vpack.c.bf16 (!%p140_p2), %v280_v11, %v279_v10  ;;  %v282_v16 = vld [vmem:[%s1250_s1 + $0x48] sm:$0xff] (!%p140_p2)  ;;  %v283_v18 = vld [vmem:[%s1250_s1 + $0x50] sm:$0xff] (!%p140_p2)  ;;  %v284_v19 = vld [vmem:[%s1250_s1 + $0x58] sm:$0xff] (!%p140_p2) }
   0x9   : > { %784 = vmatprep.subr.bf16.mxu0 (!%p140_p2), %v878_v3  ;;  %830 = vmatprep.subr.bf16.mxu1 (!%p140_p2), %v878_v3  ;;  %v794_v17 = vpack.c.bf16 (!%p140_p2), %v282_v16, %v281_v15  ;;  %v797_v20 = vpack.c.bf16 (!%p140_p2), %v284_v19, %v283_v18  ;;  %v285_v21 = vld [vmem:[%s1250_s1 + $0x60] sm:$0xff] (!%p140_p2)  ;;  %v286_v22 = vld [vmem:[%s1250_s1 + $0x68] sm:$0xff] (!%p140_p2)  ;;  %v287_v24 = vld [vmem:[%s1250_s1 + $0x70] sm:$0xff] (!%p140_p2) }
   0xa   : > { %v800_v23 = vpack.c.bf16 (!%p140_p2), %v286_v22, %v285_v21  ;;  %v288_v25 = vld [vmem:[%s1250_s1 + $0x78] sm:$0xff] (!%p140_p2)  ;;  %v289_v27 = vld [vmem:[%s1250_s1 + $0x80] sm:$0xff] (!%p140_p2)  ;;  %v290_v28 = vld [vmem:[%s1250_s1 + $0x88] sm:$0xff] (!%p140_p2) }
   0xb   : > { %v803_v26 = vpack.c.bf16 (!%p140_p2), %v288_v25, %v287_v24  ;;  %v806_v29 = vpack.c.bf16 (!%p140_p2), %v290_v28, %v289_v27  ;;  %v291_v30 = vld [vmem:[%s1250_s1 + $0x90] sm:$0xff] (!%p140_p2)  ;;  %v292_v31 = vld [vmem:[%s1250_s1 + $0x98] sm:$0xff] (!%p140_p2)  ;;  %v293_v33 = vld [vmem:[%s1250_s1 + $0xa0] sm:$0xff] (!%p140_p2) }
   0xc   : > { %786 = vmatpush1.bf16.msra.mxu0 (!%p140_p2), %v785_v6  ;;  %846 = vmatpush1.bf16.msra.mxu1 (!%p140_p2), %v785_v6  ;;  %v809_v32 = vpack.c.bf16 (!%p140_p2), %v292_v31, %v291_v30  ;;  %v294_v34 = vld [vmem:[%s1250_s1 + $0xa8] sm:$0xff] (!%p140_p2)  ;;  %v295_v36 = vld [vmem:[%s1250_s1 + $0xb0] sm:$0xff] (!%p140_p2)  ;;  %v296_v37 = vld [vmem:[%s1250_s1 + $0xb8] sm:$0xff] (!%p140_p2) }
   0xd   : > { %s1254_s20 = smov (!%p165_p3, %s164_s20), 143  ;;  %787 = vmatprep.subr.bf16.mxu0 %v878_v3  ;;  %831 = vmatprep.subr.bf16.mxu1 %v878_v3  ;;  %v812_v35 = vpack.c.bf16 %v294_v34, %v293_v33  ;;  %v815_v38 = vpack.c.bf16 %v296_v37, %v295_v36  ;;  %v297_v39 = vld [vmem:[%s1250_s1 + $0xc0] sm:$0xff]  ;;  %v298_v40 = vld [vmem:[%s1250_s1 + $0xc8] sm:$0xff]  ;;  %v299_v42 = vld [vmem:[%s1250_s1 + $0xd0] sm:$0xff] }
   0xe   : > { %s780_s27 = sshll.u32 %s1254_s20, 4  ;;  %v818_v41 = vpack.c.bf16 %v298_v40, %v297_v39  ;;  %v300_v43 = vld [vmem:[%s1250_s1 + $0xd8] sm:$0xff]  ;;  %v301_v45 = vld [vmem:[%s1250_s1 + $0xe0] sm:$0xff]  ;;  %v302_v46 = vld [vmem:[%s1250_s1 + $0xe8] sm:$0xff]  ;;  %s776_s10 = sshll.u32 %s1254_s20, 3 }
   0xf   : > { %s935_s30 = scalar_lea.vmem %s1249_s0, %s780_s27  ;;  %v821_v44 = vpack.c.bf16 %v300_v43, %v299_v42  ;;  %v824_v47 = vpack.c.bf16 %v302_v46, %v301_v45  ;;  %v303_v48 = vld [vmem:[%s1250_s1 + $0xf0] sm:$0xff]  ;;  %v304_v49 = vld [vmem:[%s1250_s1 + $0xf8] sm:$0xff] }
  0x10   : > { %v178_v12 = vld [vmem:[%s935_s30 + $0x8] sm:$0xff]  ;;  %789 = vmatpush1.bf16.msra.mxu0 %v788_v9  ;;  %847 = vmatpush1.bf16.msra.mxu1 %v788_v9  ;;  %v827_v50 = vpack.c.bf16 %v304_v49, %v303_v48  ;;  %v177_v51 = vld [vmem:[%s935_s30] sm:$0xff]  ;;  %v180_v53 = vld [vmem:[%s935_s30 + $0x18] sm:$0xff] }
  0x11   : > { %v226_v14 = vld [vmem:[%s935_s30 + $0x188] sm:$0xff]  ;;  %790 = vmatprep.subr.bf16.mxu0 %v878_v3  ;;  %832 = vmatprep.subr.bf16.mxu1 %v878_v3  ;;  %v225_v52 = vld [vmem:[%s935_s30 + $0x180] sm:$0xff]  ;;  %v228_v54 = vld [vmem:[%s935_s30 + $0x198] sm:$0xff] }
  0x12   : > { %376 = vmatprep.mubr.f32.mxu0 %v178_v12  ;;  %496 = vmatprep.mubr.f32.mxu1 %v226_v14  ;;  %v179_v55 = vld [vmem:[%s935_s30 + $0x10] sm:$0xff]  ;;  %v182_v57 = vld [vmem:[%s935_s30 + $0x28] sm:$0xff]  ;;  %v181_v59 = vld [vmem:[%s935_s30 + $0x20] sm:$0xff] }
  0x13   : > { %v227_v56 = vld [vmem:[%s935_s30 + $0x190] sm:$0xff]  ;;  %v230_v58 = vld [vmem:[%s935_s30 + $0x1a8] sm:$0xff]  ;;  %v229_v60 = vld [vmem:[%s935_s30 + $0x1a0] sm:$0xff] }
  0x14   : > { %792 = vmatpush1.bf16.msra.mxu0 %v791_v13  ;;  %848 = vmatpush1.bf16.msra.mxu1 %v791_v13  ;;  %v184_v61 = vld [vmem:[%s935_s30 + $0x38] sm:$0xff]  ;;  %v183_v63 = vld [vmem:[%s935_s30 + $0x30] sm:$0xff]  ;;  %v186_v1 = vld [vmem:[%s935_s30 + $0x48] sm:$0xff] }
  0x15   : > { %793 = vmatprep.subr.bf16.mxu0 %v878_v3  ;;  %833 = vmatprep.subr.bf16.mxu1 %v878_v3  ;;  %v232_v62 = vld [vmem:[%s935_s30 + $0x1b8] sm:$0xff]  ;;  %v231_v0 = vld [vmem:[%s935_s30 + $0x1b0] sm:$0xff]  ;;  %v234_v2 = vld [vmem:[%s935_s30 + $0x1c8] sm:$0xff] }
  0x16   : > { %v233_v4 = vld [vmem:[%s935_s30 + $0x1c0] sm:$0xff]  ;;  %v188_v5 = vld [vmem:[%s935_s30 + $0x58] sm:$0xff]  ;;  %v187_v7 = vld [vmem:[%s935_s30 + $0x50] sm:$0xff] }
  0x17   : > { %v236_v6 = vld [vmem:[%s935_s30 + $0x1d8] sm:$0xff]  ;;  %v235_v8 = vld [vmem:[%s935_s30 + $0x1d0] sm:$0xff]  ;;  %v190_v9 = vld [vmem:[%s935_s30 + $0x68] sm:$0xff] }
  0x18   : > { %795 = vmatpush1.bf16.msra.mxu0 %v794_v17  ;;  %849 = vmatpush1.bf16.msra.mxu1 %v794_v17  ;;  %v238_v10 = vld [vmem:[%s935_s30 + $0x1e8] sm:$0xff]  ;;  %v189_v11 = vld [vmem:[%s935_s30 + $0x60] sm:$0xff]  ;;  %v192_v13 = vld [vmem:[%s935_s30 + $0x78] sm:$0xff] }
  0x19   : > { %796 = vmatprep.subr.bf16.mxu0 %v878_v3  ;;  %834 = vmatprep.subr.bf16.mxu1 %v878_v3  ;;  %v237_v12 = vld [vmem:[%s935_s30 + $0x1e0] sm:$0xff]  ;;  %v240_v14 = vld [vmem:[%s935_s30 + $0x1f8] sm:$0xff]  ;;  %v191_v15 = vld [vmem:[%s935_s30 + $0x70] sm:$0xff] }
  0x1a   : > { %v239_v16 = vld [vmem:[%s935_s30 + $0x1f0] sm:$0xff]  ;;  %v194_v17 = vld [vmem:[%s935_s30 + $0x88] sm:$0xff]  ;;  %v193_v19 = vld [vmem:[%s935_s30 + $0x80] sm:$0xff] }
  0x1b   : > { %v242_v18 = vld [vmem:[%s935_s30 + $0x208] sm:$0xff]  ;;  %v196_v21 = vld [vmem:[%s935_s30 + $0x98] sm:$0xff]  ;;  %v243_v24 = vld [vmem:[%s935_s30 + $0x210] sm:$0xff] }
  0x1c   : > { %798 = vmatpush1.bf16.msra.mxu0 %v797_v20  ;;  %850 = vmatpush1.bf16.msra.mxu1 %v797_v20  ;;  %v241_v20 = vld [vmem:[%s935_s30 + $0x200] sm:$0xff]  ;;  %v244_v22 = vld [vmem:[%s935_s30 + $0x218] sm:$0xff]  ;;  %v198_v25 = vld [vmem:[%s935_s30 + $0xa8] sm:$0xff] }
  0x1d   : > { %799 = vmatprep.subr.bf16.mxu0 %v878_v3  ;;  %835 = vmatprep.subr.bf16.mxu1 %v878_v3  ;;  %v197_v27 = vld [vmem:[%s935_s30 + $0xa0] sm:$0xff]  ;;  %v248_v30 = vld [vmem:[%s935_s30 + $0x238] sm:$0xff]  ;;  %v199_v31 = vld [vmem:[%s935_s30 + $0xb0] sm:$0xff] }
  0x1e   : > { %v245_v28 = vld [vmem:[%s935_s30 + $0x220] sm:$0xff]  ;;  %v202_v33 = vld [vmem:[%s935_s30 + $0xc8] sm:$0xff]  ;;  %v204_v37 = vld [vmem:[%s935_s30 + $0xd8] sm:$0xff] }
  0x1f   : > { %v250_v34 = vld [vmem:[%s935_s30 + $0x248] sm:$0xff]  ;;  %v249_v36 = vld [vmem:[%s935_s30 + $0x240] sm:$0xff]  ;;  %v203_v39 = vld [vmem:[%s935_s30 + $0xd0] sm:$0xff] }
  0x20   : > { %801 = vmatpush1.bf16.msra.mxu0 %v800_v23  ;;  %851 = vmatpush1.bf16.msra.mxu1 %v800_v23  ;;  %v195_v23 = vld [vmem:[%s935_s30 + $0x90] sm:$0xff]  ;;  %v254_v42 = vld [vmem:[%s935_s30 + $0x268] sm:$0xff]  ;;  %v205_v43 = vld [vmem:[%s935_s30 + $0xe0] sm:$0xff] }
  0x21   : > { %802 = vmatprep.subr.bf16.mxu0 %v878_v3  ;;  %836 = vmatprep.subr.bf16.mxu1 %v878_v3  ;;  %v251_v40 = vld [vmem:[%s935_s30 + $0x250] sm:$0xff]  ;;  %v208_v45 = vld [vmem:[%s935_s30 + $0xf8] sm:$0xff]  ;;  %v210_v49 = vld [vmem:[%s935_s30 + $0x108] sm:$0xff] }
  0x22   : > { %v256_v46 = vld [vmem:[%s935_s30 + $0x278] sm:$0xff]  ;;  %v255_v48 = vld [vmem:[%s935_s30 + $0x270] sm:$0xff] }
  0x24   : > { %804 = vmatpush1.bf16.msra.mxu0 %v803_v26  ;;  %852 = vmatpush1.bf16.msra.mxu1 %v803_v26  ;;  %v246_v26 = vld [vmem:[%s935_s30 + $0x228] sm:$0xff] }
  0x25   : > { %805 = vmatprep.subr.bf16.mxu0 %v878_v3  ;;  %837 = vmatprep.subr.bf16.mxu1 %v878_v3 }
  0x28   : > { %807 = vmatpush1.bf16.msra.mxu0 %v806_v29  ;;  %853 = vmatpush1.bf16.msra.mxu1 %v806_v29  ;;  %v200_v29 = vld [vmem:[%s935_s30 + $0xb8] sm:$0xff] }
  0x29   : > { %808 = vmatprep.subr.bf16.mxu0 %v878_v3  ;;  %838 = vmatprep.subr.bf16.mxu1 %v878_v3 }
  0x2c   : > { %810 = vmatpush1.bf16.msra.mxu0 %v809_v32  ;;  %854 = vmatpush1.bf16.msra.mxu1 %v809_v32  ;;  %v247_v32 = vld [vmem:[%s935_s30 + $0x230] sm:$0xff] }
  0x2d   : > { %811 = vmatprep.subr.bf16.mxu0 %v878_v3  ;;  %839 = vmatprep.subr.bf16.mxu1 %v878_v3 }
  0x30   : > { %813 = vmatpush1.bf16.msra.mxu0 %v812_v35  ;;  %855 = vmatpush1.bf16.msra.mxu1 %v812_v35  ;;  %v201_v35 = vld [vmem:[%s935_s30 + $0xc0] sm:$0xff] }
  0x31   : > { %814 = vmatprep.subr.bf16.mxu0 %v878_v3  ;;  %840 = vmatprep.subr.bf16.mxu1 %v878_v3 }
  0x34   : > { %816 = vmatpush1.bf16.msra.mxu0 %v815_v38  ;;  %856 = vmatpush1.bf16.msra.mxu1 %v815_v38  ;;  %v252_v38 = vld [vmem:[%s935_s30 + $0x258] sm:$0xff] }
  0x35   : > { %817 = vmatprep.subr.bf16.mxu0 %v878_v3  ;;  %841 = vmatprep.subr.bf16.mxu1 %v878_v3 }
  0x38   : > { %819 = vmatpush1.bf16.msra.mxu0 %v818_v41  ;;  %857 = vmatpush1.bf16.msra.mxu1 %v818_v41  ;;  %v206_v41 = vld [vmem:[%s935_s30 + $0xe8] sm:$0xff] }
  0x39   : > { %820 = vmatprep.subr.bf16.mxu0 %v878_v3  ;;  %842 = vmatprep.subr.bf16.mxu1 %v878_v3 }
  0x3c   : > { %822 = vmatpush1.bf16.msra.mxu0 %v821_v44  ;;  %858 = vmatpush1.bf16.msra.mxu1 %v821_v44  ;;  %v253_v44 = vld [vmem:[%s935_s30 + $0x260] sm:$0xff] }
  0x3d   : > { %823 = vmatprep.subr.bf16.mxu0 %v878_v3  ;;  %843 = vmatprep.subr.bf16.mxu1 %v878_v3 }
  0x40   : > { %825 = vmatpush1.bf16.msra.mxu0 %v824_v47  ;;  %859 = vmatpush1.bf16.msra.mxu1 %v824_v47  ;;  %v207_v47 = vld [vmem:[%s935_s30 + $0xf0] sm:$0xff] }
  0x41   : > { %826 = vmatprep.subr.bf16.mxu0 %v878_v3  ;;  %844 = vmatprep.subr.bf16.mxu1 %v878_v3  ;;  %v185_v3 = vld [vmem:[%s935_s30 + $0x40] sm:$0xff] }
  0x44   : > { %828 = vmatpush1.bf16.msra.mxu0 %v827_v50  ;;  %860 = vmatpush1.bf16.msra.mxu1 %v827_v50  ;;  %v258_v50 = vld [vmem:[%s935_s30 + $0x288] sm:$0xff] }
  0x47   : > { %377 = vmatmul.mubr.f32.vlgmr.msra.gmra.mrb[0].mxu0 %v177_v51  ;;  %497 = vmatmul.mubr.f32.vlgmr.msra.gmra.mrb[0].mxu1 %v225_v52  ;;  %v209_v51 = vld [vmem:[%s935_s30 + $0x100] sm:$0xff] }
  0x48   : > { %381 = vmatprep.mubr.f32.mxu0 %v180_v53  ;;  %501 = vmatprep.mubr.f32.mxu1 %v228_v54  ;;  %v257_v52 = vld [vmem:[%s935_s30 + $0x280] sm:$0xff]  ;;  %v212_v53 = vld [vmem:[%s935_s30 + $0x118] sm:$0xff] }
  0x49   : > { %v260_v54 = vld [vmem:[%s935_s30 + $0x298] sm:$0xff] }
  0x4b   : > { %382 = vmatmul.mubr.f32.gmra.mrb[2].mxu0 %v179_v55  ;;  %502 = vmatmul.mubr.f32.gmra.mrb[2].mxu1 %v227_v56  ;;  %v211_v55 = vld [vmem:[%s935_s30 + $0x110] sm:$0xff] }
  0x4c   : > { %386 = vmatprep.mubr.f32.mxu0 %v182_v57  ;;  %506 = vmatprep.mubr.f32.mxu1 %v230_v58  ;;  %v259_v56 = vld [vmem:[%s935_s30 + $0x290] sm:$0xff]  ;;  %v214_v57 = vld [vmem:[%s935_s30 + $0x128] sm:$0xff] }
  0x4d   : > { %v262_v58 = vld [vmem:[%s935_s30 + $0x2a8] sm:$0xff] }
  0x4f   : > { %387 = vmatmul.mubr.f32.gmra.mrb[4].mxu0 %v181_v59  ;;  %507 = vmatmul.mubr.f32.gmra.mrb[4].mxu1 %v229_v60  ;;  %v213_v59 = vld [vmem:[%s935_s30 + $0x120] sm:$0xff] }
  0x50   : > { %391 = vmatprep.mubr.f32.mxu0 %v184_v61  ;;  %511 = vmatprep.mubr.f32.mxu1 %v232_v62  ;;  %v261_v60 = vld [vmem:[%s935_s30 + $0x2a0] sm:$0xff]  ;;  %v216_v61 = vld [vmem:[%s935_s30 + $0x138] sm:$0xff] }
  0x51   : > { %v264_v62 = vld [vmem:[%s935_s30 + $0x2b8] sm:$0xff] }
  0x53   : > { %392 = vmatmul.mubr.f32.gmra.mrb[6].mxu0 %v183_v63  ;;  %512 = vmatmul.mubr.f32.gmra.mrb[6].mxu1 %v231_v0  ;;  %v215_v63 = vld [vmem:[%s935_s30 + $0x130] sm:$0xff] }
  0x54   : > { %396 = vmatprep.mubr.f32.mxu0 %v186_v1  ;;  %516 = vmatprep.mubr.f32.mxu1 %v234_v2  ;;  %v263_v0 = vld [vmem:[%s935_s30 + $0x2b0] sm:$0xff]  ;;  %v218_v1 = vld [vmem:[%s935_s30 + $0x148] sm:$0xff] }
  0x55   : > { %v266_v2 = vld [vmem:[%s935_s30 + $0x2c8] sm:$0xff] }
  0x57   : > { %397 = vmatmul.mubr.f32.gmra.mrb[8].mxu0 %v185_v3  ;;  %517 = vmatmul.mubr.f32.gmra.mrb[8].mxu1 %v233_v4  ;;  %v217_v3 = vld [vmem:[%s935_s30 + $0x140] sm:$0xff] }
  0x58   : > { %401 = vmatprep.mubr.f32.mxu0 %v188_v5  ;;  %521 = vmatprep.mubr.f32.mxu1 %v236_v6  ;;  %v265_v4 = vld [vmem:[%s935_s30 + $0x2c0] sm:$0xff]  ;;  %v220_v5 = vld [vmem:[%s935_s30 + $0x158] sm:$0xff] }
  0x59   : > { %v268_v6 = vld [vmem:[%s935_s30 + $0x2d8] sm:$0xff] }
  0x5b   : > { %402 = vmatmul.mubr.f32.gmra.mrb[10].mxu0 %v187_v7  ;;  %522 = vmatmul.mubr.f32.gmra.mrb[10].mxu1 %v235_v8  ;;  %v219_v7 = vld [vmem:[%s935_s30 + $0x150] sm:$0xff] }
  0x5c   : > { %406 = vmatprep.mubr.f32.mxu0 %v190_v9  ;;  %526 = vmatprep.mubr.f32.mxu1 %v238_v10  ;;  %v267_v8 = vld [vmem:[%s935_s30 + $0x2d0] sm:$0xff]  ;;  %v222_v9 = vld [vmem:[%s935_s30 + $0x168] sm:$0xff] }
  0x5d   : > { %v270_v10 = vld [vmem:[%s935_s30 + $0x2e8] sm:$0xff] }
  0x5f   : > { %407 = vmatmul.mubr.f32.gmra.mrb[12].mxu0 %v189_v11  ;;  %527 = vmatmul.mubr.f32.gmra.mrb[12].mxu1 %v237_v12  ;;  %v221_v11 = vld [vmem:[%s935_s30 + $0x160] sm:$0xff] }
  0x60   : > { %411 = vmatprep.mubr.f32.mxu0 %v192_v13  ;;  %531 = vmatprep.mubr.f32.mxu1 %v240_v14  ;;  %v269_v12 = vld [vmem:[%s935_s30 + $0x2e0] sm:$0xff]  ;;  %v224_v13 = vld [vmem:[%s935_s30 + $0x178] sm:$0xff] }
  0x61   : > { %v272_v14 = vld [vmem:[%s935_s30 + $0x2f8] sm:$0xff] }
  0x63   : > { %412 = vmatmul.mubr.f32.gmra.mrb[14].mxu0 %v191_v15  ;;  %532 = vmatmul.mubr.f32.gmra.mrb[14].mxu1 %v239_v16  ;;  %v223_v15 = vld [vmem:[%s935_s30 + $0x170] sm:$0xff] }
  0x64   : > { %416 = vmatprep.mubr.f32.mxu0 %v194_v17  ;;  %536 = vmatprep.mubr.f32.mxu1 %v242_v18  ;;  %v271_v16 = vld [vmem:[%s935_s30 + $0x2f0] sm:$0xff]  ;;  %v1142_v17 = vld [vmem:[%s1251_s2] ss:$0 sm:$0xff]  ;;  %s1150_s30 = scalar_lea.vmem %s1252_s3, %s776_s10 }
  0x67   : > { %417 = vmatmul.mubr.f32.gmra.mrb[16].mxu0 %v193_v19  ;;  %537 = vmatmul.mubr.f32.gmra.mrb[16].mxu1 %v241_v20 }
  0x68   : > { %421 = vmatprep.mubr.f32.mxu0 %v196_v21  ;;  %541 = vmatprep.mubr.f32.mxu1 %v244_v22 }
  0x6b   : > { %422 = vmatmul.mubr.f32.gmra.mrb[18].mxu0 %v195_v23  ;;  %542 = vmatmul.mubr.f32.gmra.mrb[18].mxu1 %v243_v24 }
  0x6c   : > { %426 = vmatprep.mubr.f32.mxu0 %v198_v25  ;;  %546 = vmatprep.mubr.f32.mxu1 %v246_v26 }
  0x6f   : > { %427 = vmatmul.mubr.f32.gmra.mrb[20].mxu0 %v197_v27  ;;  %547 = vmatmul.mubr.f32.gmra.mrb[20].mxu1 %v245_v28 }
  0x70   : > { %431 = vmatprep.mubr.f32.mxu0 %v200_v29  ;;  %551 = vmatprep.mubr.f32.mxu1 %v248_v30 }
  0x73   : > { %432 = vmatmul.mubr.f32.gmra.mrb[22].mxu0 %v199_v31  ;;  %552 = vmatmul.mubr.f32.gmra.mrb[22].mxu1 %v247_v32 }
  0x74   : > { %436 = vmatprep.mubr.f32.mxu0 %v202_v33  ;;  %556 = vmatprep.mubr.f32.mxu1 %v250_v34 }
  0x77   : > { %437 = vmatmul.mubr.f32.gmra.mrb[24].mxu0 %v201_v35  ;;  %557 = vmatmul.mubr.f32.gmra.mrb[24].mxu1 %v249_v36 }
  0x78   : > { %441 = vmatprep.mubr.f32.mxu0 %v204_v37  ;;  %561 = vmatprep.mubr.f32.mxu1 %v252_v38 }
  0x7b   : > { %442 = vmatmul.mubr.f32.gmra.mrb[26].mxu0 %v203_v39  ;;  %562 = vmatmul.mubr.f32.gmra.mrb[26].mxu1 %v251_v40 }
  0x7c   : > { %446 = vmatprep.mubr.f32.mxu0 %v206_v41  ;;  %566 = vmatprep.mubr.f32.mxu1 %v254_v42 }
  0x7f   : > { %447 = vmatmul.mubr.f32.gmra.mrb[28].mxu0 %v205_v43  ;;  %567 = vmatmul.mubr.f32.gmra.mrb[28].mxu1 %v253_v44 }
  0x80   : > { %451 = vmatprep.mubr.f32.mxu0 %v208_v45  ;;  %571 = vmatprep.mubr.f32.mxu1 %v256_v46 }
  0x83   : > { %452 = vmatmul.mubr.f32.gmra.mrb[30].mxu0 %v207_v47  ;;  %572 = vmatmul.mubr.f32.gmra.mrb[30].mxu1 %v255_v48 }
  0x84   : > { %456 = vmatprep.mubr.f32.mxu0 %v210_v49  ;;  %576 = vmatprep.mubr.f32.mxu1 %v258_v50 }
  0x87   : > { %457 = vmatmul.mubr.f32.gmra.mrb[32].mxu0 %v209_v51  ;;  %577 = vmatmul.mubr.f32.gmra.mrb[32].mxu1 %v257_v52 }
  0x88   : > { %461 = vmatprep.mubr.f32.mxu0 %v212_v53  ;;  %581 = vmatprep.mubr.f32.mxu1 %v260_v54 }
  0x8b   : > { %462 = vmatmul.mubr.f32.gmra.mrb[34].mxu0 %v211_v55  ;;  %582 = vmatmul.mubr.f32.gmra.mrb[34].mxu1 %v259_v56 }
  0x8c   : > { %466 = vmatprep.mubr.f32.mxu0 %v214_v57  ;;  %586 = vmatprep.mubr.f32.mxu1 %v262_v58 }
  0x8f   : > { %467 = vmatmul.mubr.f32.gmra.mrb[36].mxu0 %v213_v59  ;;  %587 = vmatmul.mubr.f32.gmra.mrb[36].mxu1 %v261_v60 }
  0x90   : > { %471 = vmatprep.mubr.f32.mxu0 %v216_v61  ;;  %591 = vmatprep.mubr.f32.mxu1 %v264_v62 }
  0x93   : > { %472 = vmatmul.mubr.f32.gmra.mrb[38].mxu0 %v215_v63  ;;  %592 = vmatmul.mubr.f32.gmra.mrb[38].mxu1 %v263_v0 }
  0x94   : > { %476 = vmatprep.mubr.f32.mxu0 %v218_v1  ;;  %596 = vmatprep.mubr.f32.mxu1 %v266_v2 }
  0x97   : > { %477 = vmatmul.mubr.f32.gmra.mrb[40].mxu0 %v217_v3  ;;  %597 = vmatmul.mubr.f32.gmra.mrb[40].mxu1 %v265_v4 }
  0x98   : > { %481 = vmatprep.mubr.f32.mxu0 %v220_v5  ;;  %601 = vmatprep.mubr.f32.mxu1 %v268_v6 }
  0x9b   : > { %482 = vmatmul.mubr.f32.gmra.mrb[42].mxu0 %v219_v7  ;;  %602 = vmatmul.mubr.f32.gmra.mrb[42].mxu1 %v267_v8 }
  0x9c   : > { %486 = vmatprep.mubr.f32.mxu0 %v222_v9  ;;  %606 = vmatprep.mubr.f32.mxu1 %v270_v10 }
  0x9f   : > { %487 = vmatmul.mubr.f32.gmra.mrb[44].mxu0 %v221_v11  ;;  %607 = vmatmul.mubr.f32.gmra.mrb[44].mxu1 %v269_v12 }
  0xa0   : > { %491 = vmatprep.mubr.f32.mxu0 %v224_v13  ;;  %611 = vmatprep.mubr.f32.mxu1 %v272_v14 }
  0xa3   : > { %492 = vmatmul.mubr.f32.gmra.mrb[46].mxu0 %v223_v15  ;;  %612 = vmatmul.mubr.f32.gmra.mrb[46].mxu1 %v271_v16 }
 0x11a   : > { %v378_v18 = vpop.f32.mrb[0].mxu0  ;;  %v498_v19 = vpop.f32.mrb[0].mxu1 }
 0x11b   : > { %v379_v20 = vadd.f32 %v1142_v17, %v378_v18  ;;  %v499_v21 = vadd.f32 %v1142_v17, %v498_v19  ;;  %v380_v22 = vpop.f32.mrb[1].mxu0  ;;  %v500_v23 = vpop.f32.mrb[1].mxu1 }
 0x11d   : > { %v617_v24 = vmax.f32 %v379_v20, 0.0  ;;  %v641_v25 = vmax.f32 %v499_v21, 0.0 }
 0x11e   : > { %v383_v26 = vpop.f32.mrb[2].mxu0  ;;  %v503_v27 = vpop.f32.mrb[2].mxu1 }
 0x11f   : > { %665 = vst [vmem:[%s1150_s30] sm:$0xff] %v617_v24  ;;  %689 = vst [vmem:[%s1150_s30 + $0xc0] sm:$0xff] %v641_v25  ;;  %v384_v28 = vadd.f32 %v1142_v17, %v383_v26  ;;  %v504_v29 = vadd.f32 %v1142_v17, %v503_v27  ;;  %v385_v30 = vpop.f32.mrb[3].mxu0  ;;  %v505_v31 = vpop.f32.mrb[3].mxu1 }
 0x121   : > { %v618_v32 = vmax.f32 %v384_v28, 0.0  ;;  %v642_v33 = vmax.f32 %v504_v29, 0.0 }
 0x122   : > { %v388_v34 = vpop.f32.mrb[4].mxu0  ;;  %v508_v35 = vpop.f32.mrb[4].mxu1 }
 0x123   : > { %666 = vst [vmem:[%s1150_s30 + $0x8] sm:$0xff] %v618_v32  ;;  %690 = vst [vmem:[%s1150_s30 + $0xc8] sm:$0xff] %v642_v33  ;;  %v389_v36 = vadd.f32 %v1142_v17, %v388_v34  ;;  %v509_v37 = vadd.f32 %v1142_v17, %v508_v35  ;;  %v390_v38 = vpop.f32.mrb[5].mxu0  ;;  %v510_v39 = vpop.f32.mrb[5].mxu1 }
 0x125   : > { %v619_v40 = vmax.f32 %v389_v36, 0.0  ;;  %v643_v41 = vmax.f32 %v509_v37, 0.0 }
 0x126   : > { %v393_v42 = vpop.f32.mrb[6].mxu0  ;;  %v513_v43 = vpop.f32.mrb[6].mxu1 }
 0x127   : > { %667 = vst [vmem:[%s1150_s30 + $0x10] sm:$0xff] %v619_v40  ;;  %691 = vst [vmem:[%s1150_s30 + $0xd0] sm:$0xff] %v643_v41  ;;  %v394_v44 = vadd.f32 %v1142_v17, %v393_v42  ;;  %v514_v45 = vadd.f32 %v1142_v17, %v513_v43  ;;  %v395_v46 = vpop.f32.mrb[7].mxu0  ;;  %v515_v47 = vpop.f32.mrb[7].mxu1 }
 0x129   : > { %v620_v48 = vmax.f32 %v394_v44, 0.0  ;;  %v644_v49 = vmax.f32 %v514_v45, 0.0 }
 0x12a   : > { %v398_v50 = vpop.f32.mrb[8].mxu0  ;;  %v518_v51 = vpop.f32.mrb[8].mxu1 }
 0x12b   : > { %668 = vst [vmem:[%s1150_s30 + $0x18] sm:$0xff] %v620_v48  ;;  %692 = vst [vmem:[%s1150_s30 + $0xd8] sm:$0xff] %v644_v49  ;;  %v399_v52 = vadd.f32 %v1142_v17, %v398_v50  ;;  %v519_v53 = vadd.f32 %v1142_v17, %v518_v51  ;;  %v400_v54 = vpop.f32.mrb[9].mxu0  ;;  %v520_v55 = vpop.f32.mrb[9].mxu1 }
 0x12d   : > { %v621_v56 = vmax.f32 %v399_v52, 0.0  ;;  %v645_v57 = vmax.f32 %v519_v53, 0.0 }
 0x12e   : > { %v403_v58 = vpop.f32.mrb[10].mxu0  ;;  %v523_v59 = vpop.f32.mrb[10].mxu1 }
 0x12f   : > { %669 = vst [vmem:[%s1150_s30 + $0x20] sm:$0xff] %v621_v56  ;;  %693 = vst [vmem:[%s1150_s30 + $0xe0] sm:$0xff] %v645_v57  ;;  %v404_v60 = vadd.f32 %v1142_v17, %v403_v58  ;;  %v524_v61 = vadd.f32 %v1142_v17, %v523_v59  ;;  %v405_v62 = vpop.f32.mrb[11].mxu0  ;;  %v525_v63 = vpop.f32.mrb[11].mxu1 }
 0x131   : > { %v622_v0 = vmax.f32 %v404_v60, 0.0  ;;  %v646_v1 = vmax.f32 %v524_v61, 0.0 }
 0x132   : > { %v408_v2 = vpop.f32.mrb[12].mxu0  ;;  %v528_v3 = vpop.f32.mrb[12].mxu1 }
 0x133   : > { %670 = vst [vmem:[%s1150_s30 + $0x28] sm:$0xff] %v622_v0  ;;  %694 = vst [vmem:[%s1150_s30 + $0xe8] sm:$0xff] %v646_v1  ;;  %v409_v4 = vadd.f32 %v1142_v17, %v408_v2  ;;  %v529_v5 = vadd.f32 %v1142_v17, %v528_v3  ;;  %v410_v6 = vpop.f32.mrb[13].mxu0  ;;  %v530_v7 = vpop.f32.mrb[13].mxu1 }
 0x135   : > { %v623_v8 = vmax.f32 %v409_v4, 0.0  ;;  %v647_v9 = vmax.f32 %v529_v5, 0.0 }
 0x136   : > { %v413_v10 = vpop.f32.mrb[14].mxu0  ;;  %v533_v11 = vpop.f32.mrb[14].mxu1 }
 0x137   : > { %671 = vst [vmem:[%s1150_s30 + $0x30] sm:$0xff] %v623_v8  ;;  %695 = vst [vmem:[%s1150_s30 + $0xf0] sm:$0xff] %v647_v9  ;;  %v414_v12 = vadd.f32 %v1142_v17, %v413_v10  ;;  %v534_v13 = vadd.f32 %v1142_v17, %v533_v11  ;;  %v415_v14 = vpop.f32.mrb[15].mxu0  ;;  %v535_v15 = vpop.f32.mrb[15].mxu1 }
 0x139   : > { %v624_v16 = vmax.f32 %v414_v12, 0.0  ;;  %v648_v18 = vmax.f32 %v534_v13, 0.0 }
 0x13a   : > { %v418_v19 = vpop.f32.mrb[16].mxu0  ;;  %v538_v20 = vpop.f32.mrb[16].mxu1 }
 0x13b   : > { %672 = vst [vmem:[%s1150_s30 + $0x38] sm:$0xff] %v624_v16  ;;  %696 = vst [vmem:[%s1150_s30 + $0xf8] sm:$0xff] %v648_v18  ;;  %v419_v21 = vadd.f32 %v1142_v17, %v418_v19  ;;  %v539_v22 = vadd.f32 %v1142_v17, %v538_v20  ;;  %v420_v23 = vpop.f32.mrb[17].mxu0  ;;  %v540_v24 = vpop.f32.mrb[17].mxu1 }
 0x13d   : > { %v625_v25 = vmax.f32 %v419_v21, 0.0  ;;  %v649_v26 = vmax.f32 %v539_v22, 0.0 }
 0x13e   : > { %v423_v27 = vpop.f32.mrb[18].mxu0  ;;  %v543_v28 = vpop.f32.mrb[18].mxu1 }
 0x13f   : > { %673 = vst [vmem:[%s1150_s30 + $0x40] sm:$0xff] %v625_v25  ;;  %697 = vst [vmem:[%s1150_s30 + $0x100] sm:$0xff] %v649_v26  ;;  %v424_v29 = vadd.f32 %v1142_v17, %v423_v27  ;;  %v544_v30 = vadd.f32 %v1142_v17, %v543_v28  ;;  %v425_v31 = vpop.f32.mrb[19].mxu0  ;;  %v545_v32 = vpop.f32.mrb[19].mxu1 }
 0x141   : > { %v626_v33 = vmax.f32 %v424_v29, 0.0  ;;  %v650_v34 = vmax.f32 %v544_v30, 0.0 }
 0x142   : > { %v428_v35 = vpop.f32.mrb[20].mxu0  ;;  %v548_v36 = vpop.f32.mrb[20].mxu1 }
 0x143   : > { %674 = vst [vmem:[%s1150_s30 + $0x48] sm:$0xff] %v626_v33  ;;  %698 = vst [vmem:[%s1150_s30 + $0x108] sm:$0xff] %v650_v34  ;;  %v429_v37 = vadd.f32 %v1142_v17, %v428_v35  ;;  %v549_v38 = vadd.f32 %v1142_v17, %v548_v36  ;;  %v430_v39 = vpop.f32.mrb[21].mxu0  ;;  %v550_v40 = vpop.f32.mrb[21].mxu1 }
 0x145   : > { %v627_v41 = vmax.f32 %v429_v37, 0.0  ;;  %v651_v42 = vmax.f32 %v549_v38, 0.0 }
 0x146   : > { %v433_v43 = vpop.f32.mrb[22].mxu0  ;;  %v553_v44 = vpop.f32.mrb[22].mxu1 }
 0x147   : > { %675 = vst [vmem:[%s1150_s30 + $0x50] sm:$0xff] %v627_v41  ;;  %699 = vst [vmem:[%s1150_s30 + $0x110] sm:$0xff] %v651_v42  ;;  %v434_v45 = vadd.f32 %v1142_v17, %v433_v43  ;;  %v554_v46 = vadd.f32 %v1142_v17, %v553_v44  ;;  %v435_v47 = vpop.f32.mrb[23].mxu0  ;;  %v555_v48 = vpop.f32.mrb[23].mxu1 }
 0x149   : > { %v628_v49 = vmax.f32 %v434_v45, 0.0  ;;  %v652_v50 = vmax.f32 %v554_v46, 0.0 }
 0x14a   : > { %v438_v51 = vpop.f32.mrb[24].mxu0  ;;  %v558_v52 = vpop.f32.mrb[24].mxu1 }
 0x14b   : > { %676 = vst [vmem:[%s1150_s30 + $0x58] sm:$0xff] %v628_v49  ;;  %700 = vst [vmem:[%s1150_s30 + $0x118] sm:$0xff] %v652_v50  ;;  %v439_v53 = vadd.f32 %v1142_v17, %v438_v51  ;;  %v559_v54 = vadd.f32 %v1142_v17, %v558_v52  ;;  %v440_v55 = vpop.f32.mrb[25].mxu0  ;;  %v560_v56 = vpop.f32.mrb[25].mxu1 }
 0x14d   : > { %v629_v57 = vmax.f32 %v439_v53, 0.0  ;;  %v653_v58 = vmax.f32 %v559_v54, 0.0 }
 0x14e   : > { %v443_v59 = vpop.f32.mrb[26].mxu0  ;;  %v563_v60 = vpop.f32.mrb[26].mxu1 }
 0x14f   : > { %677 = vst [vmem:[%s1150_s30 + $0x60] sm:$0xff] %v629_v57  ;;  %701 = vst [vmem:[%s1150_s30 + $0x120] sm:$0xff] %v653_v58  ;;  %v444_v61 = vadd.f32 %v1142_v17, %v443_v59  ;;  %v564_v62 = vadd.f32 %v1142_v17, %v563_v60  ;;  %v445_v63 = vpop.f32.mrb[27].mxu0  ;;  %v565_v0 = vpop.f32.mrb[27].mxu1 }
 0x151   : > { %v630_v1 = vmax.f32 %v444_v61, 0.0  ;;  %v654_v2 = vmax.f32 %v564_v62, 0.0 }
 0x152   : > { %v448_v3 = vpop.f32.mrb[28].mxu0  ;;  %v568_v4 = vpop.f32.mrb[28].mxu1 }
 0x153   : > { %678 = vst [vmem:[%s1150_s30 + $0x68] sm:$0xff] %v630_v1  ;;  %702 = vst [vmem:[%s1150_s30 + $0x128] sm:$0xff] %v654_v2  ;;  %v449_v5 = vadd.f32 %v1142_v17, %v448_v3  ;;  %v569_v6 = vadd.f32 %v1142_v17, %v568_v4  ;;  %v450_v7 = vpop.f32.mrb[29].mxu0  ;;  %v570_v8 = vpop.f32.mrb[29].mxu1 }
 0x155   : > { %v631_v9 = vmax.f32 %v449_v5, 0.0  ;;  %v655_v10 = vmax.f32 %v569_v6, 0.0 }
 0x156   : > { %v453_v11 = vpop.f32.mrb[30].mxu0  ;;  %v573_v12 = vpop.f32.mrb[30].mxu1 }
 0x157   : > { %679 = vst [vmem:[%s1150_s30 + $0x70] sm:$0xff] %v631_v9  ;;  %703 = vst [vmem:[%s1150_s30 + $0x130] sm:$0xff] %v655_v10  ;;  %v454_v13 = vadd.f32 %v1142_v17, %v453_v11  ;;  %v574_v14 = vadd.f32 %v1142_v17, %v573_v12  ;;  %v455_v15 = vpop.f32.mrb[31].mxu0  ;;  %v575_v16 = vpop.f32.mrb[31].mxu1 }
 0x159   : > { %v632_v18 = vmax.f32 %v454_v13, 0.0  ;;  %v656_v19 = vmax.f32 %v574_v14, 0.0 }
 0x15a   : > { %v458_v20 = vpop.f32.mrb[32].mxu0  ;;  %v578_v21 = vpop.f32.mrb[32].mxu1 }
 0x15b   : > { %680 = vst [vmem:[%s1150_s30 + $0x78] sm:$0xff] %v632_v18  ;;  %704 = vst [vmem:[%s1150_s30 + $0x138] sm:$0xff] %v656_v19  ;;  %v459_v22 = vadd.f32 %v1142_v17, %v458_v20  ;;  %v579_v23 = vadd.f32 %v1142_v17, %v578_v21  ;;  %v460_v24 = vpop.f32.mrb[33].mxu0  ;;  %v580_v25 = vpop.f32.mrb[33].mxu1 }
 0x15d   : > { %v633_v26 = vmax.f32 %v459_v22, 0.0  ;;  %v657_v27 = vmax.f32 %v579_v23, 0.0 }
 0x15e   : > { %v463_v28 = vpop.f32.mrb[34].mxu0  ;;  %v583_v29 = vpop.f32.mrb[34].mxu1 }
 0x15f   : > { %681 = vst [vmem:[%s1150_s30 + $0x80] sm:$0xff] %v633_v26  ;;  %705 = vst [vmem:[%s1150_s30 + $0x140] sm:$0xff] %v657_v27  ;;  %v464_v30 = vadd.f32 %v1142_v17, %v463_v28  ;;  %v584_v31 = vadd.f32 %v1142_v17, %v583_v29  ;;  %v465_v32 = vpop.f32.mrb[35].mxu0  ;;  %v585_v33 = vpop.f32.mrb[35].mxu1 }
 0x161   : > { %v634_v34 = vmax.f32 %v464_v30, 0.0  ;;  %v658_v35 = vmax.f32 %v584_v31, 0.0 }
 0x162   : > { %v468_v36 = vpop.f32.mrb[36].mxu0  ;;  %v588_v37 = vpop.f32.mrb[36].mxu1 }
 0x163   : > { %682 = vst [vmem:[%s1150_s30 + $0x88] sm:$0xff] %v634_v34  ;;  %706 = vst [vmem:[%s1150_s30 + $0x148] sm:$0xff] %v658_v35  ;;  %v469_v38 = vadd.f32 %v1142_v17, %v468_v36  ;;  %v589_v39 = vadd.f32 %v1142_v17, %v588_v37  ;;  %v470_v40 = vpop.f32.mrb[37].mxu0  ;;  %v590_v41 = vpop.f32.mrb[37].mxu1 }
 0x165   : > { %v635_v42 = vmax.f32 %v469_v38, 0.0  ;;  %v659_v43 = vmax.f32 %v589_v39, 0.0 }
 0x166   : > { %v473_v44 = vpop.f32.mrb[38].mxu0  ;;  %v593_v45 = vpop.f32.mrb[38].mxu1 }
 0x167   : > { %683 = vst [vmem:[%s1150_s30 + $0x90] sm:$0xff] %v635_v42  ;;  %707 = vst [vmem:[%s1150_s30 + $0x150] sm:$0xff] %v659_v43  ;;  %v474_v46 = vadd.f32 %v1142_v17, %v473_v44  ;;  %v594_v47 = vadd.f32 %v1142_v17, %v593_v45  ;;  %v475_v48 = vpop.f32.mrb[39].mxu0  ;;  %v595_v49 = vpop.f32.mrb[39].mxu1 }
 0x169   : > { %v636_v50 = vmax.f32 %v474_v46, 0.0  ;;  %v660_v51 = vmax.f32 %v594_v47, 0.0 }
 0x16a   : > { %v478_v52 = vpop.f32.mrb[40].mxu0  ;;  %v598_v53 = vpop.f32.mrb[40].mxu1 }
 0x16b   : > { %684 = vst [vmem:[%s1150_s30 + $0x98] sm:$0xff] %v636_v50  ;;  %708 = vst [vmem:[%s1150_s30 + $0x158] sm:$0xff] %v660_v51  ;;  %v479_v54 = vadd.f32 %v1142_v17, %v478_v52  ;;  %v599_v55 = vadd.f32 %v1142_v17, %v598_v53  ;;  %v480_v56 = vpop.f32.mrb[41].mxu0  ;;  %v600_v57 = vpop.f32.mrb[41].mxu1 }
 0x16d   : > { %v637_v58 = vmax.f32 %v479_v54, 0.0  ;;  %v661_v59 = vmax.f32 %v599_v55, 0.0 }
 0x16e   : > { %v483_v60 = vpop.f32.mrb[42].mxu0  ;;  %v603_v61 = vpop.f32.mrb[42].mxu1 }
 0x16f   : > { %685 = vst [vmem:[%s1150_s30 + $0xa0] sm:$0xff] %v637_v58  ;;  %709 = vst [vmem:[%s1150_s30 + $0x160] sm:$0xff] %v661_v59  ;;  %v484_v62 = vadd.f32 %v1142_v17, %v483_v60  ;;  %v604_v63 = vadd.f32 %v1142_v17, %v603_v61  ;;  %v485_v0 = vpop.f32.mrb[43].mxu0  ;;  %v605_v1 = vpop.f32.mrb[43].mxu1 }
 0x171   : > { %v638_v2 = vmax.f32 %v484_v62, 0.0  ;;  %v662_v3 = vmax.f32 %v604_v63, 0.0 }
 0x172   : > { %v488_v4 = vpop.f32.mrb[44].mxu0  ;;  %v608_v5 = vpop.f32.mrb[44].mxu1 }
 0x173   : > { %686 = vst [vmem:[%s1150_s30 + $0xa8] sm:$0xff] %v638_v2  ;;  %710 = vst [vmem:[%s1150_s30 + $0x168] sm:$0xff] %v662_v3  ;;  %v489_v6 = vadd.f32 %v1142_v17, %v488_v4  ;;  %v609_v7 = vadd.f32 %v1142_v17, %v608_v5  ;;  %v490_v8 = vpop.f32.mrb[45].mxu0  ;;  %v610_v9 = vpop.f32.mrb[45].mxu1 }
 0x175   : > { %v639_v10 = vmax.f32 %v489_v6, 0.0  ;;  %v663_v11 = vmax.f32 %v609_v7, 0.0 }
 0x176   : > { %v493_v12 = vpop.f32.mrb[46].mxu0  ;;  %v613_v13 = vpop.f32.mrb[46].mxu1 }
 0x177   : > { %687 = vst [vmem:[%s1150_s30 + $0xb0] sm:$0xff] %v639_v10  ;;  %711 = vst [vmem:[%s1150_s30 + $0x170] sm:$0xff] %v663_v11  ;;  %v494_v14 = vadd.f32 %v1142_v17, %v493_v12  ;;  %v614_v15 = vadd.f32 %v1142_v17, %v613_v13  ;;  %v495_v16 = vpop.f32.mrb[47].mxu0  ;;  %v615_v18 = vpop.f32.mrb[47].mxu1 }
 0x179   : > { %v640_v19 = vmax.f32 %v494_v14, 0.0  ;;  %v664_v20 = vmax.f32 %v614_v15, 0.0 }
 0x17b   : > { %688 = vst [vmem:[%s1150_s30 + $0xb8] sm:$0xff] %v640_v19  ;;  %712 = vst [vmem:[%s1150_s30 + $0x178] sm:$0xff] %v664_v20 }
 0x17c PF: > { %s13_s12 = sadd.s32 1, %s876_s12  }
 0x17d   : > { %p10_p4 = scmp.ge.s32.totalorder %s13_s12, 5  }
 0x17f   :  { %12 = sbr.rel (!%p10_p4) target bundleno = 1 (0x1), region = 62 }

// kernel: fwd.5
= control target key start
LH: loop header
LB: loop body
LE: loop exit
PB: predicated region body
PF: predicated region fallthrough
CT: control target
= control target key end

     0   :  { %v875_v0 = vmov 0.0|0.0   ;;  %s1621_s1 = inlined_call_operand.vmem [shape: f32[512,128], index: 1, kind: input, shape index: {}]   ;;  %s1622_s0 = inlined_call_operand.vmem [shape: f32[248,512], index: 0, kind: input, shape index: {}]   ;;  %s1623_s2 = inlined_call_operand.vmem [shape: f32[1,128], index: 2, kind: input, shape index: {}]   ;;  %s1624_s3 = inlined_call_operand.vmem [shape: f32[248,128], index: 3, kind: output, shape index: {}]  }
   0x1   :  { %716 = vmatprep.subr.bf16.mxu1 %v875_v0  ;;  %v138_v1 = vld [vmem:[%s1621_s1] sm:$0xff]  ;;  %v139_v2 = vld [vmem:[%s1621_s1 + $0x8] sm:$0xff]  ;;  %764 = vmatprep.subr.bf16.mxu0 %v875_v0  ;;  %v140_v6 = vld [vmem:[%s1621_s1 + $0x10] sm:$0xff] }
   0x2   :  { %v170_v3 = vld [vmem:[%s1621_s1 + $0x100] sm:$0xff]  ;;  %v717_v4 = vpack.c.bf16 %v139_v2, %v138_v1  ;;  %v171_v5 = vld [vmem:[%s1621_s1 + $0x108] sm:$0xff]  ;;  %v141_v7 = vld [vmem:[%s1621_s1 + $0x18] sm:$0xff] }
   0x3   :  { %v765_v8 = vpack.c.bf16 %v171_v5, %v170_v3  ;;  %v172_v9 = vld [vmem:[%s1621_s1 + $0x110] sm:$0xff]  ;;  %v173_v10 = vld [vmem:[%s1621_s1 + $0x118] sm:$0xff]  ;;  %v720_v11 = vpack.c.bf16 %v141_v7, %v140_v6  ;;  %v142_v13 = vld [vmem:[%s1621_s1 + $0x20] sm:$0xff] }
   0x4   :  { %718 = vmatpush1.bf16.msra.mxu1 %v717_v4  ;;  %v768_v12 = vpack.c.bf16 %v173_v10, %v172_v9  ;;  %v143_v14 = vld [vmem:[%s1621_s1 + $0x28] sm:$0xff]  ;;  %v174_v15 = vld [vmem:[%s1621_s1 + $0x120] sm:$0xff]  ;;  %v144_v19 = vld [vmem:[%s1621_s1 + $0x30] sm:$0xff] }
   0x5   :  { %766 = vmatpush1.bf16.msra.mxu0 %v765_v8  ;;  %719 = vmatprep.subr.bf16.mxu1 %v875_v0  ;;  %v175_v16 = vld [vmem:[%s1621_s1 + $0x128] sm:$0xff]  ;;  %v723_v17 = vpack.c.bf16 %v143_v14, %v142_v13  ;;  %v145_v20 = vld [vmem:[%s1621_s1 + $0x38] sm:$0xff]  ;;  %v176_v21 = vld [vmem:[%s1621_s1 + $0x130] sm:$0xff] }
   0x6   :  { %767 = vmatprep.subr.bf16.mxu0 %v875_v0  ;;  %v771_v18 = vpack.c.bf16 %v175_v16, %v174_v15  ;;  %v177_v22 = vld [vmem:[%s1621_s1 + $0x138] sm:$0xff]  ;;  %v726_v23 = vpack.c.bf16 %v145_v20, %v144_v19  ;;  %v146_v25 = vld [vmem:[%s1621_s1 + $0x40] sm:$0xff]  ;;  %v147_v26 = vld [vmem:[%s1621_s1 + $0x48] sm:$0xff] }
   0x7   :  { %v774_v24 = vpack.c.bf16 %v177_v22, %v176_v21  ;;  %v178_v27 = vld [vmem:[%s1621_s1 + $0x140] sm:$0xff]  ;;  %v179_v28 = vld [vmem:[%s1621_s1 + $0x148] sm:$0xff]  ;;  %v729_v29 = vpack.c.bf16 %v147_v26, %v146_v25  ;;  %v148_v31 = vld [vmem:[%s1621_s1 + $0x50] sm:$0xff] }
   0x8   :  { %721 = vmatpush1.bf16.msra.mxu1 %v720_v11  ;;  %v777_v30 = vpack.c.bf16 %v179_v28, %v178_v27  ;;  %v149_v32 = vld [vmem:[%s1621_s1 + $0x58] sm:$0xff]  ;;  %v180_v33 = vld [vmem:[%s1621_s1 + $0x150] sm:$0xff]  ;;  %v150_v37 = vld [vmem:[%s1621_s1 + $0x60] sm:$0xff] }
   0x9   :  { %769 = vmatpush1.bf16.msra.mxu0 %v768_v12  ;;  %722 = vmatprep.subr.bf16.mxu1 %v875_v0  ;;  %v181_v34 = vld [vmem:[%s1621_s1 + $0x158] sm:$0xff]  ;;  %v732_v35 = vpack.c.bf16 %v149_v32, %v148_v31  ;;  %v151_v38 = vld [vmem:[%s1621_s1 + $0x68] sm:$0xff]  ;;  %v182_v39 = vld [vmem:[%s1621_s1 + $0x160] sm:$0xff] }
   0xa   :  { %770 = vmatprep.subr.bf16.mxu0 %v875_v0  ;;  %v780_v36 = vpack.c.bf16 %v181_v34, %v180_v33  ;;  %v183_v40 = vld [vmem:[%s1621_s1 + $0x168] sm:$0xff]  ;;  %v17_v42 = vld [vmem:[%s1622_s0 + $0x18] sm:$0xff]  ;;  %v735_v43 = vpack.c.bf16 %v151_v38, %v150_v37  ;;  %v152_v45 = vld [vmem:[%s1621_s1 + $0x70] sm:$0xff] }
   0xb   :  { %v15_v41 = vld [vmem:[%s1622_s0 + $0x8] sm:$0xff]  ;;  %493 = vmatprep.mubr.f32.mxu0 %v17_v42  ;;  %v783_v44 = vpack.c.bf16 %v183_v40, %v182_v39  ;;  %v153_v46 = vld [vmem:[%s1621_s1 + $0x78] sm:$0xff]  ;;  %v184_v47 = vld [vmem:[%s1621_s1 + $0x170] sm:$0xff] }
   0xc   :  { %724 = vmatpush1.bf16.msra.mxu1 %v723_v17  ;;  %273 = vmatprep.mubr.f32.mxu1 %v15_v41  ;;  %v185_v48 = vld [vmem:[%s1621_s1 + $0x178] sm:$0xff]  ;;  %v738_v49 = vpack.c.bf16 %v153_v46, %v152_v45  ;;  %v154_v51 = vld [vmem:[%s1621_s1 + $0x80] sm:$0xff]  ;;  %v155_v52 = vld [vmem:[%s1621_s1 + $0x88] sm:$0xff] }
   0xd   :  { %772 = vmatpush1.bf16.msra.mxu0 %v771_v18  ;;  %725 = vmatprep.subr.bf16.mxu1 %v875_v0  ;;  %v786_v50 = vpack.c.bf16 %v185_v48, %v184_v47  ;;  %v186_v53 = vld [vmem:[%s1621_s1 + $0x180] sm:$0xff]  ;;  %v187_v54 = vld [vmem:[%s1621_s1 + $0x188] sm:$0xff]  ;;  %v741_v55 = vpack.c.bf16 %v155_v52, %v154_v51  ;;  %v156_v57 = vld [vmem:[%s1621_s1 + $0x90] sm:$0xff] }
   0xe   :  { %773 = vmatprep.subr.bf16.mxu0 %v875_v0  ;;  %v789_v56 = vpack.c.bf16 %v187_v54, %v186_v53  ;;  %v157_v58 = vld [vmem:[%s1621_s1 + $0x98] sm:$0xff]  ;;  %v188_v59 = vld [vmem:[%s1621_s1 + $0x190] sm:$0xff]  ;;  %v158_v63 = vld [vmem:[%s1621_s1 + $0xa0] sm:$0xff] }
   0xf   :  { %v189_v60 = vld [vmem:[%s1621_s1 + $0x198] sm:$0xff]  ;;  %v744_v61 = vpack.c.bf16 %v157_v58, %v156_v57  ;;  %v159_v1 = vld [vmem:[%s1621_s1 + $0xa8] sm:$0xff]  ;;  %v190_v2 = vld [vmem:[%s1621_s1 + $0x1a0] sm:$0xff] }
  0x10   :  { %727 = vmatpush1.bf16.msra.mxu1 %v726_v23  ;;  %v792_v62 = vpack.c.bf16 %v189_v60, %v188_v59  ;;  %v191_v3 = vld [vmem:[%s1621_s1 + $0x1a8] sm:$0xff]  ;;  %v747_v4 = vpack.c.bf16 %v159_v1, %v158_v63  ;;  %v160_v6 = vld [vmem:[%s1621_s1 + $0xb0] sm:$0xff]  ;;  %v161_v7 = vld [vmem:[%s1621_s1 + $0xb8] sm:$0xff] }
  0x11   :  { %775 = vmatpush1.bf16.msra.mxu0 %v774_v24  ;;  %728 = vmatprep.subr.bf16.mxu1 %v875_v0  ;;  %v795_v5 = vpack.c.bf16 %v191_v3, %v190_v2  ;;  %v192_v8 = vld [vmem:[%s1621_s1 + $0x1b0] sm:$0xff]  ;;  %v193_v9 = vld [vmem:[%s1621_s1 + $0x1b8] sm:$0xff]  ;;  %v750_v10 = vpack.c.bf16 %v161_v7, %v160_v6  ;;  %v162_v12 = vld [vmem:[%s1621_s1 + $0xc0] sm:$0xff] }
  0x12   :  { %776 = vmatprep.subr.bf16.mxu0 %v875_v0  ;;  %v798_v11 = vpack.c.bf16 %v193_v9, %v192_v8  ;;  %v163_v13 = vld [vmem:[%s1621_s1 + $0xc8] sm:$0xff]  ;;  %v194_v14 = vld [vmem:[%s1621_s1 + $0x1c0] sm:$0xff]  ;;  %v164_v18 = vld [vmem:[%s1621_s1 + $0xd0] sm:$0xff] }
  0x13   :  { %v195_v15 = vld [vmem:[%s1621_s1 + $0x1c8] sm:$0xff]  ;;  %v753_v16 = vpack.c.bf16 %v163_v13, %v162_v12  ;;  %v165_v19 = vld [vmem:[%s1621_s1 + $0xd8] sm:$0xff]  ;;  %v196_v20 = vld [vmem:[%s1621_s1 + $0x1d0] sm:$0xff] }
  0x14   :  { %730 = vmatpush1.bf16.msra.mxu1 %v729_v29  ;;  %v801_v17 = vpack.c.bf16 %v195_v15, %v194_v14  ;;  %v197_v21 = vld [vmem:[%s1621_s1 + $0x1d8] sm:$0xff]  ;;  %v756_v22 = vpack.c.bf16 %v165_v19, %v164_v18  ;;  %v166_v24 = vld [vmem:[%s1621_s1 + $0xe0] sm:$0xff]  ;;  %v167_v25 = vld [vmem:[%s1621_s1 + $0xe8] sm:$0xff] }
  0x15   :  { %778 = vmatpush1.bf16.msra.mxu0 %v777_v30  ;;  %731 = vmatprep.subr.bf16.mxu1 %v875_v0  ;;  %v804_v23 = vpack.c.bf16 %v197_v21, %v196_v20  ;;  %v198_v26 = vld [vmem:[%s1621_s1 + $0x1e0] sm:$0xff]  ;;  %v199_v27 = vld [vmem:[%s1621_s1 + $0x1e8] sm:$0xff]  ;;  %v759_v28 = vpack.c.bf16 %v167_v25, %v166_v24  ;;  %v168_v30 = vld [vmem:[%s1621_s1 + $0xf0] sm:$0xff] }
  0x16   :  { %779 = vmatprep.subr.bf16.mxu0 %v875_v0  ;;  %v807_v29 = vpack.c.bf16 %v199_v27, %v198_v26  ;;  %v169_v31 = vld [vmem:[%s1621_s1 + $0xf8] sm:$0xff]  ;;  %v200_v32 = vld [vmem:[%s1621_s1 + $0x1f0] sm:$0xff]  ;;  %v19_v38 = vld [vmem:[%s1622_s0 + $0x28] sm:$0xff] }
  0x17   :  { %v201_v33 = vld [vmem:[%s1621_s1 + $0x1f8] sm:$0xff]  ;;  %v762_v34 = vpack.c.bf16 %v169_v31, %v168_v30  ;;  %v16_v37 = vld [vmem:[%s1622_s0 + $0x10] sm:$0xff]  ;;  %v23_v41 = vld [vmem:[%s1622_s0 + $0x48] sm:$0xff] }
  0x18   :  { %733 = vmatpush1.bf16.msra.mxu1 %v732_v35  ;;  %v810_v35 = vpack.c.bf16 %v201_v33, %v200_v32  ;;  %v21_v39 = vld [vmem:[%s1622_s0 + $0x38] sm:$0xff]  ;;  %v20_v40 = vld [vmem:[%s1622_s0 + $0x30] sm:$0xff]  ;;  %v27_v45 = vld [vmem:[%s1622_s0 + $0x68] sm:$0xff] }
  0x19   :  { %781 = vmatpush1.bf16.msra.mxu0 %v780_v36  ;;  %734 = vmatprep.subr.bf16.mxu1 %v875_v0  ;;  %v14_v36 = vld [vmem:[%s1622_s0] sm:$0xff]  ;;  %v25_v42 = vld [vmem:[%s1622_s0 + $0x58] sm:$0xff]  ;;  %v28_v48 = vld [vmem:[%s1622_s0 + $0x70] sm:$0xff] }
  0x1a   :  { %782 = vmatprep.subr.bf16.mxu0 %v875_v0  ;;  %v29_v46 = vld [vmem:[%s1622_s0 + $0x78] sm:$0xff]  ;;  %v26_v47 = vld [vmem:[%s1622_s0 + $0x60] sm:$0xff]  ;;  %v32_v52 = vld [vmem:[%s1622_s0 + $0x90] sm:$0xff] }
  0x1b   :  { %v30_v51 = vld [vmem:[%s1622_s0 + $0x80] sm:$0xff]  ;;  %v35_v53 = vld [vmem:[%s1622_s0 + $0xa8] sm:$0xff]  ;;  %v37_v54 = vld [vmem:[%s1622_s0 + $0xb8] sm:$0xff] }
  0x1c   :  { %736 = vmatpush1.bf16.msra.mxu1 %v735_v43  ;;  %v22_v43 = vld [vmem:[%s1622_s0 + $0x40] sm:$0xff]  ;;  %v39_v57 = vld [vmem:[%s1622_s0 + $0xc8] sm:$0xff]  ;;  %v41_v58 = vld [vmem:[%s1622_s0 + $0xd8] sm:$0xff] }
  0x1d   :  { %784 = vmatpush1.bf16.msra.mxu0 %v783_v44  ;;  %737 = vmatprep.subr.bf16.mxu1 %v875_v0  ;;  %v24_v44 = vld [vmem:[%s1622_s0 + $0x50] sm:$0xff]  ;;  %v38_v59 = vld [vmem:[%s1622_s0 + $0xc0] sm:$0xff]  ;;  %v47_v2 = vld [vmem:[%s1622_s0 + $0x108] sm:$0xff] }
  0x1e   :  { %785 = vmatprep.subr.bf16.mxu0 %v875_v0  ;;  %v40_v60 = vld [vmem:[%s1622_s0 + $0xd0] sm:$0xff]  ;;  %v42_v63 = vld [vmem:[%s1622_s0 + $0xe0] sm:$0xff]  ;;  %v49_v3 = vld [vmem:[%s1622_s0 + $0x118] sm:$0xff] }
  0x1f   :  { %v44_v1 = vld [vmem:[%s1622_s0 + $0xf0] sm:$0xff]  ;;  %v51_v6 = vld [vmem:[%s1622_s0 + $0x128] sm:$0xff]  ;;  %v53_v7 = vld [vmem:[%s1622_s0 + $0x138] sm:$0xff] }
  0x20   :  { %739 = vmatpush1.bf16.msra.mxu1 %v738_v49  ;;  %v31_v49 = vld [vmem:[%s1622_s0 + $0x88] sm:$0xff]  ;;  %v50_v8 = vld [vmem:[%s1622_s0 + $0x120] sm:$0xff]  ;;  %v52_v9 = vld [vmem:[%s1622_s0 + $0x130] sm:$0xff] }
  0x21   :  { %787 = vmatpush1.bf16.msra.mxu0 %v786_v50  ;;  %740 = vmatprep.subr.bf16.mxu1 %v875_v0  ;;  %v33_v50 = vld [vmem:[%s1622_s0 + $0x98] sm:$0xff]  ;;  %v54_v12 = vld [vmem:[%s1622_s0 + $0x140] sm:$0xff]  ;;  %v56_v13 = vld [vmem:[%s1622_s0 + $0x150] sm:$0xff] }
  0x22   :  { %788 = vmatprep.subr.bf16.mxu0 %v875_v0  ;;  %v59_v14 = vld [vmem:[%s1622_s0 + $0x168] sm:$0xff]  ;;  %v61_v15 = vld [vmem:[%s1622_s0 + $0x178] sm:$0xff]  ;;  %v62_v20 = vld [vmem:[%s1622_s0 + $0x180] sm:$0xff] }
  0x23   :  { %v63_v18 = vld [vmem:[%s1622_s0 + $0x188] sm:$0xff]  ;;  %v65_v19 = vld [vmem:[%s1622_s0 + $0x198] sm:$0xff]  ;;  %v64_v21 = vld [vmem:[%s1622_s0 + $0x190] sm:$0xff] }
  0x24   :  { %742 = vmatpush1.bf16.msra.mxu1 %v741_v55  ;;  %v34_v55 = vld [vmem:[%s1622_s0 + $0xa0] sm:$0xff]  ;;  %v68_v25 = vld [vmem:[%s1622_s0 + $0x1b0] sm:$0xff]  ;;  %v71_v26 = vld [vmem:[%s1622_s0 + $0x1c8] sm:$0xff] }
  0x25   :  { %790 = vmatpush1.bf16.msra.mxu0 %v789_v56  ;;  %743 = vmatprep.subr.bf16.mxu1 %v875_v0  ;;  %v36_v56 = vld [vmem:[%s1622_s0 + $0xb0] sm:$0xff]  ;;  %v66_v24 = vld [vmem:[%s1622_s0 + $0x1a0] sm:$0xff]  ;;  %v73_v27 = vld [vmem:[%s1622_s0 + $0x1d8] sm:$0xff] }
  0x26   :  { %791 = vmatprep.subr.bf16.mxu0 %v875_v0  ;;  %v75_v30 = vld [vmem:[%s1622_s0 + $0x1e8] sm:$0xff]  ;;  %v77_v31 = vld [vmem:[%s1622_s0 + $0x1f8] sm:$0xff]  ;;  %v74_v32 = vld [vmem:[%s1622_s0 + $0x1e0] sm:$0xff] }
  0x27   :  { %v76_v33 = vld [vmem:[%s1622_s0 + $0x1f0] sm:$0xff] }
  0x28   :  { %745 = vmatpush1.bf16.msra.mxu1 %v744_v61  ;;  %v43_v61 = vld [vmem:[%s1622_s0 + $0xe8] sm:$0xff] }
  0x29   :  { %793 = vmatpush1.bf16.msra.mxu0 %v792_v62  ;;  %746 = vmatprep.subr.bf16.mxu1 %v875_v0  ;;  %v45_v62 = vld [vmem:[%s1622_s0 + $0xf8] sm:$0xff] }
  0x2a   :  { %794 = vmatprep.subr.bf16.mxu0 %v875_v0 }
  0x2c   :  { %748 = vmatpush1.bf16.msra.mxu1 %v747_v4  ;;  %v46_v4 = vld [vmem:[%s1622_s0 + $0x100] sm:$0xff] }
  0x2d   :  { %796 = vmatpush1.bf16.msra.mxu0 %v795_v5  ;;  %749 = vmatprep.subr.bf16.mxu1 %v875_v0  ;;  %v48_v5 = vld [vmem:[%s1622_s0 + $0x110] sm:$0xff] }
  0x2e   :  { %797 = vmatprep.subr.bf16.mxu0 %v875_v0 }
  0x30   :  { %751 = vmatpush1.bf16.msra.mxu1 %v750_v10  ;;  %v55_v10 = vld [vmem:[%s1622_s0 + $0x148] sm:$0xff] }
  0x31   :  { %799 = vmatpush1.bf16.msra.mxu0 %v798_v11  ;;  %752 = vmatprep.subr.bf16.mxu1 %v875_v0  ;;  %v57_v11 = vld [vmem:[%s1622_s0 + $0x158] sm:$0xff] }
  0x32   :  { %800 = vmatprep.subr.bf16.mxu0 %v875_v0 }
  0x34   :  { %754 = vmatpush1.bf16.msra.mxu1 %v753_v16  ;;  %v58_v16 = vld [vmem:[%s1622_s0 + $0x160] sm:$0xff] }
  0x35   :  { %802 = vmatpush1.bf16.msra.mxu0 %v801_v17  ;;  %755 = vmatprep.subr.bf16.mxu1 %v875_v0  ;;  %v60_v17 = vld [vmem:[%s1622_s0 + $0x170] sm:$0xff] }
  0x36   :  { %803 = vmatprep.subr.bf16.mxu0 %v875_v0 }
  0x38   :  { %757 = vmatpush1.bf16.msra.mxu1 %v756_v22  ;;  %v67_v22 = vld [vmem:[%s1622_s0 + $0x1a8] sm:$0xff] }
  0x39   :  { %805 = vmatpush1.bf16.msra.mxu0 %v804_v23  ;;  %758 = vmatprep.subr.bf16.mxu1 %v875_v0  ;;  %v69_v23 = vld [vmem:[%s1622_s0 + $0x1b8] sm:$0xff] }
  0x3a   :  { %806 = vmatprep.subr.bf16.mxu0 %v875_v0 }
  0x3c   :  { %760 = vmatpush1.bf16.msra.mxu1 %v759_v28  ;;  %v70_v28 = vld [vmem:[%s1622_s0 + $0x1c0] sm:$0xff] }
  0x3d   :  { %808 = vmatpush1.bf16.msra.mxu0 %v807_v29  ;;  %761 = vmatprep.subr.bf16.mxu1 %v875_v0  ;;  %v72_v29 = vld [vmem:[%s1622_s0 + $0x1d0] sm:$0xff] }
  0x3e   :  { %809 = vmatprep.subr.bf16.mxu0 %v875_v0  ;;  %v18_v0 = vld [vmem:[%s1622_s0 + $0x20] sm:$0xff] }
  0x40   :  { %763 = vmatpush1.bf16.msra.mxu1 %v762_v34  ;;  %v79_v34 = vld [vmem:[%s1622_s0 + $0x208] sm:$0xff] }
  0x41   :  { %811 = vmatpush1.bf16.msra.mxu0 %v810_v35  ;;  %v81_v35 = vld [vmem:[%s1622_s0 + $0x218] sm:$0xff] }
  0x43   :  { %274 = vmatmul.mubr.f32.vlgmr.msra.gmra.mrb[0].mxu1 %v14_v36  ;;  %v78_v36 = vld [vmem:[%s1622_s0 + $0x200] sm:$0xff] }
  0x44   :  { %494 = vmatmul.mubr.f32.vlgmr.msra.gmra.mrb[0].mxu0 %v16_v37  ;;  %278 = vmatprep.mubr.f32.mxu1 %v19_v38  ;;  %v80_v37 = vld [vmem:[%s1622_s0 + $0x210] sm:$0xff]  ;;  %v83_v38 = vld [vmem:[%s1622_s0 + $0x228] sm:$0xff] }
  0x45   :  { %498 = vmatprep.mubr.f32.mxu0 %v21_v39  ;;  %v85_v39 = vld [vmem:[%s1622_s0 + $0x238] sm:$0xff] }
  0x47   :  { %279 = vmatmul.mubr.f32.gmra.mrb[2].mxu1 %v18_v0  ;;  %v82_v0 = vld [vmem:[%s1622_s0 + $0x220] sm:$0xff] }
  0x48   :  { %499 = vmatmul.mubr.f32.gmra.mrb[2].mxu0 %v20_v40  ;;  %283 = vmatprep.mubr.f32.mxu1 %v23_v41  ;;  %v84_v40 = vld [vmem:[%s1622_s0 + $0x230] sm:$0xff]  ;;  %v87_v41 = vld [vmem:[%s1622_s0 + $0x248] sm:$0xff] }
  0x49   :  { %503 = vmatprep.mubr.f32.mxu0 %v25_v42  ;;  %v89_v42 = vld [vmem:[%s1622_s0 + $0x258] sm:$0xff] }
  0x4b   :  { %284 = vmatmul.mubr.f32.gmra.mrb[4].mxu1 %v22_v43  ;;  %v86_v43 = vld [vmem:[%s1622_s0 + $0x240] sm:$0xff] }
  0x4c   :  { %504 = vmatmul.mubr.f32.gmra.mrb[4].mxu0 %v24_v44  ;;  %288 = vmatprep.mubr.f32.mxu1 %v27_v45  ;;  %v88_v44 = vld [vmem:[%s1622_s0 + $0x250] sm:$0xff]  ;;  %v91_v45 = vld [vmem:[%s1622_s0 + $0x268] sm:$0xff] }
  0x4d   :  { %508 = vmatprep.mubr.f32.mxu0 %v29_v46  ;;  %v93_v46 = vld [vmem:[%s1622_s0 + $0x278] sm:$0xff] }
  0x4f   :  { %289 = vmatmul.mubr.f32.gmra.mrb[6].mxu1 %v26_v47  ;;  %v90_v47 = vld [vmem:[%s1622_s0 + $0x260] sm:$0xff] }
  0x50   :  { %509 = vmatmul.mubr.f32.gmra.mrb[6].mxu0 %v28_v48  ;;  %293 = vmatprep.mubr.f32.mxu1 %v31_v49  ;;  %v92_v48 = vld [vmem:[%s1622_s0 + $0x270] sm:$0xff]  ;;  %v95_v49 = vld [vmem:[%s1622_s0 + $0x288] sm:$0xff] }
  0x51   :  { %513 = vmatprep.mubr.f32.mxu0 %v33_v50  ;;  %v97_v50 = vld [vmem:[%s1622_s0 + $0x298] sm:$0xff] }
  0x53   :  { %294 = vmatmul.mubr.f32.gmra.mrb[8].mxu1 %v30_v51  ;;  %v94_v51 = vld [vmem:[%s1622_s0 + $0x280] sm:$0xff] }
  0x54   :  { %514 = vmatmul.mubr.f32.gmra.mrb[8].mxu0 %v32_v52  ;;  %298 = vmatprep.mubr.f32.mxu1 %v35_v53  ;;  %v96_v52 = vld [vmem:[%s1622_s0 + $0x290] sm:$0xff]  ;;  %v99_v53 = vld [vmem:[%s1622_s0 + $0x2a8] sm:$0xff] }
  0x55   :  { %518 = vmatprep.mubr.f32.mxu0 %v37_v54  ;;  %v101_v54 = vld [vmem:[%s1622_s0 + $0x2b8] sm:$0xff] }
  0x57   :  { %299 = vmatmul.mubr.f32.gmra.mrb[10].mxu1 %v34_v55  ;;  %v98_v55 = vld [vmem:[%s1622_s0 + $0x2a0] sm:$0xff] }
  0x58   :  { %519 = vmatmul.mubr.f32.gmra.mrb[10].mxu0 %v36_v56  ;;  %303 = vmatprep.mubr.f32.mxu1 %v39_v57  ;;  %v100_v56 = vld [vmem:[%s1622_s0 + $0x2b0] sm:$0xff]  ;;  %v103_v57 = vld [vmem:[%s1622_s0 + $0x2c8] sm:$0xff] }
  0x59   :  { %523 = vmatprep.mubr.f32.mxu0 %v41_v58  ;;  %v105_v58 = vld [vmem:[%s1622_s0 + $0x2d8] sm:$0xff] }
  0x5b   :  { %304 = vmatmul.mubr.f32.gmra.mrb[12].mxu1 %v38_v59  ;;  %v102_v59 = vld [vmem:[%s1622_s0 + $0x2c0] sm:$0xff] }
  0x5c   :  { %524 = vmatmul.mubr.f32.gmra.mrb[12].mxu0 %v40_v60  ;;  %308 = vmatprep.mubr.f32.mxu1 %v43_v61  ;;  %v104_v60 = vld [vmem:[%s1622_s0 + $0x2d0] sm:$0xff]  ;;  %v107_v61 = vld [vmem:[%s1622_s0 + $0x2e8] sm:$0xff] }
  0x5d   :  { %528 = vmatprep.mubr.f32.mxu0 %v45_v62  ;;  %v109_v62 = vld [vmem:[%s1622_s0 + $0x2f8] sm:$0xff] }
  0x5f   :  { %309 = vmatmul.mubr.f32.gmra.mrb[14].mxu1 %v42_v63  ;;  %v106_v63 = vld [vmem:[%s1622_s0 + $0x2e0] sm:$0xff] }
  0x60   :  { %529 = vmatmul.mubr.f32.gmra.mrb[14].mxu0 %v44_v1  ;;  %313 = vmatprep.mubr.f32.mxu1 %v47_v2  ;;  %v108_v1 = vld [vmem:[%s1622_s0 + $0x2f0] sm:$0xff]  ;;  %v111_v2 = vld [vmem:[%s1622_s0 + $0x308] sm:$0xff] }
  0x61   :  { %533 = vmatprep.mubr.f32.mxu0 %v49_v3  ;;  %v113_v3 = vld [vmem:[%s1622_s0 + $0x318] sm:$0xff] }
  0x63   :  { %314 = vmatmul.mubr.f32.gmra.mrb[16].mxu1 %v46_v4  ;;  %v110_v4 = vld [vmem:[%s1622_s0 + $0x300] sm:$0xff] }
  0x64   :  { %534 = vmatmul.mubr.f32.gmra.mrb[16].mxu0 %v48_v5  ;;  %318 = vmatprep.mubr.f32.mxu1 %v51_v6  ;;  %v112_v5 = vld [vmem:[%s1622_s0 + $0x310] sm:$0xff]  ;;  %v115_v6 = vld [vmem:[%s1622_s0 + $0x328] sm:$0xff] }
  0x65   :  { %538 = vmatprep.mubr.f32.mxu0 %v53_v7  ;;  %v117_v7 = vld [vmem:[%s1622_s0 + $0x338] sm:$0xff] }
  0x67   :  { %319 = vmatmul.mubr.f32.gmra.mrb[18].mxu1 %v50_v8  ;;  %v114_v8 = vld [vmem:[%s1622_s0 + $0x320] sm:$0xff] }
  0x68   :  { %539 = vmatmul.mubr.f32.gmra.mrb[18].mxu0 %v52_v9  ;;  %323 = vmatprep.mubr.f32.mxu1 %v55_v10  ;;  %v116_v9 = vld [vmem:[%s1622_s0 + $0x330] sm:$0xff]  ;;  %v119_v10 = vld [vmem:[%s1622_s0 + $0x348] sm:$0xff] }
  0x69   :  { %543 = vmatprep.mubr.f32.mxu0 %v57_v11  ;;  %v121_v11 = vld [vmem:[%s1622_s0 + $0x358] sm:$0xff] }
  0x6b   :  { %324 = vmatmul.mubr.f32.gmra.mrb[20].mxu1 %v54_v12  ;;  %v118_v12 = vld [vmem:[%s1622_s0 + $0x340] sm:$0xff] }
  0x6c   :  { %544 = vmatmul.mubr.f32.gmra.mrb[20].mxu0 %v56_v13  ;;  %328 = vmatprep.mubr.f32.mxu1 %v59_v14  ;;  %v120_v13 = vld [vmem:[%s1622_s0 + $0x350] sm:$0xff]  ;;  %v123_v14 = vld [vmem:[%s1622_s0 + $0x368] sm:$0xff] }
  0x6d   :  { %548 = vmatprep.mubr.f32.mxu0 %v61_v15  ;;  %v125_v15 = vld [vmem:[%s1622_s0 + $0x378] sm:$0xff] }
  0x6f   :  { %329 = vmatmul.mubr.f32.gmra.mrb[22].mxu1 %v58_v16  ;;  %v122_v16 = vld [vmem:[%s1622_s0 + $0x360] sm:$0xff] }
  0x70   :  { %549 = vmatmul.mubr.f32.gmra.mrb[22].mxu0 %v60_v17  ;;  %333 = vmatprep.mubr.f32.mxu1 %v63_v18  ;;  %v124_v17 = vld [vmem:[%s1622_s0 + $0x370] sm:$0xff]  ;;  %v127_v18 = vld [vmem:[%s1622_s0 + $0x388] sm:$0xff] }
  0x71   :  { %553 = vmatprep.mubr.f32.mxu0 %v65_v19  ;;  %v129_v19 = vld [vmem:[%s1622_s0 + $0x398] sm:$0xff] }
  0x73   :  { %334 = vmatmul.mubr.f32.gmra.mrb[24].mxu1 %v62_v20  ;;  %v126_v20 = vld [vmem:[%s1622_s0 + $0x380] sm:$0xff] }
  0x74   :  { %554 = vmatmul.mubr.f32.gmra.mrb[24].mxu0 %v64_v21  ;;  %338 = vmatprep.mubr.f32.mxu1 %v67_v22  ;;  %v128_v21 = vld [vmem:[%s1622_s0 + $0x390] sm:$0xff]  ;;  %v131_v22 = vld [vmem:[%s1622_s0 + $0x3a8] sm:$0xff] }
  0x75   :  { %558 = vmatprep.mubr.f32.mxu0 %v69_v23  ;;  %v133_v23 = vld [vmem:[%s1622_s0 + $0x3b8] sm:$0xff] }
  0x77   :  { %339 = vmatmul.mubr.f32.gmra.mrb[26].mxu1 %v66_v24  ;;  %v130_v24 = vld [vmem:[%s1622_s0 + $0x3a0] sm:$0xff] }
  0x78   :  { %559 = vmatmul.mubr.f32.gmra.mrb[26].mxu0 %v68_v25  ;;  %343 = vmatprep.mubr.f32.mxu1 %v71_v26  ;;  %v132_v25 = vld [vmem:[%s1622_s0 + $0x3b0] sm:$0xff]  ;;  %v135_v26 = vld [vmem:[%s1622_s0 + $0x3c8] sm:$0xff] }
  0x79   :  { %563 = vmatprep.mubr.f32.mxu0 %v73_v27  ;;  %v137_v27 = vld [vmem:[%s1622_s0 + $0x3d8] sm:$0xff] }
  0x7b   :  { %344 = vmatmul.mubr.f32.gmra.mrb[28].mxu1 %v70_v28  ;;  %v134_v28 = vld [vmem:[%s1622_s0 + $0x3c0] sm:$0xff] }
  0x7c   :  { %564 = vmatmul.mubr.f32.gmra.mrb[28].mxu0 %v72_v29  ;;  %348 = vmatprep.mubr.f32.mxu1 %v75_v30  ;;  %v136_v29 = vld [vmem:[%s1622_s0 + $0x3d0] sm:$0xff]  ;;  %v1495_v30 = vld [vmem:[%s1623_s2] ss:$0 sm:$0xff] }
  0x7d   :  { %568 = vmatprep.mubr.f32.mxu0 %v77_v31 }
  0x7f   :  { %349 = vmatmul.mubr.f32.gmra.mrb[30].mxu1 %v74_v32 }
  0x80   :  { %569 = vmatmul.mubr.f32.gmra.mrb[30].mxu0 %v76_v33  ;;  %353 = vmatprep.mubr.f32.mxu1 %v79_v34 }
  0x81   :  { %573 = vmatprep.mubr.f32.mxu0 %v81_v35 }
  0x83   :  { %354 = vmatmul.mubr.f32.gmra.mrb[32].mxu1 %v78_v36 }
  0x84   :  { %574 = vmatmul.mubr.f32.gmra.mrb[32].mxu0 %v80_v37  ;;  %358 = vmatprep.mubr.f32.mxu1 %v83_v38 }
  0x85   :  { %578 = vmatprep.mubr.f32.mxu0 %v85_v39 }
  0x87   :  { %359 = vmatmul.mubr.f32.gmra.mrb[34].mxu1 %v82_v0 }
  0x88   :  { %579 = vmatmul.mubr.f32.gmra.mrb[34].mxu0 %v84_v40  ;;  %363 = vmatprep.mubr.f32.mxu1 %v87_v41 }
  0x89   :  { %583 = vmatprep.mubr.f32.mxu0 %v89_v42 }
  0x8b   :  { %364 = vmatmul.mubr.f32.gmra.mrb[36].mxu1 %v86_v43 }
  0x8c   :  { %584 = vmatmul.mubr.f32.gmra.mrb[36].mxu0 %v88_v44  ;;  %368 = vmatprep.mubr.f32.mxu1 %v91_v45 }
  0x8d   :  { %588 = vmatprep.mubr.f32.mxu0 %v93_v46 }
  0x8f   :  { %369 = vmatmul.mubr.f32.gmra.mrb[38].mxu1 %v90_v47 }
  0x90   :  { %589 = vmatmul.mubr.f32.gmra.mrb[38].mxu0 %v92_v48  ;;  %373 = vmatprep.mubr.f32.mxu1 %v95_v49 }
  0x91   :  { %593 = vmatprep.mubr.f32.mxu0 %v97_v50 }
  0x93   :  { %374 = vmatmul.mubr.f32.gmra.mrb[40].mxu1 %v94_v51 }
  0x94   :  { %594 = vmatmul.mubr.f32.gmra.mrb[40].mxu0 %v96_v52  ;;  %378 = vmatprep.mubr.f32.mxu1 %v99_v53 }
  0x95   :  { %598 = vmatprep.mubr.f32.mxu0 %v101_v54 }
  0x97   :  { %379 = vmatmul.mubr.f32.gmra.mrb[42].mxu1 %v98_v55 }
  0x98   :  { %599 = vmatmul.mubr.f32.gmra.mrb[42].mxu0 %v100_v56  ;;  %383 = vmatprep.mubr.f32.mxu1 %v103_v57 }
  0x99   :  { %603 = vmatprep.mubr.f32.mxu0 %v105_v58 }
  0x9b   :  { %384 = vmatmul.mubr.f32.gmra.mrb[44].mxu1 %v102_v59 }
  0x9c   :  { %604 = vmatmul.mubr.f32.gmra.mrb[44].mxu0 %v104_v60  ;;  %388 = vmatprep.mubr.f32.mxu1 %v107_v61 }
  0x9d   :  { %608 = vmatprep.mubr.f32.mxu0 %v109_v62 }
  0x9f   :  { %389 = vmatmul.mubr.f32.gmra.mrb[46].mxu1 %v106_v63 }
  0xa0   :  { %609 = vmatmul.mubr.f32.gmra.mrb[46].mxu0 %v108_v1  ;;  %393 = vmatprep.mubr.f32.mxu1 %v111_v2 }
  0xa1   :  { %613 = vmatprep.mubr.f32.mxu0 %v113_v3 }
  0xa3   :  { %394 = vmatmul.mubr.f32.gmra.mrb[48].mxu1 %v110_v4 }
  0xa4   :  { %614 = vmatmul.mubr.f32.gmra.mrb[48].mxu0 %v112_v5  ;;  %398 = vmatprep.mubr.f32.mxu1 %v115_v6 }
  0xa5   :  { %618 = vmatprep.mubr.f32.mxu0 %v117_v7 }
  0xa7   :  { %399 = vmatmul.mubr.f32.gmra.mrb[50].mxu1 %v114_v8 }
  0xa8   :  { %619 = vmatmul.mubr.f32.gmra.mrb[50].mxu0 %v116_v9  ;;  %403 = vmatprep.mubr.f32.mxu1 %v119_v10 }
  0xa9   :  { %623 = vmatprep.mubr.f32.mxu0 %v121_v11 }
  0xab   :  { %404 = vmatmul.mubr.f32.gmra.mrb[52].mxu1 %v118_v12 }
  0xac   :  { %624 = vmatmul.mubr.f32.gmra.mrb[52].mxu0 %v120_v13  ;;  %408 = vmatprep.mubr.f32.mxu1 %v123_v14 }
  0xad   :  { %628 = vmatprep.mubr.f32.mxu0 %v125_v15 }
  0xaf   :  { %409 = vmatmul.mubr.f32.gmra.mrb[54].mxu1 %v122_v16 }
  0xb0   :  { %629 = vmatmul.mubr.f32.gmra.mrb[54].mxu0 %v124_v17  ;;  %413 = vmatprep.mubr.f32.mxu1 %v127_v18 }
  0xb1   :  { %633 = vmatprep.mubr.f32.mxu0 %v129_v19 }
  0xb3   :  { %414 = vmatmul.mubr.f32.gmra.mrb[56].mxu1 %v126_v20 }
  0xb4   :  { %634 = vmatmul.mubr.f32.gmra.mrb[56].mxu0 %v128_v21  ;;  %418 = vmatprep.mubr.f32.mxu1 %v131_v22 }
  0xb5   :  { %638 = vmatprep.mubr.f32.mxu0 %v133_v23 }
  0xb7   :  { %419 = vmatmul.mubr.f32.gmra.mrb[58].mxu1 %v130_v24 }
  0xb8   :  { %639 = vmatmul.mubr.f32.gmra.mrb[58].mxu0 %v132_v25  ;;  %423 = vmatprep.mubr.f32.mxu1 %v135_v26 }
  0xb9   :  { %643 = vmatprep.mubr.f32.mxu0 %v137_v27 }
  0xbb   :  { %424 = vmatmul.mubr.f32.gmra.mrb[60].mxu1 %v134_v28 }
  0xbc   :  { %644 = vmatmul.mubr.f32.gmra.mrb[60].mxu0 %v136_v29 }
 0x116   :  { %v275_v31 = vpop.f32.mrb[0].mxu1 }
 0x117   :  { %v276_v32 = vadd.f32 %v1495_v30, %v275_v31  ;;  %v277_v33 = vpop.f32.mrb[1].mxu1  ;;  %v495_v34 = vpop.f32.mrb[0].mxu0 }
 0x118   :  { %v497_v35 = vpop.f32.mrb[1].mxu0 }
 0x119   :  { %v496_v36 = vadd.f32 %v495_v34, %v276_v32 }
 0x11a   :  { %v280_v37 = vpop.f32.mrb[2].mxu1 }
 0x11b   :  { %v649_v38 = vmax.f32 %v496_v36, 0.0  ;;  %v281_v39 = vadd.f32 %v1495_v30, %v280_v37  ;;  %v282_v0 = vpop.f32.mrb[3].mxu1  ;;  %v500_v40 = vpop.f32.mrb[2].mxu0 }
 0x11c   :  { %v502_v41 = vpop.f32.mrb[3].mxu0 }
 0x11d   :  { %680 = vst [vmem:[%s1624_s3] sm:$0xff] %v649_v38  ;;  %v501_v42 = vadd.f32 %v500_v40, %v281_v39 }
 0x11e   :  { %v285_v43 = vpop.f32.mrb[4].mxu1 }
 0x11f   :  { %v650_v44 = vmax.f32 %v501_v42, 0.0  ;;  %v286_v45 = vadd.f32 %v1495_v30, %v285_v43  ;;  %v287_v46 = vpop.f32.mrb[5].mxu1  ;;  %v505_v47 = vpop.f32.mrb[4].mxu0 }
 0x120   :  { %v507_v48 = vpop.f32.mrb[5].mxu0 }
 0x121   :  { %681 = vst [vmem:[%s1624_s3 + $0x8] sm:$0xff] %v650_v44  ;;  %v506_v49 = vadd.f32 %v505_v47, %v286_v45 }
 0x122   :  { %v290_v50 = vpop.f32.mrb[6].mxu1 }
 0x123   :  { %v651_v51 = vmax.f32 %v506_v49, 0.0  ;;  %v291_v52 = vadd.f32 %v1495_v30, %v290_v50  ;;  %v292_v53 = vpop.f32.mrb[7].mxu1  ;;  %v510_v54 = vpop.f32.mrb[6].mxu0 }
 0x124   :  { %v512_v55 = vpop.f32.mrb[7].mxu0 }
 0x125   :  { %682 = vst [vmem:[%s1624_s3 + $0x10] sm:$0xff] %v651_v51  ;;  %v511_v56 = vadd.f32 %v510_v54, %v291_v52 }
 0x126   :  { %v295_v57 = vpop.f32.mrb[8].mxu1 }
 0x127   :  { %v652_v58 = vmax.f32 %v511_v56, 0.0  ;;  %v296_v59 = vadd.f32 %v1495_v30, %v295_v57  ;;  %v297_v60 = vpop.f32.mrb[9].mxu1  ;;  %v515_v61 = vpop.f32.mrb[8].mxu0 }
 0x128   :  { %v517_v62 = vpop.f32.mrb[9].mxu0 }
 0x129   :  { %683 = vst [vmem:[%s1624_s3 + $0x18] sm:$0xff] %v652_v58  ;;  %v516_v63 = vadd.f32 %v515_v61, %v296_v59 }
 0x12a   :  { %v300_v1 = vpop.f32.mrb[10].mxu1 }
 0x12b   :  { %v653_v2 = vmax.f32 %v516_v63, 0.0  ;;  %v301_v3 = vadd.f32 %v1495_v30, %v300_v1  ;;  %v302_v4 = vpop.f32.mrb[11].mxu1  ;;  %v520_v5 = vpop.f32.mrb[10].mxu0 }
 0x12c   :  { %v522_v6 = vpop.f32.mrb[11].mxu0 }
 0x12d   :  { %684 = vst [vmem:[%s1624_s3 + $0x20] sm:$0xff] %v653_v2  ;;  %v521_v7 = vadd.f32 %v520_v5, %v301_v3 }
 0x12e   :  { %v305_v8 = vpop.f32.mrb[12].mxu1 }
 0x12f   :  { %v654_v9 = vmax.f32 %v521_v7, 0.0  ;;  %v306_v10 = vadd.f32 %v1495_v30, %v305_v8  ;;  %v307_v11 = vpop.f32.mrb[13].mxu1  ;;  %v525_v12 = vpop.f32.mrb[12].mxu0 }
 0x130   :  { %v527_v13 = vpop.f32.mrb[13].mxu0 }
 0x131   :  { %685 = vst [vmem:[%s1624_s3 + $0x28] sm:$0xff] %v654_v9  ;;  %v526_v14 = vadd.f32 %v525_v12, %v306_v10 }
 0x132   :  { %v310_v15 = vpop.f32.mrb[14].mxu1 }
 0x133   :  { %v655_v16 = vmax.f32 %v526_v14, 0.0  ;;  %v311_v17 = vadd.f32 %v1495_v30, %v310_v15  ;;  %v312_v18 = vpop.f32.mrb[15].mxu1  ;;  %v530_v19 = vpop.f32.mrb[14].mxu0 }
 0x134   :  { %v532_v20 = vpop.f32.mrb[15].mxu0 }
 0x135   :  { %686 = vst [vmem:[%s1624_s3 + $0x30] sm:$0xff] %v655_v16  ;;  %v531_v21 = vadd.f32 %v530_v19, %v311_v17 }
 0x136   :  { %v315_v22 = vpop.f32.mrb[16].mxu1 }
 0x137   :  { %v656_v23 = vmax.f32 %v531_v21, 0.0  ;;  %v316_v24 = vadd.f32 %v1495_v30, %v315_v22  ;;  %v317_v25 = vpop.f32.mrb[17].mxu1  ;;  %v535_v26 = vpop.f32.mrb[16].mxu0 }
 0x138   :  { %v537_v27 = vpop.f32.mrb[17].mxu0 }
 0x139   :  { %687 = vst [vmem:[%s1624_s3 + $0x38] sm:$0xff] %v656_v23  ;;  %v536_v28 = vadd.f32 %v535_v26, %v316_v24 }
 0x13a   :  { %v320_v29 = vpop.f32.mrb[18].mxu1 }
 0x13b   :  { %v657_v31 = vmax.f32 %v536_v28, 0.0  ;;  %v321_v32 = vadd.f32 %v1495_v30, %v320_v29  ;;  %v322_v33 = vpop.f32.mrb[19].mxu1  ;;  %v540_v34 = vpop.f32.mrb[18].mxu0 }
 0x13c   :  { %v542_v35 = vpop.f32.mrb[19].mxu0 }
 0x13d   :  { %688 = vst [vmem:[%s1624_s3 + $0x40] sm:$0xff] %v657_v31  ;;  %v541_v36 = vadd.f32 %v540_v34, %v321_v32 }
 0x13e   :  { %v325_v37 = vpop.f32.mrb[20].mxu1 }
 0x13f   :  { %v658_v38 = vmax.f32 %v541_v36, 0.0  ;;  %v326_v39 = vadd.f32 %v1495_v30, %v325_v37  ;;  %v327_v0 = vpop.f32.mrb[21].mxu1  ;;  %v545_v40 = vpop.f32.mrb[20].mxu0 }
 0x140   :  { %v547_v41 = vpop.f32.mrb[21].mxu0 }
 0x141   :  { %689 = vst [vmem:[%s1624_s3 + $0x48] sm:$0xff] %v658_v38  ;;  %v546_v42 = vadd.f32 %v545_v40, %v326_v39 }
 0x142   :  { %v330_v43 = vpop.f32.mrb[22].mxu1 }
 0x143   :  { %v659_v44 = vmax.f32 %v546_v42, 0.0  ;;  %v331_v45 = vadd.f32 %v1495_v30, %v330_v43  ;;  %v332_v46 = vpop.f32.mrb[23].mxu1  ;;  %v550_v47 = vpop.f32.mrb[22].mxu0 }
 0x144   :  { %v552_v48 = vpop.f32.mrb[23].mxu0 }
 0x145   :  { %690 = vst [vmem:[%s1624_s3 + $0x50] sm:$0xff] %v659_v44  ;;  %v551_v49 = vadd.f32 %v550_v47, %v331_v45 }
 0x146   :  { %v335_v50 = vpop.f32.mrb[24].mxu1 }
 0x147   :  { %v660_v51 = vmax.f32 %v551_v49, 0.0  ;;  %v336_v52 = vadd.f32 %v1495_v30, %v335_v50  ;;  %v337_v53 = vpop.f32.mrb[25].mxu1  ;;  %v555_v54 = vpop.f32.mrb[24].mxu0 }
 0x148   :  { %v557_v55 = vpop.f32.mrb[25].mxu0 }
 0x149   :  { %691 = vst [vmem:[%s1624_s3 + $0x58] sm:$0xff] %v660_v51  ;;  %v556_v56 = vadd.f32 %v555_v54, %v336_v52 }
 0x14a   :  { %v340_v57 = vpop.f32.mrb[26].mxu1 }
 0x14b   :  { %v661_v58 = vmax.f32 %v556_v56, 0.0  ;;  %v341_v59 = vadd.f32 %v1495_v30, %v340_v57  ;;  %v342_v60 = vpop.f32.mrb[27].mxu1  ;;  %v560_v61 = vpop.f32.mrb[26].mxu0 }
 0x14c   :  { %v562_v62 = vpop.f32.mrb[27].mxu0 }
 0x14d   :  { %692 = vst [vmem:[%s1624_s3 + $0x60] sm:$0xff] %v661_v58  ;;  %v561_v63 = vadd.f32 %v560_v61, %v341_v59 }
 0x14e   :  { %v345_v1 = vpop.f32.mrb[28].mxu1 }
 0x14f   :  { %v662_v2 = vmax.f32 %v561_v63, 0.0  ;;  %v346_v3 = vadd.f32 %v1495_v30, %v345_v1  ;;  %v347_v4 = vpop.f32.mrb[29].mxu1  ;;  %v565_v5 = vpop.f32.mrb[28].mxu0 }
 0x150   :  { %v567_v6 = vpop.f32.mrb[29].mxu0 }
 0x151   :  { %693 = vst [vmem:[%s1624_s3 + $0x68] sm:$0xff] %v662_v2  ;;  %v566_v7 = vadd.f32 %v565_v5, %v346_v3 }
 0x152   :  { %v350_v8 = vpop.f32.mrb[30].mxu1 }
 0x153   :  { %v663_v9 = vmax.f32 %v566_v7, 0.0  ;;  %v351_v10 = vadd.f32 %v1495_v30, %v350_v8  ;;  %v352_v11 = vpop.f32.mrb[31].mxu1  ;;  %v570_v12 = vpop.f32.mrb[30].mxu0 }
 0x154   :  { %v572_v13 = vpop.f32.mrb[31].mxu0 }
 0x155   :  { %694 = vst [vmem:[%s1624_s3 + $0x70] sm:$0xff] %v663_v9  ;;  %v571_v14 = vadd.f32 %v570_v12, %v351_v10 }
 0x156   :  { %v355_v15 = vpop.f32.mrb[32].mxu1 }
 0x157   :  { %v664_v16 = vmax.f32 %v571_v14, 0.0  ;;  %v356_v17 = vadd.f32 %v1495_v30, %v355_v15  ;;  %v357_v18 = vpop.f32.mrb[33].mxu1  ;;  %v575_v19 = vpop.f32.mrb[32].mxu0 }
 0x158   :  { %v577_v20 = vpop.f32.mrb[33].mxu0 }
 0x159   :  { %695 = vst [vmem:[%s1624_s3 + $0x78] sm:$0xff] %v664_v16  ;;  %v576_v21 = vadd.f32 %v575_v19, %v356_v17 }
 0x15a   :  { %v360_v22 = vpop.f32.mrb[34].mxu1 }
 0x15b   :  { %v665_v23 = vmax.f32 %v576_v21, 0.0  ;;  %v361_v24 = vadd.f32 %v1495_v30, %v360_v22  ;;  %v362_v25 = vpop.f32.mrb[35].mxu1  ;;  %v580_v26 = vpop.f32.mrb[34].mxu0 }
 0x15c   :  { %v582_v27 = vpop.f32.mrb[35].mxu0 }
 0x15d   :  { %696 = vst [vmem:[%s1624_s3 + $0x80] sm:$0xff] %v665_v23  ;;  %v581_v28 = vadd.f32 %v580_v26, %v361_v24 }
 0x15e   :  { %v365_v29 = vpop.f32.mrb[36].mxu1 }
 0x15f   :  { %v666_v31 = vmax.f32 %v581_v28, 0.0  ;;  %v366_v32 = vadd.f32 %v1495_v30, %v365_v29  ;;  %v367_v33 = vpop.f32.mrb[37].mxu1  ;;  %v585_v34 = vpop.f32.mrb[36].mxu0 }
 0x160   :  { %v587_v35 = vpop.f32.mrb[37].mxu0 }
 0x161   :  { %697 = vst [vmem:[%s1624_s3 + $0x88] sm:$0xff] %v666_v31  ;;  %v586_v36 = vadd.f32 %v585_v34, %v366_v32 }
 0x162   :  { %v370_v37 = vpop.f32.mrb[38].mxu1 }
 0x163   :  { %v667_v38 = vmax.f32 %v586_v36, 0.0  ;;  %v371_v39 = vadd.f32 %v1495_v30, %v370_v37  ;;  %v372_v0 = vpop.f32.mrb[39].mxu1  ;;  %v590_v40 = vpop.f32.mrb[38].mxu0 }
 0x164   :  { %v592_v41 = vpop.f32.mrb[39].mxu0 }
 0x165   :  { %698 = vst [vmem:[%s1624_s3 + $0x90] sm:$0xff] %v667_v38  ;;  %v591_v42 = vadd.f32 %v590_v40, %v371_v39 }
 0x166   :  { %v375_v43 = vpop.f32.mrb[40].mxu1 }
 0x167   :  { %v668_v44 = vmax.f32 %v591_v42, 0.0  ;;  %v376_v45 = vadd.f32 %v1495_v30, %v375_v43  ;;  %v377_v46 = vpop.f32.mrb[41].mxu1  ;;  %v595_v47 = vpop.f32.mrb[40].mxu0 }
 0x168   :  { %v597_v48 = vpop.f32.mrb[41].mxu0 }
 0x169   :  { %699 = vst [vmem:[%s1624_s3 + $0x98] sm:$0xff] %v668_v44  ;;  %v596_v49 = vadd.f32 %v595_v47, %v376_v45 }
 0x16a   :  { %v380_v50 = vpop.f32.mrb[42].mxu1 }
 0x16b   :  { %v669_v51 = vmax.f32 %v596_v49, 0.0  ;;  %v381_v52 = vadd.f32 %v1495_v30, %v380_v50  ;;  %v382_v53 = vpop.f32.mrb[43].mxu1  ;;  %v600_v54 = vpop.f32.mrb[42].mxu0 }
 0x16c   :  { %v602_v55 = vpop.f32.mrb[43].mxu0 }
 0x16d   :  { %700 = vst [vmem:[%s1624_s3 + $0xa0] sm:$0xff] %v669_v51  ;;  %v601_v56 = vadd.f32 %v600_v54, %v381_v52 }
 0x16e   :  { %v385_v57 = vpop.f32.mrb[44].mxu1 }
 0x16f   :  { %v670_v58 = vmax.f32 %v601_v56, 0.0  ;;  %v386_v59 = vadd.f32 %v1495_v30, %v385_v57  ;;  %v387_v60 = vpop.f32.mrb[45].mxu1  ;;  %v605_v61 = vpop.f32.mrb[44].mxu0 }
 0x170   :  { %v607_v62 = vpop.f32.mrb[45].mxu0 }
 0x171   :  { %701 = vst [vmem:[%s1624_s3 + $0xa8] sm:$0xff] %v670_v58  ;;  %v606_v63 = vadd.f32 %v605_v61, %v386_v59 }
 0x172   :  { %v390_v1 = vpop.f32.mrb[46].mxu1 }
 0x173   :  { %v671_v2 = vmax.f32 %v606_v63, 0.0  ;;  %v391_v3 = vadd.f32 %v1495_v30, %v390_v1  ;;  %v392_v4 = vpop.f32.mrb[47].mxu1  ;;  %v610_v5 = vpop.f32.mrb[46].mxu0 }
 0x174   :  { %v612_v6 = vpop.f32.mrb[47].mxu0 }
 0x175   :  { %702 = vst [vmem:[%s1624_s3 + $0xb0] sm:$0xff] %v671_v2  ;;  %v611_v7 = vadd.f32 %v610_v5, %v391_v3 }
 0x176   :  { %v395_v8 = vpop.f32.mrb[48].mxu1 }
 0x177   :  { %v672_v9 = vmax.f32 %v611_v7, 0.0  ;;  %v396_v10 = vadd.f32 %v1495_v30, %v395_v8  ;;  %v397_v11 = vpop.f32.mrb[49].mxu1  ;;  %v615_v12 = vpop.f32.mrb[48].mxu0 }
 0x178   :  { %v617_v13 = vpop.f32.mrb[49].mxu0 }
 0x179   :  { %703 = vst [vmem:[%s1624_s3 + $0xb8] sm:$0xff] %v672_v9  ;;  %v616_v14 = vadd.f32 %v615_v12, %v396_v10 }
 0x17a   :  { %v400_v15 = vpop.f32.mrb[50].mxu1 }
 0x17b   :  { %v673_v16 = vmax.f32 %v616_v14, 0.0  ;;  %v401_v17 = vadd.f32 %v1495_v30, %v400_v15  ;;  %v402_v18 = vpop.f32.mrb[51].mxu1  ;;  %v620_v19 = vpop.f32.mrb[50].mxu0 }
 0x17c   :  { %v622_v20 = vpop.f32.mrb[51].mxu0 }
 0x17d   :  { %704 = vst [vmem:[%s1624_s3 + $0xc0] sm:$0xff] %v673_v16  ;;  %v621_v21 = vadd.f32 %v620_v19, %v401_v17 }
 0x17e   :  { %v405_v22 = vpop.f32.mrb[52].mxu1 }
 0x17f   :  { %v674_v23 = vmax.f32 %v621_v21, 0.0  ;;  %v406_v24 = vadd.f32 %v1495_v30, %v405_v22  ;;  %v407_v25 = vpop.f32.mrb[53].mxu1  ;;  %v625_v26 = vpop.f32.mrb[52].mxu0 }
 0x180   :  { %v627_v27 = vpop.f32.mrb[53].mxu0 }
 0x181   :  { %705 = vst [vmem:[%s1624_s3 + $0xc8] sm:$0xff] %v674_v23  ;;  %v626_v28 = vadd.f32 %v625_v26, %v406_v24 }
 0x182   :  { %v410_v29 = vpop.f32.mrb[54].mxu1 }
 0x183   :  { %v675_v31 = vmax.f32 %v626_v28, 0.0  ;;  %v411_v32 = vadd.f32 %v1495_v30, %v410_v29  ;;  %v412_v33 = vpop.f32.mrb[55].mxu1  ;;  %v630_v34 = vpop.f32.mrb[54].mxu0 }
 0x184   :  { %v632_v35 = vpop.f32.mrb[55].mxu0 }
 0x185   :  { %706 = vst [vmem:[%s1624_s3 + $0xd0] sm:$0xff] %v675_v31  ;;  %v631_v36 = vadd.f32 %v630_v34, %v411_v32 }
 0x186   :  { %v415_v37 = vpop.f32.mrb[56].mxu1 }
 0x187   :  { %v676_v38 = vmax.f32 %v631_v36, 0.0  ;;  %v416_v39 = vadd.f32 %v1495_v30, %v415_v37  ;;  %v417_v0 = vpop.f32.mrb[57].mxu1  ;;  %v635_v40 = vpop.f32.mrb[56].mxu0 }
 0x188   :  { %v637_v41 = vpop.f32.mrb[57].mxu0 }
 0x189   :  { %707 = vst [vmem:[%s1624_s3 + $0xd8] sm:$0xff] %v676_v38  ;;  %v636_v42 = vadd.f32 %v635_v40, %v416_v39 }
 0x18a   :  { %v420_v43 = vpop.f32.mrb[58].mxu1 }
 0x18b   :  { %v677_v44 = vmax.f32 %v636_v42, 0.0  ;;  %v421_v45 = vadd.f32 %v1495_v30, %v420_v43  ;;  %v422_v46 = vpop.f32.mrb[59].mxu1  ;;  %v640_v47 = vpop.f32.mrb[58].mxu0 }
 0x18c   :  { %v642_v48 = vpop.f32.mrb[59].mxu0 }
 0x18d   :  { %708 = vst [vmem:[%s1624_s3 + $0xe0] sm:$0xff] %v677_v44  ;;  %v641_v49 = vadd.f32 %v640_v47, %v421_v45 }
 0x18e   :  { %v425_v50 = vpop.f32.mrb[60].mxu1 }
 0x18f   :  { %v678_v51 = vmax.f32 %v641_v49, 0.0  ;;  %v426_v52 = vadd.f32 %v1495_v30, %v425_v50  ;;  %v427_v53 = vpop.f32.mrb[61].mxu1  ;;  %v645_v54 = vpop.f32.mrb[60].mxu0 }
 0x190   :  { %v647_v55 = vpop.f32.mrb[61].mxu0 }
 0x191   :  { %709 = vst [vmem:[%s1624_s3 + $0xe8] sm:$0xff] %v678_v51  ;;  %v646_v56 = vadd.f32 %v645_v54, %v426_v52 }
 0x193   :  { %v679_v57 = vmax.f32 %v646_v56, 0.0 }
 0x195   :  { %710 = vst [vmem:[%s1624_s3 + $0xf0] sm:$0xff] %v679_v57 }

// kernel: fwd.6
= control target key start
LH: loop header
LB: loop body
LE: loop exit
PB: predicated region body
PF: predicated region fallthrough
CT: control target
= control target key end

     0   :  { %v1134_v0 = vmov 0.0|0.0   ;;  %vm1135_vm0 = vmmov 0   ;;  %s1963_s1 = inlined_call_operand.vmem [shape: f32[640,128], index: 1, kind: input, shape index: {}]   ;;  %s1964_s0 = inlined_call_operand.vmem [shape: f32[168,640], index: 0, kind: input, shape index: {}]   ;;  %s1965_s2 = inlined_call_operand.vmem [shape: f32[1,128], index: 2, kind: input, shape index: {}]   ;;  %s1966_s3 = inlined_call_operand.vmem [shape: f32[168,128], index: 3, kind: output, shape index: {}]  }
   0x1   :  { %895 = vmatprep.subr.bf16.mxu1 %v1134_v0  ;;  %943 = vmatprep.subr.bf16.mxu0 %v1134_v0  ;;  %v119_v1 = vld [vmem:[%s1963_s1] sm:$0xff]  ;;  %v120_v2 = vld [vmem:[%s1963_s1 + $0x8] sm:$0xff]  ;;  %v121_v6 = vld [vmem:[%s1963_s1 + $0x10] sm:$0xff] }
   0x2   :  { %v151_v3 = vld [vmem:[%s1963_s1 + $0x100] sm:$0xff]  ;;  %v896_v4 = vpack.c.bf16 %v120_v2, %v119_v1  ;;  %v152_v5 = vld [vmem:[%s1963_s1 + $0x108] sm:$0xff]  ;;  %v122_v7 = vld [vmem:[%s1963_s1 + $0x18] sm:$0xff] }
   0x3   :  { %v1177_v8 = vpack.c.bf16 %v152_v5, %v151_v3  ;;  %v153_v9 = vld [vmem:[%s1963_s1 + $0x110] sm:$0xff]  ;;  %v154_v10 = vld [vmem:[%s1963_s1 + $0x118] sm:$0xff]  ;;  %v899_v11 = vpack.c.bf16 %v122_v7, %v121_v6  ;;  %v123_v13 = vld [vmem:[%s1963_s1 + $0x20] sm:$0xff] }
   0x4   :  { %897 = vmatpush1.bf16.msra.mxu1 %v896_v4  ;;  %v1187_v12 = vpack.c.bf16 %v154_v10, %v153_v9  ;;  %v124_v14 = vld [vmem:[%s1963_s1 + $0x28] sm:$0xff]  ;;  %v155_v15 = vld [vmem:[%s1963_s1 + $0x120] sm:$0xff]  ;;  %v125_v19 = vld [vmem:[%s1963_s1 + $0x30] sm:$0xff] }
   0x5   :  { %945 = vmatpush1.bf16.msra.mxu0 %v1177_v8  ;;  %898 = vmatprep.subr.bf16.mxu1 %v1134_v0  ;;  %v156_v16 = vld [vmem:[%s1963_s1 + $0x128] sm:$0xff]  ;;  %v902_v17 = vpack.c.bf16 %v124_v14, %v123_v13  ;;  %v126_v20 = vld [vmem:[%s1963_s1 + $0x38] sm:$0xff]  ;;  %v157_v21 = vld [vmem:[%s1963_s1 + $0x130] sm:$0xff] }
   0x6   :  { %946 = vmatprep.subr.bf16.mxu0 %v1134_v0  ;;  %v1204_v18 = vpack.c.bf16 %v156_v16, %v155_v15  ;;  %v158_v22 = vld [vmem:[%s1963_s1 + $0x138] sm:$0xff]  ;;  %v905_v23 = vpack.c.bf16 %v126_v20, %v125_v19  ;;  %v127_v25 = vld [vmem:[%s1963_s1 + $0x40] sm:$0xff]  ;;  %v128_v26 = vld [vmem:[%s1963_s1 + $0x48] sm:$0xff] }
   0x7   :  { %v1221_v24 = vpack.c.bf16 %v158_v22, %v157_v21  ;;  %v159_v27 = vld [vmem:[%s1963_s1 + $0x140] sm:$0xff]  ;;  %v160_v28 = vld [vmem:[%s1963_s1 + $0x148] sm:$0xff]  ;;  %v908_v29 = vpack.c.bf16 %v128_v26, %v127_v25  ;;  %v129_v31 = vld [vmem:[%s1963_s1 + $0x50] sm:$0xff] }
   0x8   :  { %900 = vmatpush1.bf16.msra.mxu1 %v899_v11  ;;  %v1238_v30 = vpack.c.bf16 %v160_v28, %v159_v27  ;;  %v130_v32 = vld [vmem:[%s1963_s1 + $0x58] sm:$0xff]  ;;  %v161_v33 = vld [vmem:[%s1963_s1 + $0x150] sm:$0xff]  ;;  %v131_v37 = vld [vmem:[%s1963_s1 + $0x60] sm:$0xff] }
   0x9   :  { %948 = vmatpush1.bf16.msra.mxu0 %v1187_v12  ;;  %901 = vmatprep.subr.bf16.mxu1 %v1134_v0  ;;  %v162_v34 = vld [vmem:[%s1963_s1 + $0x158] sm:$0xff]  ;;  %v911_v35 = vpack.c.bf16 %v130_v32, %v129_v31  ;;  %v132_v38 = vld [vmem:[%s1963_s1 + $0x68] sm:$0xff]  ;;  %v163_v39 = vld [vmem:[%s1963_s1 + $0x160] sm:$0xff] }
   0xa   :  { %949 = vmatprep.subr.bf16.mxu0 %v1134_v0  ;;  %v1255_v36 = vpack.c.bf16 %v162_v34, %v161_v33  ;;  %v164_v40 = vld [vmem:[%s1963_s1 + $0x168] sm:$0xff]  ;;  %v17_v42 = vld [vmem:[%s1964_s0 + $0x18] sm:$0xff]  ;;  %v914_v43 = vpack.c.bf16 %v132_v38, %v131_v37  ;;  %v133_v45 = vld [vmem:[%s1963_s1 + $0x70] sm:$0xff] }
   0xb   :  { %v15_v41 = vld [vmem:[%s1964_s0 + $0x8] sm:$0xff]  ;;  %440 = vmatprep.mubr.f32.mxu0 %v17_v42  ;;  %v1278_v44 = vpack.c.bf16 %v164_v40, %v163_v39  ;;  %v134_v46 = vld [vmem:[%s1963_s1 + $0x78] sm:$0xff]  ;;  %v165_v47 = vld [vmem:[%s1963_s1 + $0x170] sm:$0xff] }
   0xc   :  { %903 = vmatpush1.bf16.msra.mxu1 %v902_v17  ;;  %270 = vmatprep.mubr.f32.mxu1 %v15_v41  ;;  %v166_v48 = vld [vmem:[%s1963_s1 + $0x178] sm:$0xff]  ;;  %v917_v49 = vpack.c.bf16 %v134_v46, %v133_v45  ;;  %v135_v51 = vld [vmem:[%s1963_s1 + $0x80] sm:$0xff]  ;;  %v136_v52 = vld [vmem:[%s1963_s1 + $0x88] sm:$0xff] }
   0xd   :  { %951 = vmatpush1.bf16.msra.mxu0 %v1204_v18  ;;  %904 = vmatprep.subr.bf16.mxu1 %v1134_v0  ;;  %v1295_v50 = vpack.c.bf16 %v166_v48, %v165_v47  ;;  %v167_v53 = vld [vmem:[%s1963_s1 + $0x180] sm:$0xff]  ;;  %v168_v54 = vld [vmem:[%s1963_s1 + $0x188] sm:$0xff]  ;;  %v920_v55 = vpack.c.bf16 %v136_v52, %v135_v51  ;;  %v137_v57 = vld [vmem:[%s1963_s1 + $0x90] sm:$0xff] }
   0xe   :  { %952 = vmatprep.subr.bf16.mxu0 %v1134_v0  ;;  %v1312_v56 = vpack.c.bf16 %v168_v54, %v167_v53  ;;  %v138_v58 = vld [vmem:[%s1963_s1 + $0x98] sm:$0xff]  ;;  %v169_v59 = vld [vmem:[%s1963_s1 + $0x190] sm:$0xff]  ;;  %v139_v63 = vld [vmem:[%s1963_s1 + $0xa0] sm:$0xff] }
   0xf   :  { %v170_v60 = vld [vmem:[%s1963_s1 + $0x198] sm:$0xff]  ;;  %v923_v61 = vpack.c.bf16 %v138_v58, %v137_v57  ;;  %v140_v1 = vld [vmem:[%s1963_s1 + $0xa8] sm:$0xff]  ;;  %v171_v2 = vld [vmem:[%s1963_s1 + $0x1a0] sm:$0xff] }
  0x10   :  { %906 = vmatpush1.bf16.msra.mxu1 %v905_v23  ;;  %v1329_v62 = vpack.c.bf16 %v170_v60, %v169_v59  ;;  %v172_v3 = vld [vmem:[%s1963_s1 + $0x1a8] sm:$0xff]  ;;  %v926_v4 = vpack.c.bf16 %v140_v1, %v139_v63  ;;  %v141_v6 = vld [vmem:[%s1963_s1 + $0xb0] sm:$0xff]  ;;  %v142_v7 = vld [vmem:[%s1963_s1 + $0xb8] sm:$0xff] }
  0x11   :  { %954 = vmatpush1.bf16.msra.mxu0 %v1221_v24  ;;  %907 = vmatprep.subr.bf16.mxu1 %v1134_v0  ;;  %v1346_v5 = vpack.c.bf16 %v172_v3, %v171_v2  ;;  %v173_v9 = vld [vmem:[%s1963_s1 + $0x1b0] sm:$0xff]  ;;  %v174_v10 = vld [vmem:[%s1963_s1 + $0x1b8] sm:$0xff]  ;;  %v929_v11 = vpack.c.bf16 %v142_v7, %v141_v6  ;;  %v143_v14 = vld [vmem:[%s1963_s1 + $0xc0] sm:$0xff] }
  0x12   :  { %955 = vmatprep.subr.bf16.mxu0 %v1134_v0  ;;  %v1363_v13 = vpack.c.bf16 %v174_v10, %v173_v9  ;;  %v144_v15 = vld [vmem:[%s1963_s1 + $0xc8] sm:$0xff]  ;;  %v175_v16 = vld [vmem:[%s1963_s1 + $0x1c0] sm:$0xff]  ;;  %v145_v21 = vld [vmem:[%s1963_s1 + $0xd0] sm:$0xff] }
  0x13   :  { %v176_v17 = vld [vmem:[%s1963_s1 + $0x1c8] sm:$0xff]  ;;  %v932_v19 = vpack.c.bf16 %v144_v15, %v143_v14  ;;  %v146_v22 = vld [vmem:[%s1963_s1 + $0xd8] sm:$0xff]  ;;  %v177_v23 = vld [vmem:[%s1963_s1 + $0x1d0] sm:$0xff] }
  0x14   :  { %909 = vmatpush1.bf16.msra.mxu1 %v908_v29  ;;  %v1380_v20 = vpack.c.bf16 %v176_v17, %v175_v16  ;;  %v178_v25 = vld [vmem:[%s1963_s1 + $0x1d8] sm:$0xff]  ;;  %v935_v26 = vpack.c.bf16 %v146_v22, %v145_v21  ;;  %v147_v28 = vld [vmem:[%s1963_s1 + $0xe0] sm:$0xff]  ;;  %v148_v29 = vld [vmem:[%s1963_s1 + $0xe8] sm:$0xff] }
  0x15   :  { %957 = vmatpush1.bf16.msra.mxu0 %v1238_v30  ;;  %910 = vmatprep.subr.bf16.mxu1 %v1134_v0  ;;  %v1397_v27 = vpack.c.bf16 %v178_v25, %v177_v23  ;;  %v179_v31 = vld [vmem:[%s1963_s1 + $0x1e0] sm:$0xff]  ;;  %v180_v32 = vld [vmem:[%s1963_s1 + $0x1e8] sm:$0xff]  ;;  %v938_v33 = vpack.c.bf16 %v148_v29, %v147_v28  ;;  %v150_v37 = vld [vmem:[%s1963_s1 + $0xf8] sm:$0xff] }
  0x16   :  { %958 = vmatprep.subr.bf16.mxu0 %v1134_v0  ;;  %v1414_v34 = vpack.c.bf16 %v180_v32, %v179_v31  ;;  %v181_v38 = vld [vmem:[%s1963_s1 + $0x1f0] sm:$0xff]  ;;  %v182_v39 = vld [vmem:[%s1963_s1 + $0x1f8] sm:$0xff]  ;;  %v183_v42 = vld [vmem:[%s1963_s1 + $0x200] sm:$0xff] }
  0x17   :  { %v1431_v41 = vpack.c.bf16 %v182_v39, %v181_v38  ;;  %v14_v45 = vld [vmem:[%s1964_s0] sm:$0xff]  ;;  %v16_v46 = vld [vmem:[%s1964_s0 + $0x10] sm:$0xff]  ;;  %v186_v51 = vld [vmem:[%s1963_s1 + $0x218] sm:$0xff] }
  0x18   :  { %912 = vmatpush1.bf16.msra.mxu1 %v911_v35  ;;  %v149_v35 = vld [vmem:[%s1963_s1 + $0xf0] sm:$0xff]  ;;  %v22_v52 = vld [vmem:[%s1964_s0 + $0x40] sm:$0xff]  ;;  %v19_v53 = vld [vmem:[%s1964_s0 + $0x28] sm:$0xff] }
  0x19   :  { %960 = vmatpush1.bf16.msra.mxu0 %v1255_v36  ;;  %913 = vmatprep.subr.bf16.mxu1 %v1134_v0  ;;  %v941_v40 = vpack.c.bf16 %v150_v37, %v149_v35  ;;  %v20_v48 = vld [vmem:[%s1964_s0 + $0x30] sm:$0xff]  ;;  %v21_v54 = vld [vmem:[%s1964_s0 + $0x38] sm:$0xff]  ;;  %v27_v58 = vld [vmem:[%s1964_s0 + $0x68] sm:$0xff] }
  0x1a   :  { %961 = vmatprep.subr.bf16.mxu0 %v1134_v0  ;;  %v188_v59 = vld [vmem:[%s1963_s1 + $0x228] sm:$0xff]  ;;  %v24_v60 = vld [vmem:[%s1964_s0 + $0x50] sm:$0xff]  ;;  %v30_v63 = vld [vmem:[%s1964_s0 + $0x80] sm:$0xff] }
  0x1b   :  { %v32_v2 = vld [vmem:[%s1964_s0 + $0x90] sm:$0xff]  ;;  %v31_v6 = vld [vmem:[%s1964_s0 + $0x88] sm:$0xff]  ;;  %v37_v10 = vld [vmem:[%s1964_s0 + $0xb8] sm:$0xff] }
  0x1c   :  { %915 = vmatpush1.bf16.msra.mxu1 %v914_v43  ;;  %v184_v43 = vld [vmem:[%s1963_s1 + $0x208] sm:$0xff]  ;;  %v189_v3 = vld [vmem:[%s1963_s1 + $0x230] sm:$0xff]  ;;  %v194_v22 = vld [vmem:[%s1963_s1 + $0x258] sm:$0xff] }
  0x1d   :  { %963 = vmatpush1.bf16.msra.mxu0 %v1278_v44  ;;  %916 = vmatprep.subr.bf16.mxu1 %v1134_v0  ;;  %v992_v47 = vpack.c.bf16 %v184_v43, %v183_v42  ;;  %v35_v7 = vld [vmem:[%s1964_s0 + $0xa8] sm:$0xff]  ;;  %v36_v15 = vld [vmem:[%s1964_s0 + $0xb0] sm:$0xff]  ;;  %v41_v23 = vld [vmem:[%s1964_s0 + $0xd8] sm:$0xff] }
  0x1e   :  { %964 = vmatprep.subr.bf16.mxu0 %v1134_v0  ;;  %v192_v14 = vld [vmem:[%s1963_s1 + $0x248] sm:$0xff]  ;;  %v40_v16 = vld [vmem:[%s1964_s0 + $0xd0] sm:$0xff]  ;;  %v45_v25 = vld [vmem:[%s1964_s0 + $0xf8] sm:$0xff] }
  0x1f   :  { %v193_v21 = vld [vmem:[%s1963_s1 + $0x250] sm:$0xff]  ;;  %v47_v28 = vld [vmem:[%s1964_s0 + $0x108] sm:$0xff]  ;;  %v195_v29 = vld [vmem:[%s1963_s1 + $0x260] sm:$0xff] }
  0x20   :  { %918 = vmatpush1.bf16.msra.mxu1 %v917_v49  ;;  %v185_v49 = vld [vmem:[%s1963_s1 + $0x210] sm:$0xff]  ;;  %v196_v31 = vld [vmem:[%s1963_s1 + $0x268] sm:$0xff]  ;;  %v198_v39 = vld [vmem:[%s1963_s1 + $0x278] sm:$0xff] }
  0x21   :  { %966 = vmatpush1.bf16.msra.mxu0 %v1295_v50  ;;  %919 = vmatprep.subr.bf16.mxu1 %v1134_v0  ;;  %v995_v57 = vpack.c.bf16 %v186_v51, %v185_v49  ;;  %v44_v32 = vld [vmem:[%s1964_s0 + $0xf0] sm:$0xff]  ;;  %v1010_v35 = vpack.c.bf16 %v196_v31, %v195_v29  ;;  %v55_v42 = vld [vmem:[%s1964_s0 + $0x148] sm:$0xff]  ;;  %v61_v51 = vld [vmem:[%s1964_s0 + $0x178] sm:$0xff] }
  0x22   :  { %967 = vmatprep.subr.bf16.mxu0 %v1134_v0  ;;  %v52_v37 = vld [vmem:[%s1964_s0 + $0x130] sm:$0xff]  ;;  %v59_v49 = vld [vmem:[%s1964_s0 + $0x168] sm:$0xff]  ;;  %v86_v31 = vld [vmem:[%s1964_s0 + $0x240] sm:$0xff] }
  0x23   :  { %v197_v38 = vld [vmem:[%s1963_s1 + $0x270] sm:$0xff]  ;;  %v87_v29 = vld [vmem:[%s1964_s0 + $0x248] sm:$0xff] }
  0x24   :  { %921 = vmatpush1.bf16.msra.mxu1 %v920_v55  ;;  %v25_v55 = vld [vmem:[%s1964_s0 + $0x58] sm:$0xff]  ;;  %v1013_v43 = vpack.c.bf16 %v198_v39, %v197_v38  ;;  %v96_v38 = vld [vmem:[%s1964_s0 + $0x290] sm:$0xff] }
  0x25   :  { %969 = vmatpush1.bf16.msra.mxu0 %v1312_v56  ;;  %922 = vmatprep.subr.bf16.mxu1 %v1134_v0  ;;  %v93_v39 = vld [vmem:[%s1964_s0 + $0x278] sm:$0xff] }
  0x26   :  { %970 = vmatprep.subr.bf16.mxu0 %v1134_v0 }
  0x28   :  { %924 = vmatpush1.bf16.msra.mxu1 %v923_v61  ;;  %v26_v61 = vld [vmem:[%s1964_s0 + $0x60] sm:$0xff] }
  0x29   :  { %972 = vmatpush1.bf16.msra.mxu0 %v1329_v62  ;;  %925 = vmatprep.subr.bf16.mxu1 %v1134_v0 }
  0x2a   :  { %973 = vmatprep.subr.bf16.mxu0 %v1134_v0 }
  0x2c   :  { %927 = vmatpush1.bf16.msra.mxu1 %v926_v4  ;;  %v190_v4 = vld [vmem:[%s1963_s1 + $0x238] sm:$0xff] }
  0x2d   :  { %975 = vmatpush1.bf16.msra.mxu0 %v1346_v5  ;;  %928 = vmatprep.subr.bf16.mxu1 %v1134_v0  ;;  %v1001_v9 = vpack.c.bf16 %v190_v4, %v189_v3  ;;  %v38_v3 = vld [vmem:[%s1964_s0 + $0xc0] sm:$0xff] }
  0x2e   :  { %976 = vmatprep.subr.bf16.mxu0 %v1134_v0  ;;  %v94_v4 = vld [vmem:[%s1964_s0 + $0x280] sm:$0xff] }
  0x30   :  { %930 = vmatpush1.bf16.msra.mxu1 %v929_v11  ;;  %v191_v11 = vld [vmem:[%s1963_s1 + $0x240] sm:$0xff] }
  0x31   :  { %978 = vmatpush1.bf16.msra.mxu0 %v1363_v13  ;;  %931 = vmatprep.subr.bf16.mxu1 %v1134_v0  ;;  %v1004_v17 = vpack.c.bf16 %v192_v14, %v191_v11  ;;  %v109_v11 = vld [vmem:[%s1964_s0 + $0x2f8] sm:$0xff]  ;;  %v58_v14 = vld [vmem:[%s1964_s0 + $0x160] sm:$0xff] }
  0x32   :  { %979 = vmatprep.subr.bf16.mxu0 %v1134_v0 }
  0x34   :  { %933 = vmatpush1.bf16.msra.mxu1 %v932_v19  ;;  %v42_v19 = vld [vmem:[%s1964_s0 + $0xe0] sm:$0xff] }
  0x35   :  { %981 = vmatpush1.bf16.msra.mxu0 %v1380_v20  ;;  %934 = vmatprep.subr.bf16.mxu1 %v1134_v0 }
  0x36   :  { %982 = vmatprep.subr.bf16.mxu0 %v1134_v0 }
  0x38   :  { %936 = vmatpush1.bf16.msra.mxu1 %v935_v26  ;;  %v1007_v26 = vpack.c.bf16 %v194_v22, %v193_v21  ;;  %v68_v21 = vld [vmem:[%s1964_s0 + $0x1b0] sm:$0xff]  ;;  %v77_v22 = vld [vmem:[%s1964_s0 + $0x1f8] sm:$0xff] }
  0x39   :  { %984 = vmatpush1.bf16.msra.mxu0 %v1397_v27  ;;  %937 = vmatprep.subr.bf16.mxu1 %v1134_v0 }
  0x3a   :  { %985 = vmatprep.subr.bf16.mxu0 %v1134_v0 }
  0x3c   :  { %939 = vmatpush1.bf16.msra.mxu1 %v938_v33  ;;  %v50_v33 = vld [vmem:[%s1964_s0 + $0x120] sm:$0xff] }
  0x3d   :  { %987 = vmatpush1.bf16.msra.mxu0 %v1414_v34  ;;  %940 = vmatprep.subr.bf16.mxu1 %v1134_v0 }
  0x3e   :  { %988 = vmatprep.subr.bf16.mxu0 %v1134_v0 }
  0x40   :  { %942 = vmatpush1.bf16.msra.mxu1 %v941_v40  ;;  %v49_v40 = vld [vmem:[%s1964_s0 + $0x118] sm:$0xff] }
  0x41   :  { %990 = vmatpush1.bf16.msra.mxu0 %v1431_v41  ;;  %1015 = vmatprep.subr.bf16.mxu1 %v1134_v0 }
  0x42   :  { %991 = vmatprep.subr.bf16.mxu0 %v1134_v0 }
  0x43   :  { %271 = vmatmul.mubr.f32.vlgmr.msra.gmra.mrb[0].mxu1 %v14_v45  ;;  %v57_v45 = vld [vmem:[%s1964_s0 + $0x158] sm:$0xff] }
  0x44   :  { %441 = vmatmul.mubr.f32.vlgmr.msra.gmra.mrb[0].mxu0 %v16_v46  ;;  %275 = vmatprep.mubr.f32.mxu1 %v20_v48  ;;  %v54_v46 = vld [vmem:[%s1964_s0 + $0x140] sm:$0xff] }
  0x45   :  { %993 = vmatpush3.bf16.msra.mxu0 %v992_v47  ;;  %1031 = vmatpush1.bf16.msra.mxu1 %v1177_v8  ;;  %v187_v8 = vld [vmem:[%s1963_s1 + $0x220] sm:$0xff]  ;;  %v56_v47 = vld [vmem:[%s1964_s0 + $0x150] sm:$0xff] }
  0x46   :  { %445 = vmatprep.mubr.f32.mxu0 %v22_v52  ;;  %994 = vmatprep.subr.bf16.mxu0 %v1134_v0  ;;  %v998_v1 = vpack.c.bf16 %v188_v59, %v187_v8  ;;  %v62_v48 = vld [vmem:[%s1964_s0 + $0x180] sm:$0xff]  ;;  %v65_v52 = vld [vmem:[%s1964_s0 + $0x198] sm:$0xff]  ;;  %v23_v59 = vld [vmem:[%s1964_s0 + $0x48] sm:$0xff] }
  0x47   :  { %276 = vmatmul.mubr.f32.gmra.mrb[2].mxu1 %v19_v53  ;;  %1016 = vmatprep.subr.bf16.mxu1 %v1134_v0  ;;  %v64_v53 = vld [vmem:[%s1964_s0 + $0x190] sm:$0xff]  ;;  %v74_v8 = vld [vmem:[%s1964_s0 + $0x1e0] sm:$0xff] }
  0x48   :  { %446 = vmatmul.mubr.f32.gmra.mrb[2].mxu0 %v21_v54  ;;  %280 = vmatprep.mubr.f32.mxu1 %v25_v55  ;;  %v66_v54 = vld [vmem:[%s1964_s0 + $0x1a0] sm:$0xff] }
  0x49   :  { %450 = vmatprep.mubr.f32.mxu0 %v27_v58  ;;  %996 = vmatpush3.bf16.msra.mxu0 %v995_v57  ;;  %v70_v55 = vld [vmem:[%s1964_s0 + $0x1c0] sm:$0xff]  ;;  %v1136_v57 = vmov 0.0  }
  0x4a   :  { %1032 = vmatpush1.bf16.msra.mxu1 %v1187_v12  ;;  %997 = vmatprep.subr.bf16.mxu0 %v1134_v0  ;;  %v29_v12 = vld [vmem:[%s1964_s0 + $0x78] sm:$0xff]  ;;  %v18_v58 = vld [vmem:[%s1964_s0 + $0x20] sm:$0xff] }
  0x4b   :  { %281 = vmatmul.mubr.f32.gmra.mrb[4].mxu1 %v24_v60  ;;  %1017 = vmatprep.subr.bf16.mxu1 %v1134_v0  ;;  %v79_v60 = vld [vmem:[%s1964_s0 + $0x208] sm:$0xff] }
  0x4c   :  { %451 = vmatmul.mubr.f32.gmra.mrb[4].mxu0 %v26_v61  ;;  %285 = vmatprep.mubr.f32.mxu1 %v30_v63  ;;  %v28_v61 = vld [vmem:[%s1964_s0 + $0x70] sm:$0xff] }
  0x4d   :  { %455 = vmatprep.mubr.f32.mxu0 %v32_v2  ;;  %999 = vmatpush3.bf16.msra.mxu0 %v998_v1  ;;  %v84_v63 = vld [vmem:[%s1964_s0 + $0x230] sm:$0xff]  ;;  %v33_v1 = vld [vmem:[%s1964_s0 + $0x98] sm:$0xff] }
  0x4e   :  { %1033 = vmatpush1.bf16.msra.mxu1 %v1204_v18  ;;  %1000 = vmatprep.subr.bf16.mxu0 %v1134_v0  ;;  %v34_v18 = vld [vmem:[%s1964_s0 + $0xa0] sm:$0xff]  ;;  %v89_v2 = vld [vmem:[%s1964_s0 + $0x258] sm:$0xff] }
  0x4f   :  { %286 = vmatmul.mubr.f32.gmra.mrb[6].mxu1 %v29_v12  ;;  %1018 = vmatprep.subr.bf16.mxu1 %v1134_v0  ;;  %v43_v12 = vld [vmem:[%s1964_s0 + $0xe8] sm:$0xff] }
  0x50   :  { %456 = vmatmul.mubr.f32.gmra.mrb[6].mxu0 %v31_v6  ;;  %290 = vmatprep.mubr.f32.mxu1 %v35_v7  ;;  %v48_v6 = vld [vmem:[%s1964_s0 + $0x110] sm:$0xff]  ;;  %v105_v7 = vld [vmem:[%s1964_s0 + $0x2d8] sm:$0xff] }
  0x51   :  { %460 = vmatprep.mubr.f32.mxu0 %v37_v10  ;;  %1002 = vmatpush3.bf16.msra.mxu0 %v1001_v9  ;;  %v53_v9 = vld [vmem:[%s1964_s0 + $0x138] sm:$0xff]  ;;  %v110_v10 = vld [vmem:[%s1964_s0 + $0x300] sm:$0xff] }
  0x52   :  { %1034 = vmatpush1.bf16.msra.mxu1 %v1221_v24  ;;  %1003 = vmatprep.subr.bf16.mxu0 %v1134_v0  ;;  %v39_v24 = vld [vmem:[%s1964_s0 + $0xc8] sm:$0xff] }
  0x53   :  { %291 = vmatmul.mubr.f32.gmra.mrb[8].mxu1 %v34_v18  ;;  %1019 = vmatprep.subr.bf16.mxu1 %v1134_v0  ;;  %v115_v18 = vld [vmem:[%s1964_s0 + $0x328] sm:$0xff] }
  0x54   :  { %461 = vmatmul.mubr.f32.gmra.mrb[8].mxu0 %v36_v15  ;;  %295 = vmatprep.mubr.f32.mxu1 %v40_v16  ;;  %v114_v15 = vld [vmem:[%s1964_s0 + $0x320] sm:$0xff]  ;;  %v63_v16 = vld [vmem:[%s1964_s0 + $0x188] sm:$0xff] }
  0x55   :  { %465 = vmatprep.mubr.f32.mxu0 %v42_v19  ;;  %1005 = vmatpush3.bf16.msra.mxu0 %v1004_v17  ;;  %v72_v17 = vld [vmem:[%s1964_s0 + $0x1d0] sm:$0xff]  ;;  %v71_v19 = vld [vmem:[%s1964_s0 + $0x1c8] sm:$0xff] }
  0x56   :  { %1035 = vmatpush1.bf16.msra.mxu1 %v1238_v30  ;;  %1006 = vmatprep.subr.bf16.mxu0 %v1134_v0  ;;  %v46_v30 = vld [vmem:[%s1964_s0 + $0x100] sm:$0xff] }
  0x57   :  { %296 = vmatmul.mubr.f32.gmra.mrb[10].mxu1 %v39_v24  ;;  %1020 = vmatprep.subr.bf16.mxu1 %v1134_v0  ;;  %v76_v24 = vld [vmem:[%s1964_s0 + $0x1f0] sm:$0xff] }
  0x58   :  { %466 = vmatmul.mubr.f32.gmra.mrb[10].mxu0 %v41_v23  ;;  %300 = vmatprep.mubr.f32.mxu1 %v45_v25  ;;  %v73_v23 = vld [vmem:[%s1964_s0 + $0x1d8] sm:$0xff]  ;;  %v82_v25 = vld [vmem:[%s1964_s0 + $0x220] sm:$0xff] }
  0x59   :  { %470 = vmatprep.mubr.f32.mxu0 %v47_v28  ;;  %1008 = vmatpush3.bf16.msra.mxu0 %v1007_v26  ;;  %v81_v26 = vld [vmem:[%s1964_s0 + $0x218] sm:$0xff]  ;;  %v78_v28 = vld [vmem:[%s1964_s0 + $0x200] sm:$0xff] }
  0x5a   :  { %1036 = vmatpush1.bf16.msra.mxu1 %v1255_v36  ;;  %1009 = vmatprep.subr.bf16.mxu0 %v1134_v0  ;;  %v51_v36 = vld [vmem:[%s1964_s0 + $0x128] sm:$0xff] }
  0x5b   :  { %301 = vmatmul.mubr.f32.gmra.mrb[12].mxu1 %v44_v32  ;;  %1021 = vmatprep.subr.bf16.mxu1 %v1134_v0  ;;  %v83_v32 = vld [vmem:[%s1964_s0 + $0x228] sm:$0xff] }
  0x5c   :  { %471 = vmatmul.mubr.f32.gmra.mrb[12].mxu0 %v46_v30  ;;  %305 = vmatprep.mubr.f32.mxu1 %v50_v33  ;;  %v92_v30 = vld [vmem:[%s1964_s0 + $0x270] sm:$0xff]  ;;  %v91_v33 = vld [vmem:[%s1964_s0 + $0x268] sm:$0xff] }
  0x5d   :  { %475 = vmatprep.mubr.f32.mxu0 %v52_v37  ;;  %1011 = vmatpush3.bf16.msra.mxu0 %v1010_v35  ;;  %v88_v35 = vld [vmem:[%s1964_s0 + $0x250] sm:$0xff]  ;;  %v97_v37 = vld [vmem:[%s1964_s0 + $0x298] sm:$0xff] }
  0x5e   :  { %1037 = vmatpush1.bf16.msra.mxu1 %v1278_v44  ;;  %1012 = vmatprep.subr.bf16.mxu0 %v1134_v0  ;;  %v60_v44 = vld [vmem:[%s1964_s0 + $0x170] sm:$0xff] }
  0x5f   :  { %306 = vmatmul.mubr.f32.gmra.mrb[14].mxu1 %v49_v40  ;;  %1022 = vmatprep.subr.bf16.mxu1 %v1134_v0  ;;  %v102_v40 = vld [vmem:[%s1964_s0 + $0x2c0] sm:$0xff] }
  0x60   :  { %476 = vmatmul.mubr.f32.gmra.mrb[14].mxu0 %v51_v36  ;;  %310 = vmatprep.mubr.f32.mxu1 %v55_v42  ;;  %v101_v36 = vld [vmem:[%s1964_s0 + $0x2b8] sm:$0xff]  ;;  %v98_v42 = vld [vmem:[%s1964_s0 + $0x2a0] sm:$0xff] }
  0x61   :  { %480 = vmatprep.mubr.f32.mxu0 %v57_v45  ;;  %1014 = vmatpush3.bf16.msra.mxu0 %v1013_v43  ;;  %v107_v43 = vld [vmem:[%s1964_s0 + $0x2e8] sm:$0xff]  ;;  %v106_v45 = vld [vmem:[%s1964_s0 + $0x2e0] sm:$0xff] }
  0x62   :  { %1038 = vmatpush1.bf16.msra.mxu1 %v1295_v50  ;;  %v67_v50 = vld [vmem:[%s1964_s0 + $0x1a8] sm:$0xff] }
  0x63   :  { %311 = vmatmul.mubr.f32.gmra.mrb[16].mxu1 %v54_v46  ;;  %1023 = vmatprep.subr.bf16.mxu1 %v1134_v0  ;;  %v103_v46 = vld [vmem:[%s1964_s0 + $0x2c8] sm:$0xff] }
  0x64   :  { %481 = vmatmul.mubr.f32.gmra.mrb[16].mxu0 %v56_v47  ;;  %315 = vmatprep.mubr.f32.mxu1 %v60_v44  ;;  %v112_v47 = vld [vmem:[%s1964_s0 + $0x310] sm:$0xff]  ;;  %v111_v44 = vld [vmem:[%s1964_s0 + $0x308] sm:$0xff] }
  0x65   :  { %485 = vmatprep.mubr.f32.mxu0 %v62_v48  ;;  %v108_v48 = vld [vmem:[%s1964_s0 + $0x2f0] sm:$0xff] }
  0x66   :  { %1039 = vmatpush1.bf16.msra.mxu1 %v1312_v56  ;;  %v69_v56 = vld [vmem:[%s1964_s0 + $0x1b8] sm:$0xff] }
  0x67   :  { %316 = vmatmul.mubr.f32.gmra.mrb[18].mxu1 %v59_v49  ;;  %1024 = vmatprep.subr.bf16.mxu1 %v1134_v0  ;;  %v117_v49 = vld [vmem:[%s1964_s0 + $0x338] sm:$0xff] }
  0x68   :  { %486 = vmatmul.mubr.f32.gmra.mrb[18].mxu0 %v61_v51  ;;  %320 = vmatprep.mubr.f32.mxu1 %v65_v52  ;;  %v116_v51 = vld [vmem:[%s1964_s0 + $0x330] sm:$0xff]  ;;  %v113_v52 = vld [vmem:[%s1964_s0 + $0x318] sm:$0xff] }
  0x69   :  { %490 = vmatprep.mubr.f32.mxu0 %v67_v50  ;;  %v118_v50 = vld [vmem:[%s1964_s0 + $0x340] sm:$0xff] }
  0x6a   :  { %1040 = vmatpush1.bf16.msra.mxu1 %v1329_v62  ;;  %v75_v62 = vld [vmem:[%s1964_s0 + $0x1e8] sm:$0xff] }
  0x6b   :  { %321 = vmatmul.mubr.f32.gmra.mrb[20].mxu1 %v64_v53  ;;  %1025 = vmatprep.subr.bf16.mxu1 %v1134_v0 }
  0x6c   :  { %491 = vmatmul.mubr.f32.gmra.mrb[20].mxu0 %v66_v54  ;;  %325 = vmatprep.mubr.f32.mxu1 %v70_v55 }
  0x6d   :  { %832 = vmatprep.mubr.msk.f32.mxu0 %vm1135_vm0, %v1136_v57 }
  0x6e   :  { %1041 = vmatpush1.bf16.msra.mxu1 %v1346_v5  ;;  %v80_v5 = vld [vmem:[%s1964_s0 + $0x210] sm:$0xff] }
  0x6f   :  { %326 = vmatmul.mubr.f32.gmra.mrb[22].mxu1 %v69_v56  ;;  %1026 = vmatprep.subr.bf16.mxu1 %v1134_v0 }
  0x70   :  { %833 = vmatmul.mubr.f32.vlgmr.msra.gmra.mrb[0].mxu0 %v18_v58  ;;  %330 = vmatprep.mubr.f32.mxu1 %v75_v62 }
  0x71   :  { %835 = vmatprep.mubr.msk.f32.mxu0 %vm1135_vm0, %v1136_v57 }
  0x72   :  { %1042 = vmatpush1.bf16.msra.mxu1 %v1363_v13  ;;  %v85_v13 = vld [vmem:[%s1964_s0 + $0x238] sm:$0xff] }
  0x73   :  { %331 = vmatmul.mubr.f32.gmra.mrb[24].mxu1 %v74_v8  ;;  %1027 = vmatprep.subr.bf16.mxu1 %v1134_v0 }
  0x74   :  { %836 = vmatmul.mubr.f32.gmra.mrb[2].mxu0 %v23_v59  ;;  %335 = vmatprep.mubr.f32.mxu1 %v80_v5 }
  0x75   :  { %838 = vmatprep.mubr.msk.f32.mxu0 %vm1135_vm0, %v1136_v57 }
  0x76   :  { %1043 = vmatpush1.bf16.msra.mxu1 %v1380_v20  ;;  %v90_v20 = vld [vmem:[%s1964_s0 + $0x260] sm:$0xff] }
  0x77   :  { %336 = vmatmul.mubr.f32.gmra.mrb[26].mxu1 %v79_v60  ;;  %1028 = vmatprep.subr.bf16.mxu1 %v1134_v0 }
  0x78   :  { %839 = vmatmul.mubr.f32.gmra.mrb[4].mxu0 %v28_v61  ;;  %340 = vmatprep.mubr.f32.mxu1 %v85_v13 }
  0x79   :  { %841 = vmatprep.mubr.msk.f32.mxu0 %vm1135_vm0, %v1136_v57 }
  0x7a   :  { %1044 = vmatpush1.bf16.msra.mxu1 %v1397_v27  ;;  %v95_v27 = vld [vmem:[%s1964_s0 + $0x288] sm:$0xff] }
  0x7b   :  { %341 = vmatmul.mubr.f32.gmra.mrb[28].mxu1 %v84_v63  ;;  %1029 = vmatprep.subr.bf16.mxu1 %v1134_v0 }
  0x7c   :  { %842 = vmatmul.mubr.f32.gmra.mrb[6].mxu0 %v33_v1  ;;  %345 = vmatprep.mubr.f32.mxu1 %v90_v20 }
  0x7d   :  { %844 = vmatprep.mubr.msk.f32.mxu0 %vm1135_vm0, %v1136_v57 }
  0x7e   :  { %1045 = vmatpush1.bf16.msra.mxu1 %v1414_v34  ;;  %v100_v34 = vld [vmem:[%s1964_s0 + $0x2b0] sm:$0xff] }
  0x7f   :  { %346 = vmatmul.mubr.f32.gmra.mrb[30].mxu1 %v89_v2  ;;  %1030 = vmatprep.subr.bf16.mxu1 %v1134_v0  ;;  %v99_v0 = vld [vmem:[%s1964_s0 + $0x2a8] sm:$0xff] }
  0x80   :  { %845 = vmatmul.mubr.f32.gmra.mrb[8].mxu0 %v38_v3  ;;  %350 = vmatprep.mubr.f32.mxu1 %v95_v27 }
  0x81   :  { %847 = vmatprep.mubr.msk.f32.mxu0 %vm1135_vm0, %v1136_v57 }
  0x82   :  { %1046 = vmatpush1.bf16.msra.mxu1 %v1431_v41  ;;  %v104_v41 = vld [vmem:[%s1964_s0 + $0x2d0] sm:$0xff] }
  0x83   :  { %351 = vmatmul.mubr.f32.gmra.mrb[32].mxu1 %v94_v4 }
  0x84   :  { %848 = vmatmul.mubr.f32.gmra.mrb[10].mxu0 %v43_v12  ;;  %355 = vmatprep.mubr.f32.mxu1 %v100_v34  ;;  %v1877_v34 = vld [vmem:[%s1965_s2] ss:$0 sm:$0xff] }
  0x85   :  { %850 = vmatprep.mubr.msk.f32.mxu0 %vm1135_vm0, %v1136_v57 }
  0x87   :  { %356 = vmatmul.mubr.f32.gmra.mrb[34].mxu1 %v99_v0 }
  0x88   :  { %851 = vmatmul.mubr.f32.gmra.mrb[12].mxu0 %v48_v6  ;;  %360 = vmatprep.mubr.f32.mxu1 %v105_v7 }
  0x89   :  { %853 = vmatprep.mubr.msk.f32.mxu0 %vm1135_vm0, %v1136_v57 }
  0x8b   :  { %361 = vmatmul.mubr.f32.gmra.mrb[36].mxu1 %v104_v41 }
  0x8c   :  { %854 = vmatmul.mubr.f32.gmra.mrb[14].mxu0 %v53_v9  ;;  %365 = vmatprep.mubr.f32.mxu1 %v110_v10 }
  0x8d   :  { %856 = vmatprep.mubr.msk.f32.mxu0 %vm1135_vm0, %v1136_v57 }
  0x8f   :  { %366 = vmatmul.mubr.f32.gmra.mrb[38].mxu1 %v109_v11 }
  0x90   :  { %857 = vmatmul.mubr.f32.gmra.mrb[16].mxu0 %v58_v14  ;;  %370 = vmatprep.mubr.f32.mxu1 %v115_v18 }
  0x91   :  { %859 = vmatprep.mubr.msk.f32.mxu0 %vm1135_vm0, %v1136_v57 }
  0x93   :  { %371 = vmatmul.mubr.f32.gmra.mrb[40].mxu1 %v114_v15 }
  0x94   :  { %860 = vmatmul.mubr.f32.gmra.mrb[18].mxu0 %v63_v16  ;;  %495 = vmatprep.mubr.f32.mxu1 %v72_v17 }
  0x95   :  { %862 = vmatprep.mubr.msk.f32.mxu0 %vm1135_vm0, %v1136_v57 }
  0x97   :  { %496 = vmatmul.mubr.f32.vlgmr.msra.gmra.mrb[22].mxu1 %v71_v19 }
  0x98   :  { %863 = vmatmul.mubr.f32.gmra.mrb[20].mxu0 %v68_v21  ;;  %500 = vmatprep.mubr.f32.mxu1 %v77_v22 }
  0x99   :  { %865 = vmatprep.mubr.msk.f32.mxu0 %vm1135_vm0, %v1136_v57 }
  0x9b   :  { %501 = vmatmul.mubr.f32.gmra.mrb[24].mxu1 %v76_v24 }
  0x9c   :  { %866 = vmatmul.mubr.f32.gmra.mrb[22].mxu0 %v73_v23  ;;  %505 = vmatprep.mubr.f32.mxu1 %v82_v25 }
  0x9d   :  { %868 = vmatprep.mubr.msk.f32.mxu0 %vm1135_vm0, %v1136_v57 }
  0x9f   :  { %506 = vmatmul.mubr.f32.gmra.mrb[26].mxu1 %v81_v26 }
  0xa0   :  { %869 = vmatmul.mubr.f32.gmra.mrb[24].mxu0 %v78_v28  ;;  %510 = vmatprep.mubr.f32.mxu1 %v87_v29 }
  0xa1   :  { %871 = vmatprep.mubr.msk.f32.mxu0 %vm1135_vm0, %v1136_v57 }
  0xa3   :  { %511 = vmatmul.mubr.f32.gmra.mrb[28].mxu1 %v86_v31 }
  0xa4   :  { %872 = vmatmul.mubr.f32.gmra.mrb[26].mxu0 %v83_v32  ;;  %515 = vmatprep.mubr.f32.mxu1 %v92_v30 }
  0xa5   :  { %874 = vmatprep.mubr.msk.f32.mxu0 %vm1135_vm0, %v1136_v57 }
  0xa7   :  { %516 = vmatmul.mubr.f32.gmra.mrb[30].mxu1 %v91_v33 }
  0xa8   :  { %875 = vmatmul.mubr.f32.gmra.mrb[28].mxu0 %v88_v35  ;;  %520 = vmatprep.mubr.f32.mxu1 %v97_v37 }
  0xa9   :  { %877 = vmatprep.mubr.msk.f32.mxu0 %vm1135_vm0, %v1136_v57 }
  0xab   :  { %521 = vmatmul.mubr.f32.gmra.mrb[32].mxu1 %v96_v38 }
  0xac   :  { %878 = vmatmul.mubr.f32.gmra.mrb[30].mxu0 %v93_v39  ;;  %525 = vmatprep.mubr.f32.mxu1 %v102_v40 }
  0xad   :  { %880 = vmatprep.mubr.msk.f32.mxu0 %vm1135_vm0, %v1136_v57 }
  0xaf   :  { %526 = vmatmul.mubr.f32.gmra.mrb[34].mxu1 %v101_v36 }
  0xb0   :  { %881 = vmatmul.mubr.f32.gmra.mrb[32].mxu0 %v98_v42  ;;  %530 = vmatprep.mubr.f32.mxu1 %v107_v43 }
  0xb1   :  { %883 = vmatprep.mubr.msk.f32.mxu0 %vm1135_vm0, %v1136_v57 }
  0xb3   :  { %531 = vmatmul.mubr.f32.gmra.mrb[36].mxu1 %v106_v45 }
  0xb4   :  { %884 = vmatmul.mubr.f32.gmra.mrb[34].mxu0 %v103_v46  ;;  %535 = vmatprep.mubr.f32.mxu1 %v112_v47 }
  0xb5   :  { %886 = vmatprep.mubr.msk.f32.mxu0 %vm1135_vm0, %v1136_v57 }
  0xb7   :  { %536 = vmatmul.mubr.f32.gmra.mrb[38].mxu1 %v111_v44 }
  0xb8   :  { %887 = vmatmul.mubr.f32.gmra.mrb[36].mxu0 %v108_v48  ;;  %540 = vmatprep.mubr.f32.mxu1 %v117_v49 }
  0xb9   :  { %889 = vmatprep.mubr.msk.f32.mxu0 %vm1135_vm0, %v1136_v57 }
  0xbb   :  { %541 = vmatmul.mubr.f32.gmra.mrb[40].mxu1 %v116_v51 }
  0xbc   :  { %890 = vmatmul.mubr.f32.gmra.mrb[38].mxu0 %v113_v52 }
  0xbd   :  { %892 = vmatprep.mubr.msk.f32.mxu0 %vm1135_vm0, %v1136_v57 }
  0xc0   :  { %893 = vmatmul.mubr.f32.gmra.mrb[40].mxu0 %v118_v50 }
 0x116   :  { %v272_v53 = vpop.f32.mrb[0].mxu1 }
 0x117   :  { %v274_v54 = vpop.f32.mrb[1].mxu1  ;;  %v273_v6 = vadd.f32 %v1877_v34, %v272_v53 }
 0x11a   :  { %v277_v55 = vpop.f32.mrb[2].mxu1 }
 0x11b   :  { %v279_v56 = vpop.f32.mrb[3].mxu1  ;;  %v278_v10 = vadd.f32 %v1877_v34, %v277_v55 }
 0x11e   :  { %v282_v58 = vpop.f32.mrb[4].mxu1 }
 0x11f   :  { %v284_v62 = vpop.f32.mrb[5].mxu1  ;;  %v283_v16 = vadd.f32 %v1877_v34, %v282_v58 }
 0x122   :  { %v287_v8 = vpop.f32.mrb[6].mxu1 }
 0x123   :  { %v289_v59 = vpop.f32.mrb[7].mxu1  ;;  %v288_v24 = vadd.f32 %v1877_v34, %v287_v8 }
 0x126   :  { %v292_v5 = vpop.f32.mrb[8].mxu1 }
 0x127   :  { %v294_v60 = vpop.f32.mrb[9].mxu1  ;;  %v293_v29 = vadd.f32 %v1877_v34, %v292_v5 }
 0x12a   :  { %v297_v61 = vpop.f32.mrb[10].mxu1 }
 0x12b   :  { %v299_v13 = vpop.f32.mrb[11].mxu1  ;;  %v298_v35 = vadd.f32 %v1877_v34, %v297_v61 }
 0x12e   :  { %v302_v63 = vpop.f32.mrb[12].mxu1 }
 0x12f   :  { %v304_v1 = vpop.f32.mrb[13].mxu1  ;;  %v303_v36 = vadd.f32 %v1877_v34, %v302_v63 }
 0x132   :  { %v307_v57 = vpop.f32.mrb[14].mxu1 }
 0x133   :  { %v309_v20 = vpop.f32.mrb[15].mxu1  ;;  %v308_v47 = vadd.f32 %v1877_v34, %v307_v57 }
 0x136   :  { %v312_v2 = vpop.f32.mrb[16].mxu1 }
 0x137   :  { %v314_v3 = vpop.f32.mrb[17].mxu1  ;;  %v313_v52 = vadd.f32 %v1877_v34, %v312_v2 }
 0x13a   :  { %v317_v27 = vpop.f32.mrb[18].mxu1 }
 0x13b   :  { %v319_v4 = vpop.f32.mrb[19].mxu1  ;;  %v318_v56 = vadd.f32 %v1877_v34, %v317_v27 }
 0x13e   :  { %v322_v12 = vpop.f32.mrb[20].mxu1 }
 0x13f   :  { %v324_v0 = vpop.f32.mrb[21].mxu1  ;;  %v323_v5 = vadd.f32 %v1877_v34, %v322_v12 }
 0x143   :  { %v612_v7 = vpop.f32.mrb[0].mxu0 }
 0x144   :  { %v1048_v41 = vadd.f32 %v612_v7, %v273_v6  ;;  %v834_v9 = vpop.f32.mrb[1].mxu0 }
 0x146   :  { %v716_v11 = vmax.f32 %v1048_v41, 0.0 }
 0x147   :  { %v617_v14 = vpop.f32.mrb[2].mxu0 }
 0x148   :  { %737 = vst [vmem:[%s1966_s3] sm:$0xff] %v716_v11  ;;  %v1050_v18 = vadd.f32 %v617_v14, %v278_v10  ;;  %v837_v15 = vpop.f32.mrb[3].mxu0 }
 0x14a   :  { %v717_v17 = vmax.f32 %v1050_v18, 0.0 }
 0x14b   :  { %v622_v19 = vpop.f32.mrb[4].mxu0 }
 0x14c   :  { %738 = vst [vmem:[%s1966_s3 + $0x8] sm:$0xff] %v717_v17  ;;  %v1052_v21 = vadd.f32 %v622_v19, %v283_v16  ;;  %v840_v22 = vpop.f32.mrb[5].mxu0 }
 0x14e   :  { %v718_v23 = vmax.f32 %v1052_v21, 0.0 }
 0x14f   :  { %v627_v25 = vpop.f32.mrb[6].mxu0 }
 0x150   :  { %739 = vst [vmem:[%s1966_s3 + $0x10] sm:$0xff] %v718_v23  ;;  %v1054_v26 = vadd.f32 %v627_v25, %v288_v24  ;;  %v843_v28 = vpop.f32.mrb[7].mxu0 }
 0x152   :  { %v719_v31 = vmax.f32 %v1054_v26, 0.0 }
 0x153   :  { %v632_v32 = vpop.f32.mrb[8].mxu0 }
 0x154   :  { %740 = vst [vmem:[%s1966_s3 + $0x18] sm:$0xff] %v719_v31  ;;  %v1056_v30 = vadd.f32 %v632_v32, %v293_v29  ;;  %v846_v33 = vpop.f32.mrb[9].mxu0 }
 0x156   :  { %v720_v37 = vmax.f32 %v1056_v30, 0.0 }
 0x157   :  { %v637_v38 = vpop.f32.mrb[10].mxu0 }
 0x158   :  { %741 = vst [vmem:[%s1966_s3 + $0x20] sm:$0xff] %v720_v37  ;;  %v1058_v39 = vadd.f32 %v637_v38, %v298_v35  ;;  %v849_v40 = vpop.f32.mrb[11].mxu0 }
 0x15a   :  { %v721_v42 = vmax.f32 %v1058_v39, 0.0 }
 0x15b   :  { %v642_v43 = vpop.f32.mrb[12].mxu0 }
 0x15c   :  { %742 = vst [vmem:[%s1966_s3 + $0x28] sm:$0xff] %v721_v42  ;;  %v1060_v45 = vadd.f32 %v642_v43, %v303_v36  ;;  %v852_v46 = vpop.f32.mrb[13].mxu0 }
 0x15e   :  { %v722_v44 = vmax.f32 %v1060_v45, 0.0 }
 0x15f   :  { %v647_v48 = vpop.f32.mrb[14].mxu0 }
 0x160   :  { %743 = vst [vmem:[%s1966_s3 + $0x30] sm:$0xff] %v722_v44  ;;  %v1062_v49 = vadd.f32 %v647_v48, %v308_v47  ;;  %v855_v51 = vpop.f32.mrb[15].mxu0 }
 0x162   :  { %v723_v50 = vmax.f32 %v1062_v49, 0.0 }
 0x163   :  { %v652_v53 = vpop.f32.mrb[16].mxu0 }
 0x164   :  { %744 = vst [vmem:[%s1966_s3 + $0x38] sm:$0xff] %v723_v50  ;;  %v1064_v54 = vadd.f32 %v652_v53, %v313_v52  ;;  %v858_v55 = vpop.f32.mrb[17].mxu0 }
 0x166   :  { %v724_v58 = vmax.f32 %v1064_v54, 0.0 }
 0x167   :  { %v657_v62 = vpop.f32.mrb[18].mxu0 }
 0x168   :  { %745 = vst [vmem:[%s1966_s3 + $0x40] sm:$0xff] %v724_v58  ;;  %v1066_v8 = vadd.f32 %v657_v62, %v318_v56  ;;  %v861_v59 = vpop.f32.mrb[19].mxu0 }
 0x16a   :  { %v725_v60 = vmax.f32 %v1066_v8, 0.0  ;;  %v497_v61 = vpop.f32.mrb[22].mxu1 }
 0x16b   :  { %v662_v13 = vpop.f32.mrb[20].mxu0  ;;  %v499_v63 = vpop.f32.mrb[23].mxu1  ;;  %v1069_v20 = vadd.f32 %v1877_v34, %v497_v61 }
 0x16c   :  { %746 = vst [vmem:[%s1966_s3 + $0x48] sm:$0xff] %v725_v60  ;;  %v1068_v1 = vadd.f32 %v662_v13, %v323_v5  ;;  %v864_v57 = vpop.f32.mrb[21].mxu0 }
 0x16e   :  { %v726_v2 = vmax.f32 %v1068_v1, 0.0  ;;  %v502_v3 = vpop.f32.mrb[24].mxu1 }
 0x16f   :  { %v667_v27 = vpop.f32.mrb[22].mxu0  ;;  %v504_v4 = vpop.f32.mrb[25].mxu1  ;;  %v1071_v6 = vadd.f32 %v1877_v34, %v502_v3 }
 0x170   :  { %747 = vst [vmem:[%s1966_s3 + $0x50] sm:$0xff] %v726_v2  ;;  %v1070_v12 = vadd.f32 %v1069_v20, %v667_v27  ;;  %v867_v0 = vpop.f32.mrb[23].mxu0 }
 0x172   :  { %v727_v7 = vmax.f32 %v1070_v12, 0.0  ;;  %v507_v41 = vpop.f32.mrb[26].mxu1 }
 0x173   :  { %v672_v9 = vpop.f32.mrb[24].mxu0  ;;  %v509_v10 = vpop.f32.mrb[27].mxu1  ;;  %v1073_v18 = vadd.f32 %v1877_v34, %v507_v41 }
 0x174   :  { %748 = vst [vmem:[%s1966_s3 + $0x58] sm:$0xff] %v727_v7  ;;  %v1072_v11 = vadd.f32 %v1071_v6, %v672_v9  ;;  %v870_v14 = vpop.f32.mrb[25].mxu0 }
 0x176   :  { %v728_v15 = vmax.f32 %v1072_v11, 0.0  ;;  %v512_v16 = vpop.f32.mrb[28].mxu1 }
 0x177   :  { %v677_v17 = vpop.f32.mrb[26].mxu0  ;;  %v514_v19 = vpop.f32.mrb[29].mxu1  ;;  %v1075_v24 = vadd.f32 %v1877_v34, %v512_v16 }
 0x178   :  { %749 = vst [vmem:[%s1966_s3 + $0x60] sm:$0xff] %v728_v15  ;;  %v1074_v21 = vadd.f32 %v1073_v18, %v677_v17  ;;  %v873_v22 = vpop.f32.mrb[27].mxu0 }
 0x17a   :  { %v729_v23 = vmax.f32 %v1074_v21, 0.0  ;;  %v517_v25 = vpop.f32.mrb[30].mxu1 }
 0x17b   :  { %v682_v26 = vpop.f32.mrb[28].mxu0  ;;  %v519_v28 = vpop.f32.mrb[31].mxu1  ;;  %v1077_v32 = vadd.f32 %v1877_v34, %v517_v25 }
 0x17c   :  { %750 = vst [vmem:[%s1966_s3 + $0x68] sm:$0xff] %v729_v23  ;;  %v1076_v29 = vadd.f32 %v1075_v24, %v682_v26  ;;  %v876_v31 = vpop.f32.mrb[29].mxu0 }
 0x17e   :  { %v730_v30 = vmax.f32 %v1076_v29, 0.0  ;;  %v522_v33 = vpop.f32.mrb[32].mxu1 }
 0x17f   :  { %v687_v35 = vpop.f32.mrb[30].mxu0  ;;  %v524_v37 = vpop.f32.mrb[33].mxu1  ;;  %v1079_v40 = vadd.f32 %v1877_v34, %v522_v33 }
 0x180   :  { %751 = vst [vmem:[%s1966_s3 + $0x70] sm:$0xff] %v730_v30  ;;  %v1078_v38 = vadd.f32 %v1077_v32, %v687_v35  ;;  %v879_v39 = vpop.f32.mrb[31].mxu0 }
 0x182   :  { %v731_v36 = vmax.f32 %v1078_v38, 0.0  ;;  %v527_v42 = vpop.f32.mrb[34].mxu1 }
 0x183   :  { %v692_v43 = vpop.f32.mrb[32].mxu0  ;;  %v529_v45 = vpop.f32.mrb[35].mxu1  ;;  %v1081_v44 = vadd.f32 %v1877_v34, %v527_v42 }
 0x184   :  { %752 = vst [vmem:[%s1966_s3 + $0x78] sm:$0xff] %v731_v36  ;;  %v1080_v46 = vadd.f32 %v1079_v40, %v692_v43  ;;  %v882_v47 = vpop.f32.mrb[33].mxu0 }
 0x186   :  { %v732_v48 = vmax.f32 %v1080_v46, 0.0  ;;  %v532_v49 = vpop.f32.mrb[36].mxu1 }
 0x187   :  { %v697_v51 = vpop.f32.mrb[34].mxu0  ;;  %v534_v52 = vpop.f32.mrb[37].mxu1  ;;  %v1083_v54 = vadd.f32 %v1877_v34, %v532_v49 }
 0x188   :  { %753 = vst [vmem:[%s1966_s3 + $0x80] sm:$0xff] %v732_v48  ;;  %v1082_v50 = vadd.f32 %v1081_v44, %v697_v51  ;;  %v885_v53 = vpop.f32.mrb[35].mxu0 }
 0x18a   :  { %v733_v55 = vmax.f32 %v1082_v50, 0.0  ;;  %v537_v56 = vpop.f32.mrb[38].mxu1 }
 0x18b   :  { %v702_v58 = vpop.f32.mrb[36].mxu0  ;;  %v539_v62 = vpop.f32.mrb[39].mxu1  ;;  %v1085_v5 = vadd.f32 %v1877_v34, %v537_v56 }
 0x18c   :  { %754 = vst [vmem:[%s1966_s3 + $0x88] sm:$0xff] %v733_v55  ;;  %v1084_v8 = vadd.f32 %v1083_v54, %v702_v58  ;;  %v888_v59 = vpop.f32.mrb[37].mxu0 }
 0x18e   :  { %v734_v60 = vmax.f32 %v1084_v8, 0.0  ;;  %v542_v61 = vpop.f32.mrb[40].mxu1 }
 0x18f   :  { %v707_v13 = vpop.f32.mrb[38].mxu0  ;;  %v544_v63 = vpop.f32.mrb[41].mxu1  ;;  %v1087_v20 = vadd.f32 %v1877_v34, %v542_v61 }
 0x190   :  { %755 = vst [vmem:[%s1966_s3 + $0x90] sm:$0xff] %v734_v60  ;;  %v1086_v1 = vadd.f32 %v1085_v5, %v707_v13  ;;  %v891_v57 = vpop.f32.mrb[39].mxu0 }
 0x192   :  { %v735_v2 = vmax.f32 %v1086_v1, 0.0 }
 0x193   :  { %v712_v3 = vpop.f32.mrb[40].mxu0 }
 0x194   :  { %756 = vst [vmem:[%s1966_s3 + $0x98] sm:$0xff] %v735_v2  ;;  %v1088_v27 = vadd.f32 %v1087_v20, %v712_v3  ;;  %v894_v4 = vpop.f32.mrb[41].mxu0 }
 0x196   :  { %v736_v12 = vmax.f32 %v1088_v27, 0.0 }
 0x198   :  { %757 = vst [vmem:[%s1966_s3 + $0xa0] sm:$0xff] %v736_v12 }

// kernel: fwd.7
= control target key start
LH: loop header
LB: loop body
LE: loop exit
PB: predicated region body
PF: predicated region fallthrough
CT: control target
= control target key end

     0   :  { %s3566_s18 = smov 0   ;;  %s4704_s0 = inlined_call_operand.vmem [shape: f32[8,5376], index: 0, kind: input, shape index: {}]   ;;  %s4705_s1 = inlined_call_operand.vmem [shape: f32[5376,512], index: 1, kind: input, shape index: {}]   ;;  %s4706_s2 = inlined_call_operand.vmem [shape: f32[1,512], index: 2, kind: input, shape index: {}]   ;;  %s4707_s3 = inlined_call_operand.vmem [shape: f32[512,128], index: 3, kind: input, shape index: {}]   ;;  %s4708_s4 = inlined_call_operand.vmem [shape: f32[1,128], index: 4, kind: input, shape index: {}]   ;;  %s4709_s5 = inlined_call_operand.vmem [shape: f32[8,128], index: 5, kind: output, shape index: {}]  }
   0x1 LB: > { %s3572_s19 = sadd.s32 4294967295, %s3533_s18   ;;  %p2454_p0 = scmp.ge.s32.totalorder %s3533_s18, 1  ;;  %s3533_s18 = sphi %s3566_s18, %s15_s18  }
   0x2   : > { %p195_p1 = scmp.lt.s32.totalorder %s3533_s18, 4 }
   0x4   : > { %p196_p2 = pnand %p2454_p0, %p195_p1 }
   0x5   : > { %s224_s20 = smul.u32 (!%p196_p2), 14, %s3572_s19  ;;  %p2458_p5 = scmp.ne.s32.totalorder (!%p196_p2), %s3572_s19, 0 }
   0x6   : > { %199 = sbr.rel (%p196_p2) target bundleno = 926 (0x39e), region = 40 }
   0x7   : > { %s230_s21 = smul.u32 (!%p196_p2), 224, %s3572_s19  ;;  %p225_p3 = scmp.lt.s32.totalorder (!%p196_p2), %s224_s20, 41 }
   0x9   : > { %p231_p4 = scmp.lt.s32.totalorder (!%p196_p2), %s230_s21, 671 }
   0xd   : > { %s4711_s20 = smov (!%p225_p3, %s224_s20), 41  ;;  %s4713_s21 = smov (!%p231_p4, %s230_s21), 671 }
   0xe   : > { %s2455_s22 = sshll.u32 %s4711_s20, 3  ;;  %s2463_s26 = sshll.u32 %s4713_s21, 5  ;;  %v3535_v0 = vmov (!%p2458_p5), 0.0  }
   0xf   : > { %s3581_s25 = scalar_lea.vmem %s4704_s0, %s2455_s22  ;;  %s3586_s29 = scalar_lea.vmem %s4705_s1, %s2463_s26  ;;  %241 = vst [vmem:[#allocation2] sm:$0xff] (!%p2458_p5), %v3535_v0  ;;  %242 = vst [vmem:[#allocation2 + $0x8] sm:$0xff] (!%p2458_p5), %v3535_v0 }
  0x10   : > { %240 = sbr.rel (%p2458_p5) target bundleno = 23 (0x17), region = 44  ;;  %243 = vst [vmem:[#allocation2 + $0x10] sm:$0xff] (!%p2458_p5), %v3535_v0  ;;  %244 = vst [vmem:[#allocation2 + $0x18] sm:$0xff] (!%p2458_p5), %v3535_v0 }
  0x17 PF: > { %v264_v1 = vld [vmem:[%s3586_s29 + $0x8] sm:$0xff]  ;;  %v266_v3 = vld [vmem:[%s3586_s29 + $0x18] sm:$0xff]  ;;  %v263_v6 = vld [vmem:[%s3586_s29] sm:$0xff]  ;;  %p2459_p6 = scmp.ne.s32.totalorder %s3572_s19, 2 }
  0x18   : > { %v268_v2 = vld [vmem:[%s3586_s29 + $0x28] sm:$0xff]  ;;  %v270_v5 = vld [vmem:[%s3586_s29 + $0x38] sm:$0xff]  ;;  %v267_v7 = vld [vmem:[%s3586_s29 + $0x20] sm:$0xff] }
  0x19   : > { %v2534_v4 = vpack.c.bf16 %v268_v2, %v264_v1  ;;  %v2982_v8 = vpack.c.bf16 %v270_v5, %v266_v3  ;;  %v2536_v9 = vpack.c.bf16 %v267_v7, %v263_v6  ;;  %v265_v10 = vld [vmem:[%s3586_s29 + $0x10] sm:$0xff]  ;;  %v272_v12 = vld [vmem:[%s3586_s29 + $0x48] sm:$0xff]  ;;  %v274_v15 = vld [vmem:[%s3586_s29 + $0x58] sm:$0xff] }
  0x1a   : > { %v269_v11 = vld [vmem:[%s3586_s29 + $0x30] sm:$0xff]  ;;  %v276_v14 = vld [vmem:[%s3586_s29 + $0x68] sm:$0xff]  ;;  %v278_v16 = vld [vmem:[%s3586_s29 + $0x78] sm:$0xff] }
  0x1b   : > { %2535 = vmatprep.subr.bf16.mxu0 %v2534_v4  ;;  %v2984_v13 = vpack.c.bf16 %v269_v11, %v265_v10  ;;  %2983 = vmatprep.subr.bf16.mxu1 %v2982_v8  ;;  %v2538_v17 = vpack.c.bf16 %v276_v14, %v272_v12  ;;  %v2986_v18 = vpack.c.bf16 %v278_v16, %v274_v15  ;;  %v271_v19 = vld [vmem:[%s3586_s29 + $0x40] sm:$0xff]  ;;  %v273_v21 = vld [vmem:[%s3586_s29 + $0x50] sm:$0xff]  ;;  %v280_v24 = vld [vmem:[%s3586_s29 + $0x88] sm:$0xff] }
  0x1c   : > { %2537 = vmatpush1.bf16.msra.mxu0 %v2536_v9  ;;  %v275_v20 = vld [vmem:[%s3586_s29 + $0x60] sm:$0xff]  ;;  %v277_v23 = vld [vmem:[%s3586_s29 + $0x70] sm:$0xff]  ;;  %v284_v25 = vld [vmem:[%s3586_s29 + $0xa8] sm:$0xff] }
  0x1d   : > { %2985 = vmatpush1.bf16.msra.mxu1 %v2984_v13  ;;  %v2540_v22 = vpack.c.bf16 %v275_v20, %v271_v19  ;;  %2539 = vmatprep.subr.bf16.mxu0 %v2538_v17  ;;  %v2988_v26 = vpack.c.bf16 %v277_v23, %v273_v21  ;;  %v2542_v27 = vpack.c.bf16 %v284_v25, %v280_v24  ;;  %v282_v28 = vld [vmem:[%s3586_s29 + $0x98] sm:$0xff]  ;;  %v279_v30 = vld [vmem:[%s3586_s29 + $0x80] sm:$0xff]  ;;  %v281_v33 = vld [vmem:[%s3586_s29 + $0x90] sm:$0xff] }
  0x1e   : > { %2987 = vmatprep.subr.bf16.mxu1 %v2986_v18  ;;  %v286_v29 = vld [vmem:[%s3586_s29 + $0xb8] sm:$0xff]  ;;  %v283_v32 = vld [vmem:[%s3586_s29 + $0xa0] sm:$0xff]  ;;  %v285_v34 = vld [vmem:[%s3586_s29 + $0xb0] sm:$0xff] }
  0x1f   : > { %v2990_v31 = vpack.c.bf16 %v286_v29, %v282_v28  ;;  %v2544_v35 = vpack.c.bf16 %v283_v32, %v279_v30  ;;  %v288_v36 = vld [vmem:[%s3586_s29 + $0xc8] sm:$0xff]  ;;  %v290_v38 = vld [vmem:[%s3586_s29 + $0xd8] sm:$0xff]  ;;  %v2992_v39 = vpack.c.bf16 %v285_v34, %v281_v33  ;;  %v287_v42 = vld [vmem:[%s3586_s29 + $0xc0] sm:$0xff] }
  0x20   : > { %2541 = vmatpush1.bf16.msra.mxu0 %v2540_v22  ;;  %v292_v37 = vld [vmem:[%s3586_s29 + $0xe8] sm:$0xff]  ;;  %v294_v41 = vld [vmem:[%s3586_s29 + $0xf8] sm:$0xff]  ;;  %v291_v43 = vld [vmem:[%s3586_s29 + $0xe0] sm:$0xff] }
  0x21   : > { %2989 = vmatpush1.bf16.msra.mxu1 %v2988_v26  ;;  %2543 = vmatprep.subr.bf16.mxu0 %v2542_v27  ;;  %v2546_v40 = vpack.c.bf16 %v292_v37, %v288_v36  ;;  %v2994_v44 = vpack.c.bf16 %v294_v41, %v290_v38  ;;  %v289_v45 = vld [vmem:[%s3586_s29 + $0xd0] sm:$0xff]  ;;  %v296_v47 = vld [vmem:[%s3586_s29 + $0x108] sm:$0xff]  ;;  %v298_v49 = vld [vmem:[%s3586_s29 + $0x118] sm:$0xff]  ;;  %v2548_v51 = vpack.c.bf16 %v291_v43, %v287_v42 }
  0x22   : > { %2991 = vmatprep.subr.bf16.mxu1 %v2990_v31  ;;  %v293_v46 = vld [vmem:[%s3586_s29 + $0xf0] sm:$0xff]  ;;  %v300_v48 = vld [vmem:[%s3586_s29 + $0x128] sm:$0xff]  ;;  %v302_v50 = vld [vmem:[%s3586_s29 + $0x138] sm:$0xff] }
  0x23   : > { %v2996_v52 = vpack.c.bf16 %v293_v46, %v289_v45  ;;  %v2550_v53 = vpack.c.bf16 %v300_v48, %v296_v47  ;;  %v295_v54 = vld [vmem:[%s3586_s29 + $0x100] sm:$0xff]  ;;  %v297_v56 = vld [vmem:[%s3586_s29 + $0x110] sm:$0xff]  ;;  %v2998_v57 = vpack.c.bf16 %v302_v50, %v298_v49  ;;  %v304_v59 = vld [vmem:[%s3586_s29 + $0x148] sm:$0xff] }
  0x24   : > { %2545 = vmatpush1.bf16.msra.mxu0 %v2544_v35  ;;  %v299_v55 = vld [vmem:[%s3586_s29 + $0x120] sm:$0xff]  ;;  %v301_v58 = vld [vmem:[%s3586_s29 + $0x130] sm:$0xff]  ;;  %v308_v60 = vld [vmem:[%s3586_s29 + $0x168] sm:$0xff] }
  0x25   : > { %2993 = vmatpush1.bf16.msra.mxu1 %v2992_v39  ;;  %2547 = vmatprep.subr.bf16.mxu0 %v2546_v40  ;;  %v306_v61 = vld [vmem:[%s3586_s29 + $0x158] sm:$0xff]  ;;  %v2552_v63 = vpack.c.bf16 %v299_v55, %v295_v54  ;;  %v3000_v0 = vpack.c.bf16 %v301_v58, %v297_v56  ;;  %v2554_v1 = vpack.c.bf16 %v308_v60, %v304_v59  ;;  %v303_v2 = vld [vmem:[%s3586_s29 + $0x140] sm:$0xff]  ;;  %v305_v4 = vld [vmem:[%s3586_s29 + $0x150] sm:$0xff] }
  0x26   : > { %2995 = vmatprep.subr.bf16.mxu1 %v2994_v44  ;;  %v310_v62 = vld [vmem:[%s3586_s29 + $0x178] sm:$0xff]  ;;  %v307_v3 = vld [vmem:[%s3586_s29 + $0x160] sm:$0xff]  ;;  %v309_v6 = vld [vmem:[%s3586_s29 + $0x170] sm:$0xff] }
  0x27   : > { %v3002_v5 = vpack.c.bf16 %v310_v62, %v306_v61  ;;  %v312_v7 = vld [vmem:[%s3586_s29 + $0x188] sm:$0xff]  ;;  %v314_v9 = vld [vmem:[%s3586_s29 + $0x198] sm:$0xff]  ;;  %v2556_v11 = vpack.c.bf16 %v307_v3, %v303_v2  ;;  %v3004_v12 = vpack.c.bf16 %v309_v6, %v305_v4  ;;  %v311_v14 = vld [vmem:[%s3586_s29 + $0x180] sm:$0xff] }
  0x28   : > { %2549 = vmatpush1.bf16.msra.mxu0 %v2548_v51  ;;  %v316_v8 = vld [vmem:[%s3586_s29 + $0x1a8] sm:$0xff]  ;;  %v318_v10 = vld [vmem:[%s3586_s29 + $0x1b8] sm:$0xff]  ;;  %v315_v15 = vld [vmem:[%s3586_s29 + $0x1a0] sm:$0xff] }
  0x29   : > { %2997 = vmatpush1.bf16.msra.mxu1 %v2996_v52  ;;  %2551 = vmatprep.subr.bf16.mxu0 %v2550_v53  ;;  %v2558_v13 = vpack.c.bf16 %v316_v8, %v312_v7  ;;  %v313_v16 = vld [vmem:[%s3586_s29 + $0x190] sm:$0xff]  ;;  %v3006_v17 = vpack.c.bf16 %v318_v10, %v314_v9  ;;  %v320_v19 = vld [vmem:[%s3586_s29 + $0x1c8] sm:$0xff]  ;;  %v322_v21 = vld [vmem:[%s3586_s29 + $0x1d8] sm:$0xff]  ;;  %v2560_v23 = vpack.c.bf16 %v315_v15, %v311_v14 }
  0x2a   : > { %2999 = vmatprep.subr.bf16.mxu1 %v2998_v57  ;;  %v317_v18 = vld [vmem:[%s3586_s29 + $0x1b0] sm:$0xff]  ;;  %v324_v20 = vld [vmem:[%s3586_s29 + $0x1e8] sm:$0xff]  ;;  %v326_v22 = vld [vmem:[%s3586_s29 + $0x1f8] sm:$0xff] }
  0x2b   : > { %v3008_v24 = vpack.c.bf16 %v317_v18, %v313_v16  ;;  %v2562_v25 = vpack.c.bf16 %v324_v20, %v320_v19  ;;  %v319_v26 = vld [vmem:[%s3586_s29 + $0x1c0] sm:$0xff]  ;;  %v321_v28 = vld [vmem:[%s3586_s29 + $0x1d0] sm:$0xff]  ;;  %v3010_v29 = vpack.c.bf16 %v326_v22, %v322_v21  ;;  %v328_v31 = vld [vmem:[%s3586_s29 + $0x208] sm:$0xff] }
  0x2c   : > { %2553 = vmatpush1.bf16.msra.mxu0 %v2552_v63  ;;  %v323_v27 = vld [vmem:[%s3586_s29 + $0x1e0] sm:$0xff]  ;;  %v325_v30 = vld [vmem:[%s3586_s29 + $0x1f0] sm:$0xff]  ;;  %v332_v32 = vld [vmem:[%s3586_s29 + $0x228] sm:$0xff] }
  0x2d   : > { %3001 = vmatpush1.bf16.msra.mxu1 %v3000_v0  ;;  %2555 = vmatprep.subr.bf16.mxu0 %v2554_v1  ;;  %v330_v33 = vld [vmem:[%s3586_s29 + $0x218] sm:$0xff]  ;;  %v2564_v35 = vpack.c.bf16 %v323_v27, %v319_v26  ;;  %v3012_v36 = vpack.c.bf16 %v325_v30, %v321_v28  ;;  %v2566_v37 = vpack.c.bf16 %v332_v32, %v328_v31  ;;  %v327_v38 = vld [vmem:[%s3586_s29 + $0x200] sm:$0xff]  ;;  %v329_v40 = vld [vmem:[%s3586_s29 + $0x210] sm:$0xff] }
  0x2e   : > { %3003 = vmatprep.subr.bf16.mxu1 %v3002_v5  ;;  %v334_v34 = vld [vmem:[%s3586_s29 + $0x238] sm:$0xff]  ;;  %v331_v39 = vld [vmem:[%s3586_s29 + $0x220] sm:$0xff]  ;;  %v333_v42 = vld [vmem:[%s3586_s29 + $0x230] sm:$0xff] }
  0x2f   : > { %v3014_v41 = vpack.c.bf16 %v334_v34, %v330_v33  ;;  %v336_v43 = vld [vmem:[%s3586_s29 + $0x248] sm:$0xff]  ;;  %v338_v45 = vld [vmem:[%s3586_s29 + $0x258] sm:$0xff]  ;;  %v2568_v47 = vpack.c.bf16 %v331_v39, %v327_v38  ;;  %v3016_v48 = vpack.c.bf16 %v333_v42, %v329_v40  ;;  %v335_v50 = vld [vmem:[%s3586_s29 + $0x240] sm:$0xff] }
  0x30   : > { %2557 = vmatpush1.bf16.msra.mxu0 %v2556_v11  ;;  %v340_v44 = vld [vmem:[%s3586_s29 + $0x268] sm:$0xff]  ;;  %v342_v46 = vld [vmem:[%s3586_s29 + $0x278] sm:$0xff]  ;;  %v339_v51 = vld [vmem:[%s3586_s29 + $0x260] sm:$0xff] }
  0x31   : > { %3005 = vmatpush1.bf16.msra.mxu1 %v3004_v12  ;;  %2559 = vmatprep.subr.bf16.mxu0 %v2558_v13  ;;  %v2570_v49 = vpack.c.bf16 %v340_v44, %v336_v43  ;;  %v337_v52 = vld [vmem:[%s3586_s29 + $0x250] sm:$0xff]  ;;  %v3018_v53 = vpack.c.bf16 %v342_v46, %v338_v45  ;;  %v344_v55 = vld [vmem:[%s3586_s29 + $0x288] sm:$0xff]  ;;  %v346_v57 = vld [vmem:[%s3586_s29 + $0x298] sm:$0xff]  ;;  %v2572_v59 = vpack.c.bf16 %v339_v51, %v335_v50 }
  0x32   : > { %3007 = vmatprep.subr.bf16.mxu1 %v3006_v17  ;;  %v341_v54 = vld [vmem:[%s3586_s29 + $0x270] sm:$0xff]  ;;  %v348_v56 = vld [vmem:[%s3586_s29 + $0x2a8] sm:$0xff]  ;;  %v350_v58 = vld [vmem:[%s3586_s29 + $0x2b8] sm:$0xff] }
  0x33   : > { %v3020_v60 = vpack.c.bf16 %v341_v54, %v337_v52  ;;  %v2574_v61 = vpack.c.bf16 %v348_v56, %v344_v55  ;;  %v343_v62 = vld [vmem:[%s3586_s29 + $0x280] sm:$0xff]  ;;  %v345_v0 = vld [vmem:[%s3586_s29 + $0x290] sm:$0xff]  ;;  %v3022_v1 = vpack.c.bf16 %v350_v58, %v346_v57  ;;  %v352_v3 = vld [vmem:[%s3586_s29 + $0x2c8] sm:$0xff] }
  0x34   : > { %2561 = vmatpush1.bf16.msra.mxu0 %v2560_v23  ;;  %v347_v63 = vld [vmem:[%s3586_s29 + $0x2a0] sm:$0xff]  ;;  %v349_v2 = vld [vmem:[%s3586_s29 + $0x2b0] sm:$0xff]  ;;  %v356_v4 = vld [vmem:[%s3586_s29 + $0x2e8] sm:$0xff] }
  0x35   : > { %3009 = vmatpush1.bf16.msra.mxu1 %v3008_v24  ;;  %2563 = vmatprep.subr.bf16.mxu0 %v2562_v25  ;;  %v354_v5 = vld [vmem:[%s3586_s29 + $0x2d8] sm:$0xff]  ;;  %v2576_v7 = vpack.c.bf16 %v347_v63, %v343_v62  ;;  %v351_v8 = vld [vmem:[%s3586_s29 + $0x2c0] sm:$0xff]  ;;  %v3024_v9 = vpack.c.bf16 %v349_v2, %v345_v0  ;;  %v2578_v10 = vpack.c.bf16 %v356_v4, %v352_v3  ;;  %v353_v12 = vld [vmem:[%s3586_s29 + $0x2d0] sm:$0xff] }
  0x36   : > { %3011 = vmatprep.subr.bf16.mxu1 %v3010_v29  ;;  %v358_v6 = vld [vmem:[%s3586_s29 + $0x2f8] sm:$0xff]  ;;  %v355_v11 = vld [vmem:[%s3586_s29 + $0x2e0] sm:$0xff]  ;;  %v357_v13 = vld [vmem:[%s3586_s29 + $0x2f0] sm:$0xff] }
  0x37   : > { %v3026_v14 = vpack.c.bf16 %v358_v6, %v354_v5  ;;  %v360_v15 = vld [vmem:[%s3586_s29 + $0x308] sm:$0xff]  ;;  %v362_v18 = vld [vmem:[%s3586_s29 + $0x318] sm:$0xff]  ;;  %v2580_v20 = vpack.c.bf16 %v355_v11, %v351_v8  ;;  %v3028_v21 = vpack.c.bf16 %v357_v13, %v353_v12  ;;  %v359_v23 = vld [vmem:[%s3586_s29 + $0x300] sm:$0xff] }
  0x38   : > { %2565 = vmatpush1.bf16.msra.mxu0 %v2564_v35  ;;  %v364_v16 = vld [vmem:[%s3586_s29 + $0x328] sm:$0xff]  ;;  %v366_v19 = vld [vmem:[%s3586_s29 + $0x338] sm:$0xff]  ;;  %v363_v24 = vld [vmem:[%s3586_s29 + $0x320] sm:$0xff] }
  0x39   : > { %3013 = vmatpush1.bf16.msra.mxu1 %v3012_v36  ;;  %2567 = vmatprep.subr.bf16.mxu0 %v2566_v37  ;;  %v250_v17 = vld [vmem:[%s3581_s25 + $0x8] sm:$0xff]  ;;  %v2582_v22 = vpack.c.bf16 %v364_v16, %v360_v15  ;;  %v361_v25 = vld [vmem:[%s3586_s29 + $0x310] sm:$0xff]  ;;  %v3030_v26 = vpack.c.bf16 %v366_v19, %v362_v18  ;;  %v370_v30 = vld [vmem:[%s3586_s29 + $0x358] sm:$0xff]  ;;  %v2584_v32 = vpack.c.bf16 %v363_v24, %v359_v23 }
  0x3a   : > { %3015 = vmatprep.subr.bf16.mxu1 %v3014_v41  ;;  %1223 = vmatprep.mubr.f32.mxu0 %v250_v17  ;;  %v365_v27 = vld [vmem:[%s3586_s29 + $0x330] sm:$0xff]  ;;  %v368_v28 = vld [vmem:[%s3586_s29 + $0x348] sm:$0xff]  ;;  %v374_v31 = vld [vmem:[%s3586_s29 + $0x378] sm:$0xff] }
  0x3b   : > { %1720 = vmatprep.mubr.f32.mxu1 %v250_v17  ;;  %v372_v29 = vld [vmem:[%s3586_s29 + $0x368] sm:$0xff]  ;;  %v3032_v33 = vpack.c.bf16 %v365_v27, %v361_v25  ;;  %v367_v35 = vld [vmem:[%s3586_s29 + $0x340] sm:$0xff]  ;;  %v369_v37 = vld [vmem:[%s3586_s29 + $0x350] sm:$0xff]  ;;  %v3034_v38 = vpack.c.bf16 %v374_v31, %v370_v30 }
  0x3c   : > { %2569 = vmatpush1.bf16.msra.mxu0 %v2568_v47  ;;  %v2586_v34 = vpack.c.bf16 %v372_v29, %v368_v28  ;;  %v371_v36 = vld [vmem:[%s3586_s29 + $0x360] sm:$0xff]  ;;  %v373_v39 = vld [vmem:[%s3586_s29 + $0x370] sm:$0xff]  ;;  %v376_v40 = vld [vmem:[%s3586_s29 + $0x388] sm:$0xff] }
  0x3d   : > { %3017 = vmatpush1.bf16.msra.mxu1 %v3016_v48  ;;  %2571 = vmatprep.subr.bf16.mxu0 %v2570_v49  ;;  %v380_v41 = vld [vmem:[%s3586_s29 + $0x3a8] sm:$0xff]  ;;  %v378_v42 = vld [vmem:[%s3586_s29 + $0x398] sm:$0xff]  ;;  %v2588_v44 = vpack.c.bf16 %v371_v36, %v367_v35  ;;  %v3036_v45 = vpack.c.bf16 %v373_v39, %v369_v37  ;;  %v375_v47 = vld [vmem:[%s3586_s29 + $0x380] sm:$0xff] }
  0x3e   : > { %3019 = vmatprep.subr.bf16.mxu1 %v3018_v53  ;;  %v382_v43 = vld [vmem:[%s3586_s29 + $0x3b8] sm:$0xff]  ;;  %v2590_v46 = vpack.c.bf16 %v380_v41, %v376_v40  ;;  %v379_v48 = vld [vmem:[%s3586_s29 + $0x3a0] sm:$0xff]  ;;  %v377_v49 = vld [vmem:[%s3586_s29 + $0x390] sm:$0xff] }
  0x3f   : > { %v3038_v50 = vpack.c.bf16 %v382_v43, %v378_v42  ;;  %v381_v51 = vld [vmem:[%s3586_s29 + $0x3b0] sm:$0xff]  ;;  %v384_v52 = vld [vmem:[%s3586_s29 + $0x3c8] sm:$0xff]  ;;  %v386_v54 = vld [vmem:[%s3586_s29 + $0x3d8] sm:$0xff]  ;;  %v2592_v56 = vpack.c.bf16 %v379_v48, %v375_v47 }
  0x40   : > { %2573 = vmatpush1.bf16.msra.mxu0 %v2572_v59  ;;  %v388_v53 = vld [vmem:[%s3586_s29 + $0x3e8] sm:$0xff]  ;;  %v390_v55 = vld [vmem:[%s3586_s29 + $0x3f8] sm:$0xff]  ;;  %v3040_v57 = vpack.c.bf16 %v381_v51, %v377_v49  ;;  %v383_v59 = vld [vmem:[%s3586_s29 + $0x3c0] sm:$0xff] }
  0x41   : > { %3021 = vmatpush1.bf16.msra.mxu1 %v3020_v60  ;;  %2575 = vmatprep.subr.bf16.mxu0 %v2574_v61  ;;  %v2594_v58 = vpack.c.bf16 %v388_v53, %v384_v52  ;;  %v387_v60 = vld [vmem:[%s3586_s29 + $0x3e0] sm:$0xff]  ;;  %v385_v61 = vld [vmem:[%s3586_s29 + $0x3d0] sm:$0xff]  ;;  %v3042_v62 = vpack.c.bf16 %v390_v55, %v386_v54  ;;  %v392_v0 = vld [vmem:[%s3586_s29 + $0x408] sm:$0xff] }
  0x42   : > { %3023 = vmatprep.subr.bf16.mxu1 %v3022_v1  ;;  %v389_v63 = vld [vmem:[%s3586_s29 + $0x3f0] sm:$0xff]  ;;  %v396_v1 = vld [vmem:[%s3586_s29 + $0x428] sm:$0xff]  ;;  %v394_v2 = vld [vmem:[%s3586_s29 + $0x418] sm:$0xff]  ;;  %v2596_v4 = vpack.c.bf16 %v387_v60, %v383_v59 }
  0x43   : > { %v398_v3 = vld [vmem:[%s3586_s29 + $0x438] sm:$0xff]  ;;  %v3044_v5 = vpack.c.bf16 %v389_v63, %v385_v61  ;;  %v2598_v6 = vpack.c.bf16 %v396_v1, %v392_v0  ;;  %v395_v8 = vld [vmem:[%s3586_s29 + $0x420] sm:$0xff]  ;;  %v397_v11 = vld [vmem:[%s3586_s29 + $0x430] sm:$0xff] }
  0x44   : > { %2577 = vmatpush1.bf16.msra.mxu0 %v2576_v7  ;;  %v391_v7 = vld [vmem:[%s3586_s29 + $0x400] sm:$0xff]  ;;  %v400_v12 = vld [vmem:[%s3586_s29 + $0x448] sm:$0xff]  ;;  %v406_v15 = vld [vmem:[%s3586_s29 + $0x478] sm:$0xff] }
  0x45   : > { %3025 = vmatpush1.bf16.msra.mxu1 %v3024_v9  ;;  %2579 = vmatprep.subr.bf16.mxu0 %v2578_v10  ;;  %v393_v9 = vld [vmem:[%s3586_s29 + $0x410] sm:$0xff]  ;;  %v3046_v10 = vpack.c.bf16 %v398_v3, %v394_v2  ;;  %v404_v13 = vld [vmem:[%s3586_s29 + $0x468] sm:$0xff]  ;;  %v249_v16 = vld [vmem:[%s3581_s25] sm:$0xff]  ;;  %v2600_v17 = vpack.c.bf16 %v395_v8, %v391_v7 }
  0x46   : > { %3027 = vmatprep.subr.bf16.mxu1 %v3026_v14  ;;  %v402_v14 = vld [vmem:[%s3586_s29 + $0x458] sm:$0xff]  ;;  %v3048_v18 = vpack.c.bf16 %v397_v11, %v393_v9  ;;  %v2602_v19 = vpack.c.bf16 %v404_v13, %v400_v12  ;;  %v405_v24 = vld [vmem:[%s3586_s29 + $0x470] sm:$0xff]  ;;  %v408_v25 = vld [vmem:[%s3586_s29 + $0x488] sm:$0xff] }
  0x47   : > { %v3050_v23 = vpack.c.bf16 %v406_v15, %v402_v14  ;;  %v410_v27 = vld [vmem:[%s3586_s29 + $0x498] sm:$0xff]  ;;  %v413_v36 = vld [vmem:[%s3586_s29 + $0x4b0] sm:$0xff]  ;;  %v416_v37 = vld [vmem:[%s3586_s29 + $0x4c8] sm:$0xff] }
  0x48   : > { %2581 = vmatpush1.bf16.msra.mxu0 %v2580_v20  ;;  %v399_v20 = vld [vmem:[%s3586_s29 + $0x440] sm:$0xff]  ;;  %v414_v28 = vld [vmem:[%s3586_s29 + $0x4b8] sm:$0xff]  ;;  %v421_v48 = vld [vmem:[%s3586_s29 + $0x4f0] sm:$0xff] }
  0x49   : > { %3029 = vmatpush1.bf16.msra.mxu1 %v3028_v21  ;;  %2583 = vmatprep.subr.bf16.mxu0 %v2582_v22  ;;  %v403_v21 = vld [vmem:[%s3586_s29 + $0x460] sm:$0xff]  ;;  %v401_v22 = vld [vmem:[%s3586_s29 + $0x450] sm:$0xff]  ;;  %v3054_v35 = vpack.c.bf16 %v414_v28, %v410_v27  ;;  %v418_v39 = vld [vmem:[%s3586_s29 + $0x4d8] sm:$0xff] }
  0x4a   : > { %3031 = vmatprep.subr.bf16.mxu1 %v3030_v26  ;;  %v412_v26 = vld [vmem:[%s3586_s29 + $0x4a8] sm:$0xff]  ;;  %v2604_v29 = vpack.c.bf16 %v403_v21, %v399_v20  ;;  %v3052_v30 = vpack.c.bf16 %v405_v24, %v401_v22  ;;  %v422_v40 = vld [vmem:[%s3586_s29 + $0x4f8] sm:$0xff]  ;;  %v429_v60 = vld [vmem:[%s3586_s29 + $0x530] sm:$0xff] }
  0x4b   : > { %v2606_v31 = vpack.c.bf16 %v412_v26, %v408_v25  ;;  %v3058_v47 = vpack.c.bf16 %v422_v40, %v418_v39  ;;  %v424_v49 = vld [vmem:[%s3586_s29 + $0x508] sm:$0xff]  ;;  %v426_v51 = vld [vmem:[%s3586_s29 + $0x518] sm:$0xff]  ;;  %v437_v8 = vld [vmem:[%s3586_s29 + $0x570] sm:$0xff] }
  0x4c   : > { %2585 = vmatpush1.bf16.msra.mxu0 %v2584_v32  ;;  %v407_v32 = vld [vmem:[%s3586_s29 + $0x480] sm:$0xff]  ;;  %v430_v52 = vld [vmem:[%s3586_s29 + $0x538] sm:$0xff]  ;;  %v432_v61 = vld [vmem:[%s3586_s29 + $0x548] sm:$0xff] }
  0x4d   : > { %3033 = vmatpush1.bf16.msra.mxu1 %v3032_v33  ;;  %2587 = vmatprep.subr.bf16.mxu0 %v2586_v34  ;;  %v411_v33 = vld [vmem:[%s3586_s29 + $0x4a0] sm:$0xff]  ;;  %v409_v34 = vld [vmem:[%s3586_s29 + $0x490] sm:$0xff]  ;;  %v3062_v59 = vpack.c.bf16 %v430_v52, %v426_v51  ;;  %v434_v63 = vld [vmem:[%s3586_s29 + $0x558] sm:$0xff] }
  0x4e   : > { %3035 = vmatprep.subr.bf16.mxu1 %v3034_v38  ;;  %v420_v38 = vld [vmem:[%s3586_s29 + $0x4e8] sm:$0xff]  ;;  %v2608_v41 = vpack.c.bf16 %v411_v33, %v407_v32  ;;  %v3056_v42 = vpack.c.bf16 %v413_v36, %v409_v34  ;;  %v438_v0 = vld [vmem:[%s3586_s29 + $0x578] sm:$0xff]  ;;  %v439_v14 = vld [vmem:[%s3586_s29 + $0x580] sm:$0xff] }
  0x4f   : > { %v2610_v43 = vpack.c.bf16 %v420_v38, %v416_v37  ;;  %v3066_v7 = vpack.c.bf16 %v438_v0, %v434_v63  ;;  %v440_v9 = vld [vmem:[%s3586_s29 + $0x588] sm:$0xff]  ;;  %v442_v11 = vld [vmem:[%s3586_s29 + $0x598] sm:$0xff]  ;;  %v453_v33 = vld [vmem:[%s3586_s29 + $0x5f0] sm:$0xff] }
  0x50   : > { %2589 = vmatpush1.bf16.msra.mxu0 %v2588_v44  ;;  %v415_v44 = vld [vmem:[%s3586_s29 + $0x4c0] sm:$0xff]  ;;  %v446_v12 = vld [vmem:[%s3586_s29 + $0x5b8] sm:$0xff]  ;;  %v448_v21 = vld [vmem:[%s3586_s29 + $0x5c8] sm:$0xff] }
  0x51   : > { %3037 = vmatpush1.bf16.msra.mxu1 %v3036_v45  ;;  %2591 = vmatprep.subr.bf16.mxu0 %v2590_v46  ;;  %v419_v45 = vld [vmem:[%s3586_s29 + $0x4e0] sm:$0xff]  ;;  %v417_v46 = vld [vmem:[%s3586_s29 + $0x4d0] sm:$0xff]  ;;  %v3070_v20 = vpack.c.bf16 %v446_v12, %v442_v11  ;;  %v452_v22 = vld [vmem:[%s3586_s29 + $0x5e8] sm:$0xff] }
  0x52   : > { %3039 = vmatprep.subr.bf16.mxu1 %v3038_v50  ;;  %v428_v50 = vld [vmem:[%s3586_s29 + $0x528] sm:$0xff]  ;;  %v2612_v53 = vpack.c.bf16 %v419_v45, %v415_v44  ;;  %v3060_v54 = vpack.c.bf16 %v421_v48, %v417_v46  ;;  %v450_v24 = vld [vmem:[%s3586_s29 + $0x5d8] sm:$0xff]  ;;  %v2626_v28 = vpack.c.bf16 %v452_v22, %v448_v21  ;;  %v461_v45 = vld [vmem:[%s3586_s29 + $0x630] sm:$0xff] }
  0x53   : > { %v2614_v55 = vpack.c.bf16 %v428_v50, %v424_v49  ;;  %v454_v25 = vld [vmem:[%s3586_s29 + $0x5f8] sm:$0xff]  ;;  %v456_v34 = vld [vmem:[%s3586_s29 + $0x608] sm:$0xff] }
  0x54   : > { %2593 = vmatpush1.bf16.msra.mxu0 %v2592_v56  ;;  %v423_v56 = vld [vmem:[%s3586_s29 + $0x500] sm:$0xff]  ;;  %v3074_v32 = vpack.c.bf16 %v454_v25, %v450_v24  ;;  %v458_v36 = vld [vmem:[%s3586_s29 + $0x618] sm:$0xff]  ;;  %v464_v46 = vld [vmem:[%s3586_s29 + $0x648] sm:$0xff] }
  0x55   : > { %3041 = vmatpush1.bf16.msra.mxu1 %v3040_v57  ;;  %2595 = vmatprep.subr.bf16.mxu0 %v2594_v58  ;;  %v427_v57 = vld [vmem:[%s3586_s29 + $0x520] sm:$0xff]  ;;  %v425_v58 = vld [vmem:[%s3586_s29 + $0x510] sm:$0xff]  ;;  %v462_v37 = vld [vmem:[%s3586_s29 + $0x638] sm:$0xff] }
  0x56   : > { %3043 = vmatprep.subr.bf16.mxu1 %v3042_v62  ;;  %v436_v62 = vld [vmem:[%s3586_s29 + $0x568] sm:$0xff]  ;;  %v2616_v1 = vpack.c.bf16 %v427_v57, %v423_v56  ;;  %v3064_v2 = vpack.c.bf16 %v429_v60, %v425_v58  ;;  %v3078_v44 = vpack.c.bf16 %v462_v37, %v458_v36  ;;  %v466_v48 = vld [vmem:[%s3586_s29 + $0x658] sm:$0xff]  ;;  %v469_v57 = vld [vmem:[%s3586_s29 + $0x670] sm:$0xff] }
  0x57   : > { %v2618_v3 = vpack.c.bf16 %v436_v62, %v432_v61  ;;  %v470_v49 = vld [vmem:[%s3586_s29 + $0x678] sm:$0xff]  ;;  %v472_v58 = vld [vmem:[%s3586_s29 + $0x688] sm:$0xff]  ;;  %v487_v25 = vld [vmem:[%s3586_s29 + $0x700] sm:$0xff] }
  0x58   : > { %2597 = vmatpush1.bf16.msra.mxu0 %v2596_v4  ;;  %v431_v4 = vld [vmem:[%s3586_s29 + $0x540] sm:$0xff]  ;;  %v3082_v56 = vpack.c.bf16 %v470_v49, %v466_v48  ;;  %v474_v60 = vld [vmem:[%s3586_s29 + $0x698] sm:$0xff] }
  0x59   : > { %3045 = vmatpush1.bf16.msra.mxu1 %v3044_v5  ;;  %2599 = vmatprep.subr.bf16.mxu0 %v2598_v6  ;;  %v435_v5 = vld [vmem:[%s3586_s29 + $0x560] sm:$0xff]  ;;  %v433_v6 = vld [vmem:[%s3586_s29 + $0x550] sm:$0xff]  ;;  %v478_v61 = vld [vmem:[%s3586_s29 + $0x6b8] sm:$0xff] }
  0x5a   : > { %3047 = vmatprep.subr.bf16.mxu1 %v3046_v10  ;;  %v444_v10 = vld [vmem:[%s3586_s29 + $0x5a8] sm:$0xff]  ;;  %v2620_v13 = vpack.c.bf16 %v435_v5, %v431_v4  ;;  %v3068_v15 = vpack.c.bf16 %v437_v8, %v433_v6  ;;  %v3086_v4 = vpack.c.bf16 %v478_v61, %v474_v60  ;;  %v477_v5 = vld [vmem:[%s3586_s29 + $0x6b0] sm:$0xff]  ;;  %v482_v8 = vld [vmem:[%s3586_s29 + $0x6d8] sm:$0xff] }
  0x5b   : > { %1224 = vmatmul.mubr.f32.vlgmr.msra.gmra.mrb[0].mxu0 %v249_v16  ;;  %v480_v6 = vld [vmem:[%s3586_s29 + $0x6c8] sm:$0xff]  ;;  %v494_v21 = vld [vmem:[%s3586_s29 + $0x738] sm:$0xff]  ;;  %v495_v37 = vld [vmem:[%s3586_s29 + $0x740] sm:$0xff] }
  0x5c   : > { %2601 = vmatpush1.bf16.msra.mxu0 %v2600_v17  ;;  %1721 = vmatmul.mubr.f32.vlgmr.msra.gmra.mrb[0].mxu1 %v249_v16  ;;  %v2622_v16 = vpack.c.bf16 %v444_v10, %v440_v9  ;;  %v443_v17 = vld [vmem:[%s3586_s29 + $0x5a0] sm:$0xff]  ;;  %v486_v9 = vld [vmem:[%s3586_s29 + $0x6f8] sm:$0xff] }
  0x5d   : > { %3049 = vmatpush1.bf16.msra.mxu1 %v3048_v18  ;;  %2603 = vmatprep.subr.bf16.mxu0 %v2602_v19  ;;  %v441_v18 = vld [vmem:[%s3586_s29 + $0x590] sm:$0xff]  ;;  %v2624_v26 = vpack.c.bf16 %v443_v17, %v439_v14  ;;  %v483_v14 = vld [vmem:[%s3586_s29 + $0x6e0] sm:$0xff] }
  0x5e   : > { %3051 = vmatprep.subr.bf16.mxu1 %v3050_v23  ;;  %v445_v19 = vld [vmem:[%s3586_s29 + $0x5b0] sm:$0xff]  ;;  %v252_v23 = vld [vmem:[%s3581_s25 + $0x18] sm:$0xff]  ;;  %v503_v49 = vld [vmem:[%s3586_s29 + $0x780] sm:$0xff] }
  0x5f   : > { %1294 = vmatprep.mubr.f32.mxu0 %v252_v23  ;;  %1791 = vmatprep.mubr.f32.mxu1 %v252_v23  ;;  %v3072_v27 = vpack.c.bf16 %v445_v19, %v441_v18  ;;  %v485_v17 = vld [vmem:[%s3586_s29 + $0x6f0] sm:$0xff]  ;;  %v488_v18 = vld [vmem:[%s3586_s29 + $0x708] sm:$0xff]  ;;  %v511_v61 = vld [vmem:[%s3586_s29 + $0x7c0] sm:$0xff] }
  0x60   : > { %2605 = vmatpush1.bf16.msra.mxu0 %v2604_v29  ;;  %v447_v29 = vld [vmem:[%s3586_s29 + $0x5c0] sm:$0xff]  ;;  %v492_v19 = vld [vmem:[%s3586_s29 + $0x728] sm:$0xff] }
  0x61   : > { %3053 = vmatpush1.bf16.msra.mxu1 %v3052_v30  ;;  %2607 = vmatprep.subr.bf16.mxu0 %v2606_v31  ;;  %v451_v30 = vld [vmem:[%s3586_s29 + $0x5e0] sm:$0xff]  ;;  %v449_v31 = vld [vmem:[%s3586_s29 + $0x5d0] sm:$0xff]  ;;  %v2646_v24 = vpack.c.bf16 %v492_v19, %v488_v18 }
  0x62   : > { %3055 = vmatprep.subr.bf16.mxu1 %v3054_v35  ;;  %v460_v35 = vld [vmem:[%s3586_s29 + $0x628] sm:$0xff]  ;;  %v2628_v38 = vpack.c.bf16 %v451_v30, %v447_v29  ;;  %v3076_v39 = vpack.c.bf16 %v453_v33, %v449_v31  ;;  %v493_v29 = vld [vmem:[%s3586_s29 + $0x730] sm:$0xff]  ;;  %v502_v33 = vld [vmem:[%s3586_s29 + $0x778] sm:$0xff] }
  0x63   : > { %v2630_v40 = vpack.c.bf16 %v460_v35, %v456_v34  ;;  %v496_v30 = vld [vmem:[%s3586_s29 + $0x748] sm:$0xff]  ;;  %v251_v18 = vld [vmem:[%s3581_s25 + $0x10] sm:$0xff] }
  0x64   : > { %2609 = vmatpush1.bf16.msra.mxu0 %v2608_v41  ;;  %v455_v41 = vld [vmem:[%s3586_s29 + $0x600] sm:$0xff]  ;;  %v500_v31 = vld [vmem:[%s3586_s29 + $0x768] sm:$0xff] }
  0x65   : > { %3057 = vmatpush1.bf16.msra.mxu1 %v3056_v42  ;;  %2611 = vmatprep.subr.bf16.mxu0 %v2610_v43  ;;  %v459_v42 = vld [vmem:[%s3586_s29 + $0x620] sm:$0xff]  ;;  %v457_v43 = vld [vmem:[%s3586_s29 + $0x610] sm:$0xff]  ;;  %v2650_v36 = vpack.c.bf16 %v500_v31, %v496_v30  ;;  %v542_v30 = vld [vmem:[%s3586_s29 + $0x8b8] sm:$0xff] }
  0x66   : > { %3059 = vmatprep.subr.bf16.mxu1 %v3058_v47  ;;  %v468_v47 = vld [vmem:[%s3586_s29 + $0x668] sm:$0xff]  ;;  %v2632_v50 = vpack.c.bf16 %v459_v42, %v455_v41  ;;  %v3080_v51 = vpack.c.bf16 %v461_v45, %v457_v43  ;;  %v501_v41 = vld [vmem:[%s3586_s29 + $0x770] sm:$0xff]  ;;  %v510_v45 = vld [vmem:[%s3586_s29 + $0x7b8] sm:$0xff] }
  0x67   : > { %v2634_v52 = vpack.c.bf16 %v468_v47, %v464_v46  ;;  %v504_v42 = vld [vmem:[%s3586_s29 + $0x788] sm:$0xff] }
  0x68   : > { %2613 = vmatpush1.bf16.msra.mxu0 %v2612_v53  ;;  %v463_v53 = vld [vmem:[%s3586_s29 + $0x640] sm:$0xff]  ;;  %v508_v43 = vld [vmem:[%s3586_s29 + $0x7a8] sm:$0xff] }
  0x69   : > { %3061 = vmatpush1.bf16.msra.mxu1 %v3060_v54  ;;  %2615 = vmatprep.subr.bf16.mxu0 %v2614_v55  ;;  %v467_v54 = vld [vmem:[%s3586_s29 + $0x660] sm:$0xff]  ;;  %v465_v55 = vld [vmem:[%s3586_s29 + $0x650] sm:$0xff]  ;;  %v2654_v48 = vpack.c.bf16 %v508_v43, %v504_v42  ;;  %v254_v31 = vld [vmem:[%s3581_s25 + $0x28] sm:$0xff] }
  0x6a   : > { %3063 = vmatprep.subr.bf16.mxu1 %v3062_v59  ;;  %v476_v59 = vld [vmem:[%s3586_s29 + $0x6a8] sm:$0xff]  ;;  %v2636_v62 = vpack.c.bf16 %v467_v54, %v463_v53  ;;  %v3084_v63 = vpack.c.bf16 %v469_v57, %v465_v55  ;;  %v509_v53 = vld [vmem:[%s3586_s29 + $0x7b0] sm:$0xff]  ;;  %v518_v57 = vld [vmem:[%s3586_s29 + $0x7f8] sm:$0xff] }
  0x6b   : > { %v2638_v0 = vpack.c.bf16 %v476_v59, %v472_v58  ;;  %v512_v54 = vld [vmem:[%s3586_s29 + $0x7c8] sm:$0xff]  ;;  %v546_v42 = vld [vmem:[%s3586_s29 + $0x8d8] sm:$0xff] }
  0x6c   : > { %2617 = vmatpush1.bf16.msra.mxu0 %v2616_v1  ;;  %v471_v1 = vld [vmem:[%s3586_s29 + $0x680] sm:$0xff]  ;;  %v516_v55 = vld [vmem:[%s3586_s29 + $0x7e8] sm:$0xff]  ;;  %v550_v43 = vld [vmem:[%s3586_s29 + $0x8f8] sm:$0xff] }
  0x6d   : > { %3065 = vmatpush1.bf16.msra.mxu1 %v3064_v2  ;;  %2619 = vmatprep.subr.bf16.mxu0 %v2618_v3  ;;  %v475_v2 = vld [vmem:[%s3586_s29 + $0x6a0] sm:$0xff]  ;;  %v473_v3 = vld [vmem:[%s3586_s29 + $0x690] sm:$0xff]  ;;  %v2658_v60 = vpack.c.bf16 %v516_v55, %v512_v54  ;;  %v554_v54 = vld [vmem:[%s3586_s29 + $0x918] sm:$0xff] }
  0x6e   : > { %3067 = vmatprep.subr.bf16.mxu1 %v3066_v7  ;;  %v484_v7 = vld [vmem:[%s3586_s29 + $0x6e8] sm:$0xff]  ;;  %v2640_v10 = vpack.c.bf16 %v475_v2, %v471_v1  ;;  %v3088_v11 = vpack.c.bf16 %v477_v5, %v473_v3  ;;  %v517_v1 = vld [vmem:[%s3586_s29 + $0x7f0] sm:$0xff]  ;;  %v526_v5 = vld [vmem:[%s3586_s29 + $0x838] sm:$0xff] }
  0x6f   : > { %v2642_v12 = vpack.c.bf16 %v484_v7, %v480_v6  ;;  %v520_v2 = vld [vmem:[%s3586_s29 + $0x808] sm:$0xff]  ;;  %v558_v55 = vld [vmem:[%s3586_s29 + $0x938] sm:$0xff] }
  0x70   : > { %2621 = vmatpush1.bf16.msra.mxu0 %v2620_v13  ;;  %v479_v13 = vld [vmem:[%s3586_s29 + $0x6c0] sm:$0xff]  ;;  %v524_v3 = vld [vmem:[%s3586_s29 + $0x828] sm:$0xff] }
  0x71   : > { %3069 = vmatpush1.bf16.msra.mxu1 %v3068_v15  ;;  %2623 = vmatprep.subr.bf16.mxu0 %v2622_v16  ;;  %v481_v15 = vld [vmem:[%s3586_s29 + $0x6d0] sm:$0xff]  ;;  %v3090_v16 = vpack.c.bf16 %v486_v9, %v482_v8  ;;  %v2644_v22 = vpack.c.bf16 %v483_v14, %v479_v13  ;;  %v2662_v8 = vpack.c.bf16 %v524_v3, %v520_v2  ;;  %v519_v9 = vld [vmem:[%s3586_s29 + $0x800] sm:$0xff]  ;;  %v528_v14 = vld [vmem:[%s3586_s29 + $0x848] sm:$0xff] }
  0x72   : > { %3071 = vmatprep.subr.bf16.mxu1 %v3070_v20  ;;  %v490_v20 = vld [vmem:[%s3586_s29 + $0x718] sm:$0xff]  ;;  %v3092_v23 = vpack.c.bf16 %v485_v17, %v481_v15  ;;  %v525_v13 = vld [vmem:[%s3586_s29 + $0x830] sm:$0xff]  ;;  %v532_v15 = vld [vmem:[%s3586_s29 + $0x868] sm:$0xff] }
  0x73   : > { %v534_v17 = vld [vmem:[%s3586_s29 + $0x878] sm:$0xff] }
  0x74   : > { %2625 = vmatpush1.bf16.msra.mxu0 %v2624_v26  ;;  %v491_v26 = vld [vmem:[%s3586_s29 + $0x720] sm:$0xff]  ;;  %v562_v2 = vld [vmem:[%s3586_s29 + $0x958] sm:$0xff] }
  0x75   : > { %3073 = vmatpush1.bf16.msra.mxu1 %v3072_v27  ;;  %2627 = vmatprep.subr.bf16.mxu0 %v2626_v28  ;;  %v489_v27 = vld [vmem:[%s3586_s29 + $0x710] sm:$0xff]  ;;  %v3094_v28 = vpack.c.bf16 %v494_v21, %v490_v20  ;;  %v2648_v34 = vpack.c.bf16 %v491_v26, %v487_v25  ;;  %v2666_v21 = vpack.c.bf16 %v532_v15, %v528_v14  ;;  %v566_v3 = vld [vmem:[%s3586_s29 + $0x978] sm:$0xff] }
  0x76   : > { %3075 = vmatprep.subr.bf16.mxu1 %v3074_v32  ;;  %v498_v32 = vld [vmem:[%s3586_s29 + $0x758] sm:$0xff]  ;;  %v3096_v35 = vpack.c.bf16 %v493_v29, %v489_v27  ;;  %v533_v26 = vld [vmem:[%s3586_s29 + $0x870] sm:$0xff]  ;;  %v536_v27 = vld [vmem:[%s3586_s29 + $0x888] sm:$0xff] }
  0x77   : > { %v538_v29 = vld [vmem:[%s3586_s29 + $0x898] sm:$0xff] }
  0x78   : > { %2629 = vmatpush1.bf16.msra.mxu0 %v2628_v38  ;;  %v499_v38 = vld [vmem:[%s3586_s29 + $0x760] sm:$0xff]  ;;  %v570_v14 = vld [vmem:[%s3586_s29 + $0x998] sm:$0xff] }
  0x79   : > { %3077 = vmatpush1.bf16.msra.mxu1 %v3076_v39  ;;  %2631 = vmatprep.subr.bf16.mxu0 %v2630_v40  ;;  %v497_v39 = vld [vmem:[%s3586_s29 + $0x750] sm:$0xff]  ;;  %v3098_v40 = vpack.c.bf16 %v502_v33, %v498_v32  ;;  %v2652_v46 = vpack.c.bf16 %v499_v38, %v495_v37  ;;  %v3118_v38 = vpack.c.bf16 %v542_v30, %v538_v29  ;;  %v574_v15 = vld [vmem:[%s3586_s29 + $0x9b8] sm:$0xff] }
  0x7a   : > { %3079 = vmatprep.subr.bf16.mxu1 %v3078_v44  ;;  %v506_v44 = vld [vmem:[%s3586_s29 + $0x798] sm:$0xff]  ;;  %v3100_v47 = vpack.c.bf16 %v501_v41, %v497_v39  ;;  %v537_v37 = vld [vmem:[%s3586_s29 + $0x890] sm:$0xff]  ;;  %v548_v41 = vld [vmem:[%s3586_s29 + $0x8e8] sm:$0xff] }
  0x7b   : > { %v541_v39 = vld [vmem:[%s3586_s29 + $0x8b0] sm:$0xff] }
  0x7c   : > { %2633 = vmatpush1.bf16.msra.mxu0 %v2632_v50  ;;  %v507_v50 = vld [vmem:[%s3586_s29 + $0x7a0] sm:$0xff] }
  0x7d   : > { %3081 = vmatpush1.bf16.msra.mxu1 %v3080_v51  ;;  %2635 = vmatprep.subr.bf16.mxu0 %v2634_v52  ;;  %v505_v51 = vld [vmem:[%s3586_s29 + $0x790] sm:$0xff]  ;;  %v3102_v52 = vpack.c.bf16 %v510_v45, %v506_v44  ;;  %v2656_v58 = vpack.c.bf16 %v507_v50, %v503_v49  ;;  %v3120_v45 = vpack.c.bf16 %v541_v39, %v537_v37  ;;  %v588_v37 = vld [vmem:[%s3586_s29 + $0xa28] sm:$0xff]  ;;  %v590_v39 = vld [vmem:[%s3586_s29 + $0xa38] sm:$0xff] }
  0x7e   : > { %3083 = vmatprep.subr.bf16.mxu1 %v3082_v56  ;;  %v514_v56 = vld [vmem:[%s3586_s29 + $0x7d8] sm:$0xff]  ;;  %v3104_v59 = vpack.c.bf16 %v509_v53, %v505_v51  ;;  %v545_v49 = vld [vmem:[%s3586_s29 + $0x8d0] sm:$0xff]  ;;  %v3122_v50 = vpack.c.bf16 %v550_v43, %v546_v42  ;;  %v556_v53 = vld [vmem:[%s3586_s29 + $0x928] sm:$0xff] }
  0x7f   : > { %v549_v51 = vld [vmem:[%s3586_s29 + $0x8f0] sm:$0xff]  ;;  %v583_v43 = vld [vmem:[%s3586_s29 + $0xa00] sm:$0xff] }
  0x80   : > { %2637 = vmatpush1.bf16.msra.mxu0 %v2636_v62  ;;  %v515_v62 = vld [vmem:[%s3586_s29 + $0x7e0] sm:$0xff] }
  0x81   : > { %3085 = vmatpush1.bf16.msra.mxu1 %v3084_v63  ;;  %2639 = vmatprep.subr.bf16.mxu0 %v2638_v0  ;;  %v513_v63 = vld [vmem:[%s3586_s29 + $0x7d0] sm:$0xff]  ;;  %v3106_v0 = vpack.c.bf16 %v518_v57, %v514_v56  ;;  %v2660_v6 = vpack.c.bf16 %v515_v62, %v511_v61  ;;  %v3124_v57 = vpack.c.bf16 %v549_v51, %v545_v49  ;;  %v596_v49 = vld [vmem:[%s3586_s29 + $0xa68] sm:$0xff]  ;;  %v598_v51 = vld [vmem:[%s3586_s29 + $0xa78] sm:$0xff] }
  0x82   : > { %3087 = vmatprep.subr.bf16.mxu1 %v3086_v4  ;;  %v522_v4 = vld [vmem:[%s3586_s29 + $0x818] sm:$0xff]  ;;  %v3108_v7 = vpack.c.bf16 %v517_v1, %v513_v63  ;;  %v553_v61 = vld [vmem:[%s3586_s29 + $0x910] sm:$0xff]  ;;  %v3126_v62 = vpack.c.bf16 %v558_v55, %v554_v54  ;;  %v564_v1 = vld [vmem:[%s3586_s29 + $0x968] sm:$0xff] }
  0x83   : > { %v557_v63 = vld [vmem:[%s3586_s29 + $0x930] sm:$0xff]  ;;  %v591_v55 = vld [vmem:[%s3586_s29 + $0xa40] sm:$0xff] }
  0x84   : > { %2641 = vmatpush1.bf16.msra.mxu0 %v2640_v10  ;;  %v523_v10 = vld [vmem:[%s3586_s29 + $0x820] sm:$0xff] }
  0x85   : > { %3089 = vmatpush1.bf16.msra.mxu1 %v3088_v11  ;;  %2643 = vmatprep.subr.bf16.mxu0 %v2642_v12  ;;  %v521_v11 = vld [vmem:[%s3586_s29 + $0x810] sm:$0xff]  ;;  %v3110_v12 = vpack.c.bf16 %v526_v5, %v522_v4  ;;  %v2664_v19 = vpack.c.bf16 %v523_v10, %v519_v9  ;;  %v3128_v5 = vpack.c.bf16 %v557_v63, %v553_v61  ;;  %v604_v61 = vld [vmem:[%s3586_s29 + $0xaa8] sm:$0xff]  ;;  %v606_v63 = vld [vmem:[%s3586_s29 + $0xab8] sm:$0xff] }
  0x86   : > { %3091 = vmatprep.subr.bf16.mxu1 %v3090_v16  ;;  %v530_v16 = vld [vmem:[%s3586_s29 + $0x858] sm:$0xff]  ;;  %v3112_v20 = vpack.c.bf16 %v525_v13, %v521_v11  ;;  %v561_v9 = vld [vmem:[%s3586_s29 + $0x950] sm:$0xff]  ;;  %v3130_v10 = vpack.c.bf16 %v566_v3, %v562_v2  ;;  %v572_v13 = vld [vmem:[%s3586_s29 + $0x9a8] sm:$0xff] }
  0x87   : > { %v3114_v25 = vpack.c.bf16 %v534_v17, %v530_v16  ;;  %v565_v11 = vld [vmem:[%s3586_s29 + $0x970] sm:$0xff]  ;;  %v599_v3 = vld [vmem:[%s3586_s29 + $0xa80] sm:$0xff] }
  0x88   : > { %2645 = vmatpush1.bf16.msra.mxu0 %v2644_v22  ;;  %v527_v22 = vld [vmem:[%s3586_s29 + $0x840] sm:$0xff]  ;;  %v3132_v17 = vpack.c.bf16 %v565_v11, %v561_v9  ;;  %v612_v9 = vld [vmem:[%s3586_s29 + $0xae8] sm:$0xff]  ;;  %v614_v11 = vld [vmem:[%s3586_s29 + $0xaf8] sm:$0xff] }
  0x89   : > { %3093 = vmatpush1.bf16.msra.mxu1 %v3092_v23  ;;  %2647 = vmatprep.subr.bf16.mxu0 %v2646_v24  ;;  %v531_v23 = vld [vmem:[%s3586_s29 + $0x860] sm:$0xff]  ;;  %v529_v24 = vld [vmem:[%s3586_s29 + $0x850] sm:$0xff] }
  0x8a   : > { %3095 = vmatprep.subr.bf16.mxu1 %v3094_v28  ;;  %v540_v28 = vld [vmem:[%s3586_s29 + $0x8a8] sm:$0xff]  ;;  %v2668_v32 = vpack.c.bf16 %v531_v23, %v527_v22  ;;  %v3116_v33 = vpack.c.bf16 %v533_v26, %v529_v24  ;;  %v3134_v22 = vpack.c.bf16 %v574_v15, %v570_v14  ;;  %v573_v23 = vld [vmem:[%s3586_s29 + $0x9b0] sm:$0xff]  ;;  %v578_v26 = vld [vmem:[%s3586_s29 + $0x9d8] sm:$0xff] }
  0x8b   : > { %v576_v24 = vld [vmem:[%s3586_s29 + $0x9c8] sm:$0xff]  ;;  %v607_v15 = vld [vmem:[%s3586_s29 + $0xac0] sm:$0xff] }
  0x8c   : > { %2649 = vmatpush1.bf16.msra.mxu0 %v2648_v34  ;;  %v2670_v34 = vpack.c.bf16 %v540_v28, %v536_v27  ;;  %v582_v27 = vld [vmem:[%s3586_s29 + $0x9f8] sm:$0xff] }
  0x8d   : > { %3097 = vmatpush1.bf16.msra.mxu1 %v3096_v35  ;;  %2651 = vmatprep.subr.bf16.mxu0 %v2650_v36  ;;  %v535_v35 = vld [vmem:[%s3586_s29 + $0x880] sm:$0xff] }
  0x8e   : > { %3099 = vmatprep.subr.bf16.mxu1 %v3098_v40  ;;  %v539_v36 = vld [vmem:[%s3586_s29 + $0x8a0] sm:$0xff]  ;;  %v544_v40 = vld [vmem:[%s3586_s29 + $0x8c8] sm:$0xff] }
  0x8f   : > { %v2672_v44 = vpack.c.bf16 %v539_v36, %v535_v35  ;;  %v581_v35 = vld [vmem:[%s3586_s29 + $0x9f0] sm:$0xff]  ;;  %v584_v36 = vld [vmem:[%s3586_s29 + $0xa08] sm:$0xff] }
  0x90   : > { %2653 = vmatpush1.bf16.msra.mxu0 %v2652_v46  ;;  %v2674_v46 = vpack.c.bf16 %v548_v41, %v544_v40  ;;  %v2694_v42 = vpack.c.bf16 %v588_v37, %v584_v36 }
  0x91   : > { %3101 = vmatpush1.bf16.msra.mxu1 %v3100_v47  ;;  %2655 = vmatprep.subr.bf16.mxu0 %v2654_v48  ;;  %v543_v47 = vld [vmem:[%s3586_s29 + $0x8c0] sm:$0xff] }
  0x92   : > { %3103 = vmatprep.subr.bf16.mxu1 %v3102_v52  ;;  %v547_v48 = vld [vmem:[%s3586_s29 + $0x8e0] sm:$0xff]  ;;  %v552_v52 = vld [vmem:[%s3586_s29 + $0x908] sm:$0xff] }
  0x93   : > { %v2676_v56 = vpack.c.bf16 %v547_v48, %v543_v47  ;;  %v589_v47 = vld [vmem:[%s3586_s29 + $0xa30] sm:$0xff]  ;;  %v592_v48 = vld [vmem:[%s3586_s29 + $0xa48] sm:$0xff] }
  0x94   : > { %2657 = vmatpush1.bf16.msra.mxu0 %v2656_v58  ;;  %v2678_v58 = vpack.c.bf16 %v556_v53, %v552_v52  ;;  %v2698_v54 = vpack.c.bf16 %v596_v49, %v592_v48 }
  0x95   : > { %3105 = vmatpush1.bf16.msra.mxu1 %v3104_v59  ;;  %2659 = vmatprep.subr.bf16.mxu0 %v2658_v60  ;;  %v551_v59 = vld [vmem:[%s3586_s29 + $0x900] sm:$0xff] }
  0x96   : > { %3107 = vmatprep.subr.bf16.mxu1 %v3106_v0  ;;  %v555_v60 = vld [vmem:[%s3586_s29 + $0x920] sm:$0xff]  ;;  %v560_v0 = vld [vmem:[%s3586_s29 + $0x948] sm:$0xff] }
  0x97   : > { %v2680_v4 = vpack.c.bf16 %v555_v60, %v551_v59  ;;  %v597_v59 = vld [vmem:[%s3586_s29 + $0xa70] sm:$0xff]  ;;  %v600_v60 = vld [vmem:[%s3586_s29 + $0xa88] sm:$0xff] }
  0x98   : > { %2661 = vmatpush1.bf16.msra.mxu0 %v2660_v6  ;;  %v2682_v6 = vpack.c.bf16 %v564_v1, %v560_v0  ;;  %v2702_v2 = vpack.c.bf16 %v604_v61, %v600_v60 }
  0x99   : > { %3109 = vmatpush1.bf16.msra.mxu1 %v3108_v7  ;;  %2663 = vmatprep.subr.bf16.mxu0 %v2662_v8  ;;  %v559_v7 = vld [vmem:[%s3586_s29 + $0x940] sm:$0xff] }
  0x9a   : > { %3111 = vmatprep.subr.bf16.mxu1 %v3110_v12  ;;  %v563_v8 = vld [vmem:[%s3586_s29 + $0x960] sm:$0xff]  ;;  %v568_v12 = vld [vmem:[%s3586_s29 + $0x988] sm:$0xff] }
  0x9b   : > { %1295 = vmatmul.mubr.f32.vlgmr.msra.gmra.mrb[0].mxu0 %v251_v18  ;;  %v2684_v16 = vpack.c.bf16 %v563_v8, %v559_v7  ;;  %v605_v7 = vld [vmem:[%s3586_s29 + $0xab0] sm:$0xff]  ;;  %v608_v8 = vld [vmem:[%s3586_s29 + $0xac8] sm:$0xff] }
  0x9c   : > { %2665 = vmatpush1.bf16.msra.mxu0 %v2664_v19  ;;  %1792 = vmatmul.mubr.f32.vlgmr.msra.gmra.mrb[0].mxu1 %v251_v18  ;;  %v2686_v18 = vpack.c.bf16 %v572_v13, %v568_v12  ;;  %v567_v19 = vld [vmem:[%s3586_s29 + $0x980] sm:$0xff]  ;;  %v2706_v14 = vpack.c.bf16 %v612_v9, %v608_v8 }
  0x9d   : > { %3113 = vmatpush1.bf16.msra.mxu1 %v3112_v20  ;;  %2667 = vmatprep.subr.bf16.mxu0 %v2666_v21  ;;  %v571_v20 = vld [vmem:[%s3586_s29 + $0x9a0] sm:$0xff]  ;;  %v569_v21 = vld [vmem:[%s3586_s29 + $0x990] sm:$0xff] }
  0x9e   : > { %3115 = vmatprep.subr.bf16.mxu1 %v3114_v25  ;;  %1365 = vmatprep.mubr.f32.mxu0 %v254_v31  ;;  %v580_v25 = vld [vmem:[%s3586_s29 + $0x9e8] sm:$0xff]  ;;  %v2688_v28 = vpack.c.bf16 %v571_v20, %v567_v19  ;;  %v3136_v29 = vpack.c.bf16 %v573_v23, %v569_v21  ;;  %v613_v19 = vld [vmem:[%s3586_s29 + $0xaf0] sm:$0xff]  ;;  %v622_v23 = vld [vmem:[%s3586_s29 + $0xb38] sm:$0xff] }
  0x9f   : > { %1862 = vmatprep.mubr.f32.mxu1 %v254_v31  ;;  %v2690_v30 = vpack.c.bf16 %v580_v25, %v576_v24  ;;  %v575_v31 = vld [vmem:[%s3586_s29 + $0x9c0] sm:$0xff]  ;;  %v616_v20 = vld [vmem:[%s3586_s29 + $0xb08] sm:$0xff] }
  0xa0   : > { %2669 = vmatpush1.bf16.msra.mxu0 %v2668_v32  ;;  %v579_v32 = vld [vmem:[%s3586_s29 + $0x9e0] sm:$0xff]  ;;  %v620_v21 = vld [vmem:[%s3586_s29 + $0xb28] sm:$0xff] }
  0xa1   : > { %3117 = vmatpush1.bf16.msra.mxu1 %v3116_v33  ;;  %2671 = vmatprep.subr.bf16.mxu0 %v2670_v34  ;;  %v577_v33 = vld [vmem:[%s3586_s29 + $0x9d0] sm:$0xff]  ;;  %v3138_v34 = vpack.c.bf16 %v582_v27, %v578_v26  ;;  %v2692_v40 = vpack.c.bf16 %v579_v32, %v575_v31  ;;  %v2710_v26 = vpack.c.bf16 %v620_v21, %v616_v20  ;;  %v615_v27 = vld [vmem:[%s3586_s29 + $0xb00] sm:$0xff]  ;;  %v624_v32 = vld [vmem:[%s3586_s29 + $0xb48] sm:$0xff] }
  0xa2   : > { %3119 = vmatprep.subr.bf16.mxu1 %v3118_v38  ;;  %v586_v38 = vld [vmem:[%s3586_s29 + $0xa18] sm:$0xff]  ;;  %v3140_v41 = vpack.c.bf16 %v581_v35, %v577_v33  ;;  %v621_v31 = vld [vmem:[%s3586_s29 + $0xb30] sm:$0xff]  ;;  %v628_v33 = vld [vmem:[%s3586_s29 + $0xb68] sm:$0xff] }
  0xa3   : > { %v630_v35 = vld [vmem:[%s3586_s29 + $0xb78] sm:$0xff]  ;;  %v253_v20 = vld [vmem:[%s3581_s25 + $0x20] sm:$0xff] }
  0xa4   : > { %2673 = vmatpush1.bf16.msra.mxu0 %v2672_v44  ;;  %v587_v44 = vld [vmem:[%s3586_s29 + $0xa20] sm:$0xff] }
  0xa5   : > { %3121 = vmatpush1.bf16.msra.mxu1 %v3120_v45  ;;  %2675 = vmatprep.subr.bf16.mxu0 %v2674_v46  ;;  %v585_v45 = vld [vmem:[%s3586_s29 + $0xa10] sm:$0xff]  ;;  %v3142_v46 = vpack.c.bf16 %v590_v39, %v586_v38  ;;  %v2696_v52 = vpack.c.bf16 %v587_v44, %v583_v43  ;;  %v2714_v38 = vpack.c.bf16 %v628_v33, %v624_v32  ;;  %v623_v39 = vld [vmem:[%s3586_s29 + $0xb40] sm:$0xff]  ;;  %v632_v44 = vld [vmem:[%s3586_s29 + $0xb88] sm:$0xff] }
  0xa6   : > { %3123 = vmatprep.subr.bf16.mxu1 %v3122_v50  ;;  %v594_v50 = vld [vmem:[%s3586_s29 + $0xa58] sm:$0xff]  ;;  %v3144_v53 = vpack.c.bf16 %v589_v47, %v585_v45  ;;  %v629_v43 = vld [vmem:[%s3586_s29 + $0xb70] sm:$0xff]  ;;  %v636_v45 = vld [vmem:[%s3586_s29 + $0xba8] sm:$0xff] }
  0xa7   : > { %v638_v47 = vld [vmem:[%s3586_s29 + $0xbb8] sm:$0xff] }
  0xa8   : > { %2677 = vmatpush1.bf16.msra.mxu0 %v2676_v56  ;;  %v595_v56 = vld [vmem:[%s3586_s29 + $0xa60] sm:$0xff]  ;;  %v670_v32 = vld [vmem:[%s3586_s29 + $0xcb8] sm:$0xff] }
  0xa9   : > { %3125 = vmatpush1.bf16.msra.mxu1 %v3124_v57  ;;  %2679 = vmatprep.subr.bf16.mxu0 %v2678_v58  ;;  %v593_v57 = vld [vmem:[%s3586_s29 + $0xa50] sm:$0xff]  ;;  %v3146_v58 = vpack.c.bf16 %v598_v51, %v594_v50  ;;  %v2700_v0 = vpack.c.bf16 %v595_v56, %v591_v55  ;;  %v2718_v50 = vpack.c.bf16 %v636_v45, %v632_v44  ;;  %v631_v51 = vld [vmem:[%s3586_s29 + $0xb80] sm:$0xff]  ;;  %v640_v56 = vld [vmem:[%s3586_s29 + $0xbc8] sm:$0xff] }
  0xaa   : > { %3127 = vmatprep.subr.bf16.mxu1 %v3126_v62  ;;  %v602_v62 = vld [vmem:[%s3586_s29 + $0xa98] sm:$0xff]  ;;  %v3148_v1 = vpack.c.bf16 %v597_v59, %v593_v57  ;;  %v637_v55 = vld [vmem:[%s3586_s29 + $0xbb0] sm:$0xff]  ;;  %v644_v57 = vld [vmem:[%s3586_s29 + $0xbe8] sm:$0xff] }
  0xab   : > { %v646_v59 = vld [vmem:[%s3586_s29 + $0xbf8] sm:$0xff] }
  0xac   : > { %2681 = vmatpush1.bf16.msra.mxu0 %v2680_v4  ;;  %v603_v4 = vld [vmem:[%s3586_s29 + $0xaa0] sm:$0xff]  ;;  %v256_v33 = vld [vmem:[%s3581_s25 + $0x38] sm:$0xff] }
  0xad   : > { %3129 = vmatpush1.bf16.msra.mxu1 %v3128_v5  ;;  %2683 = vmatprep.subr.bf16.mxu0 %v2682_v6  ;;  %v601_v5 = vld [vmem:[%s3586_s29 + $0xa90] sm:$0xff]  ;;  %v3150_v6 = vpack.c.bf16 %v606_v63, %v602_v62  ;;  %v2704_v12 = vpack.c.bf16 %v603_v4, %v599_v3  ;;  %v2722_v62 = vpack.c.bf16 %v644_v57, %v640_v56  ;;  %v639_v63 = vld [vmem:[%s3586_s29 + $0xbc0] sm:$0xff]  ;;  %v648_v4 = vld [vmem:[%s3586_s29 + $0xc08] sm:$0xff] }
  0xae   : > { %3131 = vmatprep.subr.bf16.mxu1 %v3130_v10  ;;  %v610_v10 = vld [vmem:[%s3586_s29 + $0xad8] sm:$0xff]  ;;  %v3152_v13 = vpack.c.bf16 %v605_v7, %v601_v5  ;;  %v645_v3 = vld [vmem:[%s3586_s29 + $0xbf0] sm:$0xff]  ;;  %v652_v5 = vld [vmem:[%s3586_s29 + $0xc28] sm:$0xff] }
  0xaf   : > { %v654_v7 = vld [vmem:[%s3586_s29 + $0xc38] sm:$0xff] }
  0xb0   : > { %2685 = vmatpush1.bf16.msra.mxu0 %v2684_v16  ;;  %v611_v16 = vld [vmem:[%s3586_s29 + $0xae0] sm:$0xff]  ;;  %v674_v44 = vld [vmem:[%s3586_s29 + $0xcd8] sm:$0xff] }
  0xb1   : > { %3133 = vmatpush1.bf16.msra.mxu1 %v3132_v17  ;;  %2687 = vmatprep.subr.bf16.mxu0 %v2686_v18  ;;  %v609_v17 = vld [vmem:[%s3586_s29 + $0xad0] sm:$0xff]  ;;  %v3154_v18 = vpack.c.bf16 %v614_v11, %v610_v10  ;;  %v2708_v24 = vpack.c.bf16 %v611_v16, %v607_v15  ;;  %v2726_v10 = vpack.c.bf16 %v652_v5, %v648_v4  ;;  %v647_v11 = vld [vmem:[%s3586_s29 + $0xc00] sm:$0xff]  ;;  %v656_v16 = vld [vmem:[%s3586_s29 + $0xc48] sm:$0xff] }
  0xb2   : > { %3135 = vmatprep.subr.bf16.mxu1 %v3134_v22  ;;  %v618_v22 = vld [vmem:[%s3586_s29 + $0xb18] sm:$0xff]  ;;  %v3156_v25 = vpack.c.bf16 %v613_v19, %v609_v17  ;;  %v653_v15 = vld [vmem:[%s3586_s29 + $0xc30] sm:$0xff]  ;;  %v660_v17 = vld [vmem:[%s3586_s29 + $0xc68] sm:$0xff] }
  0xb3   : > { %v662_v19 = vld [vmem:[%s3586_s29 + $0xc78] sm:$0xff] }
  0xb4   : > { %2689 = vmatpush1.bf16.msra.mxu0 %v2688_v28  ;;  %v619_v28 = vld [vmem:[%s3586_s29 + $0xb20] sm:$0xff]  ;;  %v678_v45 = vld [vmem:[%s3586_s29 + $0xcf8] sm:$0xff] }
  0xb5   : > { %3137 = vmatpush1.bf16.msra.mxu1 %v3136_v29  ;;  %2691 = vmatprep.subr.bf16.mxu0 %v2690_v30  ;;  %v617_v29 = vld [vmem:[%s3586_s29 + $0xb10] sm:$0xff]  ;;  %v3158_v30 = vpack.c.bf16 %v622_v23, %v618_v22  ;;  %v2712_v36 = vpack.c.bf16 %v619_v28, %v615_v27  ;;  %v2730_v23 = vpack.c.bf16 %v660_v17, %v656_v16  ;;  %v682_v56 = vld [vmem:[%s3586_s29 + $0xd18] sm:$0xff] }
  0xb6   : > { %3139 = vmatprep.subr.bf16.mxu1 %v3138_v34  ;;  %v626_v34 = vld [vmem:[%s3586_s29 + $0xb58] sm:$0xff]  ;;  %v3160_v37 = vpack.c.bf16 %v621_v31, %v617_v29  ;;  %v661_v28 = vld [vmem:[%s3586_s29 + $0xc70] sm:$0xff]  ;;  %v664_v29 = vld [vmem:[%s3586_s29 + $0xc88] sm:$0xff] }
  0xb7   : > { %v666_v31 = vld [vmem:[%s3586_s29 + $0xc98] sm:$0xff] }
  0xb8   : > { %2693 = vmatpush1.bf16.msra.mxu0 %v2692_v40  ;;  %v627_v40 = vld [vmem:[%s3586_s29 + $0xb60] sm:$0xff]  ;;  %v686_v57 = vld [vmem:[%s3586_s29 + $0xd38] sm:$0xff] }
  0xb9   : > { %3141 = vmatpush1.bf16.msra.mxu1 %v3140_v41  ;;  %2695 = vmatprep.subr.bf16.mxu0 %v2694_v42  ;;  %v625_v41 = vld [vmem:[%s3586_s29 + $0xb50] sm:$0xff]  ;;  %v3162_v42 = vpack.c.bf16 %v630_v35, %v626_v34  ;;  %v2716_v48 = vpack.c.bf16 %v627_v40, %v623_v39  ;;  %v3182_v40 = vpack.c.bf16 %v670_v32, %v666_v31  ;;  %v690_v4 = vld [vmem:[%s3586_s29 + $0xd58] sm:$0xff] }
  0xba   : > { %3143 = vmatprep.subr.bf16.mxu1 %v3142_v46  ;;  %v634_v46 = vld [vmem:[%s3586_s29 + $0xb98] sm:$0xff]  ;;  %v3164_v49 = vpack.c.bf16 %v629_v43, %v625_v41  ;;  %v665_v39 = vld [vmem:[%s3586_s29 + $0xc90] sm:$0xff]  ;;  %v676_v43 = vld [vmem:[%s3586_s29 + $0xce8] sm:$0xff] }
  0xbb   : > { %v669_v41 = vld [vmem:[%s3586_s29 + $0xcb0] sm:$0xff]  ;;  %v694_v5 = vld [vmem:[%s3586_s29 + $0xd78] sm:$0xff] }
  0xbc   : > { %2697 = vmatpush1.bf16.msra.mxu0 %v2696_v52  ;;  %v635_v52 = vld [vmem:[%s3586_s29 + $0xba0] sm:$0xff]  ;;  %v698_v16 = vld [vmem:[%s3586_s29 + $0xd98] sm:$0xff] }
  0xbd   : > { %3145 = vmatpush1.bf16.msra.mxu1 %v3144_v53  ;;  %2699 = vmatprep.subr.bf16.mxu0 %v2698_v54  ;;  %v633_v53 = vld [vmem:[%s3586_s29 + $0xb90] sm:$0xff]  ;;  %v3166_v54 = vpack.c.bf16 %v638_v47, %v634_v46  ;;  %v2720_v60 = vpack.c.bf16 %v635_v52, %v631_v51  ;;  %v3184_v47 = vpack.c.bf16 %v669_v41, %v665_v39  ;;  %v702_v17 = vld [vmem:[%s3586_s29 + $0xdb8] sm:$0xff]  ;;  %v716_v39 = vld [vmem:[%s3586_s29 + $0xe28] sm:$0xff] }
  0xbe   : > { %3147 = vmatprep.subr.bf16.mxu1 %v3146_v58  ;;  %v642_v58 = vld [vmem:[%s3586_s29 + $0xbd8] sm:$0xff]  ;;  %v3168_v61 = vpack.c.bf16 %v637_v55, %v633_v53  ;;  %v673_v51 = vld [vmem:[%s3586_s29 + $0xcd0] sm:$0xff]  ;;  %v3186_v52 = vpack.c.bf16 %v678_v45, %v674_v44  ;;  %v684_v55 = vld [vmem:[%s3586_s29 + $0xd28] sm:$0xff] }
  0xbf   : > { %v677_v53 = vld [vmem:[%s3586_s29 + $0xcf0] sm:$0xff]  ;;  %v718_v41 = vld [vmem:[%s3586_s29 + $0xe38] sm:$0xff]  ;;  %v711_v45 = vld [vmem:[%s3586_s29 + $0xe00] sm:$0xff] }
  0xc0   : > { %2701 = vmatpush1.bf16.msra.mxu0 %v2700_v0  ;;  %v643_v0 = vld [vmem:[%s3586_s29 + $0xbe0] sm:$0xff] }
  0xc1   : > { %3149 = vmatpush1.bf16.msra.mxu1 %v3148_v1  ;;  %2703 = vmatprep.subr.bf16.mxu0 %v2702_v2  ;;  %v641_v1 = vld [vmem:[%s3586_s29 + $0xbd0] sm:$0xff]  ;;  %v3170_v2 = vpack.c.bf16 %v646_v59, %v642_v58  ;;  %v2724_v8 = vpack.c.bf16 %v643_v0, %v639_v63  ;;  %v3188_v59 = vpack.c.bf16 %v677_v53, %v673_v51  ;;  %v724_v51 = vld [vmem:[%s3586_s29 + $0xe68] sm:$0xff]  ;;  %v726_v53 = vld [vmem:[%s3586_s29 + $0xe78] sm:$0xff] }
  0xc2   : > { %3151 = vmatprep.subr.bf16.mxu1 %v3150_v6  ;;  %v650_v6 = vld [vmem:[%s3586_s29 + $0xc18] sm:$0xff]  ;;  %v3172_v9 = vpack.c.bf16 %v645_v3, %v641_v1  ;;  %v681_v63 = vld [vmem:[%s3586_s29 + $0xd10] sm:$0xff]  ;;  %v3190_v0 = vpack.c.bf16 %v686_v57, %v682_v56  ;;  %v692_v3 = vld [vmem:[%s3586_s29 + $0xd68] sm:$0xff] }
  0xc3   : > { %v685_v1 = vld [vmem:[%s3586_s29 + $0xd30] sm:$0xff]  ;;  %v719_v57 = vld [vmem:[%s3586_s29 + $0xe40] sm:$0xff] }
  0xc4   : > { %2705 = vmatpush1.bf16.msra.mxu0 %v2704_v12  ;;  %v651_v12 = vld [vmem:[%s3586_s29 + $0xc20] sm:$0xff] }
  0xc5   : > { %3153 = vmatpush1.bf16.msra.mxu1 %v3152_v13  ;;  %2707 = vmatprep.subr.bf16.mxu0 %v2706_v14  ;;  %v649_v13 = vld [vmem:[%s3586_s29 + $0xc10] sm:$0xff]  ;;  %v3174_v14 = vpack.c.bf16 %v654_v7, %v650_v6  ;;  %v2728_v21 = vpack.c.bf16 %v651_v12, %v647_v11  ;;  %v3192_v7 = vpack.c.bf16 %v685_v1, %v681_v63  ;;  %v732_v63 = vld [vmem:[%s3586_s29 + $0xea8] sm:$0xff]  ;;  %v734_v1 = vld [vmem:[%s3586_s29 + $0xeb8] sm:$0xff] }
  0xc6   : > { %3155 = vmatprep.subr.bf16.mxu1 %v3154_v18  ;;  %v658_v18 = vld [vmem:[%s3586_s29 + $0xc58] sm:$0xff]  ;;  %v3176_v22 = vpack.c.bf16 %v653_v15, %v649_v13  ;;  %v689_v11 = vld [vmem:[%s3586_s29 + $0xd50] sm:$0xff]  ;;  %v3194_v12 = vpack.c.bf16 %v694_v5, %v690_v4  ;;  %v700_v15 = vld [vmem:[%s3586_s29 + $0xda8] sm:$0xff] }
  0xc7   : > { %v3178_v27 = vpack.c.bf16 %v662_v19, %v658_v18  ;;  %v693_v13 = vld [vmem:[%s3586_s29 + $0xd70] sm:$0xff]  ;;  %v727_v5 = vld [vmem:[%s3586_s29 + $0xe80] sm:$0xff] }
  0xc8   : > { %2709 = vmatpush1.bf16.msra.mxu0 %v2708_v24  ;;  %v655_v24 = vld [vmem:[%s3586_s29 + $0xc40] sm:$0xff]  ;;  %v3196_v19 = vpack.c.bf16 %v693_v13, %v689_v11  ;;  %v740_v11 = vld [vmem:[%s3586_s29 + $0xee8] sm:$0xff]  ;;  %v742_v13 = vld [vmem:[%s3586_s29 + $0xef8] sm:$0xff] }
  0xc9   : > { %3157 = vmatpush1.bf16.msra.mxu1 %v3156_v25  ;;  %2711 = vmatprep.subr.bf16.mxu0 %v2710_v26  ;;  %v659_v25 = vld [vmem:[%s3586_s29 + $0xc60] sm:$0xff]  ;;  %v657_v26 = vld [vmem:[%s3586_s29 + $0xc50] sm:$0xff] }
  0xca   : > { %3159 = vmatprep.subr.bf16.mxu1 %v3158_v30  ;;  %v668_v30 = vld [vmem:[%s3586_s29 + $0xca8] sm:$0xff]  ;;  %v2732_v34 = vpack.c.bf16 %v659_v25, %v655_v24  ;;  %v3180_v35 = vpack.c.bf16 %v661_v28, %v657_v26  ;;  %v3198_v24 = vpack.c.bf16 %v702_v17, %v698_v16  ;;  %v701_v25 = vld [vmem:[%s3586_s29 + $0xdb0] sm:$0xff]  ;;  %v706_v28 = vld [vmem:[%s3586_s29 + $0xdd8] sm:$0xff] }
  0xcb   : > { %v704_v26 = vld [vmem:[%s3586_s29 + $0xdc8] sm:$0xff]  ;;  %v735_v17 = vld [vmem:[%s3586_s29 + $0xec0] sm:$0xff] }
  0xcc   : > { %2713 = vmatpush1.bf16.msra.mxu0 %v2712_v36  ;;  %v2734_v36 = vpack.c.bf16 %v668_v30, %v664_v29  ;;  %v710_v29 = vld [vmem:[%s3586_s29 + $0xdf8] sm:$0xff] }
  0xcd   : > { %3161 = vmatpush1.bf16.msra.mxu1 %v3160_v37  ;;  %2715 = vmatprep.subr.bf16.mxu0 %v2714_v38  ;;  %v663_v37 = vld [vmem:[%s3586_s29 + $0xc80] sm:$0xff] }
  0xce   : > { %3163 = vmatprep.subr.bf16.mxu1 %v3162_v42  ;;  %v667_v38 = vld [vmem:[%s3586_s29 + $0xca0] sm:$0xff]  ;;  %v672_v42 = vld [vmem:[%s3586_s29 + $0xcc8] sm:$0xff] }
  0xcf   : > { %v2736_v46 = vpack.c.bf16 %v667_v38, %v663_v37  ;;  %v709_v37 = vld [vmem:[%s3586_s29 + $0xdf0] sm:$0xff]  ;;  %v712_v38 = vld [vmem:[%s3586_s29 + $0xe08] sm:$0xff] }
  0xd0   : > { %2717 = vmatpush1.bf16.msra.mxu0 %v2716_v48  ;;  %v2738_v48 = vpack.c.bf16 %v676_v43, %v672_v42  ;;  %v2758_v44 = vpack.c.bf16 %v716_v39, %v712_v38 }
  0xd1   : > { %3165 = vmatpush1.bf16.msra.mxu1 %v3164_v49  ;;  %2719 = vmatprep.subr.bf16.mxu0 %v2718_v50  ;;  %v671_v49 = vld [vmem:[%s3586_s29 + $0xcc0] sm:$0xff] }
  0xd2   : > { %3167 = vmatprep.subr.bf16.mxu1 %v3166_v54  ;;  %v675_v50 = vld [vmem:[%s3586_s29 + $0xce0] sm:$0xff]  ;;  %v680_v54 = vld [vmem:[%s3586_s29 + $0xd08] sm:$0xff] }
  0xd3   : > { %v2740_v58 = vpack.c.bf16 %v675_v50, %v671_v49  ;;  %v717_v49 = vld [vmem:[%s3586_s29 + $0xe30] sm:$0xff]  ;;  %v720_v50 = vld [vmem:[%s3586_s29 + $0xe48] sm:$0xff] }
  0xd4   : > { %2721 = vmatpush1.bf16.msra.mxu0 %v2720_v60  ;;  %v2742_v60 = vpack.c.bf16 %v684_v55, %v680_v54  ;;  %v2762_v56 = vpack.c.bf16 %v724_v51, %v720_v50 }
  0xd5   : > { %3169 = vmatpush1.bf16.msra.mxu1 %v3168_v61  ;;  %2723 = vmatprep.subr.bf16.mxu0 %v2722_v62  ;;  %v679_v61 = vld [vmem:[%s3586_s29 + $0xd00] sm:$0xff] }
  0xd6   : > { %3171 = vmatprep.subr.bf16.mxu1 %v3170_v2  ;;  %v683_v62 = vld [vmem:[%s3586_s29 + $0xd20] sm:$0xff]  ;;  %v688_v2 = vld [vmem:[%s3586_s29 + $0xd48] sm:$0xff] }
  0xd7   : > { %v2744_v6 = vpack.c.bf16 %v683_v62, %v679_v61  ;;  %v725_v61 = vld [vmem:[%s3586_s29 + $0xe70] sm:$0xff]  ;;  %v728_v62 = vld [vmem:[%s3586_s29 + $0xe88] sm:$0xff] }
  0xd8   : > { %2725 = vmatpush1.bf16.msra.mxu0 %v2724_v8  ;;  %v2746_v8 = vpack.c.bf16 %v692_v3, %v688_v2  ;;  %v2766_v4 = vpack.c.bf16 %v732_v63, %v728_v62 }
  0xd9   : > { %3173 = vmatpush1.bf16.msra.mxu1 %v3172_v9  ;;  %2727 = vmatprep.subr.bf16.mxu0 %v2726_v10  ;;  %v687_v9 = vld [vmem:[%s3586_s29 + $0xd40] sm:$0xff] }
  0xda   : > { %3175 = vmatprep.subr.bf16.mxu1 %v3174_v14  ;;  %v691_v10 = vld [vmem:[%s3586_s29 + $0xd60] sm:$0xff]  ;;  %v696_v14 = vld [vmem:[%s3586_s29 + $0xd88] sm:$0xff] }
  0xdb   : > { %1366 = vmatmul.mubr.f32.vlgmr.msra.gmra.mrb[0].mxu0 %v253_v20  ;;  %v2748_v18 = vpack.c.bf16 %v691_v10, %v687_v9  ;;  %v733_v9 = vld [vmem:[%s3586_s29 + $0xeb0] sm:$0xff]  ;;  %v736_v10 = vld [vmem:[%s3586_s29 + $0xec8] sm:$0xff] }
  0xdc   : > { %2729 = vmatpush1.bf16.msra.mxu0 %v2728_v21  ;;  %1863 = vmatmul.mubr.f32.vlgmr.msra.gmra.mrb[0].mxu1 %v253_v20  ;;  %v2750_v20 = vpack.c.bf16 %v700_v15, %v696_v14  ;;  %v695_v21 = vld [vmem:[%s3586_s29 + $0xd80] sm:$0xff]  ;;  %v2770_v16 = vpack.c.bf16 %v740_v11, %v736_v10 }
  0xdd   : > { %3177 = vmatpush1.bf16.msra.mxu1 %v3176_v22  ;;  %2731 = vmatprep.subr.bf16.mxu0 %v2730_v23  ;;  %v699_v22 = vld [vmem:[%s3586_s29 + $0xda0] sm:$0xff]  ;;  %v697_v23 = vld [vmem:[%s3586_s29 + $0xd90] sm:$0xff] }
  0xde   : > { %3179 = vmatprep.subr.bf16.mxu1 %v3178_v27  ;;  %1436 = vmatprep.mubr.f32.mxu0 %v256_v33  ;;  %v708_v27 = vld [vmem:[%s3586_s29 + $0xde8] sm:$0xff]  ;;  %v2752_v30 = vpack.c.bf16 %v699_v22, %v695_v21  ;;  %v3200_v31 = vpack.c.bf16 %v701_v25, %v697_v23  ;;  %v741_v21 = vld [vmem:[%s3586_s29 + $0xef0] sm:$0xff]  ;;  %v750_v25 = vld [vmem:[%s3586_s29 + $0xf38] sm:$0xff] }
  0xdf   : > { %1933 = vmatprep.mubr.f32.mxu1 %v256_v33  ;;  %v2754_v32 = vpack.c.bf16 %v708_v27, %v704_v26  ;;  %v703_v33 = vld [vmem:[%s3586_s29 + $0xdc0] sm:$0xff]  ;;  %v744_v22 = vld [vmem:[%s3586_s29 + $0xf08] sm:$0xff] }
  0xe0   : > { %2733 = vmatpush1.bf16.msra.mxu0 %v2732_v34  ;;  %v707_v34 = vld [vmem:[%s3586_s29 + $0xde0] sm:$0xff]  ;;  %v748_v23 = vld [vmem:[%s3586_s29 + $0xf28] sm:$0xff] }
  0xe1   : > { %3181 = vmatpush1.bf16.msra.mxu1 %v3180_v35  ;;  %2735 = vmatprep.subr.bf16.mxu0 %v2734_v36  ;;  %v705_v35 = vld [vmem:[%s3586_s29 + $0xdd0] sm:$0xff]  ;;  %v3202_v36 = vpack.c.bf16 %v710_v29, %v706_v28  ;;  %v2756_v42 = vpack.c.bf16 %v707_v34, %v703_v33  ;;  %v2774_v28 = vpack.c.bf16 %v748_v23, %v744_v22  ;;  %v743_v29 = vld [vmem:[%s3586_s29 + $0xf00] sm:$0xff]  ;;  %v752_v34 = vld [vmem:[%s3586_s29 + $0xf48] sm:$0xff] }
  0xe2   : > { %3183 = vmatprep.subr.bf16.mxu1 %v3182_v40  ;;  %v714_v40 = vld [vmem:[%s3586_s29 + $0xe18] sm:$0xff]  ;;  %v3204_v43 = vpack.c.bf16 %v709_v37, %v705_v35  ;;  %v749_v33 = vld [vmem:[%s3586_s29 + $0xf30] sm:$0xff]  ;;  %v756_v35 = vld [vmem:[%s3586_s29 + $0xf68] sm:$0xff] }
  0xe3   : > { %v758_v37 = vld [vmem:[%s3586_s29 + $0xf78] sm:$0xff]  ;;  %v255_v22 = vld [vmem:[%s3581_s25 + $0x30] sm:$0xff] }
  0xe4   : > { %2737 = vmatpush1.bf16.msra.mxu0 %v2736_v46  ;;  %v715_v46 = vld [vmem:[%s3586_s29 + $0xe20] sm:$0xff] }
  0xe5   : > { %3185 = vmatpush1.bf16.msra.mxu1 %v3184_v47  ;;  %2739 = vmatprep.subr.bf16.mxu0 %v2738_v48  ;;  %v713_v47 = vld [vmem:[%s3586_s29 + $0xe10] sm:$0xff]  ;;  %v3206_v48 = vpack.c.bf16 %v718_v41, %v714_v40  ;;  %v2760_v54 = vpack.c.bf16 %v715_v46, %v711_v45  ;;  %v2778_v40 = vpack.c.bf16 %v756_v35, %v752_v34  ;;  %v751_v41 = vld [vmem:[%s3586_s29 + $0xf40] sm:$0xff]  ;;  %v760_v46 = vld [vmem:[%s3586_s29 + $0xf88] sm:$0xff] }
  0xe6   : > { %3187 = vmatprep.subr.bf16.mxu1 %v3186_v52  ;;  %v722_v52 = vld [vmem:[%s3586_s29 + $0xe58] sm:$0xff]  ;;  %v3208_v55 = vpack.c.bf16 %v717_v49, %v713_v47  ;;  %v757_v45 = vld [vmem:[%s3586_s29 + $0xf70] sm:$0xff]  ;;  %v764_v47 = vld [vmem:[%s3586_s29 + $0xfa8] sm:$0xff] }
  0xe7   : > { %v766_v49 = vld [vmem:[%s3586_s29 + $0xfb8] sm:$0xff]  ;;  %v258_v35 = vld [vmem:[%s3581_s25 + $0x48] sm:$0xff] }
  0xe8   : > { %2741 = vmatpush1.bf16.msra.mxu0 %v2740_v58  ;;  %v723_v58 = vld [vmem:[%s3586_s29 + $0xe60] sm:$0xff]  ;;  %v798_v34 = vld [vmem:[%s3586_s29 + $0x10b8] sm:$0xff] }
  0xe9   : > { %3189 = vmatpush1.bf16.msra.mxu1 %v3188_v59  ;;  %2743 = vmatprep.subr.bf16.mxu0 %v2742_v60  ;;  %v721_v59 = vld [vmem:[%s3586_s29 + $0xe50] sm:$0xff]  ;;  %v3210_v60 = vpack.c.bf16 %v726_v53, %v722_v52  ;;  %v2764_v2 = vpack.c.bf16 %v723_v58, %v719_v57  ;;  %v2782_v52 = vpack.c.bf16 %v764_v47, %v760_v46  ;;  %v759_v53 = vld [vmem:[%s3586_s29 + $0xf80] sm:$0xff]  ;;  %v768_v58 = vld [vmem:[%s3586_s29 + $0xfc8] sm:$0xff] }
  0xea   : > { %3191 = vmatprep.subr.bf16.mxu1 %v3190_v0  ;;  %v730_v0 = vld [vmem:[%s3586_s29 + $0xe98] sm:$0xff]  ;;  %v3212_v3 = vpack.c.bf16 %v725_v61, %v721_v59  ;;  %v765_v57 = vld [vmem:[%s3586_s29 + $0xfb0] sm:$0xff]  ;;  %v772_v59 = vld [vmem:[%s3586_s29 + $0xfe8] sm:$0xff] }
  0xeb   : > { %v774_v61 = vld [vmem:[%s3586_s29 + $0xff8] sm:$0xff] }
  0xec   : > { %2745 = vmatpush1.bf16.msra.mxu0 %v2744_v6  ;;  %v731_v6 = vld [vmem:[%s3586_s29 + $0xea0] sm:$0xff]  ;;  %v802_v46 = vld [vmem:[%s3586_s29 + $0x10d8] sm:$0xff] }
  0xed   : > { %3193 = vmatpush1.bf16.msra.mxu1 %v3192_v7  ;;  %2747 = vmatprep.subr.bf16.mxu0 %v2746_v8  ;;  %v729_v7 = vld [vmem:[%s3586_s29 + $0xe90] sm:$0xff]  ;;  %v3214_v8 = vpack.c.bf16 %v734_v1, %v730_v0  ;;  %v2768_v14 = vpack.c.bf16 %v731_v6, %v727_v5  ;;  %v2786_v0 = vpack.c.bf16 %v772_v59, %v768_v58  ;;  %v767_v1 = vld [vmem:[%s3586_s29 + $0xfc0] sm:$0xff]  ;;  %v776_v6 = vld [vmem:[%s3586_s29 + $0x1008] sm:$0xff] }
  0xee   : > { %3195 = vmatprep.subr.bf16.mxu1 %v3194_v12  ;;  %v738_v12 = vld [vmem:[%s3586_s29 + $0xed8] sm:$0xff]  ;;  %v3216_v15 = vpack.c.bf16 %v733_v9, %v729_v7  ;;  %v773_v5 = vld [vmem:[%s3586_s29 + $0xff0] sm:$0xff]  ;;  %v780_v7 = vld [vmem:[%s3586_s29 + $0x1028] sm:$0xff] }
  0xef   : > { %v782_v9 = vld [vmem:[%s3586_s29 + $0x1038] sm:$0xff] }
  0xf0   : > { %2749 = vmatpush1.bf16.msra.mxu0 %v2748_v18  ;;  %v739_v18 = vld [vmem:[%s3586_s29 + $0xee0] sm:$0xff]  ;;  %v806_v47 = vld [vmem:[%s3586_s29 + $0x10f8] sm:$0xff] }
  0xf1   : > { %3197 = vmatpush1.bf16.msra.mxu1 %v3196_v19  ;;  %2751 = vmatprep.subr.bf16.mxu0 %v2750_v20  ;;  %v737_v19 = vld [vmem:[%s3586_s29 + $0xed0] sm:$0xff]  ;;  %v3218_v20 = vpack.c.bf16 %v742_v13, %v738_v12  ;;  %v2772_v26 = vpack.c.bf16 %v739_v18, %v735_v17  ;;  %v2790_v12 = vpack.c.bf16 %v780_v7, %v776_v6  ;;  %v775_v13 = vld [vmem:[%s3586_s29 + $0x1000] sm:$0xff]  ;;  %v784_v18 = vld [vmem:[%s3586_s29 + $0x1048] sm:$0xff] }
  0xf2   : > { %3199 = vmatprep.subr.bf16.mxu1 %v3198_v24  ;;  %v746_v24 = vld [vmem:[%s3586_s29 + $0xf18] sm:$0xff]  ;;  %v3220_v27 = vpack.c.bf16 %v741_v21, %v737_v19  ;;  %v781_v17 = vld [vmem:[%s3586_s29 + $0x1030] sm:$0xff]  ;;  %v788_v19 = vld [vmem:[%s3586_s29 + $0x1068] sm:$0xff] }
  0xf3   : > { %v790_v21 = vld [vmem:[%s3586_s29 + $0x1078] sm:$0xff] }
  0xf4   : > { %2753 = vmatpush1.bf16.msra.mxu0 %v2752_v30  ;;  %v747_v30 = vld [vmem:[%s3586_s29 + $0xf20] sm:$0xff]  ;;  %v810_v58 = vld [vmem:[%s3586_s29 + $0x1118] sm:$0xff] }
  0xf5   : > { %3201 = vmatpush1.bf16.msra.mxu1 %v3200_v31  ;;  %2755 = vmatprep.subr.bf16.mxu0 %v2754_v32  ;;  %v745_v31 = vld [vmem:[%s3586_s29 + $0xf10] sm:$0xff]  ;;  %v3222_v32 = vpack.c.bf16 %v750_v25, %v746_v24  ;;  %v2776_v38 = vpack.c.bf16 %v747_v30, %v743_v29  ;;  %v2794_v25 = vpack.c.bf16 %v788_v19, %v784_v18  ;;  %v814_v59 = vld [vmem:[%s3586_s29 + $0x1138] sm:$0xff] }
  0xf6   : > { %3203 = vmatprep.subr.bf16.mxu1 %v3202_v36  ;;  %v754_v36 = vld [vmem:[%s3586_s29 + $0xf58] sm:$0xff]  ;;  %v3224_v39 = vpack.c.bf16 %v749_v33, %v745_v31  ;;  %v789_v30 = vld [vmem:[%s3586_s29 + $0x1070] sm:$0xff]  ;;  %v792_v31 = vld [vmem:[%s3586_s29 + $0x1088] sm:$0xff] }
  0xf7   : > { %v794_v33 = vld [vmem:[%s3586_s29 + $0x1098] sm:$0xff] }
  0xf8   : > { %2757 = vmatpush1.bf16.msra.mxu0 %v2756_v42  ;;  %v755_v42 = vld [vmem:[%s3586_s29 + $0xf60] sm:$0xff]  ;;  %v818_v6 = vld [vmem:[%s3586_s29 + $0x1158] sm:$0xff] }
  0xf9   : > { %3205 = vmatpush1.bf16.msra.mxu1 %v3204_v43  ;;  %2759 = vmatprep.subr.bf16.mxu0 %v2758_v44  ;;  %v753_v43 = vld [vmem:[%s3586_s29 + $0xf50] sm:$0xff]  ;;  %v3226_v44 = vpack.c.bf16 %v758_v37, %v754_v36  ;;  %v2780_v50 = vpack.c.bf16 %v755_v42, %v751_v41  ;;  %v3246_v42 = vpack.c.bf16 %v798_v34, %v794_v33  ;;  %v822_v7 = vld [vmem:[%s3586_s29 + $0x1178] sm:$0xff] }
  0xfa   : > { %3207 = vmatprep.subr.bf16.mxu1 %v3206_v48  ;;  %v762_v48 = vld [vmem:[%s3586_s29 + $0xf98] sm:$0xff]  ;;  %v3228_v51 = vpack.c.bf16 %v757_v45, %v753_v43  ;;  %v793_v41 = vld [vmem:[%s3586_s29 + $0x1090] sm:$0xff]  ;;  %v804_v45 = vld [vmem:[%s3586_s29 + $0x10e8] sm:$0xff] }
  0xfb   : > { %v797_v43 = vld [vmem:[%s3586_s29 + $0x10b0] sm:$0xff]  ;;  %v826_v18 = vld [vmem:[%s3586_s29 + $0x1198] sm:$0xff] }
  0xfc   : > { %2761 = vmatpush1.bf16.msra.mxu0 %v2760_v54  ;;  %v763_v54 = vld [vmem:[%s3586_s29 + $0xfa0] sm:$0xff]  ;;  %v830_v19 = vld [vmem:[%s3586_s29 + $0x11b8] sm:$0xff] }
  0xfd   : > { %3209 = vmatpush1.bf16.msra.mxu1 %v3208_v55  ;;  %2763 = vmatprep.subr.bf16.mxu0 %v2762_v56  ;;  %v761_v55 = vld [vmem:[%s3586_s29 + $0xf90] sm:$0xff]  ;;  %v3230_v56 = vpack.c.bf16 %v766_v49, %v762_v48  ;;  %v2784_v62 = vpack.c.bf16 %v763_v54, %v759_v53  ;;  %v3248_v49 = vpack.c.bf16 %v797_v43, %v793_v41  ;;  %v844_v41 = vld [vmem:[%s3586_s29 + $0x1228] sm:$0xff]  ;;  %v846_v43 = vld [vmem:[%s3586_s29 + $0x1238] sm:$0xff] }
  0xfe   : > { %3211 = vmatprep.subr.bf16.mxu1 %v3210_v60  ;;  %v770_v60 = vld [vmem:[%s3586_s29 + $0xfd8] sm:$0xff]  ;;  %v3232_v63 = vpack.c.bf16 %v765_v57, %v761_v55  ;;  %v801_v53 = vld [vmem:[%s3586_s29 + $0x10d0] sm:$0xff]  ;;  %v3250_v54 = vpack.c.bf16 %v806_v47, %v802_v46  ;;  %v812_v57 = vld [vmem:[%s3586_s29 + $0x1128] sm:$0xff] }
  0xff   : > { %v805_v55 = vld [vmem:[%s3586_s29 + $0x10f0] sm:$0xff]  ;;  %v839_v47 = vld [vmem:[%s3586_s29 + $0x1200] sm:$0xff] }
 0x100   : > { %2765 = vmatpush1.bf16.msra.mxu0 %v2764_v2  ;;  %v771_v2 = vld [vmem:[%s3586_s29 + $0xfe0] sm:$0xff] }
 0x101   : > { %3213 = vmatpush1.bf16.msra.mxu1 %v3212_v3  ;;  %2767 = vmatprep.subr.bf16.mxu0 %v2766_v4  ;;  %v769_v3 = vld [vmem:[%s3586_s29 + $0xfd0] sm:$0xff]  ;;  %v3234_v4 = vpack.c.bf16 %v774_v61, %v770_v60  ;;  %v2788_v10 = vpack.c.bf16 %v771_v2, %v767_v1  ;;  %v3252_v61 = vpack.c.bf16 %v805_v55, %v801_v53  ;;  %v852_v53 = vld [vmem:[%s3586_s29 + $0x1268] sm:$0xff]  ;;  %v854_v55 = vld [vmem:[%s3586_s29 + $0x1278] sm:$0xff] }
 0x102   : > { %3215 = vmatprep.subr.bf16.mxu1 %v3214_v8  ;;  %v778_v8 = vld [vmem:[%s3586_s29 + $0x1018] sm:$0xff]  ;;  %v3236_v11 = vpack.c.bf16 %v773_v5, %v769_v3  ;;  %v809_v1 = vld [vmem:[%s3586_s29 + $0x1110] sm:$0xff]  ;;  %v3254_v2 = vpack.c.bf16 %v814_v59, %v810_v58  ;;  %v820_v5 = vld [vmem:[%s3586_s29 + $0x1168] sm:$0xff] }
 0x103   : > { %v813_v3 = vld [vmem:[%s3586_s29 + $0x1130] sm:$0xff]  ;;  %v847_v59 = vld [vmem:[%s3586_s29 + $0x1240] sm:$0xff] }
 0x104   : > { %2769 = vmatpush1.bf16.msra.mxu0 %v2768_v14  ;;  %v779_v14 = vld [vmem:[%s3586_s29 + $0x1020] sm:$0xff] }
 0x105   : > { %3217 = vmatpush1.bf16.msra.mxu1 %v3216_v15  ;;  %2771 = vmatprep.subr.bf16.mxu0 %v2770_v16  ;;  %v777_v15 = vld [vmem:[%s3586_s29 + $0x1010] sm:$0xff]  ;;  %v3238_v16 = vpack.c.bf16 %v782_v9, %v778_v8  ;;  %v2792_v23 = vpack.c.bf16 %v779_v14, %v775_v13  ;;  %v3256_v9 = vpack.c.bf16 %v813_v3, %v809_v1  ;;  %v860_v1 = vld [vmem:[%s3586_s29 + $0x12a8] sm:$0xff]  ;;  %v862_v3 = vld [vmem:[%s3586_s29 + $0x12b8] sm:$0xff] }
 0x106   : > { %3219 = vmatprep.subr.bf16.mxu1 %v3218_v20  ;;  %v786_v20 = vld [vmem:[%s3586_s29 + $0x1058] sm:$0xff]  ;;  %v3240_v24 = vpack.c.bf16 %v781_v17, %v777_v15  ;;  %v817_v13 = vld [vmem:[%s3586_s29 + $0x1150] sm:$0xff]  ;;  %v3258_v14 = vpack.c.bf16 %v822_v7, %v818_v6  ;;  %v828_v17 = vld [vmem:[%s3586_s29 + $0x11a8] sm:$0xff] }
 0x107   : > { %v3242_v29 = vpack.c.bf16 %v790_v21, %v786_v20  ;;  %v821_v15 = vld [vmem:[%s3586_s29 + $0x1170] sm:$0xff]  ;;  %v855_v7 = vld [vmem:[%s3586_s29 + $0x1280] sm:$0xff] }
 0x108   : > { %2773 = vmatpush1.bf16.msra.mxu0 %v2772_v26  ;;  %v783_v26 = vld [vmem:[%s3586_s29 + $0x1040] sm:$0xff]  ;;  %v3260_v21 = vpack.c.bf16 %v821_v15, %v817_v13  ;;  %v868_v13 = vld [vmem:[%s3586_s29 + $0x12e8] sm:$0xff]  ;;  %v870_v15 = vld [vmem:[%s3586_s29 + $0x12f8] sm:$0xff] }
 0x109   : > { %3221 = vmatpush1.bf16.msra.mxu1 %v3220_v27  ;;  %2775 = vmatprep.subr.bf16.mxu0 %v2774_v28  ;;  %v787_v27 = vld [vmem:[%s3586_s29 + $0x1060] sm:$0xff]  ;;  %v785_v28 = vld [vmem:[%s3586_s29 + $0x1050] sm:$0xff] }
 0x10a   : > { %3223 = vmatprep.subr.bf16.mxu1 %v3222_v32  ;;  %v796_v32 = vld [vmem:[%s3586_s29 + $0x10a8] sm:$0xff]  ;;  %v2796_v36 = vpack.c.bf16 %v787_v27, %v783_v26  ;;  %v3244_v37 = vpack.c.bf16 %v789_v30, %v785_v28  ;;  %v3262_v26 = vpack.c.bf16 %v830_v19, %v826_v18  ;;  %v829_v27 = vld [vmem:[%s3586_s29 + $0x11b0] sm:$0xff]  ;;  %v834_v30 = vld [vmem:[%s3586_s29 + $0x11d8] sm:$0xff] }
 0x10b   : > { %v832_v28 = vld [vmem:[%s3586_s29 + $0x11c8] sm:$0xff]  ;;  %v863_v19 = vld [vmem:[%s3586_s29 + $0x12c0] sm:$0xff] }
 0x10c   : > { %2777 = vmatpush1.bf16.msra.mxu0 %v2776_v38  ;;  %v2798_v38 = vpack.c.bf16 %v796_v32, %v792_v31  ;;  %v838_v31 = vld [vmem:[%s3586_s29 + $0x11f8] sm:$0xff] }
 0x10d   : > { %3225 = vmatpush1.bf16.msra.mxu1 %v3224_v39  ;;  %2779 = vmatprep.subr.bf16.mxu0 %v2778_v40  ;;  %v791_v39 = vld [vmem:[%s3586_s29 + $0x1080] sm:$0xff] }
 0x10e   : > { %3227 = vmatprep.subr.bf16.mxu1 %v3226_v44  ;;  %v795_v40 = vld [vmem:[%s3586_s29 + $0x10a0] sm:$0xff]  ;;  %v800_v44 = vld [vmem:[%s3586_s29 + $0x10c8] sm:$0xff] }
 0x10f   : > { %v2800_v48 = vpack.c.bf16 %v795_v40, %v791_v39  ;;  %v837_v39 = vld [vmem:[%s3586_s29 + $0x11f0] sm:$0xff]  ;;  %v840_v40 = vld [vmem:[%s3586_s29 + $0x1208] sm:$0xff] }
 0x110   : > { %2781 = vmatpush1.bf16.msra.mxu0 %v2780_v50  ;;  %v2802_v50 = vpack.c.bf16 %v804_v45, %v800_v44  ;;  %v2822_v46 = vpack.c.bf16 %v844_v41, %v840_v40 }
 0x111   : > { %3229 = vmatpush1.bf16.msra.mxu1 %v3228_v51  ;;  %2783 = vmatprep.subr.bf16.mxu0 %v2782_v52  ;;  %v799_v51 = vld [vmem:[%s3586_s29 + $0x10c0] sm:$0xff] }
 0x112   : > { %3231 = vmatprep.subr.bf16.mxu1 %v3230_v56  ;;  %v803_v52 = vld [vmem:[%s3586_s29 + $0x10e0] sm:$0xff]  ;;  %v808_v56 = vld [vmem:[%s3586_s29 + $0x1108] sm:$0xff] }
 0x113   : > { %v2804_v60 = vpack.c.bf16 %v803_v52, %v799_v51  ;;  %v845_v51 = vld [vmem:[%s3586_s29 + $0x1230] sm:$0xff]  ;;  %v848_v52 = vld [vmem:[%s3586_s29 + $0x1248] sm:$0xff] }
 0x114   : > { %2785 = vmatpush1.bf16.msra.mxu0 %v2784_v62  ;;  %v2806_v62 = vpack.c.bf16 %v812_v57, %v808_v56  ;;  %v2826_v58 = vpack.c.bf16 %v852_v53, %v848_v52 }
 0x115   : > { %3233 = vmatpush1.bf16.msra.mxu1 %v3232_v63  ;;  %2787 = vmatprep.subr.bf16.mxu0 %v2786_v0  ;;  %v807_v63 = vld [vmem:[%s3586_s29 + $0x1100] sm:$0xff] }
 0x116   : > { %3235 = vmatprep.subr.bf16.mxu1 %v3234_v4  ;;  %v811_v0 = vld [vmem:[%s3586_s29 + $0x1120] sm:$0xff]  ;;  %v816_v4 = vld [vmem:[%s3586_s29 + $0x1148] sm:$0xff] }
 0x117   : > { %v2808_v8 = vpack.c.bf16 %v811_v0, %v807_v63  ;;  %v853_v63 = vld [vmem:[%s3586_s29 + $0x1270] sm:$0xff]  ;;  %v856_v0 = vld [vmem:[%s3586_s29 + $0x1288] sm:$0xff] }
 0x118   : > { %2789 = vmatpush1.bf16.msra.mxu0 %v2788_v10  ;;  %v2810_v10 = vpack.c.bf16 %v820_v5, %v816_v4  ;;  %v2830_v6 = vpack.c.bf16 %v860_v1, %v856_v0 }
 0x119   : > { %3237 = vmatpush1.bf16.msra.mxu1 %v3236_v11  ;;  %2791 = vmatprep.subr.bf16.mxu0 %v2790_v12  ;;  %v815_v11 = vld [vmem:[%s3586_s29 + $0x1140] sm:$0xff] }
 0x11a   : > { %3239 = vmatprep.subr.bf16.mxu1 %v3238_v16  ;;  %v819_v12 = vld [vmem:[%s3586_s29 + $0x1160] sm:$0xff]  ;;  %v824_v16 = vld [vmem:[%s3586_s29 + $0x1188] sm:$0xff] }
 0x11b   : > { %1437 = vmatmul.mubr.f32.vlgmr.msra.gmra.mrb[0].mxu0 %v255_v22  ;;  %v2812_v20 = vpack.c.bf16 %v819_v12, %v815_v11  ;;  %v861_v11 = vld [vmem:[%s3586_s29 + $0x12b0] sm:$0xff]  ;;  %v864_v12 = vld [vmem:[%s3586_s29 + $0x12c8] sm:$0xff] }
 0x11c   : > { %2793 = vmatpush1.bf16.msra.mxu0 %v2792_v23  ;;  %1934 = vmatmul.mubr.f32.vlgmr.msra.gmra.mrb[0].mxu1 %v255_v22  ;;  %v2814_v22 = vpack.c.bf16 %v828_v17, %v824_v16  ;;  %v823_v23 = vld [vmem:[%s3586_s29 + $0x1180] sm:$0xff]  ;;  %v2834_v18 = vpack.c.bf16 %v868_v13, %v864_v12 }
 0x11d   : > { %3241 = vmatpush1.bf16.msra.mxu1 %v3240_v24  ;;  %2795 = vmatprep.subr.bf16.mxu0 %v2794_v25  ;;  %v827_v24 = vld [vmem:[%s3586_s29 + $0x11a0] sm:$0xff]  ;;  %v825_v25 = vld [vmem:[%s3586_s29 + $0x1190] sm:$0xff] }
 0x11e   : > { %3243 = vmatprep.subr.bf16.mxu1 %v3242_v29  ;;  %1507 = vmatprep.mubr.f32.mxu0 %v258_v35  ;;  %v836_v29 = vld [vmem:[%s3586_s29 + $0x11e8] sm:$0xff]  ;;  %v2816_v32 = vpack.c.bf16 %v827_v24, %v823_v23  ;;  %v3264_v33 = vpack.c.bf16 %v829_v27, %v825_v25  ;;  %v869_v23 = vld [vmem:[%s3586_s29 + $0x12f0] sm:$0xff]  ;;  %v878_v27 = vld [vmem:[%s3586_s29 + $0x1338] sm:$0xff] }
 0x11f   : > { %2004 = vmatprep.mubr.f32.mxu1 %v258_v35  ;;  %v2818_v34 = vpack.c.bf16 %v836_v29, %v832_v28  ;;  %v831_v35 = vld [vmem:[%s3586_s29 + $0x11c0] sm:$0xff]  ;;  %v872_v24 = vld [vmem:[%s3586_s29 + $0x1308] sm:$0xff] }
 0x120   : > { %2797 = vmatpush1.bf16.msra.mxu0 %v2796_v36  ;;  %v835_v36 = vld [vmem:[%s3586_s29 + $0x11e0] sm:$0xff]  ;;  %v876_v25 = vld [vmem:[%s3586_s29 + $0x1328] sm:$0xff] }
 0x121   : > { %3245 = vmatpush1.bf16.msra.mxu1 %v3244_v37  ;;  %2799 = vmatprep.subr.bf16.mxu0 %v2798_v38  ;;  %v833_v37 = vld [vmem:[%s3586_s29 + $0x11d0] sm:$0xff]  ;;  %v3266_v38 = vpack.c.bf16 %v838_v31, %v834_v30  ;;  %v2820_v44 = vpack.c.bf16 %v835_v36, %v831_v35  ;;  %v2838_v30 = vpack.c.bf16 %v876_v25, %v872_v24  ;;  %v871_v31 = vld [vmem:[%s3586_s29 + $0x1300] sm:$0xff]  ;;  %v880_v36 = vld [vmem:[%s3586_s29 + $0x1348] sm:$0xff] }
 0x122   : > { %3247 = vmatprep.subr.bf16.mxu1 %v3246_v42  ;;  %v842_v42 = vld [vmem:[%s3586_s29 + $0x1218] sm:$0xff]  ;;  %v3268_v45 = vpack.c.bf16 %v837_v39, %v833_v37  ;;  %v877_v35 = vld [vmem:[%s3586_s29 + $0x1330] sm:$0xff]  ;;  %v884_v37 = vld [vmem:[%s3586_s29 + $0x1368] sm:$0xff] }
 0x123   : > { %v886_v39 = vld [vmem:[%s3586_s29 + $0x1378] sm:$0xff]  ;;  %v257_v24 = vld [vmem:[%s3581_s25 + $0x40] sm:$0xff] }
 0x124   : > { %2801 = vmatpush1.bf16.msra.mxu0 %v2800_v48  ;;  %v843_v48 = vld [vmem:[%s3586_s29 + $0x1220] sm:$0xff] }
 0x125   : > { %3249 = vmatpush1.bf16.msra.mxu1 %v3248_v49  ;;  %2803 = vmatprep.subr.bf16.mxu0 %v2802_v50  ;;  %v841_v49 = vld [vmem:[%s3586_s29 + $0x1210] sm:$0xff]  ;;  %v3270_v50 = vpack.c.bf16 %v846_v43, %v842_v42  ;;  %v2824_v56 = vpack.c.bf16 %v843_v48, %v839_v47  ;;  %v2842_v42 = vpack.c.bf16 %v884_v37, %v880_v36  ;;  %v879_v43 = vld [vmem:[%s3586_s29 + $0x1340] sm:$0xff]  ;;  %v888_v48 = vld [vmem:[%s3586_s29 + $0x1388] sm:$0xff] }
 0x126   : > { %3251 = vmatprep.subr.bf16.mxu1 %v3250_v54  ;;  %v850_v54 = vld [vmem:[%s3586_s29 + $0x1258] sm:$0xff]  ;;  %v3272_v57 = vpack.c.bf16 %v845_v51, %v841_v49  ;;  %v885_v47 = vld [vmem:[%s3586_s29 + $0x1370] sm:$0xff]  ;;  %v892_v49 = vld [vmem:[%s3586_s29 + $0x13a8] sm:$0xff] }
 0x127   : > { %v894_v51 = vld [vmem:[%s3586_s29 + $0x13b8] sm:$0xff] }
 0x128   : > { %2805 = vmatpush1.bf16.msra.mxu0 %v2804_v60  ;;  %v851_v60 = vld [vmem:[%s3586_s29 + $0x1260] sm:$0xff]  ;;  %v926_v36 = vld [vmem:[%s3586_s29 + $0x14b8] sm:$0xff] }
 0x129   : > { %3253 = vmatpush1.bf16.msra.mxu1 %v3252_v61  ;;  %2807 = vmatprep.subr.bf16.mxu0 %v2806_v62  ;;  %v849_v61 = vld [vmem:[%s3586_s29 + $0x1250] sm:$0xff]  ;;  %v3274_v62 = vpack.c.bf16 %v854_v55, %v850_v54  ;;  %v2828_v4 = vpack.c.bf16 %v851_v60, %v847_v59  ;;  %v2846_v54 = vpack.c.bf16 %v892_v49, %v888_v48  ;;  %v887_v55 = vld [vmem:[%s3586_s29 + $0x1380] sm:$0xff]  ;;  %v896_v60 = vld [vmem:[%s3586_s29 + $0x13c8] sm:$0xff] }
 0x12a   : > { %3255 = vmatprep.subr.bf16.mxu1 %v3254_v2  ;;  %v858_v2 = vld [vmem:[%s3586_s29 + $0x1298] sm:$0xff]  ;;  %v3276_v5 = vpack.c.bf16 %v853_v63, %v849_v61  ;;  %v893_v59 = vld [vmem:[%s3586_s29 + $0x13b0] sm:$0xff]  ;;  %v900_v61 = vld [vmem:[%s3586_s29 + $0x13e8] sm:$0xff] }
 0x12b   : > { %v902_v63 = vld [vmem:[%s3586_s29 + $0x13f8] sm:$0xff] }
 0x12c   : > { %2809 = vmatpush1.bf16.msra.mxu0 %v2808_v8  ;;  %v859_v8 = vld [vmem:[%s3586_s29 + $0x12a0] sm:$0xff]  ;;  %v260_v37 = vld [vmem:[%s3581_s25 + $0x58] sm:$0xff] }
 0x12d   : > { %3257 = vmatpush1.bf16.msra.mxu1 %v3256_v9  ;;  %2811 = vmatprep.subr.bf16.mxu0 %v2810_v10  ;;  %v857_v9 = vld [vmem:[%s3586_s29 + $0x1290] sm:$0xff]  ;;  %v3278_v10 = vpack.c.bf16 %v862_v3, %v858_v2  ;;  %v2832_v16 = vpack.c.bf16 %v859_v8, %v855_v7  ;;  %v2850_v2 = vpack.c.bf16 %v900_v61, %v896_v60  ;;  %v895_v3 = vld [vmem:[%s3586_s29 + $0x13c0] sm:$0xff]  ;;  %v904_v8 = vld [vmem:[%s3586_s29 + $0x1408] sm:$0xff] }
 0x12e   : > { %3259 = vmatprep.subr.bf16.mxu1 %v3258_v14  ;;  %v866_v14 = vld [vmem:[%s3586_s29 + $0x12d8] sm:$0xff]  ;;  %v3280_v17 = vpack.c.bf16 %v861_v11, %v857_v9  ;;  %v901_v7 = vld [vmem:[%s3586_s29 + $0x13f0] sm:$0xff]  ;;  %v908_v9 = vld [vmem:[%s3586_s29 + $0x1428] sm:$0xff] }
 0x12f   : > { %v910_v11 = vld [vmem:[%s3586_s29 + $0x1438] sm:$0xff] }
 0x130   : > { %2813 = vmatpush1.bf16.msra.mxu0 %v2812_v20  ;;  %v867_v20 = vld [vmem:[%s3586_s29 + $0x12e0] sm:$0xff]  ;;  %v930_v48 = vld [vmem:[%s3586_s29 + $0x14d8] sm:$0xff] }
 0x131   : > { %3261 = vmatpush1.bf16.msra.mxu1 %v3260_v21  ;;  %2815 = vmatprep.subr.bf16.mxu0 %v2814_v22  ;;  %v865_v21 = vld [vmem:[%s3586_s29 + $0x12d0] sm:$0xff]  ;;  %v3282_v22 = vpack.c.bf16 %v870_v15, %v866_v14  ;;  %v2836_v28 = vpack.c.bf16 %v867_v20, %v863_v19  ;;  %v2854_v14 = vpack.c.bf16 %v908_v9, %v904_v8  ;;  %v903_v15 = vld [vmem:[%s3586_s29 + $0x1400] sm:$0xff]  ;;  %v912_v20 = vld [vmem:[%s3586_s29 + $0x1448] sm:$0xff] }
 0x132   : > { %3263 = vmatprep.subr.bf16.mxu1 %v3262_v26  ;;  %v874_v26 = vld [vmem:[%s3586_s29 + $0x1318] sm:$0xff]  ;;  %v3284_v29 = vpack.c.bf16 %v869_v23, %v865_v21  ;;  %v909_v19 = vld [vmem:[%s3586_s29 + $0x1430] sm:$0xff]  ;;  %v916_v21 = vld [vmem:[%s3586_s29 + $0x1468] sm:$0xff] }
 0x133   : > { %v918_v23 = vld [vmem:[%s3586_s29 + $0x1478] sm:$0xff] }
 0x134   : > { %2817 = vmatpush1.bf16.msra.mxu0 %v2816_v32  ;;  %v875_v32 = vld [vmem:[%s3586_s29 + $0x1320] sm:$0xff]  ;;  %v934_v49 = vld [vmem:[%s3586_s29 + $0x14f8] sm:$0xff] }
 0x135   : > { %3265 = vmatpush1.bf16.msra.mxu1 %v3264_v33  ;;  %2819 = vmatprep.subr.bf16.mxu0 %v2818_v34  ;;  %v873_v33 = vld [vmem:[%s3586_s29 + $0x1310] sm:$0xff]  ;;  %v3286_v34 = vpack.c.bf16 %v878_v27, %v874_v26  ;;  %v2840_v40 = vpack.c.bf16 %v875_v32, %v871_v31  ;;  %v2858_v27 = vpack.c.bf16 %v916_v21, %v912_v20  ;;  %v938_v60 = vld [vmem:[%s3586_s29 + $0x1518] sm:$0xff] }
 0x136   : > { %3267 = vmatprep.subr.bf16.mxu1 %v3266_v38  ;;  %v882_v38 = vld [vmem:[%s3586_s29 + $0x1358] sm:$0xff]  ;;  %v3288_v41 = vpack.c.bf16 %v877_v35, %v873_v33  ;;  %v917_v32 = vld [vmem:[%s3586_s29 + $0x1470] sm:$0xff]  ;;  %v920_v33 = vld [vmem:[%s3586_s29 + $0x1488] sm:$0xff] }
 0x137   : > { %v922_v35 = vld [vmem:[%s3586_s29 + $0x1498] sm:$0xff] }
 0x138   : > { %2821 = vmatpush1.bf16.msra.mxu0 %v2820_v44  ;;  %v883_v44 = vld [vmem:[%s3586_s29 + $0x1360] sm:$0xff]  ;;  %v942_v61 = vld [vmem:[%s3586_s29 + $0x1538] sm:$0xff] }
 0x139   : > { %3269 = vmatpush1.bf16.msra.mxu1 %v3268_v45  ;;  %2823 = vmatprep.subr.bf16.mxu0 %v2822_v46  ;;  %v881_v45 = vld [vmem:[%s3586_s29 + $0x1350] sm:$0xff]  ;;  %v3290_v46 = vpack.c.bf16 %v886_v39, %v882_v38  ;;  %v2844_v52 = vpack.c.bf16 %v883_v44, %v879_v43  ;;  %v3310_v44 = vpack.c.bf16 %v926_v36, %v922_v35  ;;  %v946_v8 = vld [vmem:[%s3586_s29 + $0x1558] sm:$0xff] }
 0x13a   : > { %3271 = vmatprep.subr.bf16.mxu1 %v3270_v50  ;;  %v890_v50 = vld [vmem:[%s3586_s29 + $0x1398] sm:$0xff]  ;;  %v3292_v53 = vpack.c.bf16 %v885_v47, %v881_v45  ;;  %v921_v43 = vld [vmem:[%s3586_s29 + $0x1490] sm:$0xff]  ;;  %v932_v47 = vld [vmem:[%s3586_s29 + $0x14e8] sm:$0xff] }
 0x13b   : > { %v925_v45 = vld [vmem:[%s3586_s29 + $0x14b0] sm:$0xff]  ;;  %v950_v9 = vld [vmem:[%s3586_s29 + $0x1578] sm:$0xff] }
 0x13c   : > { %2825 = vmatpush1.bf16.msra.mxu0 %v2824_v56  ;;  %v891_v56 = vld [vmem:[%s3586_s29 + $0x13a0] sm:$0xff]  ;;  %v954_v20 = vld [vmem:[%s3586_s29 + $0x1598] sm:$0xff] }
 0x13d   : > { %3273 = vmatpush1.bf16.msra.mxu1 %v3272_v57  ;;  %2827 = vmatprep.subr.bf16.mxu0 %v2826_v58  ;;  %v889_v57 = vld [vmem:[%s3586_s29 + $0x1390] sm:$0xff]  ;;  %v3294_v58 = vpack.c.bf16 %v894_v51, %v890_v50  ;;  %v2848_v0 = vpack.c.bf16 %v891_v56, %v887_v55  ;;  %v3312_v51 = vpack.c.bf16 %v925_v45, %v921_v43  ;;  %v958_v21 = vld [vmem:[%s3586_s29 + $0x15b8] sm:$0xff]  ;;  %v972_v43 = vld [vmem:[%s3586_s29 + $0x1628] sm:$0xff] }
 0x13e   : > { %3275 = vmatprep.subr.bf16.mxu1 %v3274_v62  ;;  %v898_v62 = vld [vmem:[%s3586_s29 + $0x13d8] sm:$0xff]  ;;  %v3296_v1 = vpack.c.bf16 %v893_v59, %v889_v57  ;;  %v929_v55 = vld [vmem:[%s3586_s29 + $0x14d0] sm:$0xff]  ;;  %v3314_v56 = vpack.c.bf16 %v934_v49, %v930_v48  ;;  %v940_v59 = vld [vmem:[%s3586_s29 + $0x1528] sm:$0xff] }
 0x13f   : > { %v933_v57 = vld [vmem:[%s3586_s29 + $0x14f0] sm:$0xff]  ;;  %v974_v45 = vld [vmem:[%s3586_s29 + $0x1638] sm:$0xff]  ;;  %v967_v49 = vld [vmem:[%s3586_s29 + $0x1600] sm:$0xff] }
 0x140   : > { %2829 = vmatpush1.bf16.msra.mxu0 %v2828_v4  ;;  %v899_v4 = vld [vmem:[%s3586_s29 + $0x13e0] sm:$0xff] }
 0x141   : > { %3277 = vmatpush1.bf16.msra.mxu1 %v3276_v5  ;;  %2831 = vmatprep.subr.bf16.mxu0 %v2830_v6  ;;  %v897_v5 = vld [vmem:[%s3586_s29 + $0x13d0] sm:$0xff]  ;;  %v3298_v6 = vpack.c.bf16 %v902_v63, %v898_v62  ;;  %v2852_v12 = vpack.c.bf16 %v899_v4, %v895_v3  ;;  %v3316_v63 = vpack.c.bf16 %v933_v57, %v929_v55  ;;  %v980_v55 = vld [vmem:[%s3586_s29 + $0x1668] sm:$0xff]  ;;  %v982_v57 = vld [vmem:[%s3586_s29 + $0x1678] sm:$0xff] }
 0x142   : > { %3279 = vmatprep.subr.bf16.mxu1 %v3278_v10  ;;  %v906_v10 = vld [vmem:[%s3586_s29 + $0x1418] sm:$0xff]  ;;  %v3300_v13 = vpack.c.bf16 %v901_v7, %v897_v5  ;;  %v937_v3 = vld [vmem:[%s3586_s29 + $0x1510] sm:$0xff]  ;;  %v3318_v4 = vpack.c.bf16 %v942_v61, %v938_v60  ;;  %v948_v7 = vld [vmem:[%s3586_s29 + $0x1568] sm:$0xff] }
 0x143   : > { %v941_v5 = vld [vmem:[%s3586_s29 + $0x1530] sm:$0xff]  ;;  %v975_v61 = vld [vmem:[%s3586_s29 + $0x1640] sm:$0xff] }
 0x144   : > { %2833 = vmatpush1.bf16.msra.mxu0 %v2832_v16  ;;  %v907_v16 = vld [vmem:[%s3586_s29 + $0x1420] sm:$0xff] }
 0x145   : > { %3281 = vmatpush1.bf16.msra.mxu1 %v3280_v17  ;;  %2835 = vmatprep.subr.bf16.mxu0 %v2834_v18  ;;  %v905_v17 = vld [vmem:[%s3586_s29 + $0x1410] sm:$0xff]  ;;  %v3302_v18 = vpack.c.bf16 %v910_v11, %v906_v10  ;;  %v2856_v25 = vpack.c.bf16 %v907_v16, %v903_v15  ;;  %v3320_v11 = vpack.c.bf16 %v941_v5, %v937_v3  ;;  %v988_v3 = vld [vmem:[%s3586_s29 + $0x16a8] sm:$0xff]  ;;  %v990_v5 = vld [vmem:[%s3586_s29 + $0x16b8] sm:$0xff] }
 0x146   : > { %3283 = vmatprep.subr.bf16.mxu1 %v3282_v22  ;;  %v914_v22 = vld [vmem:[%s3586_s29 + $0x1458] sm:$0xff]  ;;  %v3304_v26 = vpack.c.bf16 %v909_v19, %v905_v17  ;;  %v945_v15 = vld [vmem:[%s3586_s29 + $0x1550] sm:$0xff]  ;;  %v3322_v16 = vpack.c.bf16 %v950_v9, %v946_v8  ;;  %v956_v19 = vld [vmem:[%s3586_s29 + $0x15a8] sm:$0xff] }
 0x147   : > { %v3306_v31 = vpack.c.bf16 %v918_v23, %v914_v22  ;;  %v949_v17 = vld [vmem:[%s3586_s29 + $0x1570] sm:$0xff]  ;;  %v983_v9 = vld [vmem:[%s3586_s29 + $0x1680] sm:$0xff] }
 0x148   : > { %2837 = vmatpush1.bf16.msra.mxu0 %v2836_v28  ;;  %v911_v28 = vld [vmem:[%s3586_s29 + $0x1440] sm:$0xff]  ;;  %v3324_v23 = vpack.c.bf16 %v949_v17, %v945_v15  ;;  %v996_v15 = vld [vmem:[%s3586_s29 + $0x16e8] sm:$0xff]  ;;  %v998_v17 = vld [vmem:[%s3586_s29 + $0x16f8] sm:$0xff] }
 0x149   : > { %3285 = vmatpush1.bf16.msra.mxu1 %v3284_v29  ;;  %2839 = vmatprep.subr.bf16.mxu0 %v2838_v30  ;;  %v915_v29 = vld [vmem:[%s3586_s29 + $0x1460] sm:$0xff]  ;;  %v913_v30 = vld [vmem:[%s3586_s29 + $0x1450] sm:$0xff] }
 0x14a   : > { %3287 = vmatprep.subr.bf16.mxu1 %v3286_v34  ;;  %v924_v34 = vld [vmem:[%s3586_s29 + $0x14a8] sm:$0xff]  ;;  %v2860_v38 = vpack.c.bf16 %v915_v29, %v911_v28  ;;  %v3308_v39 = vpack.c.bf16 %v917_v32, %v913_v30  ;;  %v3326_v28 = vpack.c.bf16 %v958_v21, %v954_v20  ;;  %v957_v29 = vld [vmem:[%s3586_s29 + $0x15b0] sm:$0xff]  ;;  %v962_v32 = vld [vmem:[%s3586_s29 + $0x15d8] sm:$0xff] }
 0x14b   : > { %v960_v30 = vld [vmem:[%s3586_s29 + $0x15c8] sm:$0xff]  ;;  %v991_v21 = vld [vmem:[%s3586_s29 + $0x16c0] sm:$0xff] }
 0x14c   : > { %2841 = vmatpush1.bf16.msra.mxu0 %v2840_v40  ;;  %v2862_v40 = vpack.c.bf16 %v924_v34, %v920_v33  ;;  %v966_v33 = vld [vmem:[%s3586_s29 + $0x15f8] sm:$0xff] }
 0x14d   : > { %3289 = vmatpush1.bf16.msra.mxu1 %v3288_v41  ;;  %2843 = vmatprep.subr.bf16.mxu0 %v2842_v42  ;;  %v919_v41 = vld [vmem:[%s3586_s29 + $0x1480] sm:$0xff] }
 0x14e   : > { %3291 = vmatprep.subr.bf16.mxu1 %v3290_v46  ;;  %v923_v42 = vld [vmem:[%s3586_s29 + $0x14a0] sm:$0xff]  ;;  %v928_v46 = vld [vmem:[%s3586_s29 + $0x14c8] sm:$0xff] }
 0x14f   : > { %v2864_v50 = vpack.c.bf16 %v923_v42, %v919_v41  ;;  %v965_v41 = vld [vmem:[%s3586_s29 + $0x15f0] sm:$0xff]  ;;  %v968_v42 = vld [vmem:[%s3586_s29 + $0x1608] sm:$0xff] }
 0x150   : > { %2845 = vmatpush1.bf16.msra.mxu0 %v2844_v52  ;;  %v2866_v52 = vpack.c.bf16 %v932_v47, %v928_v46  ;;  %v2886_v48 = vpack.c.bf16 %v972_v43, %v968_v42 }
 0x151   : > { %3293 = vmatpush1.bf16.msra.mxu1 %v3292_v53  ;;  %2847 = vmatprep.subr.bf16.mxu0 %v2846_v54  ;;  %v927_v53 = vld [vmem:[%s3586_s29 + $0x14c0] sm:$0xff] }
 0x152   : > { %3295 = vmatprep.subr.bf16.mxu1 %v3294_v58  ;;  %v931_v54 = vld [vmem:[%s3586_s29 + $0x14e0] sm:$0xff]  ;;  %v936_v58 = vld [vmem:[%s3586_s29 + $0x1508] sm:$0xff] }
 0x153   : > { %v2868_v62 = vpack.c.bf16 %v931_v54, %v927_v53  ;;  %v973_v53 = vld [vmem:[%s3586_s29 + $0x1630] sm:$0xff]  ;;  %v976_v54 = vld [vmem:[%s3586_s29 + $0x1648] sm:$0xff] }
 0x154   : > { %2849 = vmatpush1.bf16.msra.mxu0 %v2848_v0  ;;  %v2870_v0 = vpack.c.bf16 %v940_v59, %v936_v58  ;;  %v2890_v60 = vpack.c.bf16 %v980_v55, %v976_v54 }
 0x155   : > { %3297 = vmatpush1.bf16.msra.mxu1 %v3296_v1  ;;  %2851 = vmatprep.subr.bf16.mxu0 %v2850_v2  ;;  %v935_v1 = vld [vmem:[%s3586_s29 + $0x1500] sm:$0xff] }
 0x156   : > { %3299 = vmatprep.subr.bf16.mxu1 %v3298_v6  ;;  %v939_v2 = vld [vmem:[%s3586_s29 + $0x1520] sm:$0xff]  ;;  %v944_v6 = vld [vmem:[%s3586_s29 + $0x1548] sm:$0xff] }
 0x157   : > { %v2872_v10 = vpack.c.bf16 %v939_v2, %v935_v1  ;;  %v981_v1 = vld [vmem:[%s3586_s29 + $0x1670] sm:$0xff]  ;;  %v984_v2 = vld [vmem:[%s3586_s29 + $0x1688] sm:$0xff] }
 0x158   : > { %2853 = vmatpush1.bf16.msra.mxu0 %v2852_v12  ;;  %v2874_v12 = vpack.c.bf16 %v948_v7, %v944_v6  ;;  %v2894_v8 = vpack.c.bf16 %v988_v3, %v984_v2 }
 0x159   : > { %3301 = vmatpush1.bf16.msra.mxu1 %v3300_v13  ;;  %2855 = vmatprep.subr.bf16.mxu0 %v2854_v14  ;;  %v943_v13 = vld [vmem:[%s3586_s29 + $0x1540] sm:$0xff] }
 0x15a   : > { %3303 = vmatprep.subr.bf16.mxu1 %v3302_v18  ;;  %v947_v14 = vld [vmem:[%s3586_s29 + $0x1560] sm:$0xff]  ;;  %v952_v18 = vld [vmem:[%s3586_s29 + $0x1588] sm:$0xff] }
 0x15b   : > { %1508 = vmatmul.mubr.f32.vlgmr.msra.gmra.mrb[0].mxu0 %v257_v24  ;;  %v2876_v22 = vpack.c.bf16 %v947_v14, %v943_v13  ;;  %v989_v13 = vld [vmem:[%s3586_s29 + $0x16b0] sm:$0xff]  ;;  %v992_v14 = vld [vmem:[%s3586_s29 + $0x16c8] sm:$0xff] }
 0x15c   : > { %2857 = vmatpush1.bf16.msra.mxu0 %v2856_v25  ;;  %2005 = vmatmul.mubr.f32.vlgmr.msra.gmra.mrb[0].mxu1 %v257_v24  ;;  %v2878_v24 = vpack.c.bf16 %v956_v19, %v952_v18  ;;  %v951_v25 = vld [vmem:[%s3586_s29 + $0x1580] sm:$0xff]  ;;  %v2898_v20 = vpack.c.bf16 %v996_v15, %v992_v14 }
 0x15d   : > { %3305 = vmatpush1.bf16.msra.mxu1 %v3304_v26  ;;  %2859 = vmatprep.subr.bf16.mxu0 %v2858_v27  ;;  %v955_v26 = vld [vmem:[%s3586_s29 + $0x15a0] sm:$0xff]  ;;  %v953_v27 = vld [vmem:[%s3586_s29 + $0x1590] sm:$0xff] }
 0x15e   : > { %3307 = vmatprep.subr.bf16.mxu1 %v3306_v31  ;;  %1578 = vmatprep.mubr.f32.mxu0 %v260_v37  ;;  %v964_v31 = vld [vmem:[%s3586_s29 + $0x15e8] sm:$0xff]  ;;  %v2880_v34 = vpack.c.bf16 %v955_v26, %v951_v25  ;;  %v3328_v35 = vpack.c.bf16 %v957_v29, %v953_v27  ;;  %v997_v25 = vld [vmem:[%s3586_s29 + $0x16f0] sm:$0xff]  ;;  %v1006_v29 = vld [vmem:[%s3586_s29 + $0x1738] sm:$0xff] }
 0x15f   : > { %2075 = vmatprep.mubr.f32.mxu1 %v260_v37  ;;  %v2882_v36 = vpack.c.bf16 %v964_v31, %v960_v30  ;;  %v959_v37 = vld [vmem:[%s3586_s29 + $0x15c0] sm:$0xff]  ;;  %v1000_v26 = vld [vmem:[%s3586_s29 + $0x1708] sm:$0xff] }
 0x160   : > { %2861 = vmatpush1.bf16.msra.mxu0 %v2860_v38  ;;  %v963_v38 = vld [vmem:[%s3586_s29 + $0x15e0] sm:$0xff]  ;;  %v1004_v27 = vld [vmem:[%s3586_s29 + $0x1728] sm:$0xff] }
 0x161   : > { %3309 = vmatpush1.bf16.msra.mxu1 %v3308_v39  ;;  %2863 = vmatprep.subr.bf16.mxu0 %v2862_v40  ;;  %v961_v39 = vld [vmem:[%s3586_s29 + $0x15d0] sm:$0xff]  ;;  %v3330_v40 = vpack.c.bf16 %v966_v33, %v962_v32  ;;  %v2884_v46 = vpack.c.bf16 %v963_v38, %v959_v37  ;;  %v2902_v32 = vpack.c.bf16 %v1004_v27, %v1000_v26  ;;  %v999_v33 = vld [vmem:[%s3586_s29 + $0x1700] sm:$0xff]  ;;  %v1008_v38 = vld [vmem:[%s3586_s29 + $0x1748] sm:$0xff] }
 0x162   : > { %3311 = vmatprep.subr.bf16.mxu1 %v3310_v44  ;;  %v970_v44 = vld [vmem:[%s3586_s29 + $0x1618] sm:$0xff]  ;;  %v3332_v47 = vpack.c.bf16 %v965_v41, %v961_v39  ;;  %v1005_v37 = vld [vmem:[%s3586_s29 + $0x1730] sm:$0xff]  ;;  %v1012_v39 = vld [vmem:[%s3586_s29 + $0x1768] sm:$0xff] }
 0x163   : > { %v1014_v41 = vld [vmem:[%s3586_s29 + $0x1778] sm:$0xff]  ;;  %v259_v26 = vld [vmem:[%s3581_s25 + $0x50] sm:$0xff] }
 0x164   : > { %2865 = vmatpush1.bf16.msra.mxu0 %v2864_v50  ;;  %v971_v50 = vld [vmem:[%s3586_s29 + $0x1620] sm:$0xff] }
 0x165   : > { %3313 = vmatpush1.bf16.msra.mxu1 %v3312_v51  ;;  %2867 = vmatprep.subr.bf16.mxu0 %v2866_v52  ;;  %v969_v51 = vld [vmem:[%s3586_s29 + $0x1610] sm:$0xff]  ;;  %v3334_v52 = vpack.c.bf16 %v974_v45, %v970_v44  ;;  %v2888_v58 = vpack.c.bf16 %v971_v50, %v967_v49  ;;  %v2906_v44 = vpack.c.bf16 %v1012_v39, %v1008_v38  ;;  %v1007_v45 = vld [vmem:[%s3586_s29 + $0x1740] sm:$0xff]  ;;  %v1016_v50 = vld [vmem:[%s3586_s29 + $0x1788] sm:$0xff] }
 0x166   : > { %3315 = vmatprep.subr.bf16.mxu1 %v3314_v56  ;;  %v978_v56 = vld [vmem:[%s3586_s29 + $0x1658] sm:$0xff]  ;;  %v3336_v59 = vpack.c.bf16 %v973_v53, %v969_v51  ;;  %v1013_v49 = vld [vmem:[%s3586_s29 + $0x1770] sm:$0xff]  ;;  %v1020_v51 = vld [vmem:[%s3586_s29 + $0x17a8] sm:$0xff] }
 0x167   : > { %v1022_v53 = vld [vmem:[%s3586_s29 + $0x17b8] sm:$0xff]  ;;  %v262_v39 = vld [vmem:[%s3581_s25 + $0x68] sm:$0xff] }
 0x168   : > { %2869 = vmatpush1.bf16.msra.mxu0 %v2868_v62  ;;  %v979_v62 = vld [vmem:[%s3586_s29 + $0x1660] sm:$0xff]  ;;  %v1054_v38 = vld [vmem:[%s3586_s29 + $0x18b8] sm:$0xff] }
 0x169   : > { %3317 = vmatpush1.bf16.msra.mxu1 %v3316_v63  ;;  %2871 = vmatprep.subr.bf16.mxu0 %v2870_v0  ;;  %v977_v63 = vld [vmem:[%s3586_s29 + $0x1650] sm:$0xff]  ;;  %v3338_v0 = vpack.c.bf16 %v982_v57, %v978_v56  ;;  %v2892_v6 = vpack.c.bf16 %v979_v62, %v975_v61  ;;  %v2910_v56 = vpack.c.bf16 %v1020_v51, %v1016_v50  ;;  %v1015_v57 = vld [vmem:[%s3586_s29 + $0x1780] sm:$0xff]  ;;  %v1024_v62 = vld [vmem:[%s3586_s29 + $0x17c8] sm:$0xff] }
 0x16a   : > { %3319 = vmatprep.subr.bf16.mxu1 %v3318_v4  ;;  %v986_v4 = vld [vmem:[%s3586_s29 + $0x1698] sm:$0xff]  ;;  %v3340_v7 = vpack.c.bf16 %v981_v1, %v977_v63  ;;  %v1021_v61 = vld [vmem:[%s3586_s29 + $0x17b0] sm:$0xff]  ;;  %v1028_v63 = vld [vmem:[%s3586_s29 + $0x17e8] sm:$0xff] }
 0x16b   : > { %v1030_v1 = vld [vmem:[%s3586_s29 + $0x17f8] sm:$0xff] }
 0x16c   : > { %2873 = vmatpush1.bf16.msra.mxu0 %v2872_v10  ;;  %v987_v10 = vld [vmem:[%s3586_s29 + $0x16a0] sm:$0xff]  ;;  %v1058_v50 = vld [vmem:[%s3586_s29 + $0x18d8] sm:$0xff] }
 0x16d   : > { %3321 = vmatpush1.bf16.msra.mxu1 %v3320_v11  ;;  %2875 = vmatprep.subr.bf16.mxu0 %v2874_v12  ;;  %v985_v11 = vld [vmem:[%s3586_s29 + $0x1690] sm:$0xff]  ;;  %v3342_v12 = vpack.c.bf16 %v990_v5, %v986_v4  ;;  %v2896_v18 = vpack.c.bf16 %v987_v10, %v983_v9  ;;  %v2914_v4 = vpack.c.bf16 %v1028_v63, %v1024_v62  ;;  %v1023_v5 = vld [vmem:[%s3586_s29 + $0x17c0] sm:$0xff]  ;;  %v1032_v10 = vld [vmem:[%s3586_s29 + $0x1808] sm:$0xff] }
 0x16e   : > { %3323 = vmatprep.subr.bf16.mxu1 %v3322_v16  ;;  %v994_v16 = vld [vmem:[%s3586_s29 + $0x16d8] sm:$0xff]  ;;  %v3344_v19 = vpack.c.bf16 %v989_v13, %v985_v11  ;;  %v1029_v9 = vld [vmem:[%s3586_s29 + $0x17f0] sm:$0xff]  ;;  %v1036_v11 = vld [vmem:[%s3586_s29 + $0x1828] sm:$0xff] }
 0x16f   : > { %v1038_v13 = vld [vmem:[%s3586_s29 + $0x1838] sm:$0xff] }
 0x170   : > { %2877 = vmatpush1.bf16.msra.mxu0 %v2876_v22  ;;  %v995_v22 = vld [vmem:[%s3586_s29 + $0x16e0] sm:$0xff]  ;;  %v1062_v51 = vld [vmem:[%s3586_s29 + $0x18f8] sm:$0xff] }
 0x171   : > { %3325 = vmatpush1.bf16.msra.mxu1 %v3324_v23  ;;  %2879 = vmatprep.subr.bf16.mxu0 %v2878_v24  ;;  %v993_v23 = vld [vmem:[%s3586_s29 + $0x16d0] sm:$0xff]  ;;  %v3346_v24 = vpack.c.bf16 %v998_v17, %v994_v16  ;;  %v2900_v30 = vpack.c.bf16 %v995_v22, %v991_v21  ;;  %v2918_v16 = vpack.c.bf16 %v1036_v11, %v1032_v10  ;;  %v1031_v17 = vld [vmem:[%s3586_s29 + $0x1800] sm:$0xff]  ;;  %v1040_v22 = vld [vmem:[%s3586_s29 + $0x1848] sm:$0xff] }
 0x172   : > { %3327 = vmatprep.subr.bf16.mxu1 %v3326_v28  ;;  %v1002_v28 = vld [vmem:[%s3586_s29 + $0x1718] sm:$0xff]  ;;  %v3348_v31 = vpack.c.bf16 %v997_v25, %v993_v23  ;;  %v1037_v21 = vld [vmem:[%s3586_s29 + $0x1830] sm:$0xff]  ;;  %v1044_v23 = vld [vmem:[%s3586_s29 + $0x1868] sm:$0xff] }
 0x173   : > { %v1046_v25 = vld [vmem:[%s3586_s29 + $0x1878] sm:$0xff] }
 0x174   : > { %2881 = vmatpush1.bf16.msra.mxu0 %v2880_v34  ;;  %v1003_v34 = vld [vmem:[%s3586_s29 + $0x1720] sm:$0xff]  ;;  %v1066_v62 = vld [vmem:[%s3586_s29 + $0x1918] sm:$0xff] }
 0x175   : > { %3329 = vmatpush1.bf16.msra.mxu1 %v3328_v35  ;;  %2883 = vmatprep.subr.bf16.mxu0 %v2882_v36  ;;  %v1001_v35 = vld [vmem:[%s3586_s29 + $0x1710] sm:$0xff]  ;;  %v3350_v36 = vpack.c.bf16 %v1006_v29, %v1002_v28  ;;  %v2904_v42 = vpack.c.bf16 %v1003_v34, %v999_v33  ;;  %v2922_v29 = vpack.c.bf16 %v1044_v23, %v1040_v22  ;;  %v1070_v63 = vld [vmem:[%s3586_s29 + $0x1938] sm:$0xff] }
 0x176   : > { %3331 = vmatprep.subr.bf16.mxu1 %v3330_v40  ;;  %v1010_v40 = vld [vmem:[%s3586_s29 + $0x1758] sm:$0xff]  ;;  %v3352_v43 = vpack.c.bf16 %v1005_v37, %v1001_v35  ;;  %v1045_v34 = vld [vmem:[%s3586_s29 + $0x1870] sm:$0xff]  ;;  %v1048_v35 = vld [vmem:[%s3586_s29 + $0x1888] sm:$0xff] }
 0x177   : > { %v1050_v37 = vld [vmem:[%s3586_s29 + $0x1898] sm:$0xff] }
 0x178   : > { %2885 = vmatpush1.bf16.msra.mxu0 %v2884_v46  ;;  %v1011_v46 = vld [vmem:[%s3586_s29 + $0x1760] sm:$0xff]  ;;  %v1074_v10 = vld [vmem:[%s3586_s29 + $0x1958] sm:$0xff] }
 0x179   : > { %3333 = vmatpush1.bf16.msra.mxu1 %v3332_v47  ;;  %2887 = vmatprep.subr.bf16.mxu0 %v2886_v48  ;;  %v1009_v47 = vld [vmem:[%s3586_s29 + $0x1750] sm:$0xff]  ;;  %v3354_v48 = vpack.c.bf16 %v1014_v41, %v1010_v40  ;;  %v2908_v54 = vpack.c.bf16 %v1011_v46, %v1007_v45  ;;  %v3374_v46 = vpack.c.bf16 %v1054_v38, %v1050_v37  ;;  %v1078_v11 = vld [vmem:[%s3586_s29 + $0x1978] sm:$0xff] }
 0x17a   : > { %3335 = vmatprep.subr.bf16.mxu1 %v3334_v52  ;;  %v1018_v52 = vld [vmem:[%s3586_s29 + $0x1798] sm:$0xff]  ;;  %v3356_v55 = vpack.c.bf16 %v1013_v49, %v1009_v47  ;;  %v1049_v45 = vld [vmem:[%s3586_s29 + $0x1890] sm:$0xff]  ;;  %v1060_v49 = vld [vmem:[%s3586_s29 + $0x18e8] sm:$0xff] }
 0x17b   : > { %v1053_v47 = vld [vmem:[%s3586_s29 + $0x18b0] sm:$0xff]  ;;  %v1082_v22 = vld [vmem:[%s3586_s29 + $0x1998] sm:$0xff] }
 0x17c   : > { %2889 = vmatpush1.bf16.msra.mxu0 %v2888_v58  ;;  %v1019_v58 = vld [vmem:[%s3586_s29 + $0x17a0] sm:$0xff]  ;;  %v1086_v23 = vld [vmem:[%s3586_s29 + $0x19b8] sm:$0xff] }
 0x17d   : > { %3337 = vmatpush1.bf16.msra.mxu1 %v3336_v59  ;;  %2891 = vmatprep.subr.bf16.mxu0 %v2890_v60  ;;  %v1017_v59 = vld [vmem:[%s3586_s29 + $0x1790] sm:$0xff]  ;;  %v3358_v60 = vpack.c.bf16 %v1022_v53, %v1018_v52  ;;  %v2912_v2 = vpack.c.bf16 %v1019_v58, %v1015_v57  ;;  %v3376_v53 = vpack.c.bf16 %v1053_v47, %v1049_v45  ;;  %v1100_v45 = vld [vmem:[%s3586_s29 + $0x1a28] sm:$0xff]  ;;  %v1102_v47 = vld [vmem:[%s3586_s29 + $0x1a38] sm:$0xff] }
 0x17e   : > { %3339 = vmatprep.subr.bf16.mxu1 %v3338_v0  ;;  %v1026_v0 = vld [vmem:[%s3586_s29 + $0x17d8] sm:$0xff]  ;;  %v3360_v3 = vpack.c.bf16 %v1021_v61, %v1017_v59  ;;  %v1057_v57 = vld [vmem:[%s3586_s29 + $0x18d0] sm:$0xff]  ;;  %v3378_v58 = vpack.c.bf16 %v1062_v51, %v1058_v50  ;;  %v1068_v61 = vld [vmem:[%s3586_s29 + $0x1928] sm:$0xff] }
 0x17f   : > { %v1061_v59 = vld [vmem:[%s3586_s29 + $0x18f0] sm:$0xff]  ;;  %v1095_v51 = vld [vmem:[%s3586_s29 + $0x1a00] sm:$0xff] }
 0x180   : > { %2893 = vmatpush1.bf16.msra.mxu0 %v2892_v6  ;;  %v1027_v6 = vld [vmem:[%s3586_s29 + $0x17e0] sm:$0xff] }
 0x181   : > { %3341 = vmatpush1.bf16.msra.mxu1 %v3340_v7  ;;  %2895 = vmatprep.subr.bf16.mxu0 %v2894_v8  ;;  %v1025_v7 = vld [vmem:[%s3586_s29 + $0x17d0] sm:$0xff]  ;;  %v3362_v8 = vpack.c.bf16 %v1030_v1, %v1026_v0  ;;  %v2916_v14 = vpack.c.bf16 %v1027_v6, %v1023_v5  ;;  %v3380_v1 = vpack.c.bf16 %v1061_v59, %v1057_v57  ;;  %v1108_v57 = vld [vmem:[%s3586_s29 + $0x1a68] sm:$0xff]  ;;  %v1110_v59 = vld [vmem:[%s3586_s29 + $0x1a78] sm:$0xff] }
 0x182   : > { %3343 = vmatprep.subr.bf16.mxu1 %v3342_v12  ;;  %v1034_v12 = vld [vmem:[%s3586_s29 + $0x1818] sm:$0xff]  ;;  %v3364_v15 = vpack.c.bf16 %v1029_v9, %v1025_v7  ;;  %v1065_v5 = vld [vmem:[%s3586_s29 + $0x1910] sm:$0xff]  ;;  %v3382_v6 = vpack.c.bf16 %v1070_v63, %v1066_v62  ;;  %v1076_v9 = vld [vmem:[%s3586_s29 + $0x1968] sm:$0xff] }
 0x183   : > { %v1069_v7 = vld [vmem:[%s3586_s29 + $0x1930] sm:$0xff]  ;;  %v1103_v63 = vld [vmem:[%s3586_s29 + $0x1a40] sm:$0xff] }
 0x184   : > { %2897 = vmatpush1.bf16.msra.mxu0 %v2896_v18  ;;  %v1035_v18 = vld [vmem:[%s3586_s29 + $0x1820] sm:$0xff] }
 0x185   : > { %3345 = vmatpush1.bf16.msra.mxu1 %v3344_v19  ;;  %2899 = vmatprep.subr.bf16.mxu0 %v2898_v20  ;;  %v1033_v19 = vld [vmem:[%s3586_s29 + $0x1810] sm:$0xff]  ;;  %v3366_v20 = vpack.c.bf16 %v1038_v13, %v1034_v12  ;;  %v2920_v27 = vpack.c.bf16 %v1035_v18, %v1031_v17  ;;  %v3384_v13 = vpack.c.bf16 %v1069_v7, %v1065_v5  ;;  %v1116_v5 = vld [vmem:[%s3586_s29 + $0x1aa8] sm:$0xff]  ;;  %v1118_v7 = vld [vmem:[%s3586_s29 + $0x1ab8] sm:$0xff] }
 0x186   : > { %3347 = vmatprep.subr.bf16.mxu1 %v3346_v24  ;;  %v1042_v24 = vld [vmem:[%s3586_s29 + $0x1858] sm:$0xff]  ;;  %v3368_v28 = vpack.c.bf16 %v1037_v21, %v1033_v19  ;;  %v1073_v17 = vld [vmem:[%s3586_s29 + $0x1950] sm:$0xff]  ;;  %v3386_v18 = vpack.c.bf16 %v1078_v11, %v1074_v10  ;;  %v1084_v21 = vld [vmem:[%s3586_s29 + $0x19a8] sm:$0xff] }
 0x187   : > { %v3370_v33 = vpack.c.bf16 %v1046_v25, %v1042_v24  ;;  %v1077_v19 = vld [vmem:[%s3586_s29 + $0x1970] sm:$0xff]  ;;  %v1111_v11 = vld [vmem:[%s3586_s29 + $0x1a80] sm:$0xff] }
 0x188   : > { %2901 = vmatpush1.bf16.msra.mxu0 %v2900_v30  ;;  %v1039_v30 = vld [vmem:[%s3586_s29 + $0x1840] sm:$0xff]  ;;  %v3388_v25 = vpack.c.bf16 %v1077_v19, %v1073_v17  ;;  %v1124_v17 = vld [vmem:[%s3586_s29 + $0x1ae8] sm:$0xff]  ;;  %v1126_v19 = vld [vmem:[%s3586_s29 + $0x1af8] sm:$0xff] }
 0x189   : > { %3349 = vmatpush1.bf16.msra.mxu1 %v3348_v31  ;;  %2903 = vmatprep.subr.bf16.mxu0 %v2902_v32  ;;  %v1043_v31 = vld [vmem:[%s3586_s29 + $0x1860] sm:$0xff]  ;;  %v1041_v32 = vld [vmem:[%s3586_s29 + $0x1850] sm:$0xff] }
 0x18a   : > { %3351 = vmatprep.subr.bf16.mxu1 %v3350_v36  ;;  %v1052_v36 = vld [vmem:[%s3586_s29 + $0x18a8] sm:$0xff]  ;;  %v2924_v40 = vpack.c.bf16 %v1043_v31, %v1039_v30  ;;  %v3372_v41 = vpack.c.bf16 %v1045_v34, %v1041_v32  ;;  %v3390_v30 = vpack.c.bf16 %v1086_v23, %v1082_v22  ;;  %v1085_v31 = vld [vmem:[%s3586_s29 + $0x19b0] sm:$0xff]  ;;  %v1090_v34 = vld [vmem:[%s3586_s29 + $0x19d8] sm:$0xff] }
 0x18b   : > { %v1088_v32 = vld [vmem:[%s3586_s29 + $0x19c8] sm:$0xff]  ;;  %v1119_v23 = vld [vmem:[%s3586_s29 + $0x1ac0] sm:$0xff] }
 0x18c   : > { %2905 = vmatpush1.bf16.msra.mxu0 %v2904_v42  ;;  %v2926_v42 = vpack.c.bf16 %v1052_v36, %v1048_v35  ;;  %v1094_v35 = vld [vmem:[%s3586_s29 + $0x19f8] sm:$0xff] }
 0x18d   : > { %3353 = vmatpush1.bf16.msra.mxu1 %v3352_v43  ;;  %2907 = vmatprep.subr.bf16.mxu0 %v2906_v44  ;;  %v1047_v43 = vld [vmem:[%s3586_s29 + $0x1880] sm:$0xff] }
 0x18e   : > { %3355 = vmatprep.subr.bf16.mxu1 %v3354_v48  ;;  %v1051_v44 = vld [vmem:[%s3586_s29 + $0x18a0] sm:$0xff]  ;;  %v1056_v48 = vld [vmem:[%s3586_s29 + $0x18c8] sm:$0xff] }
 0x18f   : > { %v2928_v52 = vpack.c.bf16 %v1051_v44, %v1047_v43  ;;  %v1093_v43 = vld [vmem:[%s3586_s29 + $0x19f0] sm:$0xff]  ;;  %v1096_v44 = vld [vmem:[%s3586_s29 + $0x1a08] sm:$0xff] }
 0x190   : > { %2909 = vmatpush1.bf16.msra.mxu0 %v2908_v54  ;;  %v2930_v54 = vpack.c.bf16 %v1060_v49, %v1056_v48  ;;  %v2950_v50 = vpack.c.bf16 %v1100_v45, %v1096_v44 }
 0x191   : > { %3357 = vmatpush1.bf16.msra.mxu1 %v3356_v55  ;;  %2911 = vmatprep.subr.bf16.mxu0 %v2910_v56  ;;  %v1055_v55 = vld [vmem:[%s3586_s29 + $0x18c0] sm:$0xff] }
 0x192   : > { %3359 = vmatprep.subr.bf16.mxu1 %v3358_v60  ;;  %v1059_v56 = vld [vmem:[%s3586_s29 + $0x18e0] sm:$0xff]  ;;  %v1064_v60 = vld [vmem:[%s3586_s29 + $0x1908] sm:$0xff] }
 0x193   : > { %v2932_v0 = vpack.c.bf16 %v1059_v56, %v1055_v55  ;;  %v1101_v55 = vld [vmem:[%s3586_s29 + $0x1a30] sm:$0xff]  ;;  %v1104_v56 = vld [vmem:[%s3586_s29 + $0x1a48] sm:$0xff] }
 0x194   : > { %2913 = vmatpush1.bf16.msra.mxu0 %v2912_v2  ;;  %v2934_v2 = vpack.c.bf16 %v1068_v61, %v1064_v60  ;;  %v2954_v62 = vpack.c.bf16 %v1108_v57, %v1104_v56 }
 0x195   : > { %3361 = vmatpush1.bf16.msra.mxu1 %v3360_v3  ;;  %2915 = vmatprep.subr.bf16.mxu0 %v2914_v4  ;;  %v1063_v3 = vld [vmem:[%s3586_s29 + $0x1900] sm:$0xff] }
 0x196   : > { %3363 = vmatprep.subr.bf16.mxu1 %v3362_v8  ;;  %v1067_v4 = vld [vmem:[%s3586_s29 + $0x1920] sm:$0xff]  ;;  %v1072_v8 = vld [vmem:[%s3586_s29 + $0x1948] sm:$0xff] }
 0x197   : > { %v2936_v12 = vpack.c.bf16 %v1067_v4, %v1063_v3  ;;  %v1109_v3 = vld [vmem:[%s3586_s29 + $0x1a70] sm:$0xff]  ;;  %v1112_v4 = vld [vmem:[%s3586_s29 + $0x1a88] sm:$0xff] }
 0x198   : > { %2917 = vmatpush1.bf16.msra.mxu0 %v2916_v14  ;;  %v2938_v14 = vpack.c.bf16 %v1076_v9, %v1072_v8  ;;  %v2958_v10 = vpack.c.bf16 %v1116_v5, %v1112_v4 }
 0x199   : > { %3365 = vmatpush1.bf16.msra.mxu1 %v3364_v15  ;;  %2919 = vmatprep.subr.bf16.mxu0 %v2918_v16  ;;  %v1071_v15 = vld [vmem:[%s3586_s29 + $0x1940] sm:$0xff] }
 0x19a   : > { %3367 = vmatprep.subr.bf16.mxu1 %v3366_v20  ;;  %v1075_v16 = vld [vmem:[%s3586_s29 + $0x1960] sm:$0xff]  ;;  %v1080_v20 = vld [vmem:[%s3586_s29 + $0x1988] sm:$0xff] }
 0x19b   : > { %1579 = vmatmul.mubr.f32.vlgmr.msra.gmra.mrb[0].mxu0 %v259_v26  ;;  %v2940_v24 = vpack.c.bf16 %v1075_v16, %v1071_v15  ;;  %v1117_v15 = vld [vmem:[%s3586_s29 + $0x1ab0] sm:$0xff]  ;;  %v1120_v16 = vld [vmem:[%s3586_s29 + $0x1ac8] sm:$0xff] }
 0x19c   : > { %2921 = vmatpush1.bf16.msra.mxu0 %v2920_v27  ;;  %2076 = vmatmul.mubr.f32.vlgmr.msra.gmra.mrb[0].mxu1 %v259_v26  ;;  %v2942_v26 = vpack.c.bf16 %v1084_v21, %v1080_v20  ;;  %v1079_v27 = vld [vmem:[%s3586_s29 + $0x1980] sm:$0xff]  ;;  %v2962_v22 = vpack.c.bf16 %v1124_v17, %v1120_v16  ;;  %v247_v16 = vld [vmem:[#allocation2 + $0x10] sm:$0xff]  ;;  %v246_v17 = vld [vmem:[#allocation2 + $0x8] sm:$0xff] }
 0x19d   : > { %3369 = vmatpush1.bf16.msra.mxu1 %v3368_v28  ;;  %2923 = vmatprep.subr.bf16.mxu0 %v2922_v29  ;;  %v1083_v28 = vld [vmem:[%s3586_s29 + $0x19a0] sm:$0xff]  ;;  %v1081_v29 = vld [vmem:[%s3586_s29 + $0x1990] sm:$0xff] }
 0x19e   : > { %3371 = vmatprep.subr.bf16.mxu1 %v3370_v33  ;;  %1649 = vmatprep.mubr.f32.mxu0 %v262_v39  ;;  %v1092_v33 = vld [vmem:[%s3586_s29 + $0x19e8] sm:$0xff]  ;;  %v2944_v36 = vpack.c.bf16 %v1083_v28, %v1079_v27  ;;  %v3392_v37 = vpack.c.bf16 %v1085_v31, %v1081_v29  ;;  %v1125_v27 = vld [vmem:[%s3586_s29 + $0x1af0] sm:$0xff]  ;;  %v1134_v31 = vld [vmem:[%s3586_s29 + $0x1b38] sm:$0xff] }
 0x19f   : > { %2146 = vmatprep.mubr.f32.mxu1 %v262_v39  ;;  %v2946_v38 = vpack.c.bf16 %v1092_v33, %v1088_v32  ;;  %v1087_v39 = vld [vmem:[%s3586_s29 + $0x19c0] sm:$0xff]  ;;  %v1128_v28 = vld [vmem:[%s3586_s29 + $0x1b08] sm:$0xff] }
 0x1a0   : > { %2925 = vmatpush1.bf16.msra.mxu0 %v2924_v40  ;;  %v1091_v40 = vld [vmem:[%s3586_s29 + $0x19e0] sm:$0xff]  ;;  %v1132_v29 = vld [vmem:[%s3586_s29 + $0x1b28] sm:$0xff] }
 0x1a1   : > { %3373 = vmatpush1.bf16.msra.mxu1 %v3372_v41  ;;  %2927 = vmatprep.subr.bf16.mxu0 %v2926_v42  ;;  %v1089_v41 = vld [vmem:[%s3586_s29 + $0x19d0] sm:$0xff]  ;;  %v3394_v42 = vpack.c.bf16 %v1094_v35, %v1090_v34  ;;  %v2948_v48 = vpack.c.bf16 %v1091_v40, %v1087_v39  ;;  %v2966_v34 = vpack.c.bf16 %v1132_v29, %v1128_v28  ;;  %v1127_v35 = vld [vmem:[%s3586_s29 + $0x1b00] sm:$0xff]  ;;  %v1136_v40 = vld [vmem:[%s3586_s29 + $0x1b48] sm:$0xff] }
 0x1a2   : > { %3375 = vmatprep.subr.bf16.mxu1 %v3374_v46  ;;  %v1098_v46 = vld [vmem:[%s3586_s29 + $0x1a18] sm:$0xff]  ;;  %v3396_v49 = vpack.c.bf16 %v1093_v43, %v1089_v41  ;;  %v1133_v39 = vld [vmem:[%s3586_s29 + $0x1b30] sm:$0xff]  ;;  %v1140_v41 = vld [vmem:[%s3586_s29 + $0x1b68] sm:$0xff] }
 0x1a3   : > { %v1142_v43 = vld [vmem:[%s3586_s29 + $0x1b78] sm:$0xff]  ;;  %v2216_v28 = vld [vmem:[%s4707_s3 + $0x88] sm:$0xff] (!%p2459_p6)  ;;  %v2199_v29 = vld [vmem:[%s4707_s3] sm:$0xff] (!%p2459_p6) }
 0x1a4   : > { %2929 = vmatpush1.bf16.msra.mxu0 %v2928_v52  ;;  %v1099_v52 = vld [vmem:[%s3586_s29 + $0x1a20] sm:$0xff] }
 0x1a5   : > { %3377 = vmatpush1.bf16.msra.mxu1 %v3376_v53  ;;  %2931 = vmatprep.subr.bf16.mxu0 %v2930_v54  ;;  %v1097_v53 = vld [vmem:[%s3586_s29 + $0x1a10] sm:$0xff]  ;;  %v3398_v54 = vpack.c.bf16 %v1102_v47, %v1098_v46  ;;  %v2952_v60 = vpack.c.bf16 %v1099_v52, %v1095_v51  ;;  %v2970_v46 = vpack.c.bf16 %v1140_v41, %v1136_v40  ;;  %v1135_v47 = vld [vmem:[%s3586_s29 + $0x1b40] sm:$0xff]  ;;  %v1144_v52 = vld [vmem:[%s3586_s29 + $0x1b88] sm:$0xff] }
 0x1a6   : > { %3379 = vmatprep.subr.bf16.mxu1 %v3378_v58  ;;  %v1106_v58 = vld [vmem:[%s3586_s29 + $0x1a58] sm:$0xff]  ;;  %v3400_v61 = vpack.c.bf16 %v1101_v55, %v1097_v53  ;;  %v1141_v51 = vld [vmem:[%s3586_s29 + $0x1b70] sm:$0xff]  ;;  %v1148_v53 = vld [vmem:[%s3586_s29 + $0x1ba8] sm:$0xff] }
 0x1a7   : > { %v1150_v55 = vld [vmem:[%s3586_s29 + $0x1bb8] sm:$0xff]  ;;  %v2201_v41 = vld [vmem:[%s4707_s3 + $0x10] sm:$0xff] (!%p2459_p6) }
 0x1a8   : > { %2933 = vmatpush1.bf16.msra.mxu0 %v2932_v0  ;;  %v1107_v0 = vld [vmem:[%s3586_s29 + $0x1a60] sm:$0xff]  ;;  %v2218_v40 = vld [vmem:[%s4707_s3 + $0x98] sm:$0xff] (!%p2459_p6) }
 0x1a9   : > { %3381 = vmatpush1.bf16.msra.mxu1 %v3380_v1  ;;  %2935 = vmatprep.subr.bf16.mxu0 %v2934_v2  ;;  %v1105_v1 = vld [vmem:[%s3586_s29 + $0x1a50] sm:$0xff]  ;;  %v3402_v2 = vpack.c.bf16 %v1110_v59, %v1106_v58  ;;  %v2956_v8 = vpack.c.bf16 %v1107_v0, %v1103_v63  ;;  %v2974_v58 = vpack.c.bf16 %v1148_v53, %v1144_v52  ;;  %v1143_v59 = vld [vmem:[%s3586_s29 + $0x1b80] sm:$0xff]  ;;  %v1152_v0 = vld [vmem:[%s3586_s29 + $0x1bc8] sm:$0xff] }
 0x1aa   : > { %3383 = vmatprep.subr.bf16.mxu1 %v3382_v6  ;;  %v1114_v6 = vld [vmem:[%s3586_s29 + $0x1a98] sm:$0xff]  ;;  %v3404_v9 = vpack.c.bf16 %v1109_v3, %v1105_v1  ;;  %v1149_v63 = vld [vmem:[%s3586_s29 + $0x1bb0] sm:$0xff]  ;;  %v1156_v1 = vld [vmem:[%s3586_s29 + $0x1be8] sm:$0xff] }
 0x1ab   : > { %v1158_v3 = vld [vmem:[%s3586_s29 + $0x1bf8] sm:$0xff] }
 0x1ac   : > { %2937 = vmatpush1.bf16.msra.mxu0 %v2936_v12  ;;  %v1115_v12 = vld [vmem:[%s3586_s29 + $0x1aa0] sm:$0xff] }
 0x1ad   : > { %3385 = vmatpush1.bf16.msra.mxu1 %v3384_v13  ;;  %2939 = vmatprep.subr.bf16.mxu0 %v2938_v14  ;;  %v1113_v13 = vld [vmem:[%s3586_s29 + $0x1a90] sm:$0xff]  ;;  %v3406_v14 = vpack.c.bf16 %v1118_v7, %v1114_v6  ;;  %v2960_v20 = vpack.c.bf16 %v1115_v12, %v1111_v11  ;;  %v2978_v6 = vpack.c.bf16 %v1156_v1, %v1152_v0  ;;  %v1151_v7 = vld [vmem:[%s3586_s29 + $0x1bc0] sm:$0xff] }
 0x1ae   : > { %3387 = vmatprep.subr.bf16.mxu1 %v3386_v18  ;;  %v1122_v18 = vld [vmem:[%s3586_s29 + $0x1ad8] sm:$0xff]  ;;  %v3408_v21 = vpack.c.bf16 %v1117_v15, %v1113_v13  ;;  %v1157_v11 = vld [vmem:[%s3586_s29 + $0x1bf0] sm:$0xff]  ;;  %v245_v15 = vld [vmem:[#allocation2] sm:$0xff] }
 0x1af   : > { %v2205_v0 = vld [vmem:[%s4707_s3 + $0x30] sm:$0xff] (!%p2459_p6) }
 0x1b0   : > { %2941 = vmatpush1.bf16.msra.mxu0 %v2940_v24  ;;  %v1123_v24 = vld [vmem:[%s3586_s29 + $0x1ae0] sm:$0xff] }
 0x1b1   : > { %3389 = vmatpush1.bf16.msra.mxu1 %v3388_v25  ;;  %2943 = vmatprep.subr.bf16.mxu0 %v2942_v26  ;;  %v1121_v25 = vld [vmem:[%s3586_s29 + $0x1ad0] sm:$0xff]  ;;  %v3410_v26 = vpack.c.bf16 %v1126_v19, %v1122_v18  ;;  %v2964_v32 = vpack.c.bf16 %v1123_v24, %v1119_v23  ;;  %v248_v19 = vld [vmem:[#allocation2 + $0x18] sm:$0xff] }
 0x1b2   : > { %3391 = vmatprep.subr.bf16.mxu1 %v3390_v30  ;;  %v1130_v30 = vld [vmem:[%s3586_s29 + $0x1b18] sm:$0xff]  ;;  %v3412_v33 = vpack.c.bf16 %v1125_v27, %v1121_v25  ;;  %v2215_v27 = vld [vmem:[%s4707_s3 + $0x80] sm:$0xff] (!%p2459_p6) }
 0x1b4   : > { %2945 = vmatpush1.bf16.msra.mxu0 %v2944_v36  ;;  %v1131_v36 = vld [vmem:[%s3586_s29 + $0x1b20] sm:$0xff] }
 0x1b5   : > { %3393 = vmatpush1.bf16.msra.mxu1 %v3392_v37  ;;  %2947 = vmatprep.subr.bf16.mxu0 %v2946_v38  ;;  %v1129_v37 = vld [vmem:[%s3586_s29 + $0x1b10] sm:$0xff]  ;;  %v3414_v38 = vpack.c.bf16 %v1134_v31, %v1130_v30  ;;  %v2968_v44 = vpack.c.bf16 %v1131_v36, %v1127_v35  ;;  %v3430_v30 = vpack.c.bf16 (!%p2459_p6), %v2216_v28, %v2215_v27  ;;  %v2200_v31 = vld [vmem:[%s4707_s3 + $0x8] sm:$0xff] (!%p2459_p6)  ;;  %v2231_v36 = vld [vmem:[%s4707_s3 + $0x100] sm:$0xff] (!%p2459_p6) }
 0x1b6   : > { %3395 = vmatprep.subr.bf16.mxu1 %v3394_v42  ;;  %v1138_v42 = vld [vmem:[%s3586_s29 + $0x1b58] sm:$0xff]  ;;  %v3416_v45 = vpack.c.bf16 %v1133_v39, %v1129_v37  ;;  %v2232_v37 = vld [vmem:[%s4707_s3 + $0x108] sm:$0xff] (!%p2459_p6) }
 0x1b7   : > { %v3464_v39 = vpack.c.bf16 (!%p2459_p6), %v2232_v37, %v2231_v36  ;;  %v2228_v36 = vld [vmem:[%s4707_s3 + $0xe8] sm:$0xff] (!%p2459_p6) }
 0x1b8   : > { %2949 = vmatpush1.bf16.msra.mxu0 %v2948_v48  ;;  %v1139_v48 = vld [vmem:[%s3586_s29 + $0x1b60] sm:$0xff] }
 0x1b9   : > { %3397 = vmatpush1.bf16.msra.mxu1 %v3396_v49  ;;  %2951 = vmatprep.subr.bf16.mxu0 %v2950_v50  ;;  %v1137_v49 = vld [vmem:[%s3586_s29 + $0x1b50] sm:$0xff]  ;;  %v3418_v50 = vpack.c.bf16 %v1142_v43, %v1138_v42  ;;  %v2972_v56 = vpack.c.bf16 %v1139_v48, %v1135_v47  ;;  %v2202_v42 = vld [vmem:[%s4707_s3 + $0x18] sm:$0xff] (!%p2459_p6) }
 0x1ba   : > { %3399 = vmatprep.subr.bf16.mxu1 %v3398_v54  ;;  %v1146_v54 = vld [vmem:[%s3586_s29 + $0x1b98] sm:$0xff]  ;;  %v3420_v57 = vpack.c.bf16 %v1141_v51, %v1137_v49  ;;  %v2233_v47 = vld [vmem:[%s4707_s3 + $0x110] sm:$0xff] (!%p2459_p6)  ;;  %v2220_v51 = vld [vmem:[%s4707_s3 + $0xa8] sm:$0xff] (!%p2459_p6) }
 0x1bb   : > { %v2234_v49 = vld [vmem:[%s4707_s3 + $0x118] sm:$0xff] (!%p2459_p6) }
 0x1bc   : > { %2953 = vmatpush1.bf16.msra.mxu0 %v2952_v60  ;;  %v1147_v60 = vld [vmem:[%s3586_s29 + $0x1ba0] sm:$0xff]  ;;  %v3468_v52 = vpack.c.bf16 (!%p2459_p6), %v2234_v49, %v2233_v47  ;;  %v2244_v49 = vld [vmem:[%s4707_s3 + $0x168] sm:$0xff] (!%p2459_p6) }
 0x1bd   : > { %3401 = vmatpush1.bf16.msra.mxu1 %v3400_v61  ;;  %2955 = vmatprep.subr.bf16.mxu0 %v2954_v62  ;;  %v1145_v61 = vld [vmem:[%s3586_s29 + $0x1b90] sm:$0xff]  ;;  %v3422_v62 = vpack.c.bf16 %v1150_v55, %v1146_v54  ;;  %v2976_v4 = vpack.c.bf16 %v1147_v60, %v1143_v59  ;;  %v2203_v54 = vld [vmem:[%s4707_s3 + $0x20] sm:$0xff] (!%p2459_p6)  ;;  %v2204_v55 = vld [vmem:[%s4707_s3 + $0x28] sm:$0xff] (!%p2459_p6) }
 0x1be   : > { %3403 = vmatprep.subr.bf16.mxu1 %v3402_v2  ;;  %v1154_v2 = vld [vmem:[%s3586_s29 + $0x1bd8] sm:$0xff]  ;;  %v3424_v5 = vpack.c.bf16 %v1149_v63, %v1145_v61  ;;  %v2236_v59 = vld [vmem:[%s4707_s3 + $0x128] sm:$0xff] (!%p2459_p6)  ;;  %v3440_v60 = vpack.c.bf16 (!%p2459_p6), %v2204_v55, %v2203_v54 }
 0x1bf   : > { %v2222_v63 = vld [vmem:[%s4707_s3 + $0xb8] sm:$0xff] (!%p2459_p6) }
 0x1c0   : > { %2957 = vmatpush1.bf16.msra.mxu0 %v2956_v8  ;;  %v1155_v8 = vld [vmem:[%s3586_s29 + $0x1be0] sm:$0xff]  ;;  %v2230_v54 = vld [vmem:[%s4707_s3 + $0xf8] sm:$0xff] (!%p2459_p6) }
 0x1c1   : > { %3405 = vmatpush1.bf16.msra.mxu1 %v3404_v9  ;;  %2959 = vmatprep.subr.bf16.mxu0 %v2958_v10  ;;  %v3426_v9 = vpack.c.bf16 %v1158_v3, %v1154_v2  ;;  %v1153_v10 = vld [vmem:[%s3586_s29 + $0x1bd0] sm:$0xff]  ;;  %v2980_v12 = vpack.c.bf16 %v1155_v8, %v1151_v7  ;;  %v2206_v3 = vld [vmem:[%s4707_s3 + $0x38] sm:$0xff] (!%p2459_p6) }
 0x1c2   : > { %3407 = vmatprep.subr.bf16.mxu1 %v3406_v14  ;;  %v3428_v13 = vpack.c.bf16 %v1157_v11, %v1153_v10  ;;  %v261_v14 = vld [vmem:[%s3581_s25 + $0x60] sm:$0xff]  ;;  %v2237_v7 = vld [vmem:[%s4707_s3 + $0x130] sm:$0xff] (!%p2459_p6)  ;;  %v2238_v8 = vld [vmem:[%s4707_s3 + $0x138] sm:$0xff] (!%p2459_p6)  ;;  %v2171_v10 = vlaneseq (!%p2459_p6) }
 0x1c3   : > { %v2224_v11 = vld [vmem:[%s4707_s3 + $0xc8] sm:$0xff] (!%p2459_p6) }
 0x1c4   : > { %2961 = vmatpush1.bf16.msra.mxu0 %v2960_v20 }
 0x1c5   : > { %3409 = vmatpush1.bf16.msra.mxu1 %v3408_v21  ;;  %2963 = vmatprep.subr.bf16.mxu0 %v2962_v22 }
 0x1c6   : > { %3411 = vmatprep.subr.bf16.mxu1 %v3410_v26 }
 0x1c8   : > { %2965 = vmatpush1.bf16.msra.mxu0 %v2964_v32  ;;  %v2247_v32 = vld [vmem:[%s4707_s3 + $0x180] sm:$0xff] (!%p2459_p6) }
 0x1c9   : > { %3413 = vmatpush1.bf16.msra.mxu1 %v3412_v33  ;;  %2967 = vmatprep.subr.bf16.mxu0 %v2966_v34  ;;  %v2248_v33 = vld [vmem:[%s4707_s3 + $0x188] sm:$0xff] (!%p2459_p6)  ;;  %v3432_v34 = vpack.c.bf16 (!%p2459_p6), %v2200_v31, %v2199_v29  ;;  %v2210_v31 = vld [vmem:[%s4707_s3 + $0x58] sm:$0xff] (!%p2459_p6) }
 0x1ca   : > { %3415 = vmatprep.subr.bf16.mxu1 %v3414_v38  ;;  %v3462_v35 = vpack.c.bf16 (!%p2459_p6), %v2248_v33, %v2247_v32  ;;  %v2217_v38 = vld [vmem:[%s4707_s3 + $0x90] sm:$0xff] (!%p2459_p6) }
 0x1cb   : > { %v3434_v43 = vpack.c.bf16 (!%p2459_p6), %v2218_v40, %v2217_v38  ;;  %v2241_v32 = vld [vmem:[%s4707_s3 + $0x150] sm:$0xff] (!%p2459_p6)  ;;  %v2260_v40 = vld [vmem:[%s4707_s3 + $0x1e8] sm:$0xff] (!%p2459_p6) }
 0x1cc   : > { %2969 = vmatpush1.bf16.msra.mxu0 %v2968_v44  ;;  %v3436_v44 = vpack.c.bf16 (!%p2459_p6), %v2202_v42, %v2201_v41 }
 0x1cd   : > { %3417 = vmatpush1.bf16.msra.mxu1 %v3416_v45  ;;  %2971 = vmatprep.subr.bf16.mxu0 %v2970_v46  ;;  %v2249_v45 = vld [vmem:[%s4707_s3 + $0x190] sm:$0xff] (!%p2459_p6)  ;;  %v2250_v46 = vld [vmem:[%s4707_s3 + $0x198] sm:$0xff] (!%p2459_p6) }
 0x1ce   : > { %3419 = vmatprep.subr.bf16.mxu1 %v3418_v50  ;;  %v3466_v48 = vpack.c.bf16 (!%p2459_p6), %v2250_v46, %v2249_v45  ;;  %v2219_v50 = vld [vmem:[%s4707_s3 + $0xa0] sm:$0xff] (!%p2459_p6) }
 0x1cf   : > { %v3438_v53 = vpack.c.bf16 (!%p2459_p6), %v2220_v51, %v2219_v50  ;;  %v2243_v45 = vld [vmem:[%s4707_s3 + $0x160] sm:$0xff] (!%p2459_p6) }
 0x1d0   : > { %2973 = vmatpush1.bf16.msra.mxu0 %v2972_v56  ;;  %v2251_v56 = vld [vmem:[%s4707_s3 + $0x1a0] sm:$0xff] (!%p2459_p6) }
 0x1d1   : > { %3421 = vmatpush1.bf16.msra.mxu1 %v3420_v57  ;;  %2975 = vmatprep.subr.bf16.mxu0 %v2974_v58  ;;  %v2252_v57 = vld [vmem:[%s4707_s3 + $0x1a8] sm:$0xff] (!%p2459_p6)  ;;  %v2235_v58 = vld [vmem:[%s4707_s3 + $0x120] sm:$0xff] (!%p2459_p6) }
 0x1d2   : > { %3423 = vmatprep.subr.bf16.mxu1 %v3422_v62  ;;  %v3470_v61 = vpack.c.bf16 (!%p2459_p6), %v2252_v57, %v2251_v56  ;;  %v2221_v62 = vld [vmem:[%s4707_s3 + $0xb0] sm:$0xff] (!%p2459_p6)  ;;  %v3472_v1 = vpack.c.bf16 (!%p2459_p6), %v2236_v59, %v2235_v58  ;;  %v2169_v51 = vld [vmem:[%s4706_s2] sm:$0xf] (!%p2459_p6)  ;;  %v2262_v59 = vld [vmem:[%s4707_s3 + $0x1f8] sm:$0xff] (!%p2459_p6) }
 0x1d3   : > { %v3442_v2 = vpack.c.bf16 (!%p2459_p6), %v2222_v63, %v2221_v62  ;;  %v2261_v58 = vld [vmem:[%s4707_s3 + $0x1f0] sm:$0xff] (!%p2459_p6) }
 0x1d4   : > { %2977 = vmatpush1.bf16.msra.mxu0 %v2976_v4  ;;  %v2253_v4 = vld [vmem:[%s4707_s3 + $0x1b0] sm:$0xff] (!%p2459_p6) }
 0x1d5   : > { %3425 = vmatpush1.bf16.msra.mxu1 %v3424_v5  ;;  %2979 = vmatprep.subr.bf16.mxu0 %v2978_v6  ;;  %v2254_v5 = vld [vmem:[%s4707_s3 + $0x1b8] sm:$0xff] (!%p2459_p6) }
 0x1d6   : > { %3427 = vmatprep.subr.bf16.mxu1 %v3426_v9  ;;  %v3474_v6 = vpack.c.bf16 (!%p2459_p6), %v2254_v5, %v2253_v4  ;;  %v2223_v9 = vld [vmem:[%s4707_s3 + $0xc0] sm:$0xff] (!%p2459_p6)  ;;  %v2213_v4 = vld [vmem:[%s4707_s3 + $0x70] sm:$0xff] (!%p2459_p6)  ;;  %v2214_v5 = vld [vmem:[%s4707_s3 + $0x78] sm:$0xff] (!%p2459_p6) }
 0x1d8   : > { %2981 = vmatpush1.bf16.msra.mxu0 %v2980_v12  ;;  %v3444_v12 = vpack.c.bf16 (!%p2459_p6), %v2206_v3, %v2205_v0 }
 0x1d9   : > { %3429 = vmatpush1.bf16.msra.mxu1 %v3428_v13  ;;  %3431 = vmatprep.subr.bf16.mxu0 (!%p2459_p6), %v3430_v30  ;;  %v2255_v13 = vld [vmem:[%s4707_s3 + $0x1c0] sm:$0xff] (!%p2459_p6)  ;;  %v2209_v30 = vld [vmem:[%s4707_s3 + $0x50] sm:$0xff] (!%p2459_p6) }
 0x1da   : > { %3463 = vmatprep.subr.bf16.mxu1 (!%p2459_p6), %v3462_v35  ;;  %v2227_v35 = vld [vmem:[%s4707_s3 + $0xe0] sm:$0xff] (!%p2459_p6)  ;;  %v3452_v42 = vpack.c.bf16 (!%p2459_p6), %v2210_v31, %v2209_v30 }
 0x1db   : > { %1650 = vmatmul.mubr.f32.vlgmr.msra.gmra.mrb[0].mxu0 %v261_v14 }
 0x1dc   : > { %2147 = vmatmul.mubr.f32.vlgmr.msra.gmra.mrb[0].mxu1 %v261_v14  ;;  %3433 = vmatpush3.bf16.msra.mxu0 (!%p2459_p6), %v3432_v34  ;;  %v2256_v14 = vld [vmem:[%s4707_s3 + $0x1c8] sm:$0xff] (!%p2459_p6)  ;;  %v2242_v34 = vld [vmem:[%s4707_s3 + $0x158] sm:$0xff] (!%p2459_p6) }
 0x1dd   : > { %3465 = vmatpush3.bf16.msra.mxu1 (!%p2459_p6), %v3464_v39  ;;  %3435 = vmatprep.subr.bf16.mxu0 (!%p2459_p6), %v3434_v43  ;;  %v2259_v39 = vld [vmem:[%s4707_s3 + $0x1e0] sm:$0xff] (!%p2459_p6)  ;;  %v3484_v47 = vpack.c.bf16 (!%p2459_p6), %v2242_v34, %v2241_v32 }
 0x1de   : > { %3467 = vmatprep.subr.bf16.mxu1 (!%p2459_p6), %v3466_v48  ;;  %v2211_v43 = vld [vmem:[%s4707_s3 + $0x60] sm:$0xff] (!%p2459_p6)  ;;  %v3454_v48 = vpack.c.bf16 (!%p2459_p6), %v2228_v36, %v2227_v35 }
 0x1e0   : > { %3437 = vmatpush3.bf16.msra.mxu0 (!%p2459_p6), %v3436_v44  ;;  %v2212_v44 = vld [vmem:[%s4707_s3 + $0x68] sm:$0xff] (!%p2459_p6) }
 0x1e1   : > { %3469 = vmatpush3.bf16.msra.mxu1 (!%p2459_p6), %v3468_v52  ;;  %3439 = vmatprep.subr.bf16.mxu0 (!%p2459_p6), %v3438_v53  ;;  %v3486_v52 = vpack.c.bf16 (!%p2459_p6), %v2260_v40, %v2259_v39  ;;  %v2229_v53 = vld [vmem:[%s4707_s3 + $0xf0] sm:$0xff] (!%p2459_p6) }
 0x1e2   : > { %3471 = vmatprep.subr.bf16.mxu1 (!%p2459_p6), %v3470_v61  ;;  %v3456_v61 = vpack.c.bf16 (!%p2459_p6), %v2212_v44, %v2211_v43  ;;  %v3458_v3 = vpack.c.bf16 (!%p2459_p6), %v2230_v54, %v2229_v53 }
 0x1e4   : > { %3441 = vmatpush3.bf16.msra.mxu0 (!%p2459_p6), %v3440_v60 }
 0x1e5   : > { %3473 = vmatpush3.bf16.msra.mxu1 (!%p2459_p6), %v3472_v1  ;;  %3443 = vmatprep.subr.bf16.mxu0 (!%p2459_p6), %v3442_v2  ;;  %v3488_v2 = vpack.c.bf16 (!%p2459_p6), %v2244_v49, %v2243_v45 }
 0x1e6   : > { %3475 = vmatprep.subr.bf16.mxu1 (!%p2459_p6), %v3474_v6 }
 0x1e8   : > { %3445 = vmatpush3.bf16.msra.mxu0 (!%p2459_p6), %v3444_v12 }
 0x2ad   : > { %2164 = sbr.rel (%p2459_p6) target bundleno = 926 (0x39e), region = 48 }
 0x2ae   : > { %v1651_v18 = vpop.f32.mrb[0].mxu0 }
 0x2af   : > { %v2153_v20 = vadd.f32 %v1651_v18, %v245_v15  ;;  %v2148_v21 = vpop.f32.mrb[0].mxu1  ;;  %v1653_v22 = vpop.f32.mrb[1].mxu0  ;;  %v3476_v15 = vpack.c.bf16 (!%p2459_p6), %v2238_v8, %v2237_v7  ;;  %v2208_v18 = vld [vmem:[%s4707_s3 + $0x48] sm:$0xff] (!%p2459_p6)  ;;  %v3490_v7 = vpack.c.bf16 (!%p2459_p6), %v2262_v59, %v2261_v58  ;;  %v2245_v8 = vld [vmem:[%s4707_s3 + $0x170] sm:$0xff] (!%p2459_p6) }
 0x2b0   : > { %v2155_v23 = vadd.f32 %v2148_v21, %v247_v16  ;;  %v2154_v24 = vadd.f32 %v1653_v22, %v246_v17  ;;  %v2150_v25 = vpop.f32.mrb[1].mxu1  ;;  %v3446_v16 = vpack.c.bf16 (!%p2459_p6), %v2224_v11, %v2223_v9  ;;  %v2207_v17 = vld [vmem:[%s4707_s3 + $0x40] sm:$0xff] (!%p2459_p6)  ;;  %v2240_v21 = vld [vmem:[%s4707_s3 + $0x148] sm:$0xff] (!%p2459_p6)  ;;  %v2225_v22 = vld [vmem:[%s4707_s3 + $0xd0] sm:$0xff] (!%p2459_p6) }
 0x2b1   : > { %2157 = vst [vmem:[#allocation2] sm:$0xff] %v2153_v20  ;;  %v2156_v26 = vadd.f32 %v2150_v25, %v248_v19  ;;  %v2239_v19 = vld [vmem:[%s4707_s3 + $0x140] sm:$0xff] (!%p2459_p6)  ;;  %v3478_v20 = vpack.c.bf16 (!%p2459_p6), %v2256_v14, %v2255_v13  ;;  %v2257_v25 = vld [vmem:[%s4707_s3 + $0x1d0] sm:$0xff] (!%p2459_p6)  ;;  %v3448_v27 = vpack.c.bf16 (!%p2459_p6), %v2208_v18, %v2207_v17  ;;  %3477 = vmatpush3.bf16.msra.mxu1 (!%p2459_p6), %v3476_v15  ;;  %v2246_v9 = vld [vmem:[%s4707_s3 + $0x178] sm:$0xff] (!%p2459_p6) }
 0x2b2   : > { %2159 = vst [vmem:[#allocation2 + $0x10] sm:$0xff] %v2155_v23  ;;  %2158 = vst [vmem:[#allocation2 + $0x8] sm:$0xff] %v2154_v24  ;;  %v2226_v23 = vld [vmem:[%s4707_s3 + $0xd8] sm:$0xff] (!%p2459_p6)  ;;  %v2172_v24 = vshrl.u32 (!%p2459_p6), %v2171_v10, 7  ;;  %3447 = vmatprep.subr.bf16.mxu0 (!%p2459_p6), %v3446_v16  ;;  %v3480_v28 = vpack.c.bf16 (!%p2459_p6), %v2240_v21, %v2239_v19  ;;  %v3460_v13 = vpack.c.bf16 (!%p2459_p6), %v2214_v5, %v2213_v4  ;;  %v2460_v19 = vld [vmem:[%s4708_s4] ss:$0 sm:$0xff] (!%p2459_p6) }
 0x2b3   : > { %2160 = vst [vmem:[#allocation2 + $0x18] sm:$0xff] %v2156_v26  ;;  %v2258_v26 = vld [vmem:[%s4707_s3 + $0x1d8] sm:$0xff] (!%p2459_p6)  ;;  %v3450_v29 = vpack.c.bf16 (!%p2459_p6), %v2226_v23, %v2225_v22  ;;  %3479 = vmatprep.subr.bf16.mxu1 (!%p2459_p6), %v3478_v20  ;;  %3449 = vmatpush3.bf16.msra.mxu0 (!%p2459_p6), %v3448_v27  ;;  %v3492_v15 = vpack.c.bf16 (!%p2459_p6), %v2246_v9, %v2245_v8 }
 0x2b4   : > { %v3482_v33 = vpack.c.bf16 %v2258_v26, %v2257_v25  ;;  %v2177_v37 = vsub.s32 1, %v2172_v24  ;;  %v2185_v38 = vsub.s32 3, %v2172_v24  ;;  %v2173_v41 = vsub.s32 0, %v2172_v24 }
 0x2b5   : > { %v2181_v46 = vsub.s32 2, %v2172_v24  ;;  %3481 = vmatpush3.bf16.msra.mxu1 %v3480_v28  ;;  %3451 = vmatprep.subr.bf16.mxu0 %v3450_v29 }
 0x2b6   : > { %3483 = vmatprep.subr.bf16.mxu1 %v3482_v33  ;;  %v2178_v55 = vrot.slane %v2169_v51, %v2177_v37  ;;  %v2186_v57 = vrot.slane %v2169_v51, %v2185_v38  ;;  %v2174_v60 = vrot.slane %v2169_v51, %v2173_v41 }
 0x2b7   : > { %3453 = vmatpush3.bf16.msra.mxu0 %v3452_v42  ;;  %v2182_v1 = vrot.slane %v2169_v51, %v2181_v46 }
 0x2b8   : > { %v2165_v63 = vld [vmem:[#allocation2] sm:$0xff]  ;;  %3455 = vmatprep.subr.bf16.mxu0 %v3454_v48 }
 0x2b9   : > { %v2166_v50 = vld [vmem:[#allocation2 + $0x8] sm:$0xff]  ;;  %3485 = vmatpush3.bf16.msra.mxu1 %v3484_v47  ;;  %v2167_v6 = vld [vmem:[#allocation2 + $0x10] sm:$0xff]  ;;  %v2191_v12 = vadd.f32 %v2174_v60, %v2165_v63 }
 0x2ba   : > { %v2168_v56 = vld [vmem:[#allocation2 + $0x18] sm:$0xff]  ;;  %v2192_v62 = vadd.f32 %v2178_v55, %v2166_v50  ;;  %3487 = vmatprep.subr.bf16.mxu1 %v3486_v52  ;;  %v2193_v14 = vadd.f32 %v2182_v1, %v2167_v6 }
 0x2bb   : > { %v2194_v0 = vadd.f32 %v2186_v57, %v2168_v56  ;;  %3457 = vmatpush3.bf16.msra.mxu0 %v3456_v61  ;;  %v2195_v16 = vmax.f32 %v2191_v12, 0.0 }
 0x2bc   : > { %v2196_v10 = vmax.f32 %v2192_v62, 0.0  ;;  %3459 = vmatprep.subr.bf16.mxu0 %v3458_v3  ;;  %v2197_v17 = vmax.f32 %v2193_v14, 0.0 }
 0x2bd   : > { %v2198_v11 = vmax.f32 %v2194_v0, 0.0  ;;  %3489 = vmatpush3.bf16.msra.mxu1 %v3488_v2 }
 0x2be   : > { %2334 = vmatprep.mubr.f32.mxu0 %v2196_v10  ;;  %3491 = vmatprep.subr.bf16.mxu1 %v3490_v7 }
 0x2bf   : > { %2404 = vmatprep.mubr.f32.mxu1 %v2198_v11  ;;  %3461 = vmatpush3.bf16.msra.mxu0 %v3460_v13 }
 0x2c1   : > { %3493 = vmatpush3.bf16.msra.mxu1 %v3492_v15 }
 0x2c2   : > { %2335 = vmatmul.mubr.f32.vlgmr.msra.gmra.mrb[0].mxu0 %v2195_v16 }
 0x2c4   : > { %2405 = vmatmul.mubr.f32.vlgmr.msra.gmra.mrb[0].mxu1 %v2197_v17 }
 0x395   : > { %v2496_v18 = vpop.f32.mrb[0].mxu0 }
 0x396   : > { %v2497_v20 = vpop.f32.mrb[1].mxu0 }
 0x397   : > { %v2531_v21 = vpop.f32.mrb[0].mxu1  ;;  %v2498_v22 = vadd.f32 %v2497_v20, %v2496_v18 }
 0x398   : > { %v2532_v23 = vpop.f32.mrb[1].mxu1 }
 0x399   : > { %v2533_v24 = vadd.f32 %v2532_v23, %v2531_v21  ;;  %v2337_v25 = vadd.f32 %v2498_v22, %v2460_v19 }
 0x39b   : > { %v2407_v26 = vadd.f32 %v2533_v24, %v2337_v25 }
 0x39d   : > { %2410 = vst [vmem:[%s4709_s5] sm:$0xff] %v2407_v26 }
 0x39e PF: > { %s15_s18 = sadd.s32 1, %s3533_s18  }
 0x39f   : > { %p12_p7 = scmp.ge.s32.totalorder %s15_s18, 5  }
 0x3a1   :  { %14 = sbr.rel (!%p12_p7) target bundleno = 1 (0x1), region = 77 }

</bundles_post_ra>
